<compile_context>
chip_gen: v7x
topology: tpu7x:2x2x1
jax: 0.10.0
libtpu: 0.0.40
codegen_flags: <defaults>
</compile_context>

<pallas_src>
import functools

import jax
import jax.numpy as jnp
from jax.experimental import pallas as pl
from jax.experimental.pallas import tpu as pltpu

NUM_CLASSES = 2
BN_EPS = 1e-5
COMPUTE_DTYPE = jnp.bfloat16   # MXU operand dtype; accumulation stays f32

TM_MAX = 512          # M tile cap (amortizes weight re-reads / step overhead)
TK_MAX = 1024         # K tile cap
TINY_MN = 128 * 128   # below this, grid/pipeline overhead dominates -> jnp.dot
FUSED_MIN_HW = 64     # fused conv needs a reasonable per-depth-slice M tile
FUSED_MAX_HW = 16384  # keep the per-step f32 accumulator comfortably in VMEM


def _round_up(x, m):
    return (x + m - 1) // m * m


def _detect_vmem_limit_bytes():
    """Per-generation VMEM budget (v7x has 64 MiB/TC, v5e/v6e have 128 MiB)."""
    cap = None
    try:
        info = pltpu.get_tpu_info()
        for attr in ("vmem_capacity_bytes", "vmem_size_bytes", "vmem_bytes"):
            v = getattr(info, attr, None)
            if v:
                cap = int(v)
                break
    except Exception:  # pragma: no cover - defensive
        cap = None
    if cap is None:
        try:
            kind = jax.devices()[0].device_kind.lower()
        except Exception:  # pragma: no cover - defensive
            kind = ""
        cap = 64 * 1024 * 1024 if "v7" in kind else 128 * 1024 * 1024
    return int(min(cap // 2, 64 * 1024 * 1024))


VMEM_LIMIT_BYTES = _detect_vmem_limit_bytes()


# ----------------------------------------------------------------------------
# Pallas kernel 1: fused conv3d (3x3x3, stride 1, pad 1) + BN (+res) (+ReLU)
#   grid = (batch n, output depth d, depth-tap a); kh*kw taps handled in-kernel
#   by slicing the (Hp, Wp, C) halo block.  No HBM im2col.
# ----------------------------------------------------------------------------
def _fused_conv_kernel(*refs, kh, kw, Ho, Wo, relu, has_res):
    if has_res:
        x_ref, w_ref, b_ref, r_ref, o_ref, acc_ref = refs
    else:
        x_ref, w_ref, b_ref, o_ref, acc_ref = refs
        r_ref = None

    a = pl.program_id(2)

    @pl.when(a == 0)
    def _():
        acc_ref[...] = jnp.zeros_like(acc_ref)

    C = x_ref.shape[-1]
    acc = acc_ref[...]
    for b in range(kh):
        for c in range(kw):
            xt = x_ref[b:b + Ho, c:c + Wo, :].reshape(Ho * Wo, C)
            wt = w_ref[(b * kw + c) * C:(b * kw + c + 1) * C, :]
            acc = acc + jnp.dot(xt, wt, preferred_element_type=jnp.float32)
    acc_ref[...] = acc

    @pl.when(a == pl.num_programs(2) - 1)
    def _():
        y = acc_ref[...] + b_ref[...]              # BN shift (scale in weights)
        if has_res:
            y = y + r_ref[...].astype(jnp.float32)
        if relu:
            y = jnp.maximum(y, 0.0)
        o_ref[...] = y.astype(o_ref.dtype)


def _fused_conv3x3(x, p, relu, residual):
    """3x3x3 / stride-1 / pad-1 conv + folded BN (+res)(+ReLU), im2col fused."""
    N, D, H, W, C = x.shape
    Cout = p["wq"].shape[-1]
    kd = kh = kw = 3
    Do, Ho, Wo = D, H, W
    Hp, Wp = H + 2, W + 2
    MT = Ho * Wo

    xpad = jnp.pad(x.astype(COMPUTE_DTYPE),
                   ((0, 0), (1, 1), (1, 1), (1, 1), (0, 0)))
    wf = p["wq"].reshape(kd, kh * kw * C, Cout)     # bf16, BN-scale folded
    shift = p["shift"].reshape(1, Cout)

    has_res = residual is not None
    args = [xpad, wf, shift]
    in_specs = [
        pl.BlockSpec((None, None, Hp, Wp, C),
                     lambda n, d, a: (n, d + a, 0, 0, 0)),
        pl.BlockSpec((None, kh * kw * C, Cout), lambda n, d, a: (a, 0, 0)),
        pl.BlockSpec((1, Cout), lambda n, d, a: (0, 0)),
    ]
    if has_res:
        args.append(residual.astype(COMPUTE_DTYPE).reshape(N, Do, MT, Cout))
        in_specs.append(
            pl.BlockSpec((None, None, MT, Cout), lambda n, d, a: (n, d, 0, 0)))

    kernel = functools.partial(_fused_conv_kernel, kh=kh, kw=kw, Ho=Ho, Wo=Wo,
                               relu=relu, has_res=has_res)
    out = pl.pallas_call(
        kernel,
        out_shape=jax.ShapeDtypeStruct((N, Do, MT, Cout), COMPUTE_DTYPE),
        grid_spec=pltpu.PrefetchScalarGridSpec(
            num_scalar_prefetch=0,
            grid=(N, Do, kd),
            in_specs=in_specs,
            out_specs=pl.BlockSpec((None, None, MT, Cout),
                                   lambda n, d, a: (n, d, 0, 0)),
            scratch_shapes=[pltpu.VMEM((MT, Cout), jnp.float32)],
        ),
        compiler_params=pltpu.CompilerParams(
            dimension_semantics=("parallel", "parallel", "arbitrary"),
            vmem_limit_bytes=VMEM_LIMIT_BYTES),
    )(*args)
    return out.reshape(N, Do, Ho, Wo, Cout)


# ----------------------------------------------------------------------------
# Pallas kernel 2: tiled bf16 matmul (f32 acc) + bias (+ residual) (+ ReLU)
#   used for the stem, stride-2 convs, 1x1x1 downsamples, tiny spatial extents.
# ----------------------------------------------------------------------------
def _matmul_bias_kernel(*refs, relu, has_res):
    if has_res:
        x_ref, w_ref, b_ref, r_ref, o_ref, acc_ref = refs
    else:
        x_ref, w_ref, b_ref, o_ref, acc_ref = refs
        r_ref = None

    k = pl.program_id(2)

    @pl.when(k == 0)
    def _():
        acc_ref[...] = jnp.zeros_like(acc_ref)

    acc_ref[...] += jnp.dot(x_ref[...], w_ref[...],
                            preferred_element_type=jnp.float32)

    @pl.when(k == pl.num_programs(2) - 1)
    def _():
        y = acc_ref[...] + b_ref[...]
        if has_res:
            y = y + r_ref[...].astype(jnp.float32)
        if relu:
            y = jnp.maximum(y, 0.0)
        o_ref[...] = y.astype(o_ref.dtype)


def matmul_bias(x, w, bias, residual=None, relu=False, out_dtype=COMPUTE_DTYPE):
    """out = act( x @ w + bias (+ residual) ); x:(M,K), w:(K,N), bias:(N,)."""
    M, K = x.shape
    K2, N = w.shape
    assert K == K2

    # Tiny problems: grid/pipeline overhead dominates -> plain XLA dot.
    if M * N < TINY_MN:
        y = jnp.dot(x.astype(jnp.float32), w.astype(jnp.float32),
                    preferred_element_type=jnp.float32)
        y = y + bias[None, :].astype(jnp.float32)
        if residual is not None:
            y = y + residual.astype(jnp.float32)
        if relu:
            y = jnp.maximum(y, 0.0)
        return y.astype(out_dtype)

    # --- tiling --------------------------------------------------------
    tm = min(TM_MAX, _round_up(M, 128))
    Mp = _round_up(M, tm)
    tn = N                                   # full output width: j axis == 1
    if K % 128 == 0:                         # pick tk that divides K exactly
        Kp = K
        kb = K // 128
        d = max(dd for dd in range(1, kb + 1)
                if kb % dd == 0 and dd * 128 <= TK_MAX)
        tk = d * 128
    elif K <= TK_MAX:                        # single full-K block, no padding
        Kp = K
        tk = K
    else:                                    # safety net (callers pre-pad taps)
        Kp = _round_up(K, 128)
        kb = Kp // 128
        d = max(dd for dd in range(1, kb + 1)
                if kb % dd == 0 and dd * 128 <= TK_MAX)
        tk = d * 128

    xp = x.astype(COMPUTE_DTYPE)
    if (Mp, Kp) != (M, K):
        xp = jnp.pad(xp, ((0, Mp - M), (0, Kp - K)))
    wp = w.astype(COMPUTE_DTYPE)
    if Kp != K:
        wp = jnp.pad(wp, ((0, Kp - K), (0, 0)))
    bp = bias.astype(jnp.float32).reshape(1, N)

    has_res = residual is not None
    args = [xp, wp, bp]
    in_specs = [
        pl.BlockSpec((tm, tk), lambda i, j, k: (i, k)),
        pl.BlockSpec((tk, tn), lambda i, j, k: (k, j)),
        pl.BlockSpec((1, tn), lambda i, j, k: (0, j)),
    ]
    if has_res:
        rp = residual.astype(COMPUTE_DTYPE)
        if Mp != M:
            rp = jnp.pad(rp, ((0, Mp - M), (0, 0)))
        args.append(rp)
        in_specs.append(pl.BlockSpec((tm, tn), lambda i, j, k: (i, j)))

    kernel = functools.partial(_matmul_bias_kernel, relu=relu, has_res=has_res)
    out = pl.pallas_call(
        kernel,
        out_shape=jax.ShapeDtypeStruct((Mp, N), out_dtype),
        grid_spec=pltpu.PrefetchScalarGridSpec(
            num_scalar_prefetch=0,
            grid=(Mp // tm, 1, Kp // tk),
            in_specs=in_specs,
            out_specs=pl.BlockSpec((tm, tn), lambda i, j, k: (i, j)),
            scratch_shapes=[pltpu.VMEM((tm, tn), jnp.float32)],
        ),
        compiler_params=pltpu.CompilerParams(
            dimension_semantics=("parallel", "parallel", "arbitrary"),
            vmem_limit_bytes=VMEM_LIMIT_BYTES),
    )(*args)
    if Mp != M:
        out = out[:M]
    return out


# ----------------------------------------------------------------------------
# Conv3d lowering glue
# ----------------------------------------------------------------------------
def im2col3d(x, ksize, stride, padding, extra_zero_taps=0):
    """x: (N,D,H,W,C) -> (N*Do*Ho*Wo, (taps+extra)*C), tap-major patches."""
    N, D, H, W, C = x.shape
    kd, kh, kw = ksize
    sd, sh, sw = stride
    pd, ph, pw = padding
    xp = jnp.pad(x, ((0, 0), (pd, pd), (ph, ph), (pw, pw), (0, 0)))
    Do = (D + 2 * pd - kd) // sd + 1
    Ho = (H + 2 * ph - kh) // sh + 1
    Wo = (W + 2 * pw - kw) // sw + 1
    cols = []
    for a in range(kd):
        for b in range(kh):
            for c in range(kw):
                cols.append(xp[:, a:a + sd * Do:sd, b:b + sh * Ho:sh,
                               c:c + sw * Wo:sw, :])
    for _ in range(extra_zero_taps):       # fold K padding into construction
        cols.append(jnp.zeros_like(cols[0]))
    col = jnp.stack(cols, axis=-2)         # (N, Do, Ho, Wo, taps, C)
    col = col.reshape(N * Do * Ho * Wo, (kd * kh * kw + extra_zero_taps) * C)
    return col, (Do, Ho, Wo)


def conv3d_bn(x, p, ksize, stride, padding, relu, residual=None):
    """Conv3d(bias=False) + folded eval BatchNorm3d (+residual) (+ReLU).

    x / residual / output are channels-last NDHWC bf16.  p holds the
    pre-folded weights: wq (kd*kh*kw, Cin, Cout) bf16 and shift (Cout,) f32.
    """
    N, D, H, W, C = x.shape
    kd, kh, kw = ksize
    sd, sh, sw = stride
    pd, ph, pw = padding
    Cout = p["wq"].shape[-1]
    Do = (D + 2 * pd - kd) // sd + 1
    Ho = (H + 2 * ph - kh) // sh + 1
    Wo = (W + 2 * pw - kw) // sw + 1

    if (ksize == (3, 3, 3) and stride == (1, 1, 1) and padding == (1, 1, 1)
            and FUSED_MIN_HW <= Ho * Wo <= FUSED_MAX_HW):
        return _fused_conv3x3(x, p, relu, residual)

    # im2col path: stem, stride-2 convs, 1x1x1 downsamples, tiny spatial.
    taps = kd * kh * kw
    K = taps * C
    extra = 0
    if K > TK_MAX and K % 128 != 0:
        while ((taps + extra) * C) % 128 != 0:
            extra += 1
    col, _ = im2col3d(x, ksize, stride, padding, extra_zero_taps=extra)
    wq = p["wq"]
    if extra:
        wq = jnp.pad(wq, ((0, extra), (0, 0), (0, 0)))
    wmat = wq.reshape((taps + extra) * C, Cout)
    res2d = None
    if residual is not None:
        res2d = residual.reshape(N * Do * Ho * Wo, Cout)
    out2d = matmul_bias(col, wmat, p["shift"], residual=res2d, relu=relu)
    return out2d.reshape(N, Do, Ho, Wo, Cout)


def basic_block(x, p, stride):
    """torchvision VideoResNet BasicBlock (Conv3DSimple), channels-last."""
    identity = x
    out = conv3d_bn(x, p["conv1"], (3, 3, 3), (stride,) * 3, (1, 1, 1),
                    relu=True)
    if "downsample" in p:
        identity = conv3d_bn(x, p["downsample"], (1, 1, 1), (stride,) * 3,
                             (0, 0, 0), relu=False)
    # conv2 + bn2 + residual add + final ReLU fused in one Pallas call
    out = conv3d_bn(out, p["conv2"], (3, 3, 3), (1, 1, 1), (1, 1, 1),
                    relu=True, residual=identity)
    return out


# ----------------------------------------------------------------------------
# Deterministic synthetic parameters (shapes of r3d_18 with modified stem/fc)
# ----------------------------------------------------------------------------
def _init_conv(key, cout, cin, k):
    kd, kh, kw = k
    fan_in = cin * kd * kh * kw
    return jax.random.normal(key, (cout, cin, kd, kh, kw),
                             jnp.float32) * jnp.sqrt(2.0 / fan_in)


def _init_bn(key, c):
    k1, k2, k3, k4 = jax.random.split(key, 4)
    return dict(
        gamma=1.0 + 0.1 * jax.random.normal(k1, (c,), jnp.float32),
        beta=0.05 * jax.random.normal(k2, (c,), jnp.float32),
        mean=0.05 * jax.random.normal(k3, (c,), jnp.float32),
        var=1.0 + 0.1 * jax.random.uniform(k4, (c,), jnp.float32),
    )


def _make_conv_bn(key, cout, cin, k):
    kw_, kb = jax.random.split(key)
    p = dict(w=_init_conv(kw_, cout, cin, k))
    p.update(_init_bn(kb, cout))
    return p


def init_params(seed=0):
    key = jax.random.PRNGKey(seed)

    def nk():
        nonlocal key
        key, sub = jax.random.split(key)
        return sub

    params = {"stem": _make_conv_bn(nk(), 64, 1, (3, 7, 7))}  # modified stem
    in_ch = 64
    for li, out_ch in enumerate([64, 128, 256, 512], start=1):
        blocks = []
        for bi in range(2):
            stride = 2 if (li > 1 and bi == 0) else 1
            blk = {
                "conv1": _make_conv_bn(nk(), out_ch,
                                       in_ch if bi == 0 else out_ch,
                                       (3, 3, 3)),
                "conv2": _make_conv_bn(nk(), out_ch, out_ch, (3, 3, 3)),
            }
            if bi == 0 and (stride != 1 or in_ch != out_ch):
                blk["downsample"] = _make_conv_bn(nk(), out_ch, in_ch,
                                                  (1, 1, 1))
            blocks.append(blk)
        params[f"layer{li}"] = blocks
        in_ch = out_ch
    params["fc"] = dict(
        w=jax.random.normal(nk(), (NUM_CLASSES, 512), jnp.float32)
        * (1.0 / jnp.sqrt(512.0)),
        b=0.01 * jax.random.normal(nk(), (NUM_CLASSES,), jnp.float32),
    )
    return params


# ----------------------------------------------------------------------------
# One-time parameter prep: fold BN scale, transpose, cast to bf16
# ----------------------------------------------------------------------------
def _prep_conv_bn(p):
    w = p["w"].astype(jnp.float32)                 # (Cout, Cin, kd, kh, kw)
    scale = p["gamma"] / jnp.sqrt(p["var"] + BN_EPS)
    shift = p["beta"] - p["mean"] * scale
    Cout, Cin = w.shape[0], w.shape[1]
    wq = w * scale[:, None, None, None, None]       # BN scale folded in
    wq = jnp.transpose(wq, (2, 3, 4, 1, 0)).reshape(-1, Cin, Cout)
    return {"wq": wq.astype(COMPUTE_DTYPE), "shift": shift.astype(jnp.float32)}


def prepare_params(params):
    """Run once outside jit: BN-fold + layout + cast of all conv weights."""
    prepped = {"stem": _prep_conv_bn(params["stem"])}
    for li in range(1, 5):
        blocks = []
        for blk in params[f"layer{li}"]:
            pb = {"conv1": _prep_conv_bn(blk["conv1"]),
                  "conv2": _prep_conv_bn(blk["conv2"])}
            if "downsample" in blk:
                pb["downsample"] = _prep_conv_bn(blk["downsample"])
            blocks.append(pb)
        prepped[f"layer{li}"] = blocks
    prepped["fc"] = {"w": params["fc"]["w"].T.astype(jnp.float32),
                     "b": params["fc"]["b"].astype(jnp.float32)}
    return prepped


# ----------------------------------------------------------------------------
# Full forward pass (MRIModel.forward == self.resnet(x))
# ----------------------------------------------------------------------------
def mri_model_forward(params, x):
    # x: (N, 1, D, H, W) f32 (PyTorch NCDHW).  Convert once to channels-last
    # bf16; all intermediate feature maps stay NDHWC bf16.
    x = x.astype(COMPUTE_DTYPE).transpose(0, 2, 3, 4, 1)      # (N, D, H, W, 1)
    out = conv3d_bn(x, params["stem"], (3, 7, 7), (1, 2, 2), (1, 3, 3),
                    relu=True)
    for li in range(1, 5):
        for bi, blk in enumerate(params[f"layer{li}"]):
            stride = 2 if (li > 1 and bi == 0) else 1
            out = basic_block(out, blk, stride)
    # AdaptiveAvgPool3d(1).  TODO(synk): pooling left to XLA (few elements).
    feat = jnp.mean(out.astype(jnp.float32), axis=(1, 2, 3))   # (N, 512)
    # fc = Linear(512, 2): M=batch, N=2 -> tiny-matmul fallback inside
    # matmul_bias (grid overhead would dominate a Pallas call here).
    logits = matmul_bias(feat, params["fc"]["w"], params["fc"]["b"],
                         relu=False, out_dtype=jnp.float32)
    return logits


if __name__ == "__main__":
    key = jax.random.PRNGKey(0)
    raw_params = init_params(seed=0)
    params = prepare_params(raw_params)        # one-time prep, outside jit
    # small but shape-consistent input: batch=2, 1 channel, D=8, H=W=16
    x = jax.random.normal(key, (2, 1, 8, 16, 16), jnp.float32)

    fwd = jax.jit(mri_model_forward)
    logits = fwd(params, x)
    jax.block_until_ready(logits)

    assert logits.shape == (2, NUM_CLASSES), logits.shape
    assert bool(jnp.all(jnp.isfinite(logits)))
    print("KERNEL_OK")
</pallas_src>

<mosaic_0001>
module attributes {stable_mosaic.version = 11 : i64} {
  func.func @_matmul_bias_kernel(%arg0: i32, %arg1: i32, %arg2: i32, %arg3: memref<512x147xbf16, #tpu.memory_space<vmem>>, %arg4: memref<147x64xbf16, #tpu.memory_space<vmem>>, %arg5: memref<1x64xf32, #tpu.memory_space<vmem>>, %arg6: memref<512x64xbf16, #tpu.memory_space<vmem>>, %arg7: memref<512x64xf32, #tpu.memory_space<vmem>>) attributes {dimension_semantics = [#tpu.dimension_semantics<parallel>, #tpu.dimension_semantics<parallel>, #tpu.dimension_semantics<arbitrary>], iteration_bounds = array<i64: 2, 1, 1>, scalar_prefetch = 0 : i64, scratch_operands = 1 : i64, tpu.core_type = #tpu.core_type<tc>, window_params = [{transform_indices = @transform_0, window_bounds = array<i64: 512, 147>}, {transform_indices = @transform_1, window_bounds = array<i64: 147, 64>}, {transform_indices = @transform_2, window_bounds = array<i64: 1, 64>}, {transform_indices = @transform_3, window_bounds = array<i64: 512, 64>}]} {
    %c0_i32 = arith.constant 0 : i32
    %0 = arith.cmpi eq, %arg2, %c0_i32 : i32
    %1 = arith.extui %0 : i1 to i32
    %c0_i32_0 = arith.constant 0 : i32
    %2 = arith.cmpi ne, %1, %c0_i32_0 : i32
    scf.if %2 {
      %cst_10 = arith.constant 0.000000e+00 : f32
      %12 = vector.broadcast %cst_10 : f32 to vector<512x64xf32>
      %c0_11 = arith.constant 0 : index
      %c0_12 = arith.constant 0 : index
      %13 = vector.load %arg7[%c0_11, %c0_12] : memref<512x64xf32, #tpu.memory_space<vmem>>, vector<512x64xf32>
      tpu.vector_store %arg7[%c0_11, %c0_12], %12 {strides = array<i32>} : memref<512x64xf32, #tpu.memory_space<vmem>>, vector<512x64xf32>,
    } else {
    }
    %c0 = arith.constant 0 : index
    %c0_1 = arith.constant 0 : index
    %3 = vector.load %arg7[%c0, %c0_1] : memref<512x64xf32, #tpu.memory_space<vmem>>, vector<512x64xf32>
    %c0_2 = arith.constant 0 : index
    %c0_3 = arith.constant 0 : index
    %4 = vector.load %arg3[%c0_2, %c0_3] : memref<512x147xbf16, #tpu.memory_space<vmem>>, vector<512x147xbf16>
    %c0_4 = arith.constant 0 : index
    %c0_5 = arith.constant 0 : index
    %5 = vector.load %arg4[%c0_4, %c0_5] : memref<147x64xbf16, #tpu.memory_space<vmem>>, vector<147x64xbf16>
    %cst = arith.constant dense<0.000000e+00> : vector<512x64xf32>
    %6 = tpu.matmul %4, %5, %cst {dimension_numbers = #tpu.dot_dimension_numbers<[1], [0], [0], [1], [0, 0, 1, 1], [], []>} : vector<512x147xbf16>, vector<147x64xbf16>, vector<512x64xf32> -> vector<512x64xf32>
    %7 = arith.addf %3, %6 : vector<512x64xf32>
    %c0_6 = arith.constant 0 : index
    %c0_7 = arith.constant 0 : index
    %8 = vector.load %arg7[%c0_6, %c0_7] : memref<512x64xf32, #tpu.memory_space<vmem>>, vector<512x64xf32>
    tpu.vector_store %arg7[%c0_6, %c0_7], %7 {strides = array<i32>} : memref<512x64xf32, #tpu.memory_space<vmem>>, vector<512x64xf32>,
    %c0_i32_8 = arith.constant 0 : i32
    %9 = arith.cmpi eq, %arg2, %c0_i32_8 : i32
    %10 = arith.extui %9 : i1 to i32
    %c0_i32_9 = arith.constant 0 : i32
    %11 = arith.cmpi ne, %10, %c0_i32_9 : i32
    scf.if %11 {
      %c0_10 = arith.constant 0 : index
      %c0_11 = arith.constant 0 : index
      %12 = vector.load %arg7[%c0_10, %c0_11] : memref<512x64xf32, #tpu.memory_space<vmem>>, vector<512x64xf32>
      %c0_12 = arith.constant 0 : index
      %c0_13 = arith.constant 0 : index
      %13 = vector.load %arg5[%c0_12, %c0_13] : memref<1x64xf32, #tpu.memory_space<vmem>>, vector<1x64xf32>
      %14 = vector.broadcast %13 : vector<1x64xf32> to vector<512x64xf32>
      %15 = arith.addf %12, %14 : vector<512x64xf32>
      %cst_14 = arith.constant 0.000000e+00 : f32
      %16 = vector.broadcast %cst_14 : f32 to vector<512x64xf32>
      %17 = arith.maximumf %15, %16 : vector<512x64xf32>
      %18 = arith.truncf %17 : vector<512x64xf32> to vector<512x64xbf16>
      %c0_15 = arith.constant 0 : index
      %c0_16 = arith.constant 0 : index
      %19 = vector.load %arg6[%c0_15, %c0_16] : memref<512x64xbf16, #tpu.memory_space<vmem>>, vector<512x64xbf16>
      tpu.vector_store %arg6[%c0_15, %c0_16], %18 {strides = array<i32>} : memref<512x64xbf16, #tpu.memory_space<vmem>>, vector<512x64xbf16>,
    } else {
    }
    return
  }
  func.func @transform_0(%arg0: i32, %arg1: i32, %arg2: i32) -> (i32, i32) {
    %c0_i32 = arith.constant 0 : i32
    return %arg0, %arg2 : i32, i32
  }
  func.func @transform_1(%arg0: i32, %arg1: i32, %arg2: i32) -> (i32, i32) {
    %c0_i32 = arith.constant 0 : i32
    return %arg2, %arg1 : i32, i32
  }
  func.func @transform_2(%arg0: i32, %arg1: i32, %arg2: i32) -> (i32, i32) {
    %c0_i32 = arith.constant 0 : i32
    %c0_i32_0 = arith.constant 0 : i32
    return %c0_i32, %arg1 : i32, i32
  }
  func.func @transform_3(%arg0: i32, %arg1: i32, %arg2: i32) -> (i32, i32) {
    %c0_i32 = arith.constant 0 : i32
    return %arg0, %arg1 : i32, i32
  }
}

module attributes {stable_mosaic.version = 11 : i64} {
  func.func @_fused_conv_kernel(%arg0: i32, %arg1: i32, %arg2: i32, %arg3: memref<1x1x10x10x64xbf16, #tpu.memory_space<vmem>>, %arg4: memref<1x576x64xbf16, #tpu.memory_space<vmem>>, %arg5: memref<1x64xf32, #tpu.memory_space<vmem>>, %arg6: memref<1x1x64x64xbf16, #tpu.memory_space<vmem>>, %arg7: memref<1x1x64x64xbf16, #tpu.memory_space<vmem>>, %arg8: memref<64x64xf32, #tpu.memory_space<vmem>>) attributes {dimension_semantics = [#tpu.dimension_semantics<parallel>, #tpu.dimension_semantics<parallel>, #tpu.dimension_semantics<arbitrary>], iteration_bounds = array<i64: 2, 8, 3>, scalar_prefetch = 0 : i64, scratch_operands = 1 : i64, tpu.core_type = #tpu.core_type<tc>, window_params = [{transform_indices = @transform_0, window_bounds = array<i64: 1, 1, 10, 10, 64>}, {transform_indices = @transform_1, window_bounds = array<i64: 1, 576, 64>}, {pipeline_mode = #tpu.pipeline_mode<synchronous>, transform_indices = @transform_2, window_bounds = array<i64: 1, 64>}, {transform_indices = @transform_3, window_bounds = array<i64: 1, 1, 64, 64>}, {transform_indices = @transform_4, window_bounds = array<i64: 1, 1, 64, 64>}]} {
    %c0_i32 = arith.constant 0 : i32
    %0 = arith.cmpi eq, %arg2, %c0_i32 : i32
    %1 = arith.extui %0 : i1 to i32
    %c0_i32_0 = arith.constant 0 : i32
    %2 = arith.cmpi ne, %1, %c0_i32_0 : i32
    scf.if %2 {
      %cst_75 = arith.constant 0.000000e+00 : f32
      %71 = vector.broadcast %cst_75 : f32 to vector<64x64xf32>
      %c0_76 = arith.constant 0 : index
      %c0_77 = arith.constant 0 : index
      %72 = vector.load %arg8[%c0_76, %c0_77] : memref<64x64xf32, #tpu.memory_space<vmem>>, vector<64x64xf32>
      tpu.vector_store %arg8[%c0_76, %c0_77], %71 {strides = array<i32>} : memref<64x64xf32, #tpu.memory_space<vmem>>, vector<64x64xf32>,
    } else {
    }
    %c0 = arith.constant 0 : index
    %c0_1 = arith.constant 0 : index
    %3 = vector.load %arg8[%c0, %c0_1] : memref<64x64xf32, #tpu.memory_space<vmem>>, vector<64x64xf32>
    %c0_2 = arith.constant 0 : index
    %c0_3 = arith.constant 0 : index
    %c0_4 = arith.constant 0 : index
    %c0_5 = arith.constant 0 : index
    %c0_6 = arith.constant 0 : index
    %4 = vector.load %arg3[%c0_2, %c0_3, %c0_4, %c0_5, %c0_6] : memref<1x1x10x10x64xbf16, #tpu.memory_space<vmem>>, vector<1x1x8x8x64xbf16>
    %5 = vector.shape_cast %4 : vector<1x1x8x8x64xbf16> to vector<8x8x64xbf16>
    %6 = vector.shape_cast %5 : vector<8x8x64xbf16> to vector<64x64xbf16>
    %c0_7 = arith.constant 0 : index
    %c0_8 = arith.constant 0 : index
    %c0_9 = arith.constant 0 : index
    %7 = vector.load %arg4[%c0_7, %c0_8, %c0_9] : memref<1x576x64xbf16, #tpu.memory_space<vmem>>, vector<1x64x64xbf16>
    %8 = vector.shape_cast %7 : vector<1x64x64xbf16> to vector<64x64xbf16>
    %cst = arith.constant dense<0.000000e+00> : vector<64x64xf32>
    %9 = tpu.matmul %6, %8, %cst {dimension_numbers = #tpu.dot_dimension_numbers<[1], [0], [0], [1], [0, 0, 1, 1], [], []>} : vector<64x64xbf16>, vector<64x64xbf16>, vector<64x64xf32> -> vector<64x64xf32>
    %10 = arith.addf %3, %9 : vector<64x64xf32>
    %c0_10 = arith.constant 0 : index
    %c0_11 = arith.constant 0 : index
    %c0_12 = arith.constant 0 : index
    %c1 = arith.constant 1 : index
    %c0_13 = arith.constant 0 : index
    %11 = vector.load %arg3[%c0_10, %c0_11, %c0_12, %c1, %c0_13] : memref<1x1x10x10x64xbf16, #tpu.memory_space<vmem>>, vector<1x1x8x8x64xbf16>
    %12 = vector.shape_cast %11 : vector<1x1x8x8x64xbf16> to vector<8x8x64xbf16>
    %13 = vector.shape_cast %12 : vector<8x8x64xbf16> to vector<64x64xbf16>
    %c0_14 = arith.constant 0 : index
    %c64 = arith.constant 64 : index
    %c0_15 = arith.constant 0 : index
    %14 = vector.load %arg4[%c0_14, %c64, %c0_15] : memref<1x576x64xbf16, #tpu.memory_space<vmem>>, vector<1x64x64xbf16>
    %15 = vector.shape_cast %14 : vector<1x64x64xbf16> to vector<64x64xbf16>
    %cst_16 = arith.constant dense<0.000000e+00> : vector<64x64xf32>
    %16 = tpu.matmul %13, %15, %cst_16 {dimension_numbers = #tpu.dot_dimension_numbers<[1], [0], [0], [1], [0, 0, 1, 1], [], []>} : vector<64x64xbf16>, vector<64x64xbf16>, vector<64x64xf32> -> vector<64x64xf32>
    %17 = arith.addf %10, %16 : vector<64x64xf32>
    %c0_17 = arith.constant 0 : index
    %c0_18 = arith.constant 0 : index
    %c0_19 = arith.constant 0 : index
    %c2 = arith.constant 2 : index
    %c0_20 = arith.constant 0 : index
    %18 = vector.load %arg3[%c0_17, %c0_18, %c0_19, %c2, %c0_20] : memref<1x1x10x10x64xbf16, #tpu.memory_space<vmem>>, vector<1x1x8x8x64xbf16>
    %19 = vector.shape_cast %18 : vector<1x1x8x8x64xbf16> to vector<8x8x64xbf16>
    %20 = vector.shape_cast %19 : vector<8x8x64xbf16> to vector<64x64xbf16>
    %c0_21 = arith.constant 0 : index
    %c128 = arith.constant 128 : index
    %c0_22 = arith.constant 0 : index
    %21 = vector.load %arg4[%c0_21, %c128, %c0_22] : memref<1x576x64xbf16, #tpu.memory_space<vmem>>, vector<1x64x64xbf16>
    %22 = vector.shape_cast %21 : vector<1x64x64xbf16> to vector<64x64xbf16>
    %cst_23 = arith.constant dense<0.000000e+00> : vector<64x64xf32>
    %23 = tpu.matmul %20, %22, %cst_23 {dimension_numbers = #tpu.dot_dimension_numbers<[1], [0], [0], [1], [0, 0, 1, 1], [], []>} : vector<64x64xbf16>, vector<64x64xbf16>, vector<64x64xf32> -> vector<64x64xf32>
    %24 = arith.addf %17, %23 : vector<64x64xf32>
    %c0_24 = arith.constant 0 : index
    %c0_25 = arith.constant 0 : index
    %c1_26 = arith.constant 1 : index
    %c0_27 = arith.constant 0 : index
    %c0_28 = arith.constant 0 : index
    %25 = vector.load %arg3[%c0_24, %c0_25, %c1_26, %c0_27, %c0_28] : memref<1x1x10x10x64xbf16, #tpu.memory_space<vmem>>, vector<1x1x8x8x64xbf16>
    %26 = vector.shape_cast %25 : vector<1x1x8x8x64xbf16> to vector<8x8x64xbf16>
    %27 = vector.shape_cast %26 : vector<8x8x64xbf16> to vector<64x64xbf16>
    %c0_29 = arith.constant 0 : index
    %c192 = arith.constant 192 : index
    %c0_30 = arith.constant 0 : index
    %28 = vector.load %arg4[%c0_29, %c192, %c0_30] : memref<1x576x64xbf16, #tpu.memory_space<vmem>>, vector<1x64x64xbf16>
    %29 = vector.shape_cast %28 : vector<1x64x64xbf16> to vector<64x64xbf16>
    %cst_31 = arith.constant dense<0.000000e+00> : vector<64x64xf32>
    %30 = tpu.matmul %27, %29, %cst_31 {dimension_numbers = #tpu.dot_dimension_numbers<[1], [0], [0], [1], [0, 0, 1, 1], [], []>} : vector<64x64xbf16>, vector<64x64xbf16>, vector<64x64xf32> -> vector<64x64xf32>
    %31 = arith.addf %24, %30 : vector<64x64xf32>
    %c0_32 = arith.constant 0 : index
    %c0_33 = arith.constant 0 : index
    %c1_34 = arith.constant 1 : index
    %c1_35 = arith.constant 1 : index
    %c0_36 = arith.constant 0 : index
    %32 = vector.load %arg3[%c0_32, %c0_33, %c1_34, %c1_35, %c0_36] : memref<1x1x10x10x64xbf16, #tpu.memory_space<vmem>>, vector<1x1x8x8x64xbf16>
    %33 = vector.shape_cast %32 : vector<1x1x8x8x64xbf16> to vector<8x8x64xbf16>
    %34 = vector.shape_cast %33 : vector<8x8x64xbf16> to vector<64x64xbf16>
    %c0_37 = arith.constant 0 : index
    %c256 = arith.constant 256 : index
    %c0_38 = arith.constant 0 : index
    %35 = vector.load %arg4[%c0_37, %c256, %c0_38] : memref<1x576x64xbf16, #tpu.memory_space<vmem>>, vector<1x64x64xbf16>
    %36 = vector.shape_cast %35 : vector<1x64x64xbf16> to vector<64x64xbf16>
    %cst_39 = arith.constant dense<0.000000e+00> : vector<64x64xf32>
    %37 = tpu.matmul %34, %36, %cst_39 {dimension_numbers = #tpu.dot_dimension_numbers<[1], [0], [0], [1], [0, 0, 1, 1], [], []>} : vector<64x64xbf16>, vector<64x64xbf16>, vector<64x64xf32> -> vector<64x64xf32>
    %38 = arith.addf %31, %37 : vector<64x64xf32>
    %c0_40 = arith.constant 0 : index
    %c0_41 = arith.constant 0 : index
    %c1_42 = arith.constant 1 : index
    %c2_43 = arith.constant 2 : index
    %c0_44 = arith.constant 0 : index
    %39 = vector.load %arg3[%c0_40, %c0_41, %c1_42, %c2_43, %c0_44] : memref<1x1x10x10x64xbf16, #tpu.memory_space<vmem>>, vector<1x1x8x8x64xbf16>
    %40 = vector.shape_cast %39 : vector<1x1x8x8x64xbf16> to vector<8x8x64xbf16>
    %41 = vector.shape_cast %40 : vector<8x8x64xbf16> to vector<64x64xbf16>
    %c0_45 = arith.constant 0 : index
    %c320 = arith.constant 320 : index
    %c0_46 = arith.constant 0 : index
    %42 = vector.load %arg4[%c0_45, %c320, %c0_46] : memref<1x576x64xbf16, #tpu.memory_space<vmem>>, vector<1x64x64xbf16>
    %43 = vector.shape_cast %42 : vector<1x64x64xbf16> to vector<64x64xbf16>
    %cst_47 = arith.constant dense<0.000000e+00> : vector<64x64xf32>
    %44 = tpu.matmul %41, %43, %cst_47 {dimension_numbers = #tpu.dot_dimension_numbers<[1], [0], [0], [1], [0, 0, 1, 1], [], []>} : vector<64x64xbf16>, vector<64x64xbf16>, vector<64x64xf32> -> vector<64x64xf32>
    %45 = arith.addf %38, %44 : vector<64x64xf32>
    %c0_48 = arith.constant 0 : index
    %c0_49 = arith.constant 0 : index
    %c2_50 = arith.constant 2 : index
    %c0_51 = arith.constant 0 : index
    %c0_52 = arith.constant 0 : index
    %46 = vector.load %arg3[%c0_48, %c0_49, %c2_50, %c0_51, %c0_52] : memref<1x1x10x10x64xbf16, #tpu.memory_space<vmem>>, vector<1x1x8x8x64xbf16>
    %47 = vector.shape_cast %46 : vector<1x1x8x8x64xbf16> to vector<8x8x64xbf16>
    %48 = vector.shape_cast %47 : vector<8x8x64xbf16> to vector<64x64xbf16>
    %c0_53 = arith.constant 0 : index
    %c384 = arith.constant 384 : index
    %c0_54 = arith.constant 0 : index
    %49 = vector.load %arg4[%c0_53, %c384, %c0_54] : memref<1x576x64xbf16, #tpu.memory_space<vmem>>, vector<1x64x64xbf16>
    %50 = vector.shape_cast %49 : vector<1x64x64xbf16> to vector<64x64xbf16>
    %cst_55 = arith.constant dense<0.000000e+00> : vector<64x64xf32>
    %51 = tpu.matmul %48, %50, %cst_55 {dimension_numbers = #tpu.dot_dimension_numbers<[1], [0], [0], [1], [0, 0, 1, 1], [], []>} : vector<64x64xbf16>, vector<64x64xbf16>, vector<64x64xf32> -> vector<64x64xf32>
    %52 = arith.addf %45, %51 : vector<64x64xf32>
    %c0_56 = arith.constant 0 : index
    %c0_57 = arith.constant 0 : index
    %c2_58 = arith.constant 2 : index
    %c1_59 = arith.constant 1 : index
    %c0_60 = arith.constant 0 : index
    %53 = vector.load %arg3[%c0_56, %c0_57, %c2_58, %c1_59, %c0_60] : memref<1x1x10x10x64xbf16, #tpu.memory_space<vmem>>, vector<1x1x8x8x64xbf16>
    %54 = vector.shape_cast %53 : vector<1x1x8x8x64xbf16> to vector<8x8x64xbf16>
    %55 = vector.shape_cast %54 : vector<8x8x64xbf16> to vector<64x64xbf16>
    %c0_61 = arith.constant 0 : index
    %c448 = arith.constant 448 : index
    %c0_62 = arith.constant 0 : index
    %56 = vector.load %arg4[%c0_61, %c448, %c0_62] : memref<1x576x64xbf16, #tpu.memory_space<vmem>>, vector<1x64x64xbf16>
    %57 = vector.shape_cast %56 : vector<1x64x64xbf16> to vector<64x64xbf16>
    %cst_63 = arith.constant dense<0.000000e+00> : vector<64x64xf32>
    %58 = tpu.matmul %55, %57, %cst_63 {dimension_numbers = #tpu.dot_dimension_numbers<[1], [0], [0], [1], [0, 0, 1, 1], [], []>} : vector<64x64xbf16>, vector<64x64xbf16>, vector<64x64xf32> -> vector<64x64xf32>
    %59 = arith.addf %52, %58 : vector<64x64xf32>
    %c0_64 = arith.constant 0 : index
    %c0_65 = arith.constant 0 : index
    %c2_66 = arith.constant 2 : index
    %c2_67 = arith.constant 2 : index
    %c0_68 = arith.constant 0 : index
    %60 = vector.load %arg3[%c0_64, %c0_65, %c2_66, %c2_67, %c0_68] : memref<1x1x10x10x64xbf16, #tpu.memory_space<vmem>>, vector<1x1x8x8x64xbf16>
    %61 = vector.shape_cast %60 : vector<1x1x8x8x64xbf16> to vector<8x8x64xbf16>
    %62 = vector.shape_cast %61 : vector<8x8x64xbf16> to vector<64x64xbf16>
    %c0_69 = arith.constant 0 : index
    %c512 = arith.constant 512 : index
    %c0_70 = arith.constant 0 : index
    %63 = vector.load %arg4[%c0_69, %c512, %c0_70] : memref<1x576x64xbf16, #tpu.memory_space<vmem>>, vector<1x64x64xbf16>
    %64 = vector.shape_cast %63 : vector<1x64x64xbf16> to vector<64x64xbf16>
    %cst_71 = arith.constant dense<0.000000e+00> : vector<64x64xf32>
    %65 = tpu.matmul %62, %64, %cst_71 {dimension_numbers = #tpu.dot_dimension_numbers<[1], [0], [0], [1], [0, 0, 1, 1], [], []>} : vector<64x64xbf16>, vector<64x64xbf16>, vector<64x64xf32> -> vector<64x64xf32>
    %66 = arith.addf %59, %65 : vector<64x64xf32>
    %c0_72 = arith.constant 0 : index
    %c0_73 = arith.constant 0 : index
    %67 = vector.load %arg8[%c0_72, %c0_73] : memref<64x64xf32, #tpu.memory_space<vmem>>, vector<64x64xf32>
    tpu.vector_store %arg8[%c0_72, %c0_73], %66 {strides = array<i32>} : memref<64x64xf32, #tpu.memory_space<vmem>>, vector<64x64xf32>,
    %c2_i32 = arith.constant 2 : i32
    %68 = arith.cmpi eq, %arg2, %c2_i32 : i32
    %69 = arith.extui %68 : i1 to i32
    %c0_i32_74 = arith.constant 0 : i32
    %70 = arith.cmpi ne, %69, %c0_i32_74 : i32
    scf.if %70 {
      %c0_75 = arith.constant 0 : index
      %c0_76 = arith.constant 0 : index
      %71 = vector.load %arg8[%c0_75, %c0_76] : memref<64x64xf32, #tpu.memory_space<vmem>>, vector<64x64xf32>
      %c0_77 = arith.constant 0 : index
      %c0_78 = arith.constant 0 : index
      %72 = vector.load %arg5[%c0_77, %c0_78] : memref<1x64xf32, #tpu.memory_space<vmem>>, vector<1x64xf32>
      %73 = vector.broadcast %72 : vector<1x64xf32> to vector<64x64xf32>
      %74 = arith.addf %71, %73 : vector<64x64xf32>
      %c0_79 = arith.constant 0 : index
      %c0_80 = arith.constant 0 : index
      %c0_81 = arith.constant 0 : index
      %c0_82 = arith.constant 0 : index
      %75 = vector.load %arg6[%c0_79, %c0_80, %c0_81, %c0_82] : memref<1x1x64x64xbf16, #tpu.memory_space<vmem>>, vector<1x1x64x64xbf16>
      %76 = vector.shape_cast %75 : vector<1x1x64x64xbf16> to vector<64x64xbf16>
      %77 = arith.extf %76 : vector<64x64xbf16> to vector<64x64xf32>
      %78 = arith.addf %74, %77 : vector<64x64xf32>
      %cst_83 = arith.constant 0.000000e+00 : f32
      %79 = vector.broadcast %cst_83 : f32 to vector<64x64xf32>
      %80 = arith.maximumf %78, %79 : vector<64x64xf32>
      %81 = arith.truncf %80 : vector<64x64xf32> to vector<64x64xbf16>
      %c0_84 = arith.constant 0 : index
      %c0_85 = arith.constant 0 : index
      %c0_86 = arith.constant 0 : index
      %c0_87 = arith.constant 0 : index
      %82 = vector.load %arg7[%c0_84, %c0_85, %c0_86, %c0_87] : memref<1x1x64x64xbf16, #tpu.memory_space<vmem>>, vector<1x1x64x64xbf16>
      %83 = vector.shape_cast %82 : vector<1x1x64x64xbf16> to vector<64x64xbf16>
      %84 = vector.shape_cast %81 : vector<64x64xbf16> to vector<1x1x64x64xbf16>
      tpu.vector_store %arg7[%c0_84, %c0_85, %c0_86, %c0_87], %84 {strides = array<i32>} : memref<1x1x64x64xbf16, #tpu.memory_space<vmem>>, vector<1x1x64x64xbf16>,
    } else {
    }
    return
  }
  func.func @transform_0(%arg0: i32, %arg1: i32, %arg2: i32) -> (i32, i32, i32, i32, i32) {
    %0 = arith.addi %arg1, %arg2 : i32
    %c0_i32 = arith.constant 0 : i32
    %c0_i32_0 = arith.constant 0 : i32
    %c0_i32_1 = arith.constant 0 : i32
    %c0_i32_2 = arith.constant 0 : i32
    return %arg0, %0, %c0_i32, %c0_i32_0, %c0_i32_1 : i32, i32, i32, i32, i32
  }
  func.func @transform_1(%arg0: i32, %arg1: i32, %arg2: i32) -> (i32, i32, i32) {
    %c0_i32 = arith.constant 0 : i32
    %c0_i32_0 = arith.constant 0 : i32
    %c0_i32_1 = arith.constant 0 : i32
    return %arg2, %c0_i32, %c0_i32_0 : i32, i32, i32
  }
  func.func @transform_2(%arg0: i32, %arg1: i32, %arg2: i32) -> (i32, i32) {
    %c0_i32 = arith.constant 0 : i32
    %c0_i32_0 = arith.constant 0 : i32
    %c0_i32_1 = arith.constant 0 : i32
    return %c0_i32, %c0_i32_0 : i32, i32
  }
  func.func @transform_3(%arg0: i32, %arg1: i32, %arg2: i32) -> (i32, i32, i32, i32) {
    %c0_i32 = arith.constant 0 : i32
    %c0_i32_0 = arith.constant 0 : i32
    %c0_i32_1 = arith.constant 0 : i32
    return %arg0, %arg1, %c0_i32, %c0_i32_0 : i32, i32, i32, i32
  }
  func.func @transform_4(%arg0: i32, %arg1: i32, %arg2: i32) -> (i32, i32, i32, i32) {
    %c0_i32 = arith.constant 0 : i32
    %c0_i32_0 = arith.constant 0 : i32
    %c0_i32_1 = arith.constant 0 : i32
    return %arg0, %arg1, %c0_i32, %c0_i32_0 : i32, i32, i32, i32
  }
}

module attributes {stable_mosaic.version = 11 : i64} {
  func.func @_fused_conv_kernel(%arg0: i32, %arg1: i32, %arg2: i32, %arg3: memref<1x1x10x10x64xbf16, #tpu.memory_space<vmem>>, %arg4: memref<1x576x64xbf16, #tpu.memory_space<vmem>>, %arg5: memref<1x64xf32, #tpu.memory_space<vmem>>, %arg6: memref<1x1x64x64xbf16, #tpu.memory_space<vmem>>, %arg7: memref<64x64xf32, #tpu.memory_space<vmem>>) attributes {dimension_semantics = [#tpu.dimension_semantics<parallel>, #tpu.dimension_semantics<parallel>, #tpu.dimension_semantics<arbitrary>], iteration_bounds = array<i64: 2, 8, 3>, scalar_prefetch = 0 : i64, scratch_operands = 1 : i64, tpu.core_type = #tpu.core_type<tc>, window_params = [{transform_indices = @transform_0, window_bounds = array<i64: 1, 1, 10, 10, 64>}, {transform_indices = @transform_1, window_bounds = array<i64: 1, 576, 64>}, {pipeline_mode = #tpu.pipeline_mode<synchronous>, transform_indices = @transform_2, window_bounds = array<i64: 1, 64>}, {transform_indices = @transform_3, window_bounds = array<i64: 1, 1, 64, 64>}]} {
    %c0_i32 = arith.constant 0 : i32
    %0 = arith.cmpi eq, %arg2, %c0_i32 : i32
    %1 = arith.extui %0 : i1 to i32
    %c0_i32_0 = arith.constant 0 : i32
    %2 = arith.cmpi ne, %1, %c0_i32_0 : i32
    scf.if %2 {
      %cst_75 = arith.constant 0.000000e+00 : f32
      %71 = vector.broadcast %cst_75 : f32 to vector<64x64xf32>
      %c0_76 = arith.constant 0 : index
      %c0_77 = arith.constant 0 : index
      %72 = vector.load %arg7[%c0_76, %c0_77] : memref<64x64xf32, #tpu.memory_space<vmem>>, vector<64x64xf32>
      tpu.vector_store %arg7[%c0_76, %c0_77], %71 {strides = array<i32>} : memref<64x64xf32, #tpu.memory_space<vmem>>, vector<64x64xf32>,
    } else {
    }
    %c0 = arith.constant 0 : index
    %c0_1 = arith.constant 0 : index
    %3 = vector.load %arg7[%c0, %c0_1] : memref<64x64xf32, #tpu.memory_space<vmem>>, vector<64x64xf32>
    %c0_2 = arith.constant 0 : index
    %c0_3 = arith.constant 0 : index
    %c0_4 = arith.constant 0 : index
    %c0_5 = arith.constant 0 : index
    %c0_6 = arith.constant 0 : index
    %4 = vector.load %arg3[%c0_2, %c0_3, %c0_4, %c0_5, %c0_6] : memref<1x1x10x10x64xbf16, #tpu.memory_space<vmem>>, vector<1x1x8x8x64xbf16>
    %5 = vector.shape_cast %4 : vector<1x1x8x8x64xbf16> to vector<8x8x64xbf16>
    %6 = vector.shape_cast %5 : vector<8x8x64xbf16> to vector<64x64xbf16>
    %c0_7 = arith.constant 0 : index
    %c0_8 = arith.constant 0 : index
    %c0_9 = arith.constant 0 : index
    %7 = vector.load %arg4[%c0_7, %c0_8, %c0_9] : memref<1x576x64xbf16, #tpu.memory_space<vmem>>, vector<1x64x64xbf16>
    %8 = vector.shape_cast %7 : vector<1x64x64xbf16> to vector<64x64xbf16>
    %cst = arith.constant dense<0.000000e+00> : vector<64x64xf32>
    %9 = tpu.matmul %6, %8, %cst {dimension_numbers = #tpu.dot_dimension_numbers<[1], [0], [0], [1], [0, 0, 1, 1], [], []>} : vector<64x64xbf16>, vector<64x64xbf16>, vector<64x64xf32> -> vector<64x64xf32>
    %10 = arith.addf %3, %9 : vector<64x64xf32>
    %c0_10 = arith.constant 0 : index
    %c0_11 = arith.constant 0 : index
    %c0_12 = arith.constant 0 : index
    %c1 = arith.constant 1 : index
    %c0_13 = arith.constant 0 : index
    %11 = vector.load %arg3[%c0_10, %c0_11, %c0_12, %c1, %c0_13] : memref<1x1x10x10x64xbf16, #tpu.memory_space<vmem>>, vector<1x1x8x8x64xbf16>
    %12 = vector.shape_cast %11 : vector<1x1x8x8x64xbf16> to vector<8x8x64xbf16>
    %13 = vector.shape_cast %12 : vector<8x8x64xbf16> to vector<64x64xbf16>
    %c0_14 = arith.constant 0 : index
    %c64 = arith.constant 64 : index
    %c0_15 = arith.constant 0 : index
    %14 = vector.load %arg4[%c0_14, %c64, %c0_15] : memref<1x576x64xbf16, #tpu.memory_space<vmem>>, vector<1x64x64xbf16>
    %15 = vector.shape_cast %14 : vector<1x64x64xbf16> to vector<64x64xbf16>
    %cst_16 = arith.constant dense<0.000000e+00> : vector<64x64xf32>
    %16 = tpu.matmul %13, %15, %cst_16 {dimension_numbers = #tpu.dot_dimension_numbers<[1], [0], [0], [1], [0, 0, 1, 1], [], []>} : vector<64x64xbf16>, vector<64x64xbf16>, vector<64x64xf32> -> vector<64x64xf32>
    %17 = arith.addf %10, %16 : vector<64x64xf32>
    %c0_17 = arith.constant 0 : index
    %c0_18 = arith.constant 0 : index
    %c0_19 = arith.constant 0 : index
    %c2 = arith.constant 2 : index
    %c0_20 = arith.constant 0 : index
    %18 = vector.load %arg3[%c0_17, %c0_18, %c0_19, %c2, %c0_20] : memref<1x1x10x10x64xbf16, #tpu.memory_space<vmem>>, vector<1x1x8x8x64xbf16>
    %19 = vector.shape_cast %18 : vector<1x1x8x8x64xbf16> to vector<8x8x64xbf16>
    %20 = vector.shape_cast %19 : vector<8x8x64xbf16> to vector<64x64xbf16>
    %c0_21 = arith.constant 0 : index
    %c128 = arith.constant 128 : index
    %c0_22 = arith.constant 0 : index
    %21 = vector.load %arg4[%c0_21, %c128, %c0_22] : memref<1x576x64xbf16, #tpu.memory_space<vmem>>, vector<1x64x64xbf16>
    %22 = vector.shape_cast %21 : vector<1x64x64xbf16> to vector<64x64xbf16>
    %cst_23 = arith.constant dense<0.000000e+00> : vector<64x64xf32>
    %23 = tpu.matmul %20, %22, %cst_23 {dimension_numbers = #tpu.dot_dimension_numbers<[1], [0], [0], [1], [0, 0, 1, 1], [], []>} : vector<64x64xbf16>, vector<64x64xbf16>, vector<64x64xf32> -> vector<64x64xf32>
    %24 = arith.addf %17, %23 : vector<64x64xf32>
    %c0_24 = arith.constant 0 : index
    %c0_25 = arith.constant 0 : index
    %c1_26 = arith.constant 1 : index
    %c0_27 = arith.constant 0 : index
    %c0_28 = arith.constant 0 : index
    %25 = vector.load %arg3[%c0_24, %c0_25, %c1_26, %c0_27, %c0_28] : memref<1x1x10x10x64xbf16, #tpu.memory_space<vmem>>, vector<1x1x8x8x64xbf16>
    %26 = vector.shape_cast %25 : vector<1x1x8x8x64xbf16> to vector<8x8x64xbf16>
    %27 = vector.shape_cast %26 : vector<8x8x64xbf16> to vector<64x64xbf16>
    %c0_29 = arith.constant 0 : index
    %c192 = arith.constant 192 : index
    %c0_30 = arith.constant 0 : index
    %28 = vector.load %arg4[%c0_29, %c192, %c0_30] : memref<1x576x64xbf16, #tpu.memory_space<vmem>>, vector<1x64x64xbf16>
    %29 = vector.shape_cast %28 : vector<1x64x64xbf16> to vector<64x64xbf16>
    %cst_31 = arith.constant dense<0.000000e+00> : vector<64x64xf32>
    %30 = tpu.matmul %27, %29, %cst_31 {dimension_numbers = #tpu.dot_dimension_numbers<[1], [0], [0], [1], [0, 0, 1, 1], [], []>} : vector<64x64xbf16>, vector<64x64xbf16>, vector<64x64xf32> -> vector<64x64xf32>
    %31 = arith.addf %24, %30 : vector<64x64xf32>
    %c0_32 = arith.constant 0 : index
    %c0_33 = arith.constant 0 : index
    %c1_34 = arith.constant 1 : index
    %c1_35 = arith.constant 1 : index
    %c0_36 = arith.constant 0 : index
    %32 = vector.load %arg3[%c0_32, %c0_33, %c1_34, %c1_35, %c0_36] : memref<1x1x10x10x64xbf16, #tpu.memory_space<vmem>>, vector<1x1x8x8x64xbf16>
    %33 = vector.shape_cast %32 : vector<1x1x8x8x64xbf16> to vector<8x8x64xbf16>
    %34 = vector.shape_cast %33 : vector<8x8x64xbf16> to vector<64x64xbf16>
    %c0_37 = arith.constant 0 : index
    %c256 = arith.constant 256 : index
    %c0_38 = arith.constant 0 : index
    %35 = vector.load %arg4[%c0_37, %c256, %c0_38] : memref<1x576x64xbf16, #tpu.memory_space<vmem>>, vector<1x64x64xbf16>
    %36 = vector.shape_cast %35 : vector<1x64x64xbf16> to vector<64x64xbf16>
    %cst_39 = arith.constant dense<0.000000e+00> : vector<64x64xf32>
    %37 = tpu.matmul %34, %36, %cst_39 {dimension_numbers = #tpu.dot_dimension_numbers<[1], [0], [0], [1], [0, 0, 1, 1], [], []>} : vector<64x64xbf16>, vector<64x64xbf16>, vector<64x64xf32> -> vector<64x64xf32>
    %38 = arith.addf %31, %37 : vector<64x64xf32>
    %c0_40 = arith.constant 0 : index
    %c0_41 = arith.constant 0 : index
    %c1_42 = arith.constant 1 : index
    %c2_43 = arith.constant 2 : index
    %c0_44 = arith.constant 0 : index
    %39 = vector.load %arg3[%c0_40, %c0_41, %c1_42, %c2_43, %c0_44] : memref<1x1x10x10x64xbf16, #tpu.memory_space<vmem>>, vector<1x1x8x8x64xbf16>
    %40 = vector.shape_cast %39 : vector<1x1x8x8x64xbf16> to vector<8x8x64xbf16>
    %41 = vector.shape_cast %40 : vector<8x8x64xbf16> to vector<64x64xbf16>
    %c0_45 = arith.constant 0 : index
    %c320 = arith.constant 320 : index
    %c0_46 = arith.constant 0 : index
    %42 = vector.load %arg4[%c0_45, %c320, %c0_46] : memref<1x576x64xbf16, #tpu.memory_space<vmem>>, vector<1x64x64xbf16>
    %43 = vector.shape_cast %42 : vector<1x64x64xbf16> to vector<64x64xbf16>
    %cst_47 = arith.constant dense<0.000000e+00> : vector<64x64xf32>
    %44 = tpu.matmul %41, %43, %cst_47 {dimension_numbers = #tpu.dot_dimension_numbers<[1], [0], [0], [1], [0, 0, 1, 1], [], []>} : vector<64x64xbf16>, vector<64x64xbf16>, vector<64x64xf32> -> vector<64x64xf32>
    %45 = arith.addf %38, %44 : vector<64x64xf32>
    %c0_48 = arith.constant 0 : index
    %c0_49 = arith.constant 0 : index
    %c2_50 = arith.constant 2 : index
    %c0_51 = arith.constant 0 : index
    %c0_52 = arith.constant 0 : index
    %46 = vector.load %arg3[%c0_48, %c0_49, %c2_50, %c0_51, %c0_52] : memref<1x1x10x10x64xbf16, #tpu.memory_space<vmem>>, vector<1x1x8x8x64xbf16>
    %47 = vector.shape_cast %46 : vector<1x1x8x8x64xbf16> to vector<8x8x64xbf16>
    %48 = vector.shape_cast %47 : vector<8x8x64xbf16> to vector<64x64xbf16>
    %c0_53 = arith.constant 0 : index
    %c384 = arith.constant 384 : index
    %c0_54 = arith.constant 0 : index
    %49 = vector.load %arg4[%c0_53, %c384, %c0_54] : memref<1x576x64xbf16, #tpu.memory_space<vmem>>, vector<1x64x64xbf16>
    %50 = vector.shape_cast %49 : vector<1x64x64xbf16> to vector<64x64xbf16>
    %cst_55 = arith.constant dense<0.000000e+00> : vector<64x64xf32>
    %51 = tpu.matmul %48, %50, %cst_55 {dimension_numbers = #tpu.dot_dimension_numbers<[1], [0], [0], [1], [0, 0, 1, 1], [], []>} : vector<64x64xbf16>, vector<64x64xbf16>, vector<64x64xf32> -> vector<64x64xf32>
    %52 = arith.addf %45, %51 : vector<64x64xf32>
    %c0_56 = arith.constant 0 : index
    %c0_57 = arith.constant 0 : index
    %c2_58 = arith.constant 2 : index
    %c1_59 = arith.constant 1 : index
    %c0_60 = arith.constant 0 : index
    %53 = vector.load %arg3[%c0_56, %c0_57, %c2_58, %c1_59, %c0_60] : memref<1x1x10x10x64xbf16, #tpu.memory_space<vmem>>, vector<1x1x8x8x64xbf16>
    %54 = vector.shape_cast %53 : vector<1x1x8x8x64xbf16> to vector<8x8x64xbf16>
    %55 = vector.shape_cast %54 : vector<8x8x64xbf16> to vector<64x64xbf16>
    %c0_61 = arith.constant 0 : index
    %c448 = arith.constant 448 : index
    %c0_62 = arith.constant 0 : index
    %56 = vector.load %arg4[%c0_61, %c448, %c0_62] : memref<1x576x64xbf16, #tpu.memory_space<vmem>>, vector<1x64x64xbf16>
    %57 = vector.shape_cast %56 : vector<1x64x64xbf16> to vector<64x64xbf16>
    %cst_63 = arith.constant dense<0.000000e+00> : vector<64x64xf32>
    %58 = tpu.matmul %55, %57, %cst_63 {dimension_numbers = #tpu.dot_dimension_numbers<[1], [0], [0], [1], [0, 0, 1, 1], [], []>} : vector<64x64xbf16>, vector<64x64xbf16>, vector<64x64xf32> -> vector<64x64xf32>
    %59 = arith.addf %52, %58 : vector<64x64xf32>
    %c0_64 = arith.constant 0 : index
    %c0_65 = arith.constant 0 : index
    %c2_66 = arith.constant 2 : index
    %c2_67 = arith.constant 2 : index
    %c0_68 = arith.constant 0 : index
    %60 = vector.load %arg3[%c0_64, %c0_65, %c2_66, %c2_67, %c0_68] : memref<1x1x10x10x64xbf16, #tpu.memory_space<vmem>>, vector<1x1x8x8x64xbf16>
    %61 = vector.shape_cast %60 : vector<1x1x8x8x64xbf16> to vector<8x8x64xbf16>
    %62 = vector.shape_cast %61 : vector<8x8x64xbf16> to vector<64x64xbf16>
    %c0_69 = arith.constant 0 : index
    %c512 = arith.constant 512 : index
    %c0_70 = arith.constant 0 : index
    %63 = vector.load %arg4[%c0_69, %c512, %c0_70] : memref<1x576x64xbf16, #tpu.memory_space<vmem>>, vector<1x64x64xbf16>
    %64 = vector.shape_cast %63 : vector<1x64x64xbf16> to vector<64x64xbf16>
    %cst_71 = arith.constant dense<0.000000e+00> : vector<64x64xf32>
    %65 = tpu.matmul %62, %64, %cst_71 {dimension_numbers = #tpu.dot_dimension_numbers<[1], [0], [0], [1], [0, 0, 1, 1], [], []>} : vector<64x64xbf16>, vector<64x64xbf16>, vector<64x64xf32> -> vector<64x64xf32>
    %66 = arith.addf %59, %65 : vector<64x64xf32>
    %c0_72 = arith.constant 0 : index
    %c0_73 = arith.constant 0 : index
    %67 = vector.load %arg7[%c0_72, %c0_73] : memref<64x64xf32, #tpu.memory_space<vmem>>, vector<64x64xf32>
    tpu.vector_store %arg7[%c0_72, %c0_73], %66 {strides = array<i32>} : memref<64x64xf32, #tpu.memory_space<vmem>>, vector<64x64xf32>,
    %c2_i32 = arith.constant 2 : i32
    %68 = arith.cmpi eq, %arg2, %c2_i32 : i32
    %69 = arith.extui %68 : i1 to i32
    %c0_i32_74 = arith.constant 0 : i32
    %70 = arith.cmpi ne, %69, %c0_i32_74 : i32
    scf.if %70 {
      %c0_75 = arith.constant 0 : index
      %c0_76 = arith.constant 0 : index
      %71 = vector.load %arg7[%c0_75, %c0_76] : memref<64x64xf32, #tpu.memory_space<vmem>>, vector<64x64xf32>
      %c0_77 = arith.constant 0 : index
      %c0_78 = arith.constant 0 : index
      %72 = vector.load %arg5[%c0_77, %c0_78] : memref<1x64xf32, #tpu.memory_space<vmem>>, vector<1x64xf32>
      %73 = vector.broadcast %72 : vector<1x64xf32> to vector<64x64xf32>
      %74 = arith.addf %71, %73 : vector<64x64xf32>
      %cst_79 = arith.constant 0.000000e+00 : f32
      %75 = vector.broadcast %cst_79 : f32 to vector<64x64xf32>
      %76 = arith.maximumf %74, %75 : vector<64x64xf32>
      %77 = arith.truncf %76 : vector<64x64xf32> to vector<64x64xbf16>
      %c0_80 = arith.constant 0 : index
      %c0_81 = arith.constant 0 : index
      %c0_82 = arith.constant 0 : index
      %c0_83 = arith.constant 0 : index
      %78 = vector.load %arg6[%c0_80, %c0_81, %c0_82, %c0_83] : memref<1x1x64x64xbf16, #tpu.memory_space<vmem>>, vector<1x1x64x64xbf16>
      %79 = vector.shape_cast %78 : vector<1x1x64x64xbf16> to vector<64x64xbf16>
      %80 = vector.shape_cast %77 : vector<64x64xbf16> to vector<1x1x64x64xbf16>
      tpu.vector_store %arg6[%c0_80, %c0_81, %c0_82, %c0_83], %80 {strides = array<i32>} : memref<1x1x64x64xbf16, #tpu.memory_space<vmem>>, vector<1x1x64x64xbf16>,
    } else {
    }
    return
  }
  func.func @transform_0(%arg0: i32, %arg1: i32, %arg2: i32) -> (i32, i32, i32, i32, i32) {
    %0 = arith.addi %arg1, %arg2 : i32
    %c0_i32 = arith.constant 0 : i32
    %c0_i32_0 = arith.constant 0 : i32
    %c0_i32_1 = arith.constant 0 : i32
    %c0_i32_2 = arith.constant 0 : i32
    return %arg0, %0, %c0_i32, %c0_i32_0, %c0_i32_1 : i32, i32, i32, i32, i32
  }
  func.func @transform_1(%arg0: i32, %arg1: i32, %arg2: i32) -> (i32, i32, i32) {
    %c0_i32 = arith.constant 0 : i32
    %c0_i32_0 = arith.constant 0 : i32
    %c0_i32_1 = arith.constant 0 : i32
    return %arg2, %c0_i32, %c0_i32_0 : i32, i32, i32
  }
  func.func @transform_2(%arg0: i32, %arg1: i32, %arg2: i32) -> (i32, i32) {
    %c0_i32 = arith.constant 0 : i32
    %c0_i32_0 = arith.constant 0 : i32
    %c0_i32_1 = arith.constant 0 : i32
    return %c0_i32, %c0_i32_0 : i32, i32
  }
  func.func @transform_3(%arg0: i32, %arg1: i32, %arg2: i32) -> (i32, i32, i32, i32) {
    %c0_i32 = arith.constant 0 : i32
    %c0_i32_0 = arith.constant 0 : i32
    %c0_i32_1 = arith.constant 0 : i32
    return %arg0, %arg1, %c0_i32, %c0_i32_0 : i32, i32, i32, i32
  }
}

module attributes {stable_mosaic.version = 11 : i64} {
  func.func @_matmul_bias_kernel(%arg0: i32, %arg1: i32, %arg2: i32, %arg3: memref<128x896xbf16, #tpu.memory_space<vmem>>, %arg4: memref<896x128xbf16, #tpu.memory_space<vmem>>, %arg5: memref<1x128xf32, #tpu.memory_space<vmem>>, %arg6: memref<128x128xbf16, #tpu.memory_space<vmem>>, %arg7: memref<128x128xf32, #tpu.memory_space<vmem>>) attributes {dimension_semantics = [#tpu.dimension_semantics<parallel>, #tpu.dimension_semantics<parallel>, #tpu.dimension_semantics<arbitrary>], iteration_bounds = array<i64: 1, 1, 2>, scalar_prefetch = 0 : i64, scratch_operands = 1 : i64, tpu.core_type = #tpu.core_type<tc>, window_params = [{transform_indices = @transform_0, window_bounds = array<i64: 128, 896>}, {transform_indices = @transform_1, window_bounds = array<i64: 896, 128>}, {transform_indices = @transform_2, window_bounds = array<i64: 1, 128>}, {transform_indices = @transform_3, window_bounds = array<i64: 128, 128>}]} {
    %c0_i32 = arith.constant 0 : i32
    %0 = arith.cmpi eq, %arg2, %c0_i32 : i32
    %1 = arith.extui %0 : i1 to i32
    %c0_i32_0 = arith.constant 0 : i32
    %2 = arith.cmpi ne, %1, %c0_i32_0 : i32
    scf.if %2 {
      %cst_9 = arith.constant 0.000000e+00 : f32
      %12 = vector.broadcast %cst_9 : f32 to vector<128x128xf32>
      %c0_10 = arith.constant 0 : index
      %c0_11 = arith.constant 0 : index
      %13 = vector.load %arg7[%c0_10, %c0_11] : memref<128x128xf32, #tpu.memory_space<vmem>>, vector<128x128xf32>
      tpu.vector_store %arg7[%c0_10, %c0_11], %12 {strides = array<i32>} : memref<128x128xf32, #tpu.memory_space<vmem>>, vector<128x128xf32>,
    } else {
    }
    %c0 = arith.constant 0 : index
    %c0_1 = arith.constant 0 : index
    %3 = vector.load %arg7[%c0, %c0_1] : memref<128x128xf32, #tpu.memory_space<vmem>>, vector<128x128xf32>
    %c0_2 = arith.constant 0 : index
    %c0_3 = arith.constant 0 : index
    %4 = vector.load %arg3[%c0_2, %c0_3] : memref<128x896xbf16, #tpu.memory_space<vmem>>, vector<128x896xbf16>
    %c0_4 = arith.constant 0 : index
    %c0_5 = arith.constant 0 : index
    %5 = vector.load %arg4[%c0_4, %c0_5] : memref<896x128xbf16, #tpu.memory_space<vmem>>, vector<896x128xbf16>
    %cst = arith.constant dense<0.000000e+00> : vector<128x128xf32>
    %6 = tpu.matmul %4, %5, %cst {dimension_numbers = #tpu.dot_dimension_numbers<[1], [0], [0], [1], [0, 0, 1, 1], [], []>} : vector<128x896xbf16>, vector<896x128xbf16>, vector<128x128xf32> -> vector<128x128xf32>
    %7 = arith.addf %3, %6 : vector<128x128xf32>
    %c0_6 = arith.constant 0 : index
    %c0_7 = arith.constant 0 : index
    %8 = vector.load %arg7[%c0_6, %c0_7] : memref<128x128xf32, #tpu.memory_space<vmem>>, vector<128x128xf32>
    tpu.vector_store %arg7[%c0_6, %c0_7], %7 {strides = array<i32>} : memref<128x128xf32, #tpu.memory_space<vmem>>, vector<128x128xf32>,
    %c1_i32 = arith.constant 1 : i32
    %9 = arith.cmpi eq, %arg2, %c1_i32 : i32
    %10 = arith.extui %9 : i1 to i32
    %c0_i32_8 = arith.constant 0 : i32
    %11 = arith.cmpi ne, %10, %c0_i32_8 : i32
    scf.if %11 {
      %c0_9 = arith.constant 0 : index
      %c0_10 = arith.constant 0 : index
      %12 = vector.load %arg7[%c0_9, %c0_10] : memref<128x128xf32, #tpu.memory_space<vmem>>, vector<128x128xf32>
      %c0_11 = arith.constant 0 : index
      %c0_12 = arith.constant 0 : index
      %13 = vector.load %arg5[%c0_11, %c0_12] : memref<1x128xf32, #tpu.memory_space<vmem>>, vector<1x128xf32>
      %14 = vector.broadcast %13 : vector<1x128xf32> to vector<128x128xf32>
      %15 = arith.addf %12, %14 : vector<128x128xf32>
      %cst_13 = arith.constant 0.000000e+00 : f32
      %16 = vector.broadcast %cst_13 : f32 to vector<128x128xf32>
      %17 = arith.maximumf %15, %16 : vector<128x128xf32>
      %18 = arith.truncf %17 : vector<128x128xf32> to vector<128x128xbf16>
      %c0_14 = arith.constant 0 : index
      %c0_15 = arith.constant 0 : index
      %19 = vector.load %arg6[%c0_14, %c0_15] : memref<128x128xbf16, #tpu.memory_space<vmem>>, vector<128x128xbf16>
      tpu.vector_store %arg6[%c0_14, %c0_15], %18 {strides = array<i32>} : memref<128x128xbf16, #tpu.memory_space<vmem>>, vector<128x128xbf16>,
    } else {
    }
    return
  }
  func.func @transform_0(%arg0: i32, %arg1: i32, %arg2: i32) -> (i32, i32) {
    %c0_i32 = arith.constant 0 : i32
    return %arg0, %arg2 : i32, i32
  }
  func.func @transform_1(%arg0: i32, %arg1: i32, %arg2: i32) -> (i32, i32) {
    %c0_i32 = arith.constant 0 : i32
    return %arg2, %arg1 : i32, i32
  }
  func.func @transform_2(%arg0: i32, %arg1: i32, %arg2: i32) -> (i32, i32) {
    %c0_i32 = arith.constant 0 : i32
    %c0_i32_0 = arith.constant 0 : i32
    return %c0_i32, %arg1 : i32, i32
  }
  func.func @transform_3(%arg0: i32, %arg1: i32, %arg2: i32) -> (i32, i32) {
    %c0_i32 = arith.constant 0 : i32
    return %arg0, %arg1 : i32, i32
  }
}

module attributes {stable_mosaic.version = 11 : i64} {
  func.func @_matmul_bias_kernel(%arg0: i32, %arg1: i32, %arg2: i32, %arg3: memref<128x64xbf16, #tpu.memory_space<vmem>>, %arg4: memref<64x128xbf16, #tpu.memory_space<vmem>>, %arg5: memref<1x128xf32, #tpu.memory_space<vmem>>, %arg6: memref<128x128xbf16, #tpu.memory_space<vmem>>, %arg7: memref<128x128xf32, #tpu.memory_space<vmem>>) attributes {dimension_semantics = [#tpu.dimension_semantics<parallel>, #tpu.dimension_semantics<parallel>, #tpu.dimension_semantics<arbitrary>], iteration_bounds = array<i64: 1, 1, 1>, scalar_prefetch = 0 : i64, scratch_operands = 1 : i64, tpu.core_type = #tpu.core_type<tc>, window_params = [{transform_indices = @transform_0, window_bounds = array<i64: 128, 64>}, {transform_indices = @transform_1, window_bounds = array<i64: 64, 128>}, {transform_indices = @transform_2, window_bounds = array<i64: 1, 128>}, {transform_indices = @transform_3, window_bounds = array<i64: 128, 128>}]} {
    %c0_i32 = arith.constant 0 : i32
    %0 = arith.cmpi eq, %arg2, %c0_i32 : i32
    %1 = arith.extui %0 : i1 to i32
    %c0_i32_0 = arith.constant 0 : i32
    %2 = arith.cmpi ne, %1, %c0_i32_0 : i32
    scf.if %2 {
      %cst_10 = arith.constant 0.000000e+00 : f32
      %12 = vector.broadcast %cst_10 : f32 to vector<128x128xf32>
      %c0_11 = arith.constant 0 : index
      %c0_12 = arith.constant 0 : index
      %13 = vector.load %arg7[%c0_11, %c0_12] : memref<128x128xf32, #tpu.memory_space<vmem>>, vector<128x128xf32>
      tpu.vector_store %arg7[%c0_11, %c0_12], %12 {strides = array<i32>} : memref<128x128xf32, #tpu.memory_space<vmem>>, vector<128x128xf32>,
    } else {
    }
    %c0 = arith.constant 0 : index
    %c0_1 = arith.constant 0 : index
    %3 = vector.load %arg7[%c0, %c0_1] : memref<128x128xf32, #tpu.memory_space<vmem>>, vector<128x128xf32>
    %c0_2 = arith.constant 0 : index
    %c0_3 = arith.constant 0 : index
    %4 = vector.load %arg3[%c0_2, %c0_3] : memref<128x64xbf16, #tpu.memory_space<vmem>>, vector<128x64xbf16>
    %c0_4 = arith.constant 0 : index
    %c0_5 = arith.constant 0 : index
    %5 = vector.load %arg4[%c0_4, %c0_5] : memref<64x128xbf16, #tpu.memory_space<vmem>>, vector<64x128xbf16>
    %cst = arith.constant dense<0.000000e+00> : vector<128x128xf32>
    %6 = tpu.matmul %4, %5, %cst {dimension_numbers = #tpu.dot_dimension_numbers<[1], [0], [0], [1], [0, 0, 1, 1], [], []>} : vector<128x64xbf16>, vector<64x128xbf16>, vector<128x128xf32> -> vector<128x128xf32>
    %7 = arith.addf %3, %6 : vector<128x128xf32>
    %c0_6 = arith.constant 0 : index
    %c0_7 = arith.constant 0 : index
    %8 = vector.load %arg7[%c0_6, %c0_7] : memref<128x128xf32, #tpu.memory_space<vmem>>, vector<128x128xf32>
    tpu.vector_store %arg7[%c0_6, %c0_7], %7 {strides = array<i32>} : memref<128x128xf32, #tpu.memory_space<vmem>>, vector<128x128xf32>,
    %c0_i32_8 = arith.constant 0 : i32
    %9 = arith.cmpi eq, %arg2, %c0_i32_8 : i32
    %10 = arith.extui %9 : i1 to i32
    %c0_i32_9 = arith.constant 0 : i32
    %11 = arith.cmpi ne, %10, %c0_i32_9 : i32
    scf.if %11 {
      %c0_10 = arith.constant 0 : index
      %c0_11 = arith.constant 0 : index
      %12 = vector.load %arg7[%c0_10, %c0_11] : memref<128x128xf32, #tpu.memory_space<vmem>>, vector<128x128xf32>
      %c0_12 = arith.constant 0 : index
      %c0_13 = arith.constant 0 : index
      %13 = vector.load %arg5[%c0_12, %c0_13] : memref<1x128xf32, #tpu.memory_space<vmem>>, vector<1x128xf32>
      %14 = vector.broadcast %13 : vector<1x128xf32> to vector<128x128xf32>
      %15 = arith.addf %12, %14 : vector<128x128xf32>
      %16 = arith.truncf %15 : vector<128x128xf32> to vector<128x128xbf16>
      %c0_14 = arith.constant 0 : index
      %c0_15 = arith.constant 0 : index
      %17 = vector.load %arg6[%c0_14, %c0_15] : memref<128x128xbf16, #tpu.memory_space<vmem>>, vector<128x128xbf16>
      tpu.vector_store %arg6[%c0_14, %c0_15], %16 {strides = array<i32>} : memref<128x128xbf16, #tpu.memory_space<vmem>>, vector<128x128xbf16>,
    } else {
    }
    return
  }
  func.func @transform_0(%arg0: i32, %arg1: i32, %arg2: i32) -> (i32, i32) {
    %c0_i32 = arith.constant 0 : i32
    return %arg0, %arg2 : i32, i32
  }
  func.func @transform_1(%arg0: i32, %arg1: i32, %arg2: i32) -> (i32, i32) {
    %c0_i32 = arith.constant 0 : i32
    return %arg2, %arg1 : i32, i32
  }
  func.func @transform_2(%arg0: i32, %arg1: i32, %arg2: i32) -> (i32, i32) {
    %c0_i32 = arith.constant 0 : i32
    %c0_i32_0 = arith.constant 0 : i32
    return %c0_i32, %arg1 : i32, i32
  }
  func.func @transform_3(%arg0: i32, %arg1: i32, %arg2: i32) -> (i32, i32) {
    %c0_i32 = arith.constant 0 : i32
    return %arg0, %arg1 : i32, i32
  }
}

module attributes {stable_mosaic.version = 11 : i64} {
  func.func @_matmul_bias_kernel(%arg0: i32, %arg1: i32, %arg2: i32, %arg3: memref<128x384xbf16, #tpu.memory_space<vmem>>, %arg4: memref<384x128xbf16, #tpu.memory_space<vmem>>, %arg5: memref<1x128xf32, #tpu.memory_space<vmem>>, %arg6: memref<128x128xbf16, #tpu.memory_space<vmem>>, %arg7: memref<128x128xbf16, #tpu.memory_space<vmem>>, %arg8: memref<128x128xf32, #tpu.memory_space<vmem>>) attributes {dimension_semantics = [#tpu.dimension_semantics<parallel>, #tpu.dimension_semantics<parallel>, #tpu.dimension_semantics<arbitrary>], iteration_bounds = array<i64: 1, 1, 9>, scalar_prefetch = 0 : i64, scratch_operands = 1 : i64, tpu.core_type = #tpu.core_type<tc>, window_params = [{transform_indices = @transform_0, window_bounds = array<i64: 128, 384>}, {transform_indices = @transform_1, window_bounds = array<i64: 384, 128>}, {transform_indices = @transform_2, window_bounds = array<i64: 1, 128>}, {transform_indices = @transform_3, window_bounds = array<i64: 128, 128>}, {transform_indices = @transform_4, window_bounds = array<i64: 128, 128>}]} {
    %c0_i32 = arith.constant 0 : i32
    %0 = arith.cmpi eq, %arg2, %c0_i32 : i32
    %1 = arith.extui %0 : i1 to i32
    %c0_i32_0 = arith.constant 0 : i32
    %2 = arith.cmpi ne, %1, %c0_i32_0 : i32
    scf.if %2 {
      %cst_9 = arith.constant 0.000000e+00 : f32
      %12 = vector.broadcast %cst_9 : f32 to vector<128x128xf32>
      %c0_10 = arith.constant 0 : index
      %c0_11 = arith.constant 0 : index
      %13 = vector.load %arg8[%c0_10, %c0_11] : memref<128x128xf32, #tpu.memory_space<vmem>>, vector<128x128xf32>
      tpu.vector_store %arg8[%c0_10, %c0_11], %12 {strides = array<i32>} : memref<128x128xf32, #tpu.memory_space<vmem>>, vector<128x128xf32>,
    } else {
    }
    %c0 = arith.constant 0 : index
    %c0_1 = arith.constant 0 : index
    %3 = vector.load %arg8[%c0, %c0_1] : memref<128x128xf32, #tpu.memory_space<vmem>>, vector<128x128xf32>
    %c0_2 = arith.constant 0 : index
    %c0_3 = arith.constant 0 : index
    %4 = vector.load %arg3[%c0_2, %c0_3] : memref<128x384xbf16, #tpu.memory_space<vmem>>, vector<128x384xbf16>
    %c0_4 = arith.constant 0 : index
    %c0_5 = arith.constant 0 : index
    %5 = vector.load %arg4[%c0_4, %c0_5] : memref<384x128xbf16, #tpu.memory_space<vmem>>, vector<384x128xbf16>
    %cst = arith.constant dense<0.000000e+00> : vector<128x128xf32>
    %6 = tpu.matmul %4, %5, %cst {dimension_numbers = #tpu.dot_dimension_numbers<[1], [0], [0], [1], [0, 0, 1, 1], [], []>} : vector<128x384xbf16>, vector<384x128xbf16>, vector<128x128xf32> -> vector<128x128xf32>
    %7 = arith.addf %3, %6 : vector<128x128xf32>
    %c0_6 = arith.constant 0 : index
    %c0_7 = arith.constant 0 : index
    %8 = vector.load %arg8[%c0_6, %c0_7] : memref<128x128xf32, #tpu.memory_space<vmem>>, vector<128x128xf32>
    tpu.vector_store %arg8[%c0_6, %c0_7], %7 {strides = array<i32>} : memref<128x128xf32, #tpu.memory_space<vmem>>, vector<128x128xf32>,
    %c8_i32 = arith.constant 8 : i32
    %9 = arith.cmpi eq, %arg2, %c8_i32 : i32
    %10 = arith.extui %9 : i1 to i32
    %c0_i32_8 = arith.constant 0 : i32
    %11 = arith.cmpi ne, %10, %c0_i32_8 : i32
    scf.if %11 {
      %c0_9 = arith.constant 0 : index
      %c0_10 = arith.constant 0 : index
      %12 = vector.load %arg8[%c0_9, %c0_10] : memref<128x128xf32, #tpu.memory_space<vmem>>, vector<128x128xf32>
      %c0_11 = arith.constant 0 : index
      %c0_12 = arith.constant 0 : index
      %13 = vector.load %arg5[%c0_11, %c0_12] : memref<1x128xf32, #tpu.memory_space<vmem>>, vector<1x128xf32>
      %14 = vector.broadcast %13 : vector<1x128xf32> to vector<128x128xf32>
      %15 = arith.addf %12, %14 : vector<128x128xf32>
      %c0_13 = arith.constant 0 : index
      %c0_14 = arith.constant 0 : index
      %16 = vector.load %arg6[%c0_13, %c0_14] : memref<128x128xbf16, #tpu.memory_space<vmem>>, vector<128x128xbf16>
      %17 = arith.extf %16 : vector<128x128xbf16> to vector<128x128xf32>
      %18 = arith.addf %15, %17 : vector<128x128xf32>
      %cst_15 = arith.constant 0.000000e+00 : f32
      %19 = vector.broadcast %cst_15 : f32 to vector<128x128xf32>
      %20 = arith.maximumf %18, %19 : vector<128x128xf32>
      %21 = arith.truncf %20 : vector<128x128xf32> to vector<128x128xbf16>
      %c0_16 = arith.constant 0 : index
      %c0_17 = arith.constant 0 : index
      %22 = vector.load %arg7[%c0_16, %c0_17] : memref<128x128xbf16, #tpu.memory_space<vmem>>, vector<128x128xbf16>
      tpu.vector_store %arg7[%c0_16, %c0_17], %21 {strides = array<i32>} : memref<128x128xbf16, #tpu.memory_space<vmem>>, vector<128x128xbf16>,
    } else {
    }
    return
  }
  func.func @transform_0(%arg0: i32, %arg1: i32, %arg2: i32) -> (i32, i32) {
    %c0_i32 = arith.constant 0 : i32
    return %arg0, %arg2 : i32, i32
  }
  func.func @transform_1(%arg0: i32, %arg1: i32, %arg2: i32) -> (i32, i32) {
    %c0_i32 = arith.constant 0 : i32
    return %arg2, %arg1 : i32, i32
  }
  func.func @transform_2(%arg0: i32, %arg1: i32, %arg2: i32) -> (i32, i32) {
    %c0_i32 = arith.constant 0 : i32
    %c0_i32_0 = arith.constant 0 : i32
    return %c0_i32, %arg1 : i32, i32
  }
  func.func @transform_3(%arg0: i32, %arg1: i32, %arg2: i32) -> (i32, i32) {
    %c0_i32 = arith.constant 0 : i32
    return %arg0, %arg1 : i32, i32
  }
  func.func @transform_4(%arg0: i32, %arg1: i32, %arg2: i32) -> (i32, i32) {
    %c0_i32 = arith.constant 0 : i32
    return %arg0, %arg1 : i32, i32
  }
}

module attributes {stable_mosaic.version = 11 : i64} {
  func.func @_matmul_bias_kernel(%arg0: i32, %arg1: i32, %arg2: i32, %arg3: memref<128x384xbf16, #tpu.memory_space<vmem>>, %arg4: memref<384x128xbf16, #tpu.memory_space<vmem>>, %arg5: memref<1x128xf32, #tpu.memory_space<vmem>>, %arg6: memref<128x128xbf16, #tpu.memory_space<vmem>>, %arg7: memref<128x128xf32, #tpu.memory_space<vmem>>) attributes {dimension_semantics = [#tpu.dimension_semantics<parallel>, #tpu.dimension_semantics<parallel>, #tpu.dimension_semantics<arbitrary>], iteration_bounds = array<i64: 1, 1, 9>, scalar_prefetch = 0 : i64, scratch_operands = 1 : i64, tpu.core_type = #tpu.core_type<tc>, window_params = [{transform_indices = @transform_0, window_bounds = array<i64: 128, 384>}, {transform_indices = @transform_1, window_bounds = array<i64: 384, 128>}, {transform_indices = @transform_2, window_bounds = array<i64: 1, 128>}, {transform_indices = @transform_3, window_bounds = array<i64: 128, 128>}]} {
    %c0_i32 = arith.constant 0 : i32
    %0 = arith.cmpi eq, %arg2, %c0_i32 : i32
    %1 = arith.extui %0 : i1 to i32
    %c0_i32_0 = arith.constant 0 : i32
    %2 = arith.cmpi ne, %1, %c0_i32_0 : i32
    scf.if %2 {
      %cst_9 = arith.constant 0.000000e+00 : f32
      %12 = vector.broadcast %cst_9 : f32 to vector<128x128xf32>
      %c0_10 = arith.constant 0 : index
      %c0_11 = arith.constant 0 : index
      %13 = vector.load %arg7[%c0_10, %c0_11] : memref<128x128xf32, #tpu.memory_space<vmem>>, vector<128x128xf32>
      tpu.vector_store %arg7[%c0_10, %c0_11], %12 {strides = array<i32>} : memref<128x128xf32, #tpu.memory_space<vmem>>, vector<128x128xf32>,
    } else {
    }
    %c0 = arith.constant 0 : index
    %c0_1 = arith.constant 0 : index
    %3 = vector.load %arg7[%c0, %c0_1] : memref<128x128xf32, #tpu.memory_space<vmem>>, vector<128x128xf32>
    %c0_2 = arith.constant 0 : index
    %c0_3 = arith.constant 0 : index
    %4 = vector.load %arg3[%c0_2, %c0_3] : memref<128x384xbf16, #tpu.memory_space<vmem>>, vector<128x384xbf16>
    %c0_4 = arith.constant 0 : index
    %c0_5 = arith.constant 0 : index
    %5 = vector.load %arg4[%c0_4, %c0_5] : memref<384x128xbf16, #tpu.memory_space<vmem>>, vector<384x128xbf16>
    %cst = arith.constant dense<0.000000e+00> : vector<128x128xf32>
    %6 = tpu.matmul %4, %5, %cst {dimension_numbers = #tpu.dot_dimension_numbers<[1], [0], [0], [1], [0, 0, 1, 1], [], []>} : vector<128x384xbf16>, vector<384x128xbf16>, vector<128x128xf32> -> vector<128x128xf32>
    %7 = arith.addf %3, %6 : vector<128x128xf32>
    %c0_6 = arith.constant 0 : index
    %c0_7 = arith.constant 0 : index
    %8 = vector.load %arg7[%c0_6, %c0_7] : memref<128x128xf32, #tpu.memory_space<vmem>>, vector<128x128xf32>
    tpu.vector_store %arg7[%c0_6, %c0_7], %7 {strides = array<i32>} : memref<128x128xf32, #tpu.memory_space<vmem>>, vector<128x128xf32>,
    %c8_i32 = arith.constant 8 : i32
    %9 = arith.cmpi eq, %arg2, %c8_i32 : i32
    %10 = arith.extui %9 : i1 to i32
    %c0_i32_8 = arith.constant 0 : i32
    %11 = arith.cmpi ne, %10, %c0_i32_8 : i32
    scf.if %11 {
      %c0_9 = arith.constant 0 : index
      %c0_10 = arith.constant 0 : index
      %12 = vector.load %arg7[%c0_9, %c0_10] : memref<128x128xf32, #tpu.memory_space<vmem>>, vector<128x128xf32>
      %c0_11 = arith.constant 0 : index
      %c0_12 = arith.constant 0 : index
      %13 = vector.load %arg5[%c0_11, %c0_12] : memref<1x128xf32, #tpu.memory_space<vmem>>, vector<1x128xf32>
      %14 = vector.broadcast %13 : vector<1x128xf32> to vector<128x128xf32>
      %15 = arith.addf %12, %14 : vector<128x128xf32>
      %cst_13 = arith.constant 0.000000e+00 : f32
      %16 = vector.broadcast %cst_13 : f32 to vector<128x128xf32>
      %17 = arith.maximumf %15, %16 : vector<128x128xf32>
      %18 = arith.truncf %17 : vector<128x128xf32> to vector<128x128xbf16>
      %c0_14 = arith.constant 0 : index
      %c0_15 = arith.constant 0 : index
      %19 = vector.load %arg6[%c0_14, %c0_15] : memref<128x128xbf16, #tpu.memory_space<vmem>>, vector<128x128xbf16>
      tpu.vector_store %arg6[%c0_14, %c0_15], %18 {strides = array<i32>} : memref<128x128xbf16, #tpu.memory_space<vmem>>, vector<128x128xbf16>,
    } else {
    }
    return
  }
  func.func @transform_0(%arg0: i32, %arg1: i32, %arg2: i32) -> (i32, i32) {
    %c0_i32 = arith.constant 0 : i32
    return %arg0, %arg2 : i32, i32
  }
  func.func @transform_1(%arg0: i32, %arg1: i32, %arg2: i32) -> (i32, i32) {
    %c0_i32 = arith.constant 0 : i32
    return %arg2, %arg1 : i32, i32
  }
  func.func @transform_2(%arg0: i32, %arg1: i32, %arg2: i32) -> (i32, i32) {
    %c0_i32 = arith.constant 0 : i32
    %c0_i32_0 = arith.constant 0 : i32
    return %c0_i32, %arg1 : i32, i32
  }
  func.func @transform_3(%arg0: i32, %arg1: i32, %arg2: i32) -> (i32, i32) {
    %c0_i32 = arith.constant 0 : i32
    return %arg0, %arg1 : i32, i32
  }
}

</mosaic_0001>

<bundles_post_ra>
// kernel: mri_model_forward.10
= control target key start
LH: loop header
LB: loop body
LE: loop exit
PB: predicated region body
PF: predicated region fallthrough
CT: control target
= control target key end

     0   :  { %8 = vsyncpa [#allocation4], 0  ;;  %s3437_s0 = inlined_call_operand.hbm [shape: bf16[1024,147], index: 0, kind: input, shape index: {}]   ;;  %s3438_s1 = inlined_call_operand.hbm [shape: bf16[147,64], index: 1, kind: input, shape index: {}]   ;;  %s3439_s2 = inlined_call_operand.hbm [shape: f32[1,64], index: 2, kind: input, shape index: {}]   ;;  %s3440_s3 = inlined_call_operand.hbm [shape: bf16[1024,64], index: 3, kind: output, shape index: {}]  }
   0x1   :  { %10 = vsyncpa [#allocation4 + $0x1], 0 }
   0x2   :  { %11 = vsyncpa [#allocation7], 0 }
   0x3   :  { %12 = vsyncpa [#allocation5], 0 }
   0x4   :  { %14 = vsyncpa [#allocation5 + $0x1], 0  ;;  %s2684_s12 = smov 0   ;;  %s2686_s13 = smov 0  }
   0x5   :  { %s2688_s14 = smov 0   ;;  %s2690_s15 = smov 0  }
   0x6   :  { %s2692_s16 = smov 0   ;;  %s2694_s17 = smov 0  }
   0x7 LB: > { %s2000_s18 = sadd.s32 4294967295, %s2649_s17   ;;  %s2001_s19 = sadd.s32 4294967294, %s2649_s17   ;;  %s2649_s17 = sphi %s2694_s17, %s20_s17   ;;  %s2645_s16 = sphi %s2692_s16, %s3462_s16   ;;  %s2641_s15 = sphi %s2690_s15, %s3461_s15   ;;  %s2637_s14 = sphi %s2688_s14, %s3460_s14   ;;  %s2633_s13 = sphi %s2686_s13, %s3459_s13   ;;  %s2629_s12 = sphi %s2684_s12, %s3458_s12  }
   0x8   : > { %p61_p0 = scmp.ne.s32.totalorder %s2633_s13, %s2629_s12  ;;  %p2718_p1 = scmp.eq.s32.totalorder %s2000_s18, 0 }
   0x9   : > { %p2722_p2 = scmp.eq.s32.totalorder %s2000_s18, 1  ;;  %p147_p3 = scmp.eq.s32.totalorder %s2001_s19, 1 }
   0xa   : > { %s3445_s20 = scalar_select %p2718_p1, 1, 0 }
   0xb   : > { %p2728_p4 = por %p2718_p1, %p61_p0  ;;  %p2002_p5 = scmp.ge.s32.totalorder %s2649_s17, 1 }
   0xc   : > { %p2733_p6 = por %p147_p3, %p61_p0  ;;  %p154_p7 = scmp.lt.s32.totalorder %s2649_s17, 3 }
   0xd   : > { %s3447_s22 = scalar_select %p2728_p4, 1, 0 }
   0xe   : > { %s3448_s23 = scalar_select %p2733_p6, 1, 0 }
   0xf   : > { %p2738_p8 = pnand %p2002_p5, %p154_p7  ;;  %s2651_s25 = smov [#allocation6]  }
  0x10   : > { %s170_s26 = sshll.u32 %s2651_s25, 4  ;;  %s2652_s28 = smov [#allocation8]   ;;  %s2742_s26 = int_to_ptr.vmem [resolvable:$true] %s170_s26 }
  0x11   : > { %p2290_p9 = pneg %p2738_p8  ;;  %s186_s29 = sshll.u32 %s2652_s28, 4  ;;  %s2753_s29 = int_to_ptr.vmem [resolvable:$true] %s186_s29 }
  0x12   : > { %s2477_s5 = scalar_lea.hbm %s3438_s1, 1216 }
  0x13   : > { %p2749_p11 = pnand %p2290_p9, %p2718_p1  ;;  %p2478_p12 = scmp.ne.s32.totalorder %s3438_s1, %s2477_s5 }
  0x14   : > { %p2484_p5 = scmp.lt.u32.totalorder %s2477_s5, %s3438_s1 }
  0x15   : > { %p2479_p13 = pneg %p2749_p11 }
  0x17   : > { %p2480_p0 = pnand %p2479_p13, %p2478_p12 }
  0x19   : > { %p2481_p3 = pneg %p2480_p0 }
  0x1b   : > { %p2486_p7 = pnand %p2484_p5, %p2481_p3 }
  0x1d   : > { %2489 = shalt.err (!%p2486_p7)
}
  0x1e   : > { %s2490_s10 = scalar_lea.vmem %s2742_s26, 1216  ;;  %p2498_p1 = scmp.lt.s32.totalorder %s2742_s26, %s2742_s26 }
  0x1f   : > { %p2491_p9 = scmp.ne.s32.totalorder %s2742_s26, %s2490_s10  ;;  %p2499_p12 = scmp.lt.s32.totalorder %s2490_s10, %s2490_s10 }
  0x21   : > { %p2493_p10 = pnand %p2491_p9, %p2479_p13  ;;  %p2500_p0 = por %p2499_p12, %p2498_p1 }
  0x23   : > { %p2494_p6 = pneg %p2493_p10 }
  0x25   : > { %p2501_p4 = pnand %p2500_p0, %p2494_p6 }
  0x27   : > { %2504 = shalt.err (!%p2501_p4)
}
  0x28   : > { %s2653_s11 = smov 64   ;;  %s2654_s18 = smov 4  }
  0x29   : > { %2293 = dma.hbm_to_vmem [thread:$0]  (!%p2749_p11), %s3438_s1, 1216, %s2742_s26, [#allocation7], %s2653_s11, %s2653_s11, %s2654_s18  }
  0x2a   : > { %s2505_s4 = scalar_lea.hbm %s3439_s2, 16 }
  0x2b   : > { %p2506_p1 = scmp.ne.s32.totalorder %s3439_s2, %s2505_s4  ;;  %p2512_p10 = scmp.lt.u32.totalorder %s2505_s4, %s3439_s2 }
  0x2d   : > { %p2508_p4 = pnand %p2506_p1, %p2479_p13 }
  0x2f   : > { %p2509_p6 = pneg %p2508_p4 }
  0x31   : > { %p2514_p3 = pnand %p2512_p10, %p2509_p6 }
  0x33   : > { %2517 = shalt.err (!%p2514_p3)
}
  0x34   : > { %s2518_s26 = scalar_lea.vmem %s2753_s29, 16  ;;  %s2525_s9 = scalar_lea.vmem %s2753_s29, 32 }
  0x35   : > { %p2519_p5 = scmp.ne.s32.totalorder %s2753_s29, %s2518_s26  ;;  %p2526_p12 = scmp.lt.s32.totalorder %s2753_s29, %s2753_s29 }
  0x36   : > { %p2527_p0 = scmp.lt.s32.totalorder %s2525_s9, %s2518_s26 }
  0x37   : > { %p2521_p7 = pnand %p2519_p5, %p2479_p13 }
  0x38   : > { %p2528_p1 = por %p2527_p0, %p2526_p12 }
  0x39   : > { %p2522_p9 = pneg %p2521_p7 }
  0x3b   : > { %p2529_p4 = pnand %p2528_p1, %p2522_p9 }
  0x3d   : > { %2532 = shalt.err (!%p2529_p4)
}
  0x3e   : > { %2296 = dma.hbm_to_vmem [thread:$0]  (!%p2749_p11), %s3439_s2, 16, %s2753_s29, [#allocation7]  }
  0x3f   : > { %s39_s18 = sadd.s32 1, %s2645_s16  ;;  %s48_s19 = sadd.s32 1, %s2637_s14 }
  0x40   : > { %p41_p13 = scmp.ge.s32.totalorder %s39_s18, 2  ;;  %p55_p6 = scmp.ne.s32.totalorder %s2637_s14, %s2633_s13 }
  0x41   : > { %p56_p10 = scmp.eq.s32.totalorder %s2649_s17, 0  ;;  %p2307_p3 = scmp.lt.s32.totalorder %s2649_s17, 2 }
  0x42   : > { %s3464_s18 = smov (%p41_p13, %s39_s18), 0  ;;  %p2818_p7 = por %p2722_p2, %p55_p6 }
  0x43   : > { %p57_p5 = por %p56_p10, %p55_p6  ;;  %s43_s25 = ssub.s32 %s2645_s16, %s3464_s18 }
  0x44   : > { %s3451_s27 = scalar_select %p2818_p7, 1, 0 }
  0x45   : > { %s197_s28 = sand.u32 1, %s2637_s14   ;;  %p46_p9 = scmp.eq.s32.totalorder %s43_s25, 0 }
  0x46   : > { %s2006_s29 = sshll.u32 %s197_s28, 9  ;;  %s2192_s30 = sshll.u32 %s2645_s16, 13 }
  0x47   : > { %s2827_s4 = scalar_select %p46_p9, %s2637_s14, %s48_s19  }
  0x48   : > { %s2832_s7 = scalar_lea.hbm %s3437_s0, %s2192_s30  ;;  %s201_s21 = scalar_lea.vmem [#allocation3], %s2006_s29 }
  0x49   : > { %s211_s8 = sshll.u32 %s201_s21, 4  ;;  %p2836_p2 = pnand %p2307_p3, %p57_p5  ;;  %s2840_s8 = int_to_ptr.vmem [resolvable:$true] %s211_s8 }
  0x4a   : > { %s2842_s9 = scalar_lea.sflag [#allocation4], %s197_s28  ;;  %s2533_s10 = scalar_lea.hbm %s2832_s7, 8192 }
  0x4b   : > { %p2534_p11 = scmp.ne.s32.totalorder %s2832_s7, %s2533_s10  ;;  %p2535_p12 = pneg %p2836_p2 }
  0x4c   : > { %s2538_s25 = scalar_lea.hbm %s3437_s0, 16384  ;;  %p2539_p4 = scmp.lt.u32.totalorder %s2832_s7, %s3437_s0 }
  0x4d   : > { %p2536_p0 = pnand %p2535_p12, %p2534_p11  ;;  %p2540_p13 = scmp.lt.u32.totalorder %s2538_s25, %s2533_s10 }
  0x4e   : > { %p2542_p10 = scmp.lt.u32.totalorder %s2533_s10, %s2832_s7 }
  0x4f   : > { %p2537_p1 = pneg %p2536_p0  ;;  %p2541_p6 = por %p2540_p13, %p2539_p4 }
  0x51   : > { %p2543_p3 = por %p2542_p10, %p2541_p6 }
  0x53   : > { %p2544_p5 = pnand %p2543_p3, %p2537_p1 }
  0x55   : > { %2547 = shalt.err (!%p2544_p5)
}
  0x56   : > { %s2548_s28 = scalar_lea.vmem %s2840_s8, 8192  ;;  %s2655_s5 = smov [#allocation3]  }
  0x57   : > { %p2549_p9 = scmp.ne.s32.totalorder %s2840_s8, %s2548_s28  ;;  %s2553_s6 = sshll.u32 %s2655_s5, 4  ;;  %s2554_s6 = int_to_ptr.vmem [resolvable:$false] %s2553_s6 }
  0x58   : > { %s2555_s21 = scalar_lea.vmem %s2554_s6, 16384  ;;  %p2556_p7 = scmp.lt.s32.totalorder %s2840_s8, %s2554_s6 }
  0x59   : > { %p2551_p11 = pnand %p2549_p9, %p2535_p12  ;;  %p2557_p4 = scmp.lt.s32.totalorder %s2555_s21, %s2548_s28 }
  0x5b   : > { %p2552_p0 = pneg %p2551_p11  ;;  %p2558_p13 = por %p2557_p4, %p2556_p7 }
  0x5d   : > { %p2559_p6 = pnand %p2558_p13, %p2552_p0 }
  0x5f   : > { %2562 = shalt.err (!%p2559_p6)
}
  0x60   : > { %s2656_s10 = smov 128   ;;  %s2657_s11 = smov 8  }
  0x61   : > { %2300 = dma.hbm_to_vmem [thread:$0]  (!%p2836_p2), %s2832_s7, 8192, %s2840_s8, %s2842_s9, %s2656_s10, %s2656_s10, %s2657_s11  }
  0x62   : > { %223 = sbr.rel (%p2738_p8) target bundleno = 518 (0x206), region = 32  ;;  %s2873_s19 = sand.u32 (!%p2738_p8), 1, %s2633_s13  }
  0x63   : > { %s2011_s25 = sshll.u32 (!%p2738_p8), %s2873_s19, 9  ;;  %s226_s29 = scalar_lea.sflag (!%p2738_p8), [#allocation4], %s2873_s19 }
  0x64   : > { %s2877_s30 = scalar_lea.vmem (!%p2738_p8), [#allocation3], %s2011_s25  ;;  %p3453_p7 = scmp.ne.s32.totalorder (!%p2738_p8), %s3447_s22, 0 }
  0x69   : > { %2616 = dma.done.wait (%p3453_p7), %s226_s29, 8192  }
  0x6a   : > { %2618 = vsyncadd (%p3453_p7), %s226_s29, 4294959104  ;;  %p3454_p2 = scmp.ne.s32.totalorder %s3445_s20, 0 }
  0x6c   : > { %2620 = dma.done.wait (%p3454_p2), [#allocation7], 1232  }
  0x6d   : > { %2622 = vsyncadd (%p3454_p2), [#allocation7], 4294966064  ;;  %v2658_v0 = vmov 0   ;;  %v2370_v1 = vld [vmem:[#allocation6] sm:$0xff]   ;;  %v2371_v2 = vld [vmem:[#allocation6 + $0x8] sm:$0xff]   ;;  %vm826_vm0 = vcmask 154624  }
  0x6e   : > { %930 = vmatprep.subr.bf16.mxu0 %v2658_v0  ;;  %2258 = vmatprep.subr.bf16.mxu1 %v2658_v0  ;;  %v2372_v3 = vld [vmem:[#allocation6 + $0x10] sm:$0xff]   ;;  %v2373_v4 = vld [vmem:[#allocation6 + $0x18] sm:$0xff]   ;;  %v2382_v5 = vld [vmem:[%s2877_s30 + $0x4] ss:$8 sps:$4 sm:$0xff]   ;;  %vm923_vm1 = vcmask 1040384   ;;  %vm924_vm2 = vcmask 1041408  }
  0x6f   : > { %931 = vmatpush1.bf16.msra.mxu0 %v2370_v1  ;;  %2268 = vmatpush1.bf16.msra.mxu1 %v2370_v1  ;;  %v2385_v6 = vld [vmem:[%s2877_s30 + $0x104] ss:$8 sps:$4 sm:$0xff]   ;;  %v2376_v9 = vld [vmem:[#allocation6 + $0x30] sm:$0xff]   ;;  %v2377_v10 = vld [vmem:[#allocation6 + $0x38] sm:$0xff]   ;;  %v2659_v11 = vmov 65535   ;;  %vm269_vm3 = vcmask 523264  }
  0x70   : > { %932 = vmatprep.subr.bf16.mxu0 %v2658_v0  ;;  %2259 = vmatprep.subr.bf16.mxu1 %v2658_v0  ;;  %v2374_v7 = vld [vmem:[#allocation6 + $0x20] sm:$0xff]   ;;  %v2375_v8 = vld [vmem:[#allocation6 + $0x28] sm:$0xff]   ;;  %v925_v12 = vsel %vm923_vm1, 4294967295, %v2659_v11  ;;  %v2660_v18 = vmov 0.0   ;;  %v2386_v20 = vld [vmem:[%s2877_s30 + $0x14] ss:$8 sps:$4 sm:$0xff]  }
  0x71   : > { %2089 = vmatprep.mubr.msk.bf16.mxu0 %vm826_vm0, %v2382_v5  ;;  %2105 = vmatprep.mubr.msk.bf16.mxu1 %vm826_vm0, %v2385_v6  ;;  %v2378_v13 = vld [vmem:[#allocation6 + $0x40] sm:$0xff]   ;;  %v2379_v14 = vld [vmem:[#allocation6 + $0x48] ss:$0 sps:$4 sm:$0x33]   ;;  %v926_v15 = vsel %vm924_vm2, %v925_v12, 0  ;;  %270 = vst.msk [vmem:[#allocation2] sm:$0xff] %vm269_vm3, %v2660_v18 }
  0x72   : > { %v2891_v16 = vand.u32 %v2379_v14, %v926_v15  ;;  %v2894_v17 = vld [vmem:[%s2877_s30] ss:$8 sps:$4 sm:$0xff]   ;;  %271 = vst.msk [vmem:[#allocation2 + $0x8] sm:$0xff] %vm269_vm3, %v2660_v18  ;;  %272 = vst.msk [vmem:[#allocation2 + $0x10] sm:$0xff] %vm269_vm3, %v2660_v18  ;;  %v2388_v21 = vld [vmem:[%s2877_s30 + $0x114] ss:$8 sps:$4 sm:$0xff]  }
  0x73   : > { %933 = vmatpush1.bf16.msra.mxu0 %v2371_v2  ;;  %2269 = vmatpush1.bf16.msra.mxu1 %v2371_v2  ;;  %273 = vst.msk [vmem:[#allocation2 + $0x18] sm:$0xff] %vm269_vm3, %v2660_v18  ;;  %274 = vst.msk [vmem:[#allocation2 + $0x20] sm:$0xff] %vm269_vm3, %v2660_v18  ;;  %v2383_v19 = vld [vmem:[%s2877_s30 + $0x100] ss:$8 sps:$4 sm:$0xff]   ;;  %v2390_v22 = vld [vmem:[%s2877_s30 + $0x10] ss:$8 sps:$4 sm:$0xff]  }
  0x74   : > { %934 = vmatprep.subr.bf16.mxu0 %v2658_v0  ;;  %2260 = vmatprep.subr.bf16.mxu1 %v2658_v0  ;;  %275 = vst.msk [vmem:[#allocation2 + $0x28] sm:$0xff] %vm269_vm3, %v2660_v18  ;;  %276 = vst.msk [vmem:[#allocation2 + $0x30] sm:$0xff] %vm269_vm3, %v2660_v18  ;;  %v2391_v23 = vld [vmem:[%s2877_s30 + $0x110] ss:$8 sps:$4 sm:$0xff]   ;;  %v2392_v24 = vld [vmem:[%s2877_s30 + $0x24] ss:$8 sps:$4 sm:$0xff]  }
  0x75   : > { %277 = vst.msk [vmem:[#allocation2 + $0x38] sm:$0xff] %vm269_vm3, %v2660_v18  ;;  %278 = vst.msk [vmem:[#allocation2 + $0x40] sm:$0xff] %vm269_vm3, %v2660_v18  ;;  %v2394_v25 = vld [vmem:[%s2877_s30 + $0x124] ss:$8 sps:$4 sm:$0xff]   ;;  %v2396_v26 = vld [vmem:[%s2877_s30 + $0x20] ss:$8 sps:$4 sm:$0xff]  }
  0x76   : > { %279 = vst.msk [vmem:[#allocation2 + $0x48] sm:$0xff] %vm269_vm3, %v2660_v18  ;;  %280 = vst.msk [vmem:[#allocation2 + $0x50] sm:$0xff] %vm269_vm3, %v2660_v18  ;;  %v2397_v27 = vld [vmem:[%s2877_s30 + $0x120] ss:$8 sps:$4 sm:$0xff]   ;;  %v2398_v28 = vld [vmem:[%s2877_s30 + $0x34] ss:$8 sps:$4 sm:$0xff]  }
  0x77   : > { %935 = vmatpush1.bf16.msra.mxu0 %v2372_v3  ;;  %2270 = vmatpush1.bf16.msra.mxu1 %v2372_v3  ;;  %281 = vst.msk [vmem:[#allocation2 + $0x58] sm:$0xff] %vm269_vm3, %v2660_v18  ;;  %282 = vst.msk [vmem:[#allocation2 + $0x60] sm:$0xff] %vm269_vm3, %v2660_v18  ;;  %v2400_v29 = vld [vmem:[%s2877_s30 + $0x134] ss:$8 sps:$4 sm:$0xff]   ;;  %v2402_v30 = vld [vmem:[%s2877_s30 + $0x30] ss:$8 sps:$4 sm:$0xff]  }
  0x78   : > { %936 = vmatprep.subr.bf16.mxu0 %v2658_v0  ;;  %2261 = vmatprep.subr.bf16.mxu1 %v2658_v0  ;;  %283 = vst.msk [vmem:[#allocation2 + $0x68] sm:$0xff] %vm269_vm3, %v2660_v18  ;;  %284 = vst.msk [vmem:[#allocation2 + $0x70] sm:$0xff] %vm269_vm3, %v2660_v18  ;;  %v2403_v31 = vld [vmem:[%s2877_s30 + $0x130] ss:$8 sps:$4 sm:$0xff]   ;;  %v2404_v32 = vld [vmem:[%s2877_s30 + $0x44] ss:$8 sps:$4 sm:$0xff]  }
  0x79   : > { %285 = vst.msk [vmem:[#allocation2 + $0x78] sm:$0xff] %vm269_vm3, %v2660_v18  ;;  %286 = vst.msk [vmem:[#allocation2 + $0x80] sm:$0xff] %vm269_vm3, %v2660_v18  ;;  %v2406_v33 = vld [vmem:[%s2877_s30 + $0x144] ss:$8 sps:$4 sm:$0xff]   ;;  %v2408_v34 = vld [vmem:[%s2877_s30 + $0x40] ss:$8 sps:$4 sm:$0xff]  }
  0x7a   : > { %287 = vst.msk [vmem:[#allocation2 + $0x88] sm:$0xff] %vm269_vm3, %v2660_v18  ;;  %288 = vst.msk [vmem:[#allocation2 + $0x90] sm:$0xff] %vm269_vm3, %v2660_v18  ;;  %v2409_v35 = vld [vmem:[%s2877_s30 + $0x140] ss:$8 sps:$4 sm:$0xff]   ;;  %v2410_v36 = vld [vmem:[%s2877_s30 + $0x54] ss:$8 sps:$4 sm:$0xff]  }
  0x7b   : > { %937 = vmatpush1.bf16.msra.mxu0 %v2373_v4  ;;  %2271 = vmatpush1.bf16.msra.mxu1 %v2373_v4  ;;  %289 = vst.msk [vmem:[#allocation2 + $0x98] sm:$0xff] %vm269_vm3, %v2660_v18  ;;  %290 = vst.msk [vmem:[#allocation2 + $0xa0] sm:$0xff] %vm269_vm3, %v2660_v18  ;;  %v2412_v37 = vld [vmem:[%s2877_s30 + $0x154] ss:$8 sps:$4 sm:$0xff]   ;;  %v2414_v38 = vld [vmem:[%s2877_s30 + $0x50] ss:$8 sps:$4 sm:$0xff]  }
  0x7c   : > { %938 = vmatprep.subr.bf16.mxu0 %v2658_v0  ;;  %2262 = vmatprep.subr.bf16.mxu1 %v2658_v0  ;;  %291 = vst.msk [vmem:[#allocation2 + $0xa8] sm:$0xff] %vm269_vm3, %v2660_v18  ;;  %292 = vst.msk [vmem:[#allocation2 + $0xb0] sm:$0xff] %vm269_vm3, %v2660_v18  ;;  %v2415_v39 = vld [vmem:[%s2877_s30 + $0x150] ss:$8 sps:$4 sm:$0xff]   ;;  %v2416_v40 = vld [vmem:[%s2877_s30 + $0x64] ss:$8 sps:$4 sm:$0xff]  }
  0x7d   : > { %293 = vst.msk [vmem:[#allocation2 + $0xb8] sm:$0xff] %vm269_vm3, %v2660_v18  ;;  %294 = vst.msk [vmem:[#allocation2 + $0xc0] sm:$0xff] %vm269_vm3, %v2660_v18  ;;  %v2418_v41 = vld [vmem:[%s2877_s30 + $0x164] ss:$8 sps:$4 sm:$0xff]   ;;  %v2420_v42 = vld [vmem:[%s2877_s30 + $0x60] ss:$8 sps:$4 sm:$0xff]  }
  0x7e   : > { %295 = vst.msk [vmem:[#allocation2 + $0xc8] sm:$0xff] %vm269_vm3, %v2660_v18  ;;  %296 = vst.msk [vmem:[#allocation2 + $0xd0] sm:$0xff] %vm269_vm3, %v2660_v18  ;;  %v2421_v43 = vld [vmem:[%s2877_s30 + $0x160] ss:$8 sps:$4 sm:$0xff]   ;;  %v2422_v44 = vld [vmem:[%s2877_s30 + $0x74] ss:$8 sps:$4 sm:$0xff]  }
  0x7f   : > { %939 = vmatpush1.bf16.msra.mxu0 %v2374_v7  ;;  %2272 = vmatpush1.bf16.msra.mxu1 %v2374_v7  ;;  %297 = vst.msk [vmem:[#allocation2 + $0xd8] sm:$0xff] %vm269_vm3, %v2660_v18  ;;  %298 = vst.msk [vmem:[#allocation2 + $0xe0] sm:$0xff] %vm269_vm3, %v2660_v18  ;;  %v2424_v45 = vld [vmem:[%s2877_s30 + $0x174] ss:$8 sps:$4 sm:$0xff]   ;;  %v2426_v46 = vld [vmem:[%s2877_s30 + $0x70] ss:$8 sps:$4 sm:$0xff]  }
  0x80   : > { %940 = vmatprep.subr.bf16.mxu0 %v2658_v0  ;;  %2263 = vmatprep.subr.bf16.mxu1 %v2658_v0  ;;  %299 = vst.msk [vmem:[#allocation2 + $0xe8] sm:$0xff] %vm269_vm3, %v2660_v18  ;;  %300 = vst.msk [vmem:[#allocation2 + $0xf0] sm:$0xff] %vm269_vm3, %v2660_v18  ;;  %v2427_v47 = vld [vmem:[%s2877_s30 + $0x170] ss:$8 sps:$4 sm:$0xff]   ;;  %v2428_v48 = vld [vmem:[%s2877_s30 + $0x84] ss:$8 sps:$4 sm:$0xff]  }
  0x81   : > { %301 = vst.msk [vmem:[#allocation2 + $0xf8] sm:$0xff] %vm269_vm3, %v2660_v18  ;;  %302 = vst.msk [vmem:[#allocation2 + $0x100] sm:$0xff] %vm269_vm3, %v2660_v18  ;;  %v2430_v49 = vld [vmem:[%s2877_s30 + $0x184] ss:$8 sps:$4 sm:$0xff]   ;;  %v2432_v50 = vld [vmem:[%s2877_s30 + $0x80] ss:$8 sps:$4 sm:$0xff]  }
  0x82   : > { %303 = vst.msk [vmem:[#allocation2 + $0x108] sm:$0xff] %vm269_vm3, %v2660_v18  ;;  %304 = vst.msk [vmem:[#allocation2 + $0x110] sm:$0xff] %vm269_vm3, %v2660_v18  ;;  %v2433_v51 = vld [vmem:[%s2877_s30 + $0x180] ss:$8 sps:$4 sm:$0xff]   ;;  %v2434_v52 = vld [vmem:[%s2877_s30 + $0x94] ss:$8 sps:$4 sm:$0xff]  }
  0x83   : > { %941 = vmatpush1.bf16.msra.mxu0 %v2375_v8  ;;  %2273 = vmatpush1.bf16.msra.mxu1 %v2375_v8  ;;  %305 = vst.msk [vmem:[#allocation2 + $0x118] sm:$0xff] %vm269_vm3, %v2660_v18  ;;  %306 = vst.msk [vmem:[#allocation2 + $0x120] sm:$0xff] %vm269_vm3, %v2660_v18  ;;  %v2436_v53 = vld [vmem:[%s2877_s30 + $0x194] ss:$8 sps:$4 sm:$0xff]   ;;  %v2438_v54 = vld [vmem:[%s2877_s30 + $0x90] ss:$8 sps:$4 sm:$0xff]  }
  0x84   : > { %942 = vmatprep.subr.bf16.mxu0 %v2658_v0  ;;  %2264 = vmatprep.subr.bf16.mxu1 %v2658_v0  ;;  %307 = vst.msk [vmem:[#allocation2 + $0x128] sm:$0xff] %vm269_vm3, %v2660_v18  ;;  %308 = vst.msk [vmem:[#allocation2 + $0x130] sm:$0xff] %vm269_vm3, %v2660_v18  ;;  %v2439_v55 = vld [vmem:[%s2877_s30 + $0x190] ss:$8 sps:$4 sm:$0xff]   ;;  %v2440_v56 = vld [vmem:[%s2877_s30 + $0xa4] ss:$8 sps:$4 sm:$0xff]  }
  0x85   : > { %309 = vst.msk [vmem:[#allocation2 + $0x138] sm:$0xff] %vm269_vm3, %v2660_v18  ;;  %310 = vst.msk [vmem:[#allocation2 + $0x140] sm:$0xff] %vm269_vm3, %v2660_v18  ;;  %v2442_v57 = vld [vmem:[%s2877_s30 + $0x1a4] ss:$8 sps:$4 sm:$0xff]   ;;  %v2444_v58 = vld [vmem:[%s2877_s30 + $0xa0] ss:$8 sps:$4 sm:$0xff]  }
  0x86   : > { %311 = vst.msk [vmem:[#allocation2 + $0x148] sm:$0xff] %vm269_vm3, %v2660_v18  ;;  %312 = vst.msk [vmem:[#allocation2 + $0x150] sm:$0xff] %vm269_vm3, %v2660_v18  ;;  %v2445_v59 = vld [vmem:[%s2877_s30 + $0x1a0] ss:$8 sps:$4 sm:$0xff]   ;;  %v2446_v60 = vld [vmem:[%s2877_s30 + $0xb4] ss:$8 sps:$4 sm:$0xff]  }
  0x87   : > { %943 = vmatpush1.bf16.msra.mxu0 %v2376_v9  ;;  %2274 = vmatpush1.bf16.msra.mxu1 %v2376_v9  ;;  %313 = vst.msk [vmem:[#allocation2 + $0x158] sm:$0xff] %vm269_vm3, %v2660_v18  ;;  %314 = vst.msk [vmem:[#allocation2 + $0x160] sm:$0xff] %vm269_vm3, %v2660_v18  ;;  %v2448_v61 = vld [vmem:[%s2877_s30 + $0x1b4] ss:$8 sps:$4 sm:$0xff]   ;;  %v2450_v62 = vld [vmem:[%s2877_s30 + $0xb0] ss:$8 sps:$4 sm:$0xff]  }
  0x88   : > { %944 = vmatprep.subr.bf16.mxu0 %v2658_v0  ;;  %2265 = vmatprep.subr.bf16.mxu1 %v2658_v0  ;;  %315 = vst.msk [vmem:[#allocation2 + $0x168] sm:$0xff] %vm269_vm3, %v2660_v18  ;;  %316 = vst.msk [vmem:[#allocation2 + $0x170] sm:$0xff] %vm269_vm3, %v2660_v18  ;;  %v2451_v63 = vld [vmem:[%s2877_s30 + $0x1b0] ss:$8 sps:$4 sm:$0xff]   ;;  %v2454_v1 = vld [vmem:[%s2877_s30 + $0x1c4] ss:$8 sps:$4 sm:$0xff]  }
  0x89   : > { %317 = vst.msk [vmem:[#allocation2 + $0x178] sm:$0xff] %vm269_vm3, %v2660_v18  ;;  %318 = vst.msk [vmem:[#allocation2 + $0x180] sm:$0xff] %vm269_vm3, %v2660_v18  ;;  %v2456_v2 = vld [vmem:[%s2877_s30 + $0xc0] ss:$8 sps:$4 sm:$0xff]   ;;  %v2458_v4 = vld [vmem:[%s2877_s30 + $0xd4] ss:$8 sps:$4 sm:$0xff]  }
  0x8a   : > { %319 = vst.msk [vmem:[#allocation2 + $0x188] sm:$0xff] %vm269_vm3, %v2660_v18  ;;  %320 = vst.msk [vmem:[#allocation2 + $0x190] sm:$0xff] %vm269_vm3, %v2660_v18  ;;  %v2457_v3 = vld [vmem:[%s2877_s30 + $0x1c0] ss:$8 sps:$4 sm:$0xff]   ;;  %v2460_v5 = vld [vmem:[%s2877_s30 + $0x1d4] ss:$8 sps:$4 sm:$0xff]  }
  0x8b   : > { %945 = vmatpush1.bf16.msra.mxu0 %v2377_v10  ;;  %2275 = vmatpush1.bf16.msra.mxu1 %v2377_v10  ;;  %321 = vst.msk [vmem:[#allocation2 + $0x198] sm:$0xff] %vm269_vm3, %v2660_v18  ;;  %322 = vst.msk [vmem:[#allocation2 + $0x1a0] sm:$0xff] %vm269_vm3, %v2660_v18  ;;  %v2462_v6 = vld [vmem:[%s2877_s30 + $0xd0] ss:$8 sps:$4 sm:$0xff]   ;;  %v2464_v8 = vld [vmem:[%s2877_s30 + $0xe4] ss:$8 sps:$4 sm:$0xff]  }
  0x8c   : > { %946 = vmatprep.subr.bf16.mxu0 %v2658_v0  ;;  %2266 = vmatprep.subr.bf16.mxu1 %v2658_v0  ;;  %323 = vst.msk [vmem:[#allocation2 + $0x1a8] sm:$0xff] %vm269_vm3, %v2660_v18  ;;  %324 = vst.msk [vmem:[#allocation2 + $0x1b0] sm:$0xff] %vm269_vm3, %v2660_v18  ;;  %v2463_v7 = vld [vmem:[%s2877_s30 + $0x1d0] ss:$8 sps:$4 sm:$0xff]   ;;  %v2466_v9 = vld [vmem:[%s2877_s30 + $0x1e4] ss:$8 sps:$4 sm:$0xff]  }
  0x8d   : > { %325 = vst.msk [vmem:[#allocation2 + $0x1b8] sm:$0xff] %vm269_vm3, %v2660_v18  ;;  %326 = vst.msk [vmem:[#allocation2 + $0x1c0] sm:$0xff] %vm269_vm3, %v2660_v18  ;;  %v2468_v10 = vld [vmem:[%s2877_s30 + $0xe0] ss:$8 sps:$4 sm:$0xff]   ;;  %v2470_v12 = vld [vmem:[%s2877_s30 + $0xf4] ss:$8 sps:$4 sm:$0xff]  }
  0x8e   : > { %327 = vst.msk [vmem:[#allocation2 + $0x1c8] sm:$0xff] %vm269_vm3, %v2660_v18  ;;  %328 = vst.msk [vmem:[#allocation2 + $0x1d0] sm:$0xff] %vm269_vm3, %v2660_v18  ;;  %v2469_v11 = vld [vmem:[%s2877_s30 + $0x1e0] ss:$8 sps:$4 sm:$0xff]   ;;  %v2474_v14 = vld [vmem:[%s2877_s30 + $0xf0] ss:$8 sps:$4 sm:$0xff]  }
  0x8f   : > { %947 = vmatpush1.bf16.msra.mxu0 %v2378_v13  ;;  %2276 = vmatpush1.bf16.msra.mxu1 %v2378_v13  ;;  %329 = vst.msk [vmem:[#allocation2 + $0x1d8] sm:$0xff] %vm269_vm3, %v2660_v18  ;;  %330 = vst.msk [vmem:[#allocation2 + $0x1e0] sm:$0xff] %vm269_vm3, %v2660_v18  ;;  %v2472_v13 = vld [vmem:[%s2877_s30 + $0x1f4] ss:$8 sps:$4 sm:$0xff]   ;;  %v2475_v15 = vld [vmem:[%s2877_s30 + $0x1f0] ss:$8 sps:$4 sm:$0xff]  }
  0x90   : > { %948 = vmatprep.subr.bf16.mxu0 %v2658_v0  ;;  %2267 = vmatprep.subr.bf16.mxu1 %v2658_v0  ;;  %331 = vst.msk [vmem:[#allocation2 + $0x1e8] sm:$0xff] %vm269_vm3, %v2660_v18  ;;  %332 = vst.msk [vmem:[#allocation2 + $0x1f0] sm:$0xff] %vm269_vm3, %v2660_v18  ;;  %v2452_v0 = vld [vmem:[%s2877_s30 + $0xc4] ss:$8 sps:$4 sm:$0xff]   ;;  %s2014_s20 = sshll.u32 %s2873_s19, 8  ;;  %vm1806_vm4 = vcmask 519168  }
  0x91   : > { %333 = vst.msk [vmem:[#allocation2 + $0x1f8] sm:$0xff] %vm269_vm3, %v2660_v18  ;;  %s3133_s22 = scalar_lea.vmem [#allocation9], %s2014_s20  ;;  %s2257_s24 = sshll.u32 %s2641_s15, 12 }
  0x92   : > { %s1886_s7 = sshll.u32 %s3133_s22, 4  ;;  %s3378_s9 = scalar_lea.hbm %s3440_s3, %s2257_s24  ;;  %s3380_s7 = int_to_ptr.vmem [resolvable:$true] %s1886_s7 }
  0x93   : > { %949 = vmatpush1.bf16.msra.mxu0 %v2891_v16  ;;  %2277 = vmatpush1.bf16.msra.mxu1 %v2891_v16  ;;  %v334_v16 = vld [vmem:[#allocation2] sm:$0xff]  ;;  %s1872_s15 = scalar_lea.sflag [#allocation5], %s2873_s19  ;;  %s2563_s28 = scalar_lea.vmem %s3380_s7, 4096 }
  0x94   : > { %p2564_p8 = scmp.ne.s32.totalorder %s3380_s7, %s2563_s28  ;;  %p3455_p12 = scmp.ne.s32.totalorder %s3451_s27, 0 }
  0x95   : > { %s2661_s5 = smov [#allocation9]  }
  0x96   : > { %963 = vmatmul.mubr.bf16.vlgmr.msra.gmra.mrb[0].mxu0 %v2894_v17  ;;  %1091 = vmatmul.mubr.bf16.vlgmr.msra.gmra.mrb[0].mxu1 %v2383_v19  ;;  %v366_v17 = vld [vmem:[#allocation2 + $0x100] sm:$0xff]  ;;  %p2565_p1 = pnand %p2564_p8, %p3455_p12  ;;  %s2567_s6 = sshll.u32 %s2661_s5, 4  ;;  %s2568_s6 = int_to_ptr.vmem [resolvable:$false] %s2567_s6 }
  0x97   : > { %2090 = vmatprep.mubr.msk.bf16.mxu0 %vm826_vm0, %v2386_v20  ;;  %2106 = vmatprep.mubr.msk.bf16.mxu1 %vm826_vm0, %v2388_v21  ;;  %v335_v20 = vld [vmem:[#allocation2 + $0x8] sm:$0xff]  ;;  %s2569_s21 = scalar_lea.vmem %s2568_s6, 8192  ;;  %p2570_p3 = scmp.lt.s32.totalorder %s3380_s7, %s2568_s6 }
  0x98   : > { %v367_v21 = vld [vmem:[#allocation2 + $0x108] sm:$0xff]  ;;  %p2566_p10 = pneg %p2565_p1  ;;  %p2571_p5 = scmp.lt.s32.totalorder %s2569_s21, %s2563_s28 }
  0x9a   : > { %p2572_p9 = por %p2571_p5, %p2570_p3 }
  0x9c   : > { %p2573_p11 = pnand %p2572_p9, %p2566_p10 }
  0x9e   : > { %971 = vmatmul.mubr.bf16.gmra.mrb[4].mxu0 %v2390_v22  ;;  %1099 = vmatmul.mubr.bf16.gmra.mrb[4].mxu1 %v2391_v23 }
  0x9f   : > { %2091 = vmatprep.mubr.msk.bf16.mxu0 %vm826_vm0, %v2392_v24  ;;  %2107 = vmatprep.mubr.msk.bf16.mxu1 %vm826_vm0, %v2394_v25 }
  0xa6   : > { %979 = vmatmul.mubr.bf16.gmra.mrb[8].mxu0 %v2396_v26  ;;  %1107 = vmatmul.mubr.bf16.gmra.mrb[8].mxu1 %v2397_v27 }
  0xa7   : > { %2092 = vmatprep.mubr.msk.bf16.mxu0 %vm826_vm0, %v2398_v28  ;;  %2108 = vmatprep.mubr.msk.bf16.mxu1 %vm826_vm0, %v2400_v29 }
  0xae   : > { %987 = vmatmul.mubr.bf16.gmra.mrb[12].mxu0 %v2402_v30  ;;  %1115 = vmatmul.mubr.bf16.gmra.mrb[12].mxu1 %v2403_v31 }
  0xaf   : > { %2093 = vmatprep.mubr.msk.bf16.mxu0 %vm826_vm0, %v2404_v32  ;;  %2109 = vmatprep.mubr.msk.bf16.mxu1 %vm826_vm0, %v2406_v33  ;;  %v336_v32 = vld [vmem:[#allocation2 + $0x10] sm:$0xff] }
  0xb0   : > { %v368_v33 = vld [vmem:[#allocation2 + $0x110] sm:$0xff] }
  0xb6   : > { %995 = vmatmul.mubr.bf16.gmra.mrb[16].mxu0 %v2408_v34  ;;  %1123 = vmatmul.mubr.bf16.gmra.mrb[16].mxu1 %v2409_v35  ;;  %v3122_v34 = vld [vmem:[#allocation8] ss:$0 sm:$0xff] }
  0xb7   : > { %2094 = vmatprep.mubr.msk.bf16.mxu0 %vm826_vm0, %v2410_v36  ;;  %2110 = vmatprep.mubr.msk.bf16.mxu1 %vm826_vm0, %v2412_v37  ;;  %v337_v37 = vld [vmem:[#allocation2 + $0x18] sm:$0xff] }
  0xbe   : > { %1003 = vmatmul.mubr.bf16.gmra.mrb[20].mxu0 %v2414_v38  ;;  %1131 = vmatmul.mubr.bf16.gmra.mrb[20].mxu1 %v2415_v39  ;;  %v369_v38 = vld [vmem:[#allocation2 + $0x118] sm:$0xff] }
  0xbf   : > { %2095 = vmatprep.mubr.msk.bf16.mxu0 %vm826_vm0, %v2416_v40  ;;  %2111 = vmatprep.mubr.msk.bf16.mxu1 %vm826_vm0, %v2418_v41 }
  0xc6   : > { %1011 = vmatmul.mubr.bf16.gmra.mrb[24].mxu0 %v2420_v42  ;;  %1139 = vmatmul.mubr.bf16.gmra.mrb[24].mxu1 %v2421_v43 }
  0xc7   : > { %2096 = vmatprep.mubr.msk.bf16.mxu0 %vm826_vm0, %v2422_v44  ;;  %2112 = vmatprep.mubr.msk.bf16.mxu1 %vm826_vm0, %v2424_v45 }
  0xce   : > { %1019 = vmatmul.mubr.bf16.gmra.mrb[28].mxu0 %v2426_v46  ;;  %1147 = vmatmul.mubr.bf16.gmra.mrb[28].mxu1 %v2427_v47 }
  0xcf   : > { %2097 = vmatprep.mubr.msk.bf16.mxu0 %vm826_vm0, %v2428_v48  ;;  %2113 = vmatprep.mubr.msk.bf16.mxu1 %vm826_vm0, %v2430_v49 }
  0xd6   : > { %1027 = vmatmul.mubr.bf16.gmra.mrb[32].mxu0 %v2432_v50  ;;  %1155 = vmatmul.mubr.bf16.gmra.mrb[32].mxu1 %v2433_v51 }
  0xd7   : > { %2098 = vmatprep.mubr.msk.bf16.mxu0 %vm826_vm0, %v2434_v52  ;;  %2114 = vmatprep.mubr.msk.bf16.mxu1 %vm826_vm0, %v2436_v53 }
  0xde   : > { %1035 = vmatmul.mubr.bf16.gmra.mrb[36].mxu0 %v2438_v54  ;;  %1163 = vmatmul.mubr.bf16.gmra.mrb[36].mxu1 %v2439_v55 }
  0xdf   : > { %2099 = vmatprep.mubr.msk.bf16.mxu0 %vm826_vm0, %v2440_v56  ;;  %2115 = vmatprep.mubr.msk.bf16.mxu1 %vm826_vm0, %v2442_v57 }
  0xe6   : > { %1043 = vmatmul.mubr.bf16.gmra.mrb[40].mxu0 %v2444_v58  ;;  %1171 = vmatmul.mubr.bf16.gmra.mrb[40].mxu1 %v2445_v59  ;;  %v338_v59 = vld [vmem:[#allocation2 + $0x20] sm:$0xff] }
  0xe7   : > { %2100 = vmatprep.mubr.msk.bf16.mxu0 %vm826_vm0, %v2446_v60  ;;  %2116 = vmatprep.mubr.msk.bf16.mxu1 %vm826_vm0, %v2448_v61  ;;  %v370_v60 = vld [vmem:[#allocation2 + $0x120] sm:$0xff] }
  0xee   : > { %1051 = vmatmul.mubr.bf16.gmra.mrb[44].mxu0 %v2450_v62  ;;  %1179 = vmatmul.mubr.bf16.gmra.mrb[44].mxu1 %v2451_v63 }
  0xef   : > { %2101 = vmatprep.mubr.msk.bf16.mxu0 %vm826_vm0, %v2452_v0  ;;  %2117 = vmatprep.mubr.msk.bf16.mxu1 %vm826_vm0, %v2454_v1 }
  0xf6   : > { %1059 = vmatmul.mubr.bf16.gmra.mrb[48].mxu0 %v2456_v2  ;;  %1187 = vmatmul.mubr.bf16.gmra.mrb[48].mxu1 %v2457_v3  ;;  %v339_v3 = vld [vmem:[#allocation2 + $0x28] sm:$0xff] }
  0xf7   : > { %2102 = vmatprep.mubr.msk.bf16.mxu0 %vm826_vm0, %v2458_v4  ;;  %2118 = vmatprep.mubr.msk.bf16.mxu1 %vm826_vm0, %v2460_v5  ;;  %v371_v4 = vld [vmem:[#allocation2 + $0x128] sm:$0xff] }
  0xfe   : > { %1067 = vmatmul.mubr.bf16.gmra.mrb[52].mxu0 %v2462_v6  ;;  %1195 = vmatmul.mubr.bf16.gmra.mrb[52].mxu1 %v2463_v7 }
  0xff   : > { %2103 = vmatprep.mubr.msk.bf16.mxu0 %vm826_vm0, %v2464_v8  ;;  %2119 = vmatprep.mubr.msk.bf16.mxu1 %vm826_vm0, %v2466_v9 }
 0x106   : > { %1075 = vmatmul.mubr.bf16.gmra.mrb[56].mxu0 %v2468_v10  ;;  %1203 = vmatmul.mubr.bf16.gmra.mrb[56].mxu1 %v2469_v11 }
 0x107   : > { %2104 = vmatprep.mubr.msk.bf16.mxu0 %vm826_vm0, %v2470_v12  ;;  %2120 = vmatprep.mubr.msk.bf16.mxu1 %vm826_vm0, %v2472_v13 }
 0x10e   : > { %1083 = vmatmul.mubr.bf16.gmra.mrb[60].mxu0 %v2474_v14  ;;  %1211 = vmatmul.mubr.bf16.gmra.mrb[60].mxu1 %v2475_v15 }
 0x169   : > { %v964_v18 = vpop.f32.mrb[0].mxu0  ;;  %v1092_v19 = vpop.f32.mrb[0].mxu1 }
 0x16a   : > { %v1219_v22 = vadd.f32 %v964_v18, %v334_v16  ;;  %v1251_v23 = vadd.f32 %v1092_v19, %v366_v17  ;;  %v966_v24 = vpop.f32.mrb[1].mxu0  ;;  %v1094_v25 = vpop.f32.mrb[1].mxu1 }
 0x16b   : > { %v967_v26 = vpop.f32.mrb[2].mxu0  ;;  %v1095_v27 = vpop.f32.mrb[2].mxu1 }
 0x16c   : > { %1284 = vst.msk [vmem:[#allocation2] sm:$0xff] %vm269_vm3, %v1219_v22  ;;  %1316 = vst.msk [vmem:[#allocation2 + $0x100] sm:$0xff] %vm269_vm3, %v1251_v23  ;;  %v1220_v28 = vadd.f32 %v967_v26, %v335_v20  ;;  %v1252_v29 = vadd.f32 %v1095_v27, %v367_v21  ;;  %v969_v30 = vpop.f32.mrb[3].mxu0  ;;  %v1097_v31 = vpop.f32.mrb[3].mxu1  ;;  %v340_v27 = vld [vmem:[#allocation2 + $0x30] sm:$0xff] }
 0x16e   : > { %1285 = vst.msk [vmem:[#allocation2 + $0x8] sm:$0xff] %vm269_vm3, %v1220_v28  ;;  %1317 = vst.msk [vmem:[#allocation2 + $0x108] sm:$0xff] %vm269_vm3, %v1252_v29  ;;  %v372_v28 = vld [vmem:[#allocation2 + $0x130] sm:$0xff] }
 0x171   : > { %v972_v35 = vpop.f32.mrb[4].mxu0  ;;  %v1100_v36 = vpop.f32.mrb[4].mxu1 }
 0x172   : > { %v1221_v39 = vadd.f32 %v972_v35, %v336_v32  ;;  %v1253_v40 = vadd.f32 %v1100_v36, %v368_v33  ;;  %v974_v41 = vpop.f32.mrb[5].mxu0  ;;  %v1102_v42 = vpop.f32.mrb[5].mxu1  ;;  %v341_v36 = vld [vmem:[#allocation2 + $0x38] sm:$0xff] }
 0x173   : > { %v1351_v43 = vld [vmem:[#allocation2] sm:$0xff]  ;;  %v975_v45 = vpop.f32.mrb[6].mxu0  ;;  %v1103_v46 = vpop.f32.mrb[6].mxu1 }
 0x174   : > { %v1383_v44 = vld [vmem:[#allocation2 + $0x100] sm:$0xff]  ;;  %v1422_v47 = vadd.f32 %v3122_v34, %v1351_v43  ;;  %1286 = vst.msk [vmem:[#allocation2 + $0x10] sm:$0xff] %vm269_vm3, %v1221_v39  ;;  %1318 = vst.msk [vmem:[#allocation2 + $0x110] sm:$0xff] %vm269_vm3, %v1253_v40  ;;  %v1222_v49 = vadd.f32 %v975_v45, %v337_v37  ;;  %v1254_v50 = vadd.f32 %v1103_v46, %v369_v38  ;;  %v977_v51 = vpop.f32.mrb[7].mxu0  ;;  %v1105_v52 = vpop.f32.mrb[7].mxu1  ;;  %v373_v37 = vld [vmem:[#allocation2 + $0x138] sm:$0xff] }
 0x175   : > { %v1454_v48 = vadd.f32 %v3122_v34, %v1383_v44  ;;  %v1352_v53 = vld [vmem:[#allocation2 + $0x8] sm:$0xff] }
 0x176   : > { %v1384_v54 = vld [vmem:[#allocation2 + $0x108] sm:$0xff]  ;;  %v1486_v55 = vmax.f32 %v1422_v47, 0.0  ;;  %v1423_v57 = vadd.f32 %v3122_v34, %v1352_v53  ;;  %1287 = vst.msk [vmem:[#allocation2 + $0x18] sm:$0xff] %vm269_vm3, %v1222_v49  ;;  %1319 = vst.msk [vmem:[#allocation2 + $0x118] sm:$0xff] %vm269_vm3, %v1254_v50 }
 0x177   : > { %v1518_v56 = vmax.f32 %v1454_v48, 0.0  ;;  %v1455_v58 = vadd.f32 %v3122_v34, %v1384_v54 }
 0x178   : > { %v2193_v61 = vpack.c.bf16 %v1486_v55, %v1486_v55  ;;  %v1487_v63 = vmax.f32 %v1423_v57, 0.0 }
 0x179   : > { %v2225_v62 = vpack.c.bf16 %v1518_v56, %v1518_v56  ;;  %v1519_v0 = vmax.f32 %v1455_v58, 0.0  ;;  %v980_v1 = vpop.f32.mrb[8].mxu0  ;;  %v1108_v2 = vpop.f32.mrb[8].mxu1 }
 0x17a   : > { %1807 = vst.msk [vmem:[%s3133_s22] sm:$0xf] %vm1806_vm4, %v2193_v61  ;;  %v2194_v5 = vpack.c.bf16 %v1487_v63, %v1487_v63  ;;  %v1223_v7 = vadd.f32 %v980_v1, %v338_v59  ;;  %v1255_v8 = vadd.f32 %v1108_v2, %v370_v60  ;;  %v982_v9 = vpop.f32.mrb[9].mxu0  ;;  %v1110_v10 = vpop.f32.mrb[9].mxu1  ;;  %v342_v60 = vld [vmem:[#allocation2 + $0x40] sm:$0xff] }
 0x17b   : > { %1839 = vst.msk [vmem:[%s3133_s22 + $0x80] sm:$0xf] %vm1806_vm4, %v2225_v62  ;;  %v2226_v6 = vpack.c.bf16 %v1519_v0, %v1519_v0  ;;  %v1353_v11 = vld [vmem:[#allocation2 + $0x10] sm:$0xff]  ;;  %v983_v13 = vpop.f32.mrb[10].mxu0  ;;  %v1111_v14 = vpop.f32.mrb[10].mxu1  ;;  %v374_v61 = vld [vmem:[#allocation2 + $0x140] sm:$0xff] }
 0x17c   : > { %v1385_v12 = vld [vmem:[#allocation2 + $0x110] sm:$0xff]  ;;  %1808 = vst.msk [vmem:[%s3133_s22 + $0x4] sm:$0xf] %vm1806_vm4, %v2194_v5  ;;  %v1424_v15 = vadd.f32 %v3122_v34, %v1353_v11  ;;  %v1224_v17 = vadd.f32 %v983_v13, %v339_v3  ;;  %v1256_v18 = vadd.f32 %v1111_v14, %v371_v4  ;;  %v985_v19 = vpop.f32.mrb[11].mxu0  ;;  %v1113_v20 = vpop.f32.mrb[11].mxu1  ;;  %v343_v4 = vld [vmem:[#allocation2 + $0x48] sm:$0xff] }
 0x17d   : > { %1840 = vst.msk [vmem:[%s3133_s22 + $0x84] sm:$0xf] %vm1806_vm4, %v2226_v6  ;;  %v1456_v16 = vadd.f32 %v3122_v34, %v1385_v12  ;;  %v1354_v21 = vld [vmem:[#allocation2 + $0x18] sm:$0xff]  ;;  %v375_v5 = vld [vmem:[#allocation2 + $0x148] sm:$0xff] }
 0x17e   : > { %1288 = vst.msk [vmem:[#allocation2 + $0x20] sm:$0xff] %vm269_vm3, %v1223_v7  ;;  %1320 = vst.msk [vmem:[#allocation2 + $0x120] sm:$0xff] %vm269_vm3, %v1255_v8  ;;  %v1386_v22 = vld [vmem:[#allocation2 + $0x118] sm:$0xff]  ;;  %v1488_v23 = vmax.f32 %v1424_v15, 0.0  ;;  %v1425_v25 = vadd.f32 %v3122_v34, %v1354_v21 }
 0x17f   : > { %v1520_v24 = vmax.f32 %v1456_v16, 0.0  ;;  %v1457_v26 = vadd.f32 %v3122_v34, %v1386_v22  ;;  %1289 = vst.msk [vmem:[#allocation2 + $0x28] sm:$0xff] %vm269_vm3, %v1224_v17  ;;  %1321 = vst.msk [vmem:[#allocation2 + $0x128] sm:$0xff] %vm269_vm3, %v1256_v18 }
 0x180   : > { %v2195_v29 = vpack.c.bf16 %v1488_v23, %v1488_v23  ;;  %v1489_v31 = vmax.f32 %v1425_v25, 0.0 }
 0x181   : > { %v2227_v30 = vpack.c.bf16 %v1520_v24, %v1520_v24  ;;  %v1521_v32 = vmax.f32 %v1457_v26, 0.0  ;;  %v988_v33 = vpop.f32.mrb[12].mxu0  ;;  %v1116_v35 = vpop.f32.mrb[12].mxu1 }
 0x182   : > { %1809 = vst.msk [vmem:[%s3133_s22 + $0x8] sm:$0xf] %vm1806_vm4, %v2195_v29  ;;  %v2196_v38 = vpack.c.bf16 %v1489_v31, %v1489_v31  ;;  %v1225_v40 = vadd.f32 %v988_v33, %v340_v27  ;;  %v1257_v41 = vadd.f32 %v1116_v35, %v372_v28  ;;  %v990_v42 = vpop.f32.mrb[13].mxu0  ;;  %v1118_v43 = vpop.f32.mrb[13].mxu1  ;;  %v344_v28 = vld [vmem:[#allocation2 + $0x50] sm:$0xff] }
 0x183   : > { %1841 = vst.msk [vmem:[%s3133_s22 + $0x88] sm:$0xf] %vm1806_vm4, %v2227_v30  ;;  %v2228_v39 = vpack.c.bf16 %v1521_v32, %v1521_v32  ;;  %v991_v46 = vpop.f32.mrb[14].mxu0  ;;  %v1119_v47 = vpop.f32.mrb[14].mxu1  ;;  %v376_v29 = vld [vmem:[#allocation2 + $0x150] sm:$0xff] }
 0x184   : > { %1810 = vst.msk [vmem:[%s3133_s22 + $0xc] sm:$0xf] %vm1806_vm4, %v2196_v38  ;;  %v1226_v50 = vadd.f32 %v991_v46, %v341_v36  ;;  %v1258_v51 = vadd.f32 %v1119_v47, %v373_v37  ;;  %v993_v52 = vpop.f32.mrb[15].mxu0  ;;  %v1121_v53 = vpop.f32.mrb[15].mxu1  ;;  %v345_v37 = vld [vmem:[#allocation2 + $0x58] sm:$0xff] }
 0x185   : > { %v1355_v44 = vld [vmem:[#allocation2 + $0x20] sm:$0xff]  ;;  %1842 = vst.msk [vmem:[%s3133_s22 + $0x8c] sm:$0xf] %vm1806_vm4, %v2228_v39  ;;  %v377_v38 = vld [vmem:[#allocation2 + $0x158] sm:$0xff] }
 0x186   : > { %v1387_v45 = vld [vmem:[#allocation2 + $0x120] sm:$0xff]  ;;  %v1426_v48 = vadd.f32 %v3122_v34, %v1355_v44  ;;  %1290 = vst.msk [vmem:[#allocation2 + $0x30] sm:$0xff] %vm269_vm3, %v1225_v40  ;;  %1322 = vst.msk [vmem:[#allocation2 + $0x130] sm:$0xff] %vm269_vm3, %v1257_v41  ;;  %v1356_v54 = vld [vmem:[#allocation2 + $0x28] sm:$0xff] }
 0x187   : > { %v1458_v49 = vadd.f32 %v3122_v34, %v1387_v45  ;;  %v1388_v55 = vld [vmem:[#allocation2 + $0x128] sm:$0xff]  ;;  %v1427_v58 = vadd.f32 %v3122_v34, %v1356_v54  ;;  %1291 = vst.msk [vmem:[#allocation2 + $0x38] sm:$0xff] %vm269_vm3, %v1226_v50  ;;  %1323 = vst.msk [vmem:[#allocation2 + $0x138] sm:$0xff] %vm269_vm3, %v1258_v51 }
 0x188   : > { %v1490_v56 = vmax.f32 %v1426_v48, 0.0  ;;  %v1459_v59 = vadd.f32 %v3122_v34, %v1388_v55 }
 0x189   : > { %v1522_v57 = vmax.f32 %v1458_v49, 0.0  ;;  %v1491_v0 = vmax.f32 %v1427_v58, 0.0  ;;  %v996_v2 = vpop.f32.mrb[16].mxu0  ;;  %v1124_v3 = vpop.f32.mrb[16].mxu1 }
 0x18a   : > { %v2197_v62 = vpack.c.bf16 %v1490_v56, %v1490_v56  ;;  %v1523_v1 = vmax.f32 %v1459_v59, 0.0  ;;  %v1227_v8 = vadd.f32 %v996_v2, %v342_v60  ;;  %v1259_v9 = vadd.f32 %v1124_v3, %v374_v61  ;;  %v998_v10 = vpop.f32.mrb[17].mxu0  ;;  %v1126_v11 = vpop.f32.mrb[17].mxu1  ;;  %v346_v61 = vld [vmem:[#allocation2 + $0x60] sm:$0xff] }
 0x18b   : > { %v2229_v63 = vpack.c.bf16 %v1522_v57, %v1522_v57  ;;  %v2198_v6 = vpack.c.bf16 %v1491_v0, %v1491_v0  ;;  %v999_v14 = vpop.f32.mrb[18].mxu0  ;;  %v1127_v15 = vpop.f32.mrb[18].mxu1 }
 0x18c   : > { %1811 = vst.msk [vmem:[%s3133_s22 + $0x10] sm:$0xf] %vm1806_vm4, %v2197_v62  ;;  %v2230_v7 = vpack.c.bf16 %v1523_v1, %v1523_v1  ;;  %v1228_v18 = vadd.f32 %v999_v14, %v343_v4  ;;  %v1260_v19 = vadd.f32 %v1127_v15, %v375_v5  ;;  %v1001_v20 = vpop.f32.mrb[19].mxu0  ;;  %v1129_v21 = vpop.f32.mrb[19].mxu1  ;;  %v378_v62 = vld [vmem:[#allocation2 + $0x160] sm:$0xff]  ;;  %v347_v5 = vld [vmem:[#allocation2 + $0x68] sm:$0xff] }
 0x18d   : > { %1843 = vst.msk [vmem:[%s3133_s22 + $0x90] sm:$0xf] %vm1806_vm4, %v2229_v63  ;;  %v1357_v12 = vld [vmem:[#allocation2 + $0x30] sm:$0xff]  ;;  %1812 = vst.msk [vmem:[%s3133_s22 + $0x14] sm:$0xf] %vm1806_vm4, %v2198_v6  ;;  %v379_v6 = vld [vmem:[#allocation2 + $0x168] sm:$0xff] }
 0x18e   : > { %v1389_v13 = vld [vmem:[#allocation2 + $0x130] sm:$0xff]  ;;  %1844 = vst.msk [vmem:[%s3133_s22 + $0x94] sm:$0xf] %vm1806_vm4, %v2230_v7  ;;  %v1428_v16 = vadd.f32 %v3122_v34, %v1357_v12  ;;  %v1358_v22 = vld [vmem:[#allocation2 + $0x38] sm:$0xff] }
 0x18f   : > { %v1460_v17 = vadd.f32 %v3122_v34, %v1389_v13  ;;  %1292 = vst.msk [vmem:[#allocation2 + $0x40] sm:$0xff] %vm269_vm3, %v1227_v8  ;;  %1324 = vst.msk [vmem:[#allocation2 + $0x140] sm:$0xff] %vm269_vm3, %v1259_v9  ;;  %v1390_v23 = vld [vmem:[#allocation2 + $0x138] sm:$0xff]  ;;  %v1429_v26 = vadd.f32 %v3122_v34, %v1358_v22 }
 0x190   : > { %v1492_v24 = vmax.f32 %v1428_v16, 0.0  ;;  %v1461_v27 = vadd.f32 %v3122_v34, %v1390_v23  ;;  %1293 = vst.msk [vmem:[#allocation2 + $0x48] sm:$0xff] %vm269_vm3, %v1228_v18  ;;  %1325 = vst.msk [vmem:[#allocation2 + $0x148] sm:$0xff] %vm269_vm3, %v1260_v19 }
 0x191   : > { %v1524_v25 = vmax.f32 %v1460_v17, 0.0  ;;  %v1493_v32 = vmax.f32 %v1429_v26, 0.0  ;;  %v1004_v35 = vpop.f32.mrb[20].mxu0  ;;  %v1132_v36 = vpop.f32.mrb[20].mxu1 }
 0x192   : > { %v2199_v30 = vpack.c.bf16 %v1492_v24, %v1492_v24  ;;  %v1525_v33 = vmax.f32 %v1461_v27, 0.0  ;;  %v1229_v41 = vadd.f32 %v1004_v35, %v344_v28  ;;  %v1261_v42 = vadd.f32 %v1132_v36, %v376_v29  ;;  %v1006_v43 = vpop.f32.mrb[21].mxu0  ;;  %v1134_v44 = vpop.f32.mrb[21].mxu1  ;;  %v348_v29 = vld [vmem:[#allocation2 + $0x70] sm:$0xff] }
 0x193   : > { %v2231_v31 = vpack.c.bf16 %v1524_v25, %v1524_v25  ;;  %v2200_v39 = vpack.c.bf16 %v1493_v32, %v1493_v32  ;;  %v1007_v47 = vpop.f32.mrb[22].mxu0  ;;  %v1135_v48 = vpop.f32.mrb[22].mxu1 }
 0x194   : > { %1813 = vst.msk [vmem:[%s3133_s22 + $0x18] sm:$0xf] %vm1806_vm4, %v2199_v30  ;;  %v2232_v40 = vpack.c.bf16 %v1525_v33, %v1525_v33  ;;  %v1230_v51 = vadd.f32 %v1007_v47, %v345_v37  ;;  %v1262_v52 = vadd.f32 %v1135_v48, %v377_v38  ;;  %v1009_v53 = vpop.f32.mrb[23].mxu0  ;;  %v1137_v54 = vpop.f32.mrb[23].mxu1  ;;  %v380_v30 = vld [vmem:[#allocation2 + $0x170] sm:$0xff]  ;;  %v349_v38 = vld [vmem:[#allocation2 + $0x78] sm:$0xff] }
 0x195   : > { %1845 = vst.msk [vmem:[%s3133_s22 + $0x98] sm:$0xf] %vm1806_vm4, %v2231_v31  ;;  %1814 = vst.msk [vmem:[%s3133_s22 + $0x1c] sm:$0xf] %vm1806_vm4, %v2200_v39  ;;  %v381_v39 = vld [vmem:[#allocation2 + $0x178] sm:$0xff] }
 0x196   : > { %v1359_v45 = vld [vmem:[#allocation2 + $0x40] sm:$0xff]  ;;  %1846 = vst.msk [vmem:[%s3133_s22 + $0x9c] sm:$0xf] %vm1806_vm4, %v2232_v40 }
 0x197   : > { %v1391_v46 = vld [vmem:[#allocation2 + $0x140] sm:$0xff]  ;;  %v1430_v49 = vadd.f32 %v3122_v34, %v1359_v45  ;;  %1294 = vst.msk [vmem:[#allocation2 + $0x50] sm:$0xff] %vm269_vm3, %v1229_v41  ;;  %1326 = vst.msk [vmem:[#allocation2 + $0x150] sm:$0xff] %vm269_vm3, %v1261_v42  ;;  %v1360_v55 = vld [vmem:[#allocation2 + $0x48] sm:$0xff] }
 0x198   : > { %v1462_v50 = vadd.f32 %v3122_v34, %v1391_v46  ;;  %v1392_v56 = vld [vmem:[#allocation2 + $0x148] sm:$0xff]  ;;  %v1431_v59 = vadd.f32 %v3122_v34, %v1360_v55  ;;  %1295 = vst.msk [vmem:[#allocation2 + $0x58] sm:$0xff] %vm269_vm3, %v1230_v51  ;;  %1327 = vst.msk [vmem:[#allocation2 + $0x158] sm:$0xff] %vm269_vm3, %v1262_v52 }
 0x199   : > { %v1494_v57 = vmax.f32 %v1430_v49, 0.0  ;;  %v1463_v60 = vadd.f32 %v3122_v34, %v1392_v56  ;;  %v1012_v3 = vpop.f32.mrb[24].mxu0  ;;  %v1140_v4 = vpop.f32.mrb[24].mxu1 }
 0x19a   : > { %v1526_v58 = vmax.f32 %v1462_v50, 0.0  ;;  %v1495_v1 = vmax.f32 %v1431_v59, 0.0  ;;  %v1231_v9 = vadd.f32 %v1012_v3, %v346_v61  ;;  %v1263_v10 = vadd.f32 %v1140_v4, %v378_v62  ;;  %v1014_v11 = vpop.f32.mrb[25].mxu0  ;;  %v1142_v12 = vpop.f32.mrb[25].mxu1  ;;  %v350_v62 = vld [vmem:[#allocation2 + $0x80] sm:$0xff] }
 0x19b   : > { %v2201_v63 = vpack.c.bf16 %v1494_v57, %v1494_v57  ;;  %v1527_v2 = vmax.f32 %v1463_v60, 0.0  ;;  %v1015_v15 = vpop.f32.mrb[26].mxu0  ;;  %v1143_v16 = vpop.f32.mrb[26].mxu1 }
 0x19c   : > { %v2233_v0 = vpack.c.bf16 %v1526_v58, %v1526_v58  ;;  %v2202_v7 = vpack.c.bf16 %v1495_v1, %v1495_v1  ;;  %1296 = vst.msk [vmem:[#allocation2 + $0x60] sm:$0xff] %vm269_vm3, %v1231_v9  ;;  %1328 = vst.msk [vmem:[#allocation2 + $0x160] sm:$0xff] %vm269_vm3, %v1263_v10  ;;  %v1232_v19 = vadd.f32 %v1015_v15, %v347_v5  ;;  %v1017_v21 = vpop.f32.mrb[27].mxu0  ;;  %v1145_v22 = vpop.f32.mrb[27].mxu1 }
 0x19d   : > { %1815 = vst.msk [vmem:[%s3133_s22 + $0x20] sm:$0xf] %vm1806_vm4, %v2201_v63  ;;  %v2234_v8 = vpack.c.bf16 %v1527_v2, %v1527_v2  ;;  %v1264_v20 = vadd.f32 %v1143_v16, %v379_v6  ;;  %v382_v63 = vld [vmem:[#allocation2 + $0x180] sm:$0xff]  ;;  %v351_v6 = vld [vmem:[#allocation2 + $0x88] sm:$0xff] }
 0x19e   : > { %1847 = vst.msk [vmem:[%s3133_s22 + $0xa0] sm:$0xf] %vm1806_vm4, %v2233_v0  ;;  %v1361_v13 = vld [vmem:[#allocation2 + $0x50] sm:$0xff]  ;;  %1816 = vst.msk [vmem:[%s3133_s22 + $0x24] sm:$0xf] %vm1806_vm4, %v2202_v7  ;;  %v383_v7 = vld [vmem:[#allocation2 + $0x188] sm:$0xff] }
 0x19f   : > { %v1393_v14 = vld [vmem:[#allocation2 + $0x150] sm:$0xff]  ;;  %1848 = vst.msk [vmem:[%s3133_s22 + $0xa4] sm:$0xf] %vm1806_vm4, %v2234_v8  ;;  %v1432_v17 = vadd.f32 %v3122_v34, %v1361_v13  ;;  %v1362_v23 = vld [vmem:[#allocation2 + $0x58] sm:$0xff] }
 0x1a0   : > { %v1464_v18 = vadd.f32 %v3122_v34, %v1393_v14  ;;  %v1394_v24 = vld [vmem:[#allocation2 + $0x158] sm:$0xff]  ;;  %v1433_v27 = vadd.f32 %v3122_v34, %v1362_v23  ;;  %1297 = vst.msk [vmem:[#allocation2 + $0x68] sm:$0xff] %vm269_vm3, %v1232_v19  ;;  %1329 = vst.msk [vmem:[#allocation2 + $0x168] sm:$0xff] %vm269_vm3, %v1264_v20 }
 0x1a1   : > { %v1496_v25 = vmax.f32 %v1432_v17, 0.0  ;;  %v1465_v28 = vadd.f32 %v3122_v34, %v1394_v24  ;;  %v1020_v36 = vpop.f32.mrb[28].mxu0  ;;  %v1148_v37 = vpop.f32.mrb[28].mxu1 }
 0x1a2   : > { %v1528_v26 = vmax.f32 %v1464_v18, 0.0  ;;  %v1497_v33 = vmax.f32 %v1433_v27, 0.0  ;;  %v1233_v42 = vadd.f32 %v1020_v36, %v348_v29  ;;  %v1265_v43 = vadd.f32 %v1148_v37, %v380_v30  ;;  %v1022_v44 = vpop.f32.mrb[29].mxu0  ;;  %v1150_v45 = vpop.f32.mrb[29].mxu1  ;;  %v352_v30 = vld [vmem:[#allocation2 + $0x90] sm:$0xff] }
 0x1a3   : > { %v2203_v31 = vpack.c.bf16 %v1496_v25, %v1496_v25  ;;  %v1529_v35 = vmax.f32 %v1465_v28, 0.0  ;;  %v1363_v46 = vld [vmem:[#allocation2 + $0x60] sm:$0xff]  ;;  %v1023_v48 = vpop.f32.mrb[30].mxu0  ;;  %v1151_v49 = vpop.f32.mrb[30].mxu1 }
 0x1a4   : > { %v2235_v32 = vpack.c.bf16 %v1528_v26, %v1528_v26  ;;  %v2204_v40 = vpack.c.bf16 %v1497_v33, %v1497_v33  ;;  %v1395_v47 = vld [vmem:[#allocation2 + $0x160] sm:$0xff]  ;;  %v1434_v50 = vadd.f32 %v3122_v34, %v1363_v46  ;;  %1298 = vst.msk [vmem:[#allocation2 + $0x70] sm:$0xff] %vm269_vm3, %v1233_v42  ;;  %1330 = vst.msk [vmem:[#allocation2 + $0x170] sm:$0xff] %vm269_vm3, %v1265_v43  ;;  %v1025_v54 = vpop.f32.mrb[31].mxu0  ;;  %v1153_v55 = vpop.f32.mrb[31].mxu1 }
 0x1a5   : > { %1817 = vst.msk [vmem:[%s3133_s22 + $0x28] sm:$0xf] %vm1806_vm4, %v2203_v31  ;;  %v2236_v41 = vpack.c.bf16 %v1529_v35, %v1529_v35  ;;  %v1466_v51 = vadd.f32 %v3122_v34, %v1395_v47  ;;  %v1234_v52 = vadd.f32 %v1023_v48, %v349_v38  ;;  %v1266_v53 = vadd.f32 %v1151_v49, %v381_v39  ;;  %v384_v31 = vld [vmem:[#allocation2 + $0x190] sm:$0xff]  ;;  %v353_v39 = vld [vmem:[#allocation2 + $0x98] sm:$0xff] }
 0x1a6   : > { %1849 = vst.msk [vmem:[%s3133_s22 + $0xa8] sm:$0xf] %vm1806_vm4, %v2235_v32  ;;  %1818 = vst.msk [vmem:[%s3133_s22 + $0x2c] sm:$0xf] %vm1806_vm4, %v2204_v40  ;;  %v1498_v58 = vmax.f32 %v1434_v50, 0.0  ;;  %v385_v40 = vld [vmem:[#allocation2 + $0x198] sm:$0xff] }
 0x1a7   : > { %1850 = vst.msk [vmem:[%s3133_s22 + $0xac] sm:$0xf] %vm1806_vm4, %v2236_v41  ;;  %v1364_v56 = vld [vmem:[#allocation2 + $0x68] sm:$0xff]  ;;  %v1530_v59 = vmax.f32 %v1466_v51, 0.0 }
 0x1a8   : > { %v1396_v57 = vld [vmem:[#allocation2 + $0x168] sm:$0xff]  ;;  %v1435_v60 = vadd.f32 %v3122_v34, %v1364_v56  ;;  %1299 = vst.msk [vmem:[#allocation2 + $0x78] sm:$0xff] %vm269_vm3, %v1234_v52  ;;  %1331 = vst.msk [vmem:[#allocation2 + $0x178] sm:$0xff] %vm269_vm3, %v1266_v53  ;;  %v2205_v0 = vpack.c.bf16 %v1498_v58, %v1498_v58 }
 0x1a9   : > { %v1467_v61 = vadd.f32 %v3122_v34, %v1396_v57  ;;  %v2237_v1 = vpack.c.bf16 %v1530_v59, %v1530_v59  ;;  %v1028_v4 = vpop.f32.mrb[32].mxu0  ;;  %v1156_v5 = vpop.f32.mrb[32].mxu1 }
 0x1aa   : > { %v1499_v2 = vmax.f32 %v1435_v60, 0.0  ;;  %1819 = vst.msk [vmem:[%s3133_s22 + $0x30] sm:$0xf] %vm1806_vm4, %v2205_v0  ;;  %v1235_v10 = vadd.f32 %v1028_v4, %v350_v62  ;;  %v1267_v11 = vadd.f32 %v1156_v5, %v382_v63  ;;  %v1030_v12 = vpop.f32.mrb[33].mxu0  ;;  %v1158_v13 = vpop.f32.mrb[33].mxu1  ;;  %v354_v63 = vld [vmem:[#allocation2 + $0xa0] sm:$0xff] }
 0x1ab   : > { %v1531_v3 = vmax.f32 %v1467_v61, 0.0  ;;  %1851 = vst.msk [vmem:[%s3133_s22 + $0xb0] sm:$0xf] %vm1806_vm4, %v2237_v1  ;;  %v1365_v14 = vld [vmem:[#allocation2 + $0x70] sm:$0xff]  ;;  %v1031_v16 = vpop.f32.mrb[34].mxu0  ;;  %v1159_v17 = vpop.f32.mrb[34].mxu1 }
 0x1ac   : > { %v2206_v8 = vpack.c.bf16 %v1499_v2, %v1499_v2  ;;  %v1397_v15 = vld [vmem:[#allocation2 + $0x170] sm:$0xff]  ;;  %v1436_v18 = vadd.f32 %v3122_v34, %v1365_v14  ;;  %1300 = vst.msk [vmem:[#allocation2 + $0x80] sm:$0xff] %vm269_vm3, %v1235_v10  ;;  %1332 = vst.msk [vmem:[#allocation2 + $0x180] sm:$0xff] %vm269_vm3, %v1267_v11  ;;  %v1236_v20 = vadd.f32 %v1031_v16, %v351_v6  ;;  %v1033_v22 = vpop.f32.mrb[35].mxu0  ;;  %v1161_v23 = vpop.f32.mrb[35].mxu1  ;;  %v386_v0 = vld [vmem:[#allocation2 + $0x1a0] sm:$0xff] }
 0x1ad   : > { %v2238_v9 = vpack.c.bf16 %v1531_v3, %v1531_v3  ;;  %v1468_v19 = vadd.f32 %v3122_v34, %v1397_v15  ;;  %v1268_v21 = vadd.f32 %v1159_v17, %v383_v7  ;;  %v355_v7 = vld [vmem:[#allocation2 + $0xa8] sm:$0xff] }
 0x1ae   : > { %1820 = vst.msk [vmem:[%s3133_s22 + $0x34] sm:$0xf] %vm1806_vm4, %v2206_v8  ;;  %v1500_v26 = vmax.f32 %v1436_v18, 0.0  ;;  %v387_v8 = vld [vmem:[#allocation2 + $0x1a8] sm:$0xff] }
 0x1af   : > { %1852 = vst.msk [vmem:[%s3133_s22 + $0xb4] sm:$0xf] %vm1806_vm4, %v2238_v9  ;;  %v1366_v24 = vld [vmem:[#allocation2 + $0x78] sm:$0xff]  ;;  %v1532_v27 = vmax.f32 %v1468_v19, 0.0 }
 0x1b0   : > { %v1398_v25 = vld [vmem:[#allocation2 + $0x178] sm:$0xff]  ;;  %v1437_v28 = vadd.f32 %v3122_v34, %v1366_v24  ;;  %1301 = vst.msk [vmem:[#allocation2 + $0x88] sm:$0xff] %vm269_vm3, %v1236_v20  ;;  %1333 = vst.msk [vmem:[#allocation2 + $0x188] sm:$0xff] %vm269_vm3, %v1268_v21  ;;  %v2207_v32 = vpack.c.bf16 %v1500_v26, %v1500_v26 }
 0x1b1   : > { %v1469_v29 = vadd.f32 %v3122_v34, %v1398_v25  ;;  %v2239_v33 = vpack.c.bf16 %v1532_v27, %v1532_v27  ;;  %v1036_v37 = vpop.f32.mrb[36].mxu0  ;;  %v1164_v38 = vpop.f32.mrb[36].mxu1 }
 0x1b2   : > { %v1501_v35 = vmax.f32 %v1437_v28, 0.0  ;;  %1821 = vst.msk [vmem:[%s3133_s22 + $0x38] sm:$0xf] %vm1806_vm4, %v2207_v32  ;;  %v1237_v43 = vadd.f32 %v1036_v37, %v352_v30  ;;  %v1269_v44 = vadd.f32 %v1164_v38, %v384_v31  ;;  %v1038_v45 = vpop.f32.mrb[37].mxu0  ;;  %v1166_v46 = vpop.f32.mrb[37].mxu1  ;;  %v356_v31 = vld [vmem:[#allocation2 + $0xb0] sm:$0xff] }
 0x1b3   : > { %v1533_v36 = vmax.f32 %v1469_v29, 0.0  ;;  %1853 = vst.msk [vmem:[%s3133_s22 + $0xb8] sm:$0xf] %vm1806_vm4, %v2239_v33  ;;  %v1367_v47 = vld [vmem:[#allocation2 + $0x80] sm:$0xff]  ;;  %v1039_v49 = vpop.f32.mrb[38].mxu0  ;;  %v1167_v50 = vpop.f32.mrb[38].mxu1 }
 0x1b4   : > { %v2208_v41 = vpack.c.bf16 %v1501_v35, %v1501_v35  ;;  %v1399_v48 = vld [vmem:[#allocation2 + $0x180] sm:$0xff]  ;;  %v1438_v51 = vadd.f32 %v3122_v34, %v1367_v47  ;;  %1302 = vst.msk [vmem:[#allocation2 + $0x90] sm:$0xff] %vm269_vm3, %v1237_v43  ;;  %1334 = vst.msk [vmem:[#allocation2 + $0x190] sm:$0xff] %vm269_vm3, %v1269_v44  ;;  %v1238_v53 = vadd.f32 %v1039_v49, %v353_v39  ;;  %v1041_v55 = vpop.f32.mrb[39].mxu0  ;;  %v1169_v56 = vpop.f32.mrb[39].mxu1  ;;  %v388_v32 = vld [vmem:[#allocation2 + $0x1b0] sm:$0xff] }
 0x1b5   : > { %v2240_v42 = vpack.c.bf16 %v1533_v36, %v1533_v36  ;;  %v1470_v52 = vadd.f32 %v3122_v34, %v1399_v48  ;;  %v1270_v54 = vadd.f32 %v1167_v50, %v385_v40  ;;  %v357_v40 = vld [vmem:[#allocation2 + $0xb8] sm:$0xff] }
 0x1b6   : > { %1822 = vst.msk [vmem:[%s3133_s22 + $0x3c] sm:$0xf] %vm1806_vm4, %v2208_v41  ;;  %v1502_v59 = vmax.f32 %v1438_v51, 0.0  ;;  %v389_v41 = vld [vmem:[#allocation2 + $0x1b8] sm:$0xff] }
 0x1b7   : > { %1854 = vst.msk [vmem:[%s3133_s22 + $0xbc] sm:$0xf] %vm1806_vm4, %v2240_v42  ;;  %v1368_v57 = vld [vmem:[#allocation2 + $0x88] sm:$0xff]  ;;  %v1534_v60 = vmax.f32 %v1470_v52, 0.0 }
 0x1b8   : > { %v1400_v58 = vld [vmem:[#allocation2 + $0x188] sm:$0xff]  ;;  %v1439_v61 = vadd.f32 %v3122_v34, %v1368_v57  ;;  %1303 = vst.msk [vmem:[#allocation2 + $0x98] sm:$0xff] %vm269_vm3, %v1238_v53  ;;  %1335 = vst.msk [vmem:[#allocation2 + $0x198] sm:$0xff] %vm269_vm3, %v1270_v54  ;;  %v2209_v1 = vpack.c.bf16 %v1502_v59, %v1502_v59 }
 0x1b9   : > { %v1471_v62 = vadd.f32 %v3122_v34, %v1400_v58  ;;  %v2241_v2 = vpack.c.bf16 %v1534_v60, %v1534_v60  ;;  %v1044_v5 = vpop.f32.mrb[40].mxu0  ;;  %v1172_v6 = vpop.f32.mrb[40].mxu1 }
 0x1ba   : > { %v1503_v3 = vmax.f32 %v1439_v61, 0.0  ;;  %1823 = vst.msk [vmem:[%s3133_s22 + $0x40] sm:$0xf] %vm1806_vm4, %v2209_v1  ;;  %v1239_v11 = vadd.f32 %v1044_v5, %v354_v63  ;;  %v1271_v12 = vadd.f32 %v1172_v6, %v386_v0  ;;  %v1046_v13 = vpop.f32.mrb[41].mxu0  ;;  %v1174_v14 = vpop.f32.mrb[41].mxu1  ;;  %v358_v0 = vld [vmem:[#allocation2 + $0xc0] sm:$0xff] }
 0x1bb   : > { %v1535_v4 = vmax.f32 %v1471_v62, 0.0  ;;  %1855 = vst.msk [vmem:[%s3133_s22 + $0xc0] sm:$0xf] %vm1806_vm4, %v2241_v2  ;;  %v1369_v15 = vld [vmem:[#allocation2 + $0x90] sm:$0xff]  ;;  %v1047_v17 = vpop.f32.mrb[42].mxu0  ;;  %v1175_v18 = vpop.f32.mrb[42].mxu1 }
 0x1bc   : > { %v2210_v9 = vpack.c.bf16 %v1503_v3, %v1503_v3  ;;  %v1401_v16 = vld [vmem:[#allocation2 + $0x190] sm:$0xff]  ;;  %v1440_v19 = vadd.f32 %v3122_v34, %v1369_v15  ;;  %1304 = vst.msk [vmem:[#allocation2 + $0xa0] sm:$0xff] %vm269_vm3, %v1239_v11  ;;  %1336 = vst.msk [vmem:[#allocation2 + $0x1a0] sm:$0xff] %vm269_vm3, %v1271_v12  ;;  %v1240_v21 = vadd.f32 %v1047_v17, %v355_v7  ;;  %v1049_v23 = vpop.f32.mrb[43].mxu0  ;;  %v1177_v24 = vpop.f32.mrb[43].mxu1  ;;  %v390_v1 = vld [vmem:[#allocation2 + $0x1c0] sm:$0xff] }
 0x1bd   : > { %v2242_v10 = vpack.c.bf16 %v1535_v4, %v1535_v4  ;;  %v1472_v20 = vadd.f32 %v3122_v34, %v1401_v16  ;;  %v1272_v22 = vadd.f32 %v1175_v18, %v387_v8  ;;  %v359_v8 = vld [vmem:[#allocation2 + $0xc8] sm:$0xff] }
 0x1be   : > { %1824 = vst.msk [vmem:[%s3133_s22 + $0x44] sm:$0xf] %vm1806_vm4, %v2210_v9  ;;  %v1504_v27 = vmax.f32 %v1440_v19, 0.0  ;;  %v391_v9 = vld [vmem:[#allocation2 + $0x1c8] sm:$0xff] }
 0x1bf   : > { %1856 = vst.msk [vmem:[%s3133_s22 + $0xc4] sm:$0xf] %vm1806_vm4, %v2242_v10  ;;  %v1370_v25 = vld [vmem:[#allocation2 + $0x98] sm:$0xff]  ;;  %v1536_v28 = vmax.f32 %v1472_v20, 0.0 }
 0x1c0   : > { %v1402_v26 = vld [vmem:[#allocation2 + $0x198] sm:$0xff]  ;;  %v1441_v29 = vadd.f32 %v3122_v34, %v1370_v25  ;;  %1305 = vst.msk [vmem:[#allocation2 + $0xa8] sm:$0xff] %vm269_vm3, %v1240_v21  ;;  %1337 = vst.msk [vmem:[#allocation2 + $0x1a8] sm:$0xff] %vm269_vm3, %v1272_v22  ;;  %v2211_v33 = vpack.c.bf16 %v1504_v27, %v1504_v27 }
 0x1c1   : > { %v1473_v30 = vadd.f32 %v3122_v34, %v1402_v26  ;;  %v2243_v35 = vpack.c.bf16 %v1536_v28, %v1536_v28  ;;  %v1052_v38 = vpop.f32.mrb[44].mxu0  ;;  %v1180_v39 = vpop.f32.mrb[44].mxu1 }
 0x1c2   : > { %v1505_v36 = vmax.f32 %v1441_v29, 0.0  ;;  %1825 = vst.msk [vmem:[%s3133_s22 + $0x48] sm:$0xf] %vm1806_vm4, %v2211_v33  ;;  %v1241_v44 = vadd.f32 %v1052_v38, %v356_v31  ;;  %v1273_v45 = vadd.f32 %v1180_v39, %v388_v32  ;;  %v1054_v46 = vpop.f32.mrb[45].mxu0  ;;  %v1182_v47 = vpop.f32.mrb[45].mxu1  ;;  %v360_v32 = vld [vmem:[#allocation2 + $0xd0] sm:$0xff] }
 0x1c3   : > { %v1537_v37 = vmax.f32 %v1473_v30, 0.0  ;;  %1857 = vst.msk [vmem:[%s3133_s22 + $0xc8] sm:$0xf] %vm1806_vm4, %v2243_v35  ;;  %v1371_v48 = vld [vmem:[#allocation2 + $0xa0] sm:$0xff]  ;;  %v1055_v50 = vpop.f32.mrb[46].mxu0  ;;  %v1183_v51 = vpop.f32.mrb[46].mxu1 }
 0x1c4   : > { %v2212_v42 = vpack.c.bf16 %v1505_v36, %v1505_v36  ;;  %v1403_v49 = vld [vmem:[#allocation2 + $0x1a0] sm:$0xff]  ;;  %v1442_v52 = vadd.f32 %v3122_v34, %v1371_v48  ;;  %1306 = vst.msk [vmem:[#allocation2 + $0xb0] sm:$0xff] %vm269_vm3, %v1241_v44  ;;  %1338 = vst.msk [vmem:[#allocation2 + $0x1b0] sm:$0xff] %vm269_vm3, %v1273_v45  ;;  %v1242_v54 = vadd.f32 %v1055_v50, %v357_v40  ;;  %v1057_v56 = vpop.f32.mrb[47].mxu0  ;;  %v1185_v57 = vpop.f32.mrb[47].mxu1  ;;  %v392_v33 = vld [vmem:[#allocation2 + $0x1d0] sm:$0xff] }
 0x1c5   : > { %v2244_v43 = vpack.c.bf16 %v1537_v37, %v1537_v37  ;;  %v1474_v53 = vadd.f32 %v3122_v34, %v1403_v49  ;;  %v1274_v55 = vadd.f32 %v1183_v51, %v389_v41  ;;  %v361_v41 = vld [vmem:[#allocation2 + $0xd8] sm:$0xff] }
 0x1c6   : > { %1826 = vst.msk [vmem:[%s3133_s22 + $0x4c] sm:$0xf] %vm1806_vm4, %v2212_v42  ;;  %v1506_v60 = vmax.f32 %v1442_v52, 0.0  ;;  %v393_v42 = vld [vmem:[#allocation2 + $0x1d8] sm:$0xff] }
 0x1c7   : > { %1858 = vst.msk [vmem:[%s3133_s22 + $0xcc] sm:$0xf] %vm1806_vm4, %v2244_v43  ;;  %v1372_v58 = vld [vmem:[#allocation2 + $0xa8] sm:$0xff]  ;;  %v1538_v61 = vmax.f32 %v1474_v53, 0.0 }
 0x1c8   : > { %v1404_v59 = vld [vmem:[#allocation2 + $0x1a8] sm:$0xff]  ;;  %v1443_v62 = vadd.f32 %v3122_v34, %v1372_v58  ;;  %1307 = vst.msk [vmem:[#allocation2 + $0xb8] sm:$0xff] %vm269_vm3, %v1242_v54  ;;  %1339 = vst.msk [vmem:[#allocation2 + $0x1b8] sm:$0xff] %vm269_vm3, %v1274_v55  ;;  %v2213_v2 = vpack.c.bf16 %v1506_v60, %v1506_v60 }
 0x1c9   : > { %v1475_v63 = vadd.f32 %v3122_v34, %v1404_v59  ;;  %v2245_v3 = vpack.c.bf16 %v1538_v61, %v1538_v61  ;;  %v1060_v6 = vpop.f32.mrb[48].mxu0  ;;  %v1188_v7 = vpop.f32.mrb[48].mxu1 }
 0x1ca   : > { %v1507_v4 = vmax.f32 %v1443_v62, 0.0  ;;  %1827 = vst.msk [vmem:[%s3133_s22 + $0x50] sm:$0xf] %vm1806_vm4, %v2213_v2  ;;  %v1243_v12 = vadd.f32 %v1060_v6, %v358_v0  ;;  %v1275_v13 = vadd.f32 %v1188_v7, %v390_v1  ;;  %v1062_v14 = vpop.f32.mrb[49].mxu0  ;;  %v1190_v15 = vpop.f32.mrb[49].mxu1  ;;  %v362_v1 = vld [vmem:[#allocation2 + $0xe0] sm:$0xff] }
 0x1cb   : > { %v1539_v5 = vmax.f32 %v1475_v63, 0.0  ;;  %1859 = vst.msk [vmem:[%s3133_s22 + $0xd0] sm:$0xf] %vm1806_vm4, %v2245_v3  ;;  %v1373_v16 = vld [vmem:[#allocation2 + $0xb0] sm:$0xff]  ;;  %v1063_v18 = vpop.f32.mrb[50].mxu0  ;;  %v1191_v19 = vpop.f32.mrb[50].mxu1 }
 0x1cc   : > { %v2214_v10 = vpack.c.bf16 %v1507_v4, %v1507_v4  ;;  %v1405_v17 = vld [vmem:[#allocation2 + $0x1b0] sm:$0xff]  ;;  %v1444_v20 = vadd.f32 %v3122_v34, %v1373_v16  ;;  %1308 = vst.msk [vmem:[#allocation2 + $0xc0] sm:$0xff] %vm269_vm3, %v1243_v12  ;;  %1340 = vst.msk [vmem:[#allocation2 + $0x1c0] sm:$0xff] %vm269_vm3, %v1275_v13  ;;  %v1244_v22 = vadd.f32 %v1063_v18, %v359_v8  ;;  %v1065_v24 = vpop.f32.mrb[51].mxu0  ;;  %v1193_v25 = vpop.f32.mrb[51].mxu1  ;;  %v394_v2 = vld [vmem:[#allocation2 + $0x1e0] sm:$0xff] }
 0x1cd   : > { %v2246_v11 = vpack.c.bf16 %v1539_v5, %v1539_v5  ;;  %v1476_v21 = vadd.f32 %v3122_v34, %v1405_v17  ;;  %v1276_v23 = vadd.f32 %v1191_v19, %v391_v9  ;;  %v363_v9 = vld [vmem:[#allocation2 + $0xe8] sm:$0xff] }
 0x1ce   : > { %1828 = vst.msk [vmem:[%s3133_s22 + $0x54] sm:$0xf] %vm1806_vm4, %v2214_v10  ;;  %v1508_v28 = vmax.f32 %v1444_v20, 0.0  ;;  %v395_v10 = vld [vmem:[#allocation2 + $0x1e8] sm:$0xff] }
 0x1cf   : > { %1860 = vst.msk [vmem:[%s3133_s22 + $0xd4] sm:$0xf] %vm1806_vm4, %v2246_v11  ;;  %v1374_v26 = vld [vmem:[#allocation2 + $0xb8] sm:$0xff]  ;;  %v1540_v29 = vmax.f32 %v1476_v21, 0.0  ;;  %v3335_v20 = vld [vmem:[#allocation8] ss:$0 sm:$0xff] }
 0x1d0   : > { %v1406_v27 = vld [vmem:[#allocation2 + $0x1b8] sm:$0xff]  ;;  %v1445_v30 = vadd.f32 %v3122_v34, %v1374_v26  ;;  %1309 = vst.msk [vmem:[#allocation2 + $0xc8] sm:$0xff] %vm269_vm3, %v1244_v22  ;;  %1341 = vst.msk [vmem:[#allocation2 + $0x1c8] sm:$0xff] %vm269_vm3, %v1276_v23  ;;  %v2215_v35 = vpack.c.bf16 %v1508_v28, %v1508_v28 }
 0x1d1   : > { %v1477_v31 = vadd.f32 %v3122_v34, %v1406_v27  ;;  %v2247_v36 = vpack.c.bf16 %v1540_v29, %v1540_v29  ;;  %v1068_v39 = vpop.f32.mrb[52].mxu0  ;;  %v1196_v40 = vpop.f32.mrb[52].mxu1 }
 0x1d2   : > { %v1509_v37 = vmax.f32 %v1445_v30, 0.0  ;;  %1829 = vst.msk [vmem:[%s3133_s22 + $0x58] sm:$0xf] %vm1806_vm4, %v2215_v35  ;;  %v1245_v45 = vadd.f32 %v1068_v39, %v360_v32  ;;  %v1277_v46 = vadd.f32 %v1196_v40, %v392_v33  ;;  %v1070_v47 = vpop.f32.mrb[53].mxu0  ;;  %v1198_v48 = vpop.f32.mrb[53].mxu1  ;;  %v364_v33 = vld [vmem:[#allocation2 + $0xf0] sm:$0xff] }
 0x1d3   : > { %v1541_v38 = vmax.f32 %v1477_v31, 0.0  ;;  %1861 = vst.msk [vmem:[%s3133_s22 + $0xd8] sm:$0xf] %vm1806_vm4, %v2247_v36  ;;  %v1375_v49 = vld [vmem:[#allocation2 + $0xc0] sm:$0xff]  ;;  %v1071_v51 = vpop.f32.mrb[54].mxu0  ;;  %v1199_v52 = vpop.f32.mrb[54].mxu1 }
 0x1d4   : > { %v2216_v43 = vpack.c.bf16 %v1509_v37, %v1509_v37  ;;  %v1407_v50 = vld [vmem:[#allocation2 + $0x1c0] sm:$0xff]  ;;  %v1446_v53 = vadd.f32 %v3122_v34, %v1375_v49  ;;  %1310 = vst.msk [vmem:[#allocation2 + $0xd0] sm:$0xff] %vm269_vm3, %v1245_v45  ;;  %1342 = vst.msk [vmem:[#allocation2 + $0x1d0] sm:$0xff] %vm269_vm3, %v1277_v46  ;;  %v1246_v55 = vadd.f32 %v1071_v51, %v361_v41  ;;  %v1073_v57 = vpop.f32.mrb[55].mxu0  ;;  %v1201_v58 = vpop.f32.mrb[55].mxu1  ;;  %v396_v35 = vld [vmem:[#allocation2 + $0x1f0] sm:$0xff] }
 0x1d5   : > { %v2248_v44 = vpack.c.bf16 %v1541_v38, %v1541_v38  ;;  %v1478_v54 = vadd.f32 %v3122_v34, %v1407_v50  ;;  %v1278_v56 = vadd.f32 %v1199_v52, %v393_v42  ;;  %v365_v42 = vld [vmem:[#allocation2 + $0xf8] sm:$0xff] }
 0x1d6   : > { %1830 = vst.msk [vmem:[%s3133_s22 + $0x5c] sm:$0xf] %vm1806_vm4, %v2216_v43  ;;  %v1510_v61 = vmax.f32 %v1446_v53, 0.0  ;;  %v397_v43 = vld [vmem:[#allocation2 + $0x1f8] sm:$0xff] }
 0x1d7   : > { %1862 = vst.msk [vmem:[%s3133_s22 + $0xdc] sm:$0xf] %vm1806_vm4, %v2248_v44  ;;  %v1376_v59 = vld [vmem:[#allocation2 + $0xc8] sm:$0xff]  ;;  %v1542_v62 = vmax.f32 %v1478_v54, 0.0 }
 0x1d8   : > { %v1408_v60 = vld [vmem:[#allocation2 + $0x1c8] sm:$0xff]  ;;  %v1447_v63 = vadd.f32 %v3122_v34, %v1376_v59  ;;  %1311 = vst.msk [vmem:[#allocation2 + $0xd8] sm:$0xff] %vm269_vm3, %v1246_v55  ;;  %1343 = vst.msk [vmem:[#allocation2 + $0x1d8] sm:$0xff] %vm269_vm3, %v1278_v56  ;;  %v2217_v3 = vpack.c.bf16 %v1510_v61, %v1510_v61 }
 0x1d9   : > { %v1479_v0 = vadd.f32 %v3122_v34, %v1408_v60  ;;  %v2249_v4 = vpack.c.bf16 %v1542_v62, %v1542_v62  ;;  %v1076_v7 = vpop.f32.mrb[56].mxu0  ;;  %v1204_v8 = vpop.f32.mrb[56].mxu1 }
 0x1da   : > { %v1511_v5 = vmax.f32 %v1447_v63, 0.0  ;;  %1831 = vst.msk [vmem:[%s3133_s22 + $0x60] sm:$0xf] %vm1806_vm4, %v2217_v3  ;;  %v1247_v12 = vadd.f32 %v1076_v7, %v362_v1  ;;  %v1279_v13 = vadd.f32 %v1204_v8, %v394_v2  ;;  %v1078_v14 = vpop.f32.mrb[57].mxu0  ;;  %v1206_v15 = vpop.f32.mrb[57].mxu1 }
 0x1db   : > { %v1543_v6 = vmax.f32 %v1479_v0, 0.0  ;;  %1863 = vst.msk [vmem:[%s3133_s22 + $0xe0] sm:$0xf] %vm1806_vm4, %v2249_v4  ;;  %v1377_v16 = vld [vmem:[#allocation2 + $0xd0] sm:$0xff]  ;;  %v1079_v18 = vpop.f32.mrb[58].mxu0  ;;  %v1207_v19 = vpop.f32.mrb[58].mxu1 }
 0x1dc   : > { %v2218_v34 = vpack.c.bf16 %v1511_v5, %v1511_v5  ;;  %v1409_v17 = vld [vmem:[#allocation2 + $0x1d0] sm:$0xff]  ;;  %v1448_v21 = vadd.f32 %v3335_v20, %v1377_v16  ;;  %1312 = vst.msk [vmem:[#allocation2 + $0xe0] sm:$0xff] %vm269_vm3, %v1247_v12  ;;  %1344 = vst.msk [vmem:[#allocation2 + $0x1e0] sm:$0xff] %vm269_vm3, %v1279_v13  ;;  %v1248_v23 = vadd.f32 %v1079_v18, %v363_v9  ;;  %v1081_v25 = vpop.f32.mrb[59].mxu0  ;;  %v1209_v26 = vpop.f32.mrb[59].mxu1 }
 0x1dd   : > { %v2250_v11 = vpack.c.bf16 %v1543_v6, %v1543_v6  ;;  %v1480_v22 = vadd.f32 %v3335_v20, %v1409_v17  ;;  %v1280_v24 = vadd.f32 %v1207_v19, %v395_v10 }
 0x1de   : > { %1832 = vst.msk [vmem:[%s3133_s22 + $0x64] sm:$0xf] %vm1806_vm4, %v2218_v34  ;;  %v1512_v29 = vmax.f32 %v1448_v21, 0.0 }
 0x1df   : > { %1864 = vst.msk [vmem:[%s3133_s22 + $0xe4] sm:$0xf] %vm1806_vm4, %v2250_v11  ;;  %v1378_v27 = vld [vmem:[#allocation2 + $0xd8] sm:$0xff]  ;;  %v1544_v30 = vmax.f32 %v1480_v22, 0.0 }
 0x1e0   : > { %v1410_v28 = vld [vmem:[#allocation2 + $0x1d8] sm:$0xff]  ;;  %v1449_v31 = vadd.f32 %v3335_v20, %v1378_v27  ;;  %1313 = vst.msk [vmem:[#allocation2 + $0xe8] sm:$0xff] %vm269_vm3, %v1248_v23  ;;  %1345 = vst.msk [vmem:[#allocation2 + $0x1e8] sm:$0xff] %vm269_vm3, %v1280_v24  ;;  %v2219_v36 = vpack.c.bf16 %v1512_v29, %v1512_v29 }
 0x1e1   : > { %v1481_v32 = vadd.f32 %v3335_v20, %v1410_v28  ;;  %v2251_v37 = vpack.c.bf16 %v1544_v30, %v1544_v30  ;;  %v1084_v40 = vpop.f32.mrb[60].mxu0  ;;  %v1212_v41 = vpop.f32.mrb[60].mxu1 }
 0x1e2   : > { %v1513_v38 = vmax.f32 %v1449_v31, 0.0  ;;  %1833 = vst.msk [vmem:[%s3133_s22 + $0x68] sm:$0xf] %vm1806_vm4, %v2219_v36  ;;  %v1249_v46 = vadd.f32 %v1084_v40, %v364_v33  ;;  %v1281_v47 = vadd.f32 %v1212_v41, %v396_v35  ;;  %v1086_v48 = vpop.f32.mrb[61].mxu0  ;;  %v1214_v49 = vpop.f32.mrb[61].mxu1 }
 0x1e3   : > { %v1545_v39 = vmax.f32 %v1481_v32, 0.0  ;;  %1865 = vst.msk [vmem:[%s3133_s22 + $0xe8] sm:$0xf] %vm1806_vm4, %v2251_v37  ;;  %v1379_v50 = vld [vmem:[#allocation2 + $0xe0] sm:$0xff]  ;;  %v1087_v52 = vpop.f32.mrb[62].mxu0  ;;  %v1215_v53 = vpop.f32.mrb[62].mxu1 }
 0x1e4   : > { %v2220_v44 = vpack.c.bf16 %v1513_v38, %v1513_v38  ;;  %v1411_v51 = vld [vmem:[#allocation2 + $0x1e0] sm:$0xff]  ;;  %v1450_v54 = vadd.f32 %v3335_v20, %v1379_v50  ;;  %1314 = vst.msk [vmem:[#allocation2 + $0xf0] sm:$0xff] %vm269_vm3, %v1249_v46  ;;  %1346 = vst.msk [vmem:[#allocation2 + $0x1f0] sm:$0xff] %vm269_vm3, %v1281_v47  ;;  %v1250_v56 = vadd.f32 %v1087_v52, %v365_v42  ;;  %v1089_v58 = vpop.f32.mrb[63].mxu0  ;;  %v1217_v59 = vpop.f32.mrb[63].mxu1 }
 0x1e5   : > { %v2252_v45 = vpack.c.bf16 %v1545_v39, %v1545_v39  ;;  %v1482_v55 = vadd.f32 %v3335_v20, %v1411_v51  ;;  %v1282_v57 = vadd.f32 %v1215_v53, %v397_v43 }
 0x1e6   : > { %1834 = vst.msk [vmem:[%s3133_s22 + $0x6c] sm:$0xf] %vm1806_vm4, %v2220_v44  ;;  %v1514_v62 = vmax.f32 %v1450_v54, 0.0 }
 0x1e7   : > { %1866 = vst.msk [vmem:[%s3133_s22 + $0xec] sm:$0xf] %vm1806_vm4, %v2252_v45  ;;  %v1380_v60 = vld [vmem:[#allocation2 + $0xe8] sm:$0xff]  ;;  %v1546_v63 = vmax.f32 %v1482_v55, 0.0 }
 0x1e8   : > { %v1412_v61 = vld [vmem:[#allocation2 + $0x1e8] sm:$0xff]  ;;  %v1451_v0 = vadd.f32 %v3335_v20, %v1380_v60  ;;  %1315 = vst.msk [vmem:[#allocation2 + $0xf8] sm:$0xff] %vm269_vm3, %v1250_v56  ;;  %1347 = vst.msk [vmem:[#allocation2 + $0x1f8] sm:$0xff] %vm269_vm3, %v1282_v57  ;;  %v2221_v2 = vpack.c.bf16 %v1514_v62, %v1514_v62 }
 0x1e9   : > { %v1483_v1 = vadd.f32 %v3335_v20, %v1412_v61  ;;  %v2253_v3 = vpack.c.bf16 %v1546_v63, %v1546_v63 }
 0x1ea   : > { %v1515_v4 = vmax.f32 %v1451_v0, 0.0  ;;  %1835 = vst.msk [vmem:[%s3133_s22 + $0x70] sm:$0xf] %vm1806_vm4, %v2221_v2 }
 0x1eb   : > { %v1547_v5 = vmax.f32 %v1483_v1, 0.0  ;;  %1867 = vst.msk [vmem:[%s3133_s22 + $0xf0] sm:$0xf] %vm1806_vm4, %v2253_v3  ;;  %v1381_v8 = vld [vmem:[#allocation2 + $0xf0] sm:$0xff] }
 0x1ec   : > { %v2222_v6 = vpack.c.bf16 %v1515_v4, %v1515_v4  ;;  %v1413_v9 = vld [vmem:[#allocation2 + $0x1f0] sm:$0xff]  ;;  %v1452_v10 = vadd.f32 %v3335_v20, %v1381_v8 }
 0x1ed   : > { %v2254_v7 = vpack.c.bf16 %v1547_v5, %v1547_v5  ;;  %v1484_v34 = vadd.f32 %v3335_v20, %v1413_v9 }
 0x1ee   : > { %1836 = vst.msk [vmem:[%s3133_s22 + $0x74] sm:$0xf] %vm1806_vm4, %v2222_v6  ;;  %v1516_v13 = vmax.f32 %v1452_v10, 0.0 }
 0x1ef   : > { %1868 = vst.msk [vmem:[%s3133_s22 + $0xf4] sm:$0xf] %vm1806_vm4, %v2254_v7  ;;  %v1382_v11 = vld [vmem:[#allocation2 + $0xf8] sm:$0xff]  ;;  %v1548_v14 = vmax.f32 %v1484_v34, 0.0 }
 0x1f0   : > { %v1414_v12 = vld [vmem:[#allocation2 + $0x1f8] sm:$0xff]  ;;  %v1453_v15 = vadd.f32 %v3335_v20, %v1382_v11  ;;  %v2223_v17 = vpack.c.bf16 %v1516_v13, %v1516_v13 }
 0x1f1   : > { %v1485_v16 = vadd.f32 %v3335_v20, %v1414_v12  ;;  %v2255_v18 = vpack.c.bf16 %v1548_v14, %v1548_v14 }
 0x1f2   : > { %v1517_v19 = vmax.f32 %v1453_v15, 0.0  ;;  %1837 = vst.msk [vmem:[%s3133_s22 + $0x78] sm:$0xf] %vm1806_vm4, %v2223_v17 }
 0x1f3   : > { %v1549_v21 = vmax.f32 %v1485_v16, 0.0  ;;  %1869 = vst.msk [vmem:[%s3133_s22 + $0xf8] sm:$0xf] %vm1806_vm4, %v2255_v18 }
 0x1f4   : > { %v2224_v20 = vpack.c.bf16 %v1517_v19, %v1517_v19 }
 0x1f5   : > { %v2256_v22 = vpack.c.bf16 %v1549_v21, %v1549_v21 }
 0x1f6   : > { %1838 = vst.msk [vmem:[%s3133_s22 + $0x7c] sm:$0xf] %vm1806_vm4, %v2224_v20 }
 0x1f7   : > { %1870 = vst.msk [vmem:[%s3133_s22 + $0xfc] sm:$0xf] %vm1806_vm4, %v2256_v22 }
 0x1f8   : > { %2576 = shalt.err (!%p2573_p11)
}
 0x1f9   : > { %s2577_s10 = scalar_lea.hbm %s3378_s9, 4096  ;;  %s2581_s29 = scalar_lea.hbm %s3440_s3, 8192 }
 0x1fa   : > { %p2578_p0 = scmp.ne.s32.totalorder %s3378_s9, %s2577_s10  ;;  %p2582_p6 = scmp.lt.u32.totalorder %s3378_s9, %s3440_s3 }
 0x1fb   : > { %p2583_p7 = scmp.lt.u32.totalorder %s2581_s29, %s2577_s10  ;;  %p2585_p8 = scmp.lt.u32.totalorder %s2577_s10, %s3378_s9 }
 0x1fc   : > { %p2579_p4 = pnand %p2578_p0, %p3455_p12 }
 0x1fd   : > { %p2584_p2 = por %p2583_p7, %p2582_p6 }
 0x1fe   : > { %p2580_p13 = pneg %p2579_p4 }
 0x1ff   : > { %p2586_p1 = por %p2585_p8, %p2584_p2 }
 0x201   : > { %p2587_p10 = pnand %p2586_p1, %p2580_p13 }
 0x203   : > { %2590 = shalt.err (!%p2587_p10)
}
 0x204   : > { %s2662_s22 = smov 64   ;;  %s2663_s24 = smov 4  }
 0x205   : > { %2288 = dma.vmem_to_hbm [thread:$0]  (%p3455_p12), %s3380_s7, 4096, %s3378_s9, %s1872_s15, %s2662_s22, %s2662_s22, %s2663_s24  }
 0x206 PF: > { %s1901_s8 = sand.u32 1, %s2629_s12   ;;  %p3456_p3 = scmp.ne.s32.totalorder %s3448_s23, 0 }
 0x207   : > { %p3457_p5 = scmp.ge.s32.totalorder %s2649_s17, 2  ;;  %s1902_s26 = scalar_lea.sflag [#allocation5], %s1901_s8 }
 0x209   : > { %p2302_p9 = pnand %p3457_p5, %p3456_p3 }
 0x20b   : > { %2624 = dma.done.wait (!%p2302_p9), %s1902_s26, 4096  }
 0x20c   : > { %2626 = vsyncadd (!%p2302_p9), %s1902_s26, 4294963200  ;;  %s20_s17 = sadd.s32 1, %s2649_s17   ;;  %s3458_s12 = smov %s2633_s13 }
 0x20d   : > { %p17_p11 = scmp.ge.s32.totalorder %s20_s17, 4   ;;  %s3459_s13 = smov %s2637_s14 }
 0x20e   : > { %s3460_s14 = smov %s2827_s4  ;;  %s3461_s15 = smov %s2645_s16 }
 0x20f   : > { %s3462_s16 = smov %s3464_s18  ;;  %19 = sbr.rel (!%p17_p11) target bundleno = 7 (0x7), region = 95 }
 0x216   :  { %1907 = vsyncpa [#allocation4], 1 }
 0x217   :  { %1909 = vsyncpa [#allocation4 + $0x1], 1 }
 0x218   :  { %1910 = vsyncpa [#allocation7], 1 }
 0x219   :  { %1911 = vsyncpa [#allocation5], 1 }
 0x21a   :  { %1913 = vsyncpa [#allocation5 + $0x1], 1 }

// kernel: mri_model_forward.12
= control target key start
LH: loop header
LB: loop body
LE: loop exit
PB: predicated region body
PF: predicated region fallthrough
CT: control target
= control target key end

     0   :  { %s4409_s0 = inlined_call_operand.hbm [shape: bf16[2,10,10,10,64], index: 0, kind: input, shape index: {}]   ;;  %s4410_s1 = inlined_call_operand.hbm [shape: bf16[3,576,64], index: 1, kind: input, shape index: {}]   ;;  %s4411_s2 = inlined_call_operand.hbm [shape: f32[1,64], index: 2, kind: input, shape index: {}]   ;;  %s4412_s3 = inlined_call_operand.hbm [shape: bf16[2,8,64,64], index: 3, kind: input, shape index: {}]   ;;  %s4413_s4 = inlined_call_operand.hbm [shape: bf16[2,8,64,64], index: 4, kind: output, shape index: {}]  }
   0x1   :  { %4437 = sst [smem:[#allocation29_spill]] %s4411_s2 }
   0x2   :  { %4438 = sst [smem:[#allocation30_spill]] %s4413_s4 }
   0x3   :  { %9 = vsyncpa [#allocation4], 0 }
   0x4   :  { %11 = vsyncpa [#allocation4 + $0x1], 0 }
   0x5   :  { %12 = vsyncpa [#allocation7], 0 }
   0x6   :  { %14 = vsyncpa [#allocation7 + $0x1], 0 }
   0x7   :  { %15 = vsyncpa [#allocation10], 0 }
   0x8   :  { %17 = vsyncpa [#allocation10 + $0x1], 0 }
   0x9   :  { %18 = vsyncpa [#allocation5], 0 }
   0xa   :  { %20 = vsyncpa [#allocation5 + $0x1], 0  ;;  %s3515_s15 = smov 0   ;;  %s3517_s16 = smov 0  }
   0xb   :  { %s3519_s17 = smov 0   ;;  %s3521_s18 = smov 0  }
   0xc   :  { %s3523_s19 = smov 0   ;;  %s3525_s20 = smov 0  }
   0xd   :  { %s3527_s21 = smov 0   ;;  %s3529_s22 = smov 0  }
   0xe   :  { %s3531_s23 = smov 0   ;;  %s3533_s24 = smov 0  }
   0xf   :  { %s3535_s25 = smov 0   ;;  %s3537_s26 = smov 0  }
  0x10   :  { %s3539_s27 = smov 0   ;;  %s3541_s28 = smov 0  }
  0x11   :  { %s3543_s29 = smov 0   ;;  %s3545_s30 = smov 0  }
  0x12 LB: > { %4439 = sst [smem:[#allocation17_spill]] %s3418_s15  ;;  %s3592_s5 = sadd.s32 4294967295, %s3478_s30   ;;  %s3478_s30 = sphi %s3545_s30, %s26_s30   ;;  %s3474_s29 = sphi %s3543_s29, %s4513_s29   ;;  %s3470_s28 = sphi %s3541_s28, %s4512_s28   ;;  %s3466_s27 = sphi %s3539_s27, %s4511_s27   ;;  %s3462_s26 = sphi %s3537_s26, %s4510_s26   ;;  %s3458_s25 = sphi %s3535_s25, %s4509_s25   ;;  %s3454_s24 = sphi %s3533_s24, %s4508_s24   ;;  %s3450_s23 = sphi %s3531_s23, %s4507_s23   ;;  %s3446_s22 = sphi %s3529_s22, %s4506_s22   ;;  %s3442_s21 = sphi %s3527_s21, %s4505_s21   ;;  %s3438_s20 = sphi %s3525_s20, %s4504_s20   ;;  %s3434_s19 = sphi %s3523_s19, %s4503_s19   ;;  %s3430_s18 = sphi %s3521_s18, %s4502_s18   ;;  %s3426_s17 = sphi %s3519_s17, %s4501_s17   ;;  %s3422_s16 = sphi %s3517_s16, %s4500_s16   ;;  %s3418_s15 = sphi %s3515_s15, %s4499_s15  }
  0x13   : > { %4440 = sst [smem:[#allocation18_spill]] %s3446_s22  ;;  %s2413_s6 = sadd.s32 4294967294, %s3478_s30  }
  0x14   : > { %4441 = sst [smem:[#allocation19_spill]] %s3454_s24  ;;  %p69_p0 = scmp.ne.s32.totalorder %s3446_s22, %s3442_s21 }
  0x15   : > { %4442 = sst [smem:[#allocation20_spill]] %s3458_s25  ;;  %p4417_p1 = scmp.eq.s32.totalorder %s3592_s5, 0 }
  0x16   : > { %4443 = sst [smem:[#allocation21_spill]] %s3462_s26  ;;  %p95_p2 = scmp.ne.s32.totalorder %s3434_s19, %s3430_s18 }
  0x17   : > { %p144_p3 = scmp.ne.s32.totalorder %s3422_s16, %s3418_s15  ;;  %p3602_p4 = por %p4417_p1, %p69_p0 }
  0x18   : > { %p3609_p6 = por %p95_p2, %p4417_p1  ;;  %p176_p8 = scmp.eq.s32.totalorder %s2413_s6, 47 }
  0x19   : > { %s4444_s7 = scalar_select %p3602_p4, 1, 0 }
  0x1a   : > { %s4446_s8 = scalar_select %p3609_p6, 1, 0 }
  0x1b   : > { %4445 = sst [smem:[#allocation22_spill]] %s4444_s7  ;;  %p3615_p7 = por %p144_p3, %p4417_p1 }
  0x1c   : > { %4447 = sst [smem:[#allocation23_spill]] %s4446_s8  ;;  %p2414_p9 = scmp.ge.s32.totalorder %s3478_s30, 1 }
  0x1d   : > { %s4448_s9 = scalar_select %p3615_p7, 1, 0 }
  0x1e   : > { %p183_p10 = scmp.lt.s32.totalorder %s3478_s30, 49  ;;  %p3621_p11 = por %p176_p8, %p144_p3 }
  0x1f   : > { %4449 = sst [smem:[#allocation24_spill]] %s4448_s9  ;;  %s3480_s12 = smov [#allocation8]  }
  0x20   : > { %s4450_s10 = scalar_select %p3621_p11, 1, 0 }
  0x21   : > { %p3625_p12 = pnand %p2414_p9, %p183_p10  ;;  %s196_s13 = sshll.u32 %s3480_s12, 4  ;;  %s197_s13 = int_to_ptr.vmem [resolvable:$true] %s196_s13 }
  0x22   : > { %4451 = sst [smem:[#allocation25_spill]] %s4450_s10  ;;  %s4454_s2 = sld [smem:[#allocation29_spill]] }
  0x23   : > { %s4452_s11 = scalar_select %p3625_p12, 1, 0 }
  0x24   : > { %p2982_p13 = pneg %p3625_p12 }
  0x26   : > { %p3633_p0 = pnand %p2982_p13, %p4417_p1 }
  0x28   : > { %s3186_s6 = scalar_lea.hbm %s4454_s2, 16  ;;  %p3188_p3 = pneg %p3633_p0 }
  0x29   : > { %p3187_p2 = scmp.ne.s32.totalorder %s4454_s2, %s3186_s6  ;;  %p3193_p10 = scmp.lt.u32.totalorder %s3186_s6, %s4454_s2 }
  0x2b   : > { %p3189_p8 = pnand %p3188_p3, %p3187_p2 }
  0x2d   : > { %p3190_p9 = pneg %p3189_p8 }
  0x2f   : > { %p3195_p13 = pnand %p3193_p10, %p3190_p9 }
  0x31   : > { %3198 = shalt.err (!%p3195_p13)
}
  0x32   : > { %s3199_s26 = scalar_lea.vmem %s197_s13, 16  ;;  %s3206_s18 = scalar_lea.vmem %s197_s13, 32 }
  0x33   : > { %p3200_p1 = scmp.ne.s32.totalorder %s197_s13, %s3199_s26  ;;  %p3207_p7 = scmp.lt.s32.totalorder %s197_s13, %s197_s13 }
  0x34   : > { %p3208_p6 = scmp.lt.s32.totalorder %s3206_s18, %s3199_s26 }
  0x35   : > { %p3202_p5 = pnand %p3200_p1, %p3188_p3 }
  0x36   : > { %p3209_p4 = por %p3208_p6, %p3207_p7 }
  0x37   : > { %p3203_p11 = pneg %p3202_p5 }
  0x39   : > { %p3210_p12 = pnand %p3209_p4, %p3203_p11 }
  0x3b   : > { %3213 = shalt.err (!%p3210_p12)
}
  0x3c   : > { %2985 = dma.hbm_to_vmem [thread:$0]  (!%p3633_p0), %s4454_s2, 16, %s197_s13, [#allocation7]  }
  0x3d   : > { %s38_s4 = sadd.s32 1, %s3466_s27  ;;  %s41_s26 = sadd.s32 1, %s3470_s28 }
  0x3e   : > { %p39_p1 = scmp.ge.s32.totalorder %s38_s4, 3  ;;  %s45_s14 = sadd.s32 1, %s3474_s29 }
  0x3f   : > { %s3658_s21 = sadd.s32 %s3466_s27, %s3470_s28  ;;  %s56_s6 = sadd.s32 1, %s3450_s23 }
  0x40   : > { %s4515_s4 = smov (%p39_p1, %s38_s4), 0  ;;  %s4517_s26 = smov (!%p39_p1, %s41_s26), %s3470_s28 }
  0x41   : > { %4455 = sst [smem:[#allocation26_spill]] %s4515_s4  ;;  %p63_p4 = scmp.ne.s32.totalorder %s3450_s23, %s3446_s22 }
  0x42   : > { %p43_p5 = scmp.ge.s32.totalorder %s4517_s26, 8  ;;  %p4433_p6 = scmp.eq.s32.totalorder %s3478_s30, 0 }
  0x43   : > { %s79_s13 = ssub.s32 %s3466_s27, %s4515_s4  ;;  %p4432_p7 = scmp.lt.s32.totalorder %s3478_s30, 48 }
  0x44   : > { %s4519_s26 = smov (%p43_p5, %s4517_s26), 0  ;;  %s4521_s14 = smov (!%p43_p5, %s45_s14), %s3474_s29 }
  0x45   : > { %4456 = sst [smem:[#allocation27_spill]] %s4519_s26  ;;  %s50_s12 = sadd.s32 %s4519_s26, %s4515_s4 }
  0x46   : > { %p3677_p11 = por %p4433_p6, %p63_p4  ;;  %p47_p12 = scmp.ge.s32.totalorder %s4521_s14, 2 }
  0x47   : > { %s52_s15 = ssub.s32 %s3658_s21, %s50_s12  ;;  %p3682_p0 = scmp.eq.s32.totalorder %s79_s13, 0 }
  0x48   : > { %s127_s2 = ssub.s32 %s3470_s28, %s4519_s26  ;;  %s4523_s14 = smov (%p47_p12, %s4521_s14), 0 }
  0x49   : > { %4459 = sst [smem:[#allocation28_spill]] %s4523_s14  ;;  %s207_s25 = sand.u32 1, %s3450_s23  }
  0x4a   : > { %s2964_s4 = smul.u32 20, %s3658_s21  ;;  %s51_s24 = ssub.s32 %s3474_s29, %s4523_s14 }
  0x4b   : > { %s53_s9 = sor.u32 %s52_s15, %s51_s24  ;;  %s3694_s8 = sor.u32 %s127_s2, %s51_s24 }
  0x4c   : > { %p54_p2 = scmp.eq.s32.totalorder %s53_s9, 0  ;;  %s2963_s7 = smul.u32 80, %s207_s25 }
  0x4d   : > { %p3701_p8 = pnand %p4432_p7, %p3677_p11  ;;  %s2965_s26 = smul.u32 200, %s3474_s29 }
  0x4e   : > { %s3706_s12 = scalar_select %p54_p2, %s3450_s23, %s56_s6  }
  0x4f   : > { %s211_s21 = scalar_lea.vmem [#allocation3], %s2963_s7  ;;  %s218_s15 = sadd.s32 %s2965_s26, %s2964_s4 }
  0x50   : > { %s221_s14 = sshll.u32 %s211_s21, 4  ;;  %s2417_s2 = sshll.u32 %s218_s15, 6  ;;  %s3709_s14 = int_to_ptr.vmem [resolvable:$true] %s221_s14 }
  0x51   : > { %s3714_s18 = scalar_lea.hbm %s4409_s0, %s2417_s2  ;;  %s3716_s22 = scalar_lea.sflag [#allocation4], %s207_s25 }
  0x52   : > { %s3214_s6 = scalar_lea.hbm %s3714_s18, 1280  ;;  %p3216_p10 = pneg %p3701_p8 }
  0x53   : > { %p3215_p9 = scmp.ne.s32.totalorder %s3714_s18, %s3214_s6  ;;  %s3219_s26 = scalar_lea.hbm %s4409_s0, 25600 }
  0x54   : > { %p3220_p4 = scmp.lt.u32.totalorder %s3714_s18, %s4409_s0  ;;  %p3221_p5 = scmp.lt.u32.totalorder %s3219_s26, %s3214_s6 }
  0x55   : > { %p3217_p13 = pnand %p3216_p10, %p3215_p9  ;;  %p3223_p12 = scmp.lt.u32.totalorder %s3214_s6, %s3714_s18 }
  0x56   : > { %p3222_p11 = por %p3221_p5, %p3220_p4 }
  0x57   : > { %p3218_p1 = pneg %p3217_p13 }
  0x58   : > { %p3224_p2 = por %p3223_p12, %p3222_p11 }
  0x5a   : > { %p3225_p3 = pnand %p3224_p2, %p3218_p1 }
  0x5c   : > { %3228 = shalt.err (!%p3225_p3)
}
  0x5d   : > { %s3229_s25 = scalar_lea.vmem %s3709_s14, 1280  ;;  %s3481_s2 = smov [#allocation3]  }
  0x5e   : > { %p3230_p9 = scmp.ne.s32.totalorder %s3709_s14, %s3229_s25  ;;  %s3234_s24 = sshll.u32 %s3481_s2, 4  ;;  %s3235_s24 = int_to_ptr.vmem [resolvable:$false] %s3234_s24 }
  0x5f   : > { %s3236_s9 = scalar_lea.vmem %s3235_s24, 2560  ;;  %p3237_p6 = scmp.lt.s32.totalorder %s3709_s14, %s3235_s24 }
  0x60   : > { %p3232_p13 = pnand %p3230_p9, %p3216_p10  ;;  %p3238_p4 = scmp.lt.s32.totalorder %s3236_s9, %s3229_s25 }
  0x62   : > { %p3233_p7 = pneg %p3232_p13  ;;  %p3239_p5 = por %p3238_p4, %p3237_p6 }
  0x64   : > { %p3240_p11 = pnand %p3239_p5, %p3233_p7 }
  0x66   : > { %3243 = shalt.err (!%p3240_p11)
}
  0x67   : > { %s4434_s6 = smov 64   ;;  %s4436_s7 = smov 4  }
  0x68   : > { %2989 = dma.hbm_to_vmem [thread:$0]  (!%p3701_p8), %s3714_s18, 1280, %s3709_s14, %s3716_s22, %s4434_s6, %s4434_s6, %s4436_s7  }
  0x69   : > { %s231_s4 = sand.u32 1, %s3478_s30   ;;  %s82_s26 = sadd.s32 1, %s3438_s20 }
  0x6a   : > { %p89_p6 = scmp.ne.s32.totalorder %s3438_s20, %s3434_s19  ;;  %p4461_p7 = scmp.eq.s32.totalorder %s3478_s30, 0 }
  0x6b   : > { %s3754_s21 = scalar_select %p3682_p0, %s3438_s20, %s82_s26  }
  0x6c   : > { %p91_p3 = por %p89_p6, %p4461_p7  ;;  %s233_s15 = sand.u32 1, %s3438_s20  }
  0x6d   : > { %s2966_s25 = smul.u32 288, %s233_s15  ;;  %p4462_p10 = scmp.lt.s32.totalorder %s3478_s30, 48 }
  0x6e   : > { %s2967_s2 = smul.u32 4608, %s3466_s27  ;;  %s3773_s18 = scalar_lea.sflag [#allocation7], %s231_s4 }
  0x6f   : > { %p3762_p1 = pnand %p4462_p10, %p91_p3  ;;  %s235_s14 = scalar_lea.vmem [#allocation6], %s2966_s25 }
  0x70   : > { %s3769_s22 = scalar_lea.hbm %s4410_s1, %s2967_s2  ;;  %s242_s10 = sshll.u32 %s235_s14, 4  ;;  %s3771_s10 = int_to_ptr.vmem [resolvable:$true] %s242_s10 }
  0x71   : > { %s3244_s26 = scalar_lea.hbm %s3769_s22, 4608  ;;  %p3246_p8 = pneg %p3762_p1 }
  0x72   : > { %p3245_p0 = scmp.ne.s32.totalorder %s3769_s22, %s3244_s26  ;;  %s3249_s13 = scalar_lea.hbm %s4410_s1, 13824 }
  0x73   : > { %p3250_p9 = scmp.lt.u32.totalorder %s3769_s22, %s4410_s1  ;;  %p3251_p13 = scmp.lt.u32.totalorder %s3249_s13, %s3244_s26 }
  0x74   : > { %p3247_p12 = pnand %p3246_p8, %p3245_p0  ;;  %p3253_p5 = scmp.lt.u32.totalorder %s3244_s26, %s3769_s22 }
  0x75   : > { %p3252_p4 = por %p3251_p13, %p3250_p9 }
  0x76   : > { %p3248_p2 = pneg %p3247_p12 }
  0x77   : > { %p3254_p11 = por %p3253_p5, %p3252_p4 }
  0x79   : > { %p3255_p6 = pnand %p3254_p11, %p3248_p2 }
  0x7b   : > { %3258 = shalt.err (!%p3255_p6)
}
  0x7c   : > { %s3259_s4 = scalar_lea.vmem %s3771_s10, 4608  ;;  %s3484_s25 = smov [#allocation6]  }
  0x7d   : > { %p3260_p7 = scmp.ne.s32.totalorder %s3771_s10, %s3259_s4  ;;  %s3264_s14 = sshll.u32 %s3484_s25, 4  ;;  %s3265_s14 = int_to_ptr.vmem [resolvable:$false] %s3264_s14 }
  0x7e   : > { %s3266_s6 = scalar_lea.vmem %s3265_s14, 9216  ;;  %p3267_p0 = scmp.lt.s32.totalorder %s3771_s10, %s3265_s14 }
  0x7f   : > { %p3262_p3 = pnand %p3260_p7, %p3246_p8  ;;  %p3268_p12 = scmp.lt.s32.totalorder %s3266_s6, %s3259_s4 }
  0x81   : > { %p3263_p10 = pneg %p3262_p3  ;;  %p3269_p9 = por %p3268_p12, %p3267_p0 }
  0x83   : > { %p3270_p13 = pnand %p3269_p9, %p3263_p10 }
  0x85   : > { %3273 = shalt.err (!%p3270_p13)
}
  0x86   : > { %s4464_s26 = smov 64   ;;  %s131_s15 = sadd.s32 1, %s3426_s17 }
  0x87   : > { %2992 = dma.hbm_to_vmem [thread:$0]  (!%p3762_p1), %s3769_s22, 4608, %s3771_s10, %s3773_s18, %s4464_s26, %s4464_s26, %s4436_s7  }
  0x88   : > { %p138_p8 = scmp.ne.s32.totalorder %s3426_s17, %s3422_s16  ;;  %p4465_p2 = scmp.eq.s32.totalorder %s3694_s8, 0 }
  0x89   : > { %p4466_p4 = scmp.eq.s32.totalorder %s3478_s30, 0  ;;  %p4467_p11 = scmp.eq.s32.totalorder %s3592_s5, 47 }
  0x8a   : > { %s3810_s24 = scalar_select %p4465_p2, %s3426_s17, %s131_s15  }
  0x8b   : > { %p140_p5 = por %p138_p8, %p4466_p4  ;;  %p3816_p6 = por %p4467_p11, %p138_p8 }
  0x8c   : > { %s252_s13 = sand.u32 1, %s3426_s17   ;;  %s2420_s9 = sshll.u32 %s3470_s28, 3 }
  0x8d   : > { %s2419_s4 = sshll.u32 %s252_s13, 5  ;;  %s2421_s25 = sshll.u32 %s3474_s29, 6 }
  0x8e   : > { %s262_s14 = sadd.s32 %s2421_s25, %s2420_s9  ;;  %s256_s6 = scalar_lea.vmem [#allocation9], %s2419_s4 }
  0x8f   : > { %s265_s22 = sshll.u32 %s256_s6, 4  ;;  %s2422_s10 = sshll.u32 %s262_s14, 6  ;;  %s3823_s22 = int_to_ptr.vmem [resolvable:$true] %s265_s22 }
  0x90   : > { %s3828_s15 = scalar_lea.hbm %s4412_s3, %s2422_s10  ;;  %p4469_p1 = scmp.lt.s32.totalorder %s3478_s30, 48 }
  0x91   : > { %s3836_s9 = scalar_lea.sflag [#allocation10], %s252_s13  ;;  %s3274_s4 = scalar_lea.hbm %s3828_s15, 512 }
  0x92   : > { %p3832_p7 = pnand %p4469_p1, %p140_p5  ;;  %p3275_p3 = scmp.ne.s32.totalorder %s3828_s15, %s3274_s4 }
  0x93   : > { %s3279_s6 = scalar_lea.hbm %s4412_s3, 8192  ;;  %p3280_p9 = scmp.lt.u32.totalorder %s3828_s15, %s4412_s3 }
  0x94   : > { %p3276_p10 = pneg %p3832_p7  ;;  %p3281_p13 = scmp.lt.u32.totalorder %s3279_s6, %s3274_s4 }
  0x95   : > { %p3283_p2 = scmp.lt.u32.totalorder %s3274_s4, %s3828_s15 }
  0x96   : > { %p3277_p0 = pnand %p3276_p10, %p3275_p3  ;;  %p3282_p8 = por %p3281_p13, %p3280_p9 }
  0x98   : > { %p3278_p12 = pneg %p3277_p0  ;;  %p3284_p4 = por %p3283_p2, %p3282_p8 }
  0x9a   : > { %p3285_p5 = pnand %p3284_p4, %p3278_p12 }
  0x9c   : > { %3288 = shalt.err (!%p3285_p5)
}
  0x9d   : > { %s3289_s13 = scalar_lea.vmem %s3823_s22, 512  ;;  %s3485_s18 = smov [#allocation9]  }
  0x9e   : > { %p3290_p11 = scmp.ne.s32.totalorder %s3823_s22, %s3289_s13  ;;  %s3294_s25 = sshll.u32 %s3485_s18, 4  ;;  %s3295_s25 = int_to_ptr.vmem [resolvable:$false] %s3294_s25 }
  0x9f   : > { %s3296_s14 = scalar_lea.vmem %s3295_s25, 1024  ;;  %p3297_p0 = scmp.lt.s32.totalorder %s3823_s22, %s3295_s25 }
  0xa0   : > { %p3292_p1 = pnand %p3290_p11, %p3276_p10  ;;  %p3298_p9 = scmp.lt.s32.totalorder %s3296_s14, %s3289_s13 }
  0xa2   : > { %p3293_p3 = pneg %p3292_p1  ;;  %p3299_p13 = por %p3298_p9, %p3297_p0 }
  0xa4   : > { %p3300_p8 = pnand %p3299_p13, %p3293_p3 }
  0xa6   : > { %3303 = shalt.err (!%p3300_p8)
}
  0xa7   : > { %s4471_s4 = smov 4   ;;  %p4472_p10 = scmp.ne.s32.totalorder %s4452_s11, 0 }
  0xa8   : > { %2995 = dma.hbm_to_vmem [thread:$0]  (!%p3832_p7), %s3828_s15, 512, %s3823_s22, %s3836_s9, %s4464_s26, %s4464_s26, %s4471_s4  }
  0xa9   : > { %277 = sbr.rel (%p4472_p10) target bundleno = 579 (0x243), region = 36  ;;  %s4473_s6 = sld [smem:[#allocation18_spill]] (!%p4472_p10) }
  0xaa   : > { %s4474_s10 = sld [smem:[#allocation22_spill]] (!%p4472_p10) }
  0xaf   : > { %s279_s8 = sand.u32 (!%p4472_p10), 1, %s4473_s6  }
  0xb0   : > { %s2968_s18 = smul.u32 80, %s279_s8  ;;  %s280_s13 = scalar_lea.sflag [#allocation4], %s279_s8 }
  0xb1   : > { %p4475_p12 = scmp.ne.s32.totalorder %s4474_s10, 0 }
  0xb2   : > { %s3870_s25 = scalar_lea.vmem [#allocation3], %s2968_s18 }
  0xb3   : > { %3397 = dma.done.wait (%p4475_p12), %s280_s13, 1280  }
  0xb4   : > { %3399 = vsyncadd (%p4475_p12), %s280_s13, 4294966016  ;;  %s4476_s7 = sld [smem:[#allocation23_spill]]  ;;  %s288_s14 = sand.u32 1, %s3592_s5  }
  0xb5   : > { %s290_s26 = sand.u32 1, %s3434_s19   ;;  %s289_s11 = scalar_lea.sflag [#allocation7], %s288_s14 }
  0xb6   : > { %s2969_s22 = smul.u32 288, %s290_s26 }
  0xb8   : > { %s3878_s15 = scalar_lea.vmem [#allocation6], %s2969_s22 }
  0xba   : > { %p4477_p7 = scmp.ne.s32.totalorder %s4476_s7, 0 }
  0xbc   : > { %3401 = dma.done.wait (%p4477_p7), %s289_s11, 4608  }
  0xbd   : > { %3403 = vsyncadd (%p4477_p7), %s289_s11, 4294962688  ;;  %p4478_p2 = scmp.eq.s32.totalorder %s3592_s5, 0 }
  0xbf   : > { %3405 = dma.done.wait (%p4478_p2), [#allocation7], 16   ;;  %p4479_p4 = pmov %p4478_p2 }
  0xc0   : > { %s4480_s9 = sld [smem:[#allocation24_spill]]  ;;  %s3889_s4 = sand.u32 1, %s3422_s16  }
  0xc1   : > { %3407 = vsyncadd (%p4479_p4), [#allocation7], 4294967280  ;;  %s2425_s6 = sshll.u32 %s3889_s4, 5  ;;  %s302_s10 = scalar_lea.sflag [#allocation10], %s3889_s4 }
  0xc2   : > { %s3893_s8 = scalar_lea.vmem [#allocation9], %s2425_s6 }
  0xc6   : > { %p4481_p5 = scmp.ne.s32.totalorder %s4480_s9, 0 }
  0xc8   : > { %3409 = dma.done.wait (%p4481_p5), %s302_s10, 512  }
  0xc9   : > { %3411 = vsyncadd (%p4481_p5), %s302_s10, 4294966784  ;;  %s3899_s18 = scalar_lea.vmem [#allocation11], %s2425_s6  ;;  %s4482_s13 = sld [smem:[#allocation19_spill]] }
  0xcf   : > { %p2427_p11 = scmp.ne.s32.totalorder %s4482_s13, 0 }
  0xd0   : > { %vm346_vm0 = vcmask (!%p2427_p11), 523264   ;;  %v3486_v0 = vmov (!%p2427_p11), 0.0  }
  0xd1   : > { %345 = sbr.rel (%p2427_p11) target bundleno = 216 (0xd8), region = 56  ;;  %347 = vst.msk [vmem:[#allocation2] sm:$0xff] (!%p2427_p11), %vm346_vm0, %v3486_v0  ;;  %348 = vst.msk [vmem:[#allocation2 + $0x8] sm:$0xff] (!%p2427_p11), %vm346_vm0, %v3486_v0 }
  0xd2   : > { %349 = vst.msk [vmem:[#allocation2 + $0x10] sm:$0xff] (!%p2427_p11), %vm346_vm0, %v3486_v0  ;;  %350 = vst.msk [vmem:[#allocation2 + $0x18] sm:$0xff] (!%p2427_p11), %vm346_vm0, %v3486_v0 }
  0xd3   : > { %351 = vst.msk [vmem:[#allocation2 + $0x20] sm:$0xff] (!%p2427_p11), %vm346_vm0, %v3486_v0  ;;  %352 = vst.msk [vmem:[#allocation2 + $0x28] sm:$0xff] (!%p2427_p11), %vm346_vm0, %v3486_v0 }
  0xd4   : > { %353 = vst.msk [vmem:[#allocation2 + $0x30] sm:$0xff] (!%p2427_p11), %vm346_vm0, %v3486_v0  ;;  %354 = vst.msk [vmem:[#allocation2 + $0x38] sm:$0xff] (!%p2427_p11), %vm346_vm0, %v3486_v0 }
  0xd8 PF: > { %v3138_v1 = vld [vmem:[%s3878_s15] sm:$0xff]   ;;  %v3140_v3 = vld [vmem:[%s3878_s15 + $0x8] sm:$0xff]   ;;  %v3142_v5 = vld [vmem:[%s3878_s15 + $0x10] sm:$0xff]   ;;  %vm423_vm1 = vcmask 523264   ;;  %vm525_vm2 = vsmask.f32 3328 }
  0xd9   : > { %v3139_v2 = vld [vmem:[%s3878_s15 + $0x80] sm:$0xff]   ;;  %2739 = vmatprep.subr.bf16.mxu1 %v3138_v1  ;;  %v3141_v4 = vld [vmem:[%s3878_s15 + $0x88] sm:$0xff]   ;;  %v3143_v6 = vld [vmem:[%s3878_s15 + $0x90] sm:$0xff]   ;;  %vm526_vm3 = vsmask.f32 7440  ;;  %vm793_vm5 = vcmask 1042432  }
  0xda   : > { %2803 = vmatprep.subr.bf16.mxu0 %v3139_v2  ;;  %2740 = vmatpush3.bf16.msra.mxu1 %v3138_v1  ;;  %v3144_v7 = vld [vmem:[%s3878_s15 + $0x18] sm:$0xff]   ;;  %v2494_v12 = vld [vmem:[%s3870_s25 + $0x10] sm:$0xf]  ;;  %v3918_v15 = vld [vmem:[%s3870_s25 + $0x14] sm:$0x1]  ;;  %vm794_vm6 = vcmask 1046532  }
  0xdb   : > { %2804 = vmatpush3.bf16.msra.mxu0 %v3139_v2  ;;  %2741 = vmatprep.subr.bf16.mxu1 %v3140_v3  ;;  %v3145_v8 = vld [vmem:[%s3878_s15 + $0x98] sm:$0xff]   ;;  %v1134_v17 = vshrl.u32 %v2494_v12, 16  ;;  %v1137_v18 = vshll.u32 %v2494_v12, 16  ;;  %v1143_v21 = vshll.u32 %v3918_v15, 16  ;;  %vm3925_vm4 = vmor %vm525_vm2, %vm526_vm3  ;;  %v3148_v27 = vld [vmem:[%s3878_s15 + $0x20] sm:$0xff]   ;;  %v1390_v49 = vrot.slane %v3918_v15, 5 }
  0xdc   : > { %2805 = vmatprep.subr.bf16.mxu0 %v3141_v4  ;;  %v3146_v9 = vld [vmem:[%s3870_s25] ss:$8 sps:$4 sm:$0xff]   ;;  %v3914_v11 = vld [vmem:[%s3870_s25 + $0xc] sm:$0x1]  ;;  %v3147_v30 = vld [vmem:[%s3870_s25 + $0x10] ss:$8 sps:$4 sm:$0xff]  }
  0xdd   : > { %v2492_v10 = vld [vmem:[%s3870_s25 + $0x8] sm:$0xf]  ;;  %2747 = vmatprep.mubr.msk.bf16.mxu1 %vm423_vm1, %v3146_v9  ;;  %v1129_v16 = vshll.u32 %v3914_v11, 16  ;;  %v1386_v22 = vrot.slane %v3914_v11, 5  ;;  %v1136_v25 = vrot.slane %v1134_v17, 4  ;;  %v1139_v26 = vrot.slane %v1137_v18, 5  ;;  %vm4017_vm7 = vmor %vm793_vm5, %vm794_vm6 }
  0xde   : > { %2742 = vmatpush3.bf16.msra.mxu1 %v3140_v3  ;;  %v1120_v13 = vshrl.u32 %v2492_v10, 16  ;;  %v1123_v14 = vshll.u32 %v2492_v10, 16  ;;  %v1145_v29 = vrot.slane %v1143_v21, 5  ;;  %v3932_v31 = vld [vmem:[%s3878_s15 + $0xa0] sm:$0xff]   ;;  %v2496_v33 = vld [vmem:[%s3870_s25 + $0x18] sm:$0xf] }
  0xdf   : > { %2806 = vmatpush3.bf16.msra.mxu0 %v3141_v4  ;;  %2743 = vmatprep.subr.bf16.mxu1 %v3142_v5  ;;  %v1131_v24 = vrot.slane %v1129_v16, 5  ;;  %v1140_v32 = vor.u32 %v1139_v26, %v1136_v25  ;;  %v3936_v34 = vld [vmem:[%s3870_s25 + $0x1c] sm:$0x1]  ;;  %v2498_v36 = vld [vmem:[%s3870_s25 + $0x20] sm:$0xf]  ;;  %v1148_v38 = vshrl.u32 %v2496_v33, 16 }
  0xe0   : > { %2807 = vmatprep.subr.bf16.mxu0 %v3143_v6  ;;  %v1122_v19 = vrot.slane %v1120_v13, 4  ;;  %v1125_v20 = vrot.slane %v1123_v14, 5  ;;  %v3940_v37 = vld [vmem:[%s3870_s25 + $0x24] sm:$0x1]  ;;  %v1151_v40 = vshll.u32 %v2496_v33, 16  ;;  %v1157_v41 = vshll.u32 %v3936_v34, 16 }
  0xe1   : > { %v1141_v39 = vrot.slane %v1140_v32, 4  ;;  %v1162_v42 = vshrl.u32 %v2498_v36, 16  ;;  %v1150_v44 = vrot.slane %v1148_v38, 4  ;;  %v1165_v45 = vshll.u32 %v2498_v36, 16  ;;  %v3150_v47 = vld [vmem:[%s3878_s15 + $0x28] sm:$0xff]   ;;  %v3154_v56 = vld [vmem:[%s3878_s15 + $0x30] sm:$0xff]  }
  0xe2   : > { %2744 = vmatpush3.bf16.msra.mxu1 %v3142_v5  ;;  %v1126_v28 = vor.u32 %v1125_v20, %v1122_v19  ;;  %v1171_v46 = vshll.u32 %v3940_v37, 16  ;;  %v1153_v50 = vrot.slane %v1151_v40, 5  ;;  %v1159_v53 = vrot.slane %v1157_v41, 5  ;;  %v3152_v61 = vld [vmem:[%s3870_s25 + $0x20] ss:$8 sps:$4 sm:$0xff]   ;;  %s4487_s5 = sld [smem:[#allocation19_spill]] }
  0xe3   : > { %2808 = vmatpush3.bf16.msra.mxu0 %v3143_v6  ;;  %2745 = vmatprep.subr.bf16.mxu1 %v3144_v7  ;;  %v1146_v48 = vsel %vm3925_vm4, %v1141_v39, %v1145_v29  ;;  %v1164_v51 = vrot.slane %v1162_v42, 4  ;;  %v1167_v54 = vrot.slane %v1165_v45, 5  ;;  %v1394_v58 = vrot.slane %v3936_v34, 5  ;;  %v2500_v63 = vld [vmem:[%s3870_s25 + $0x28] sm:$0xf]  ;;  %v3155_v39 = vld [vmem:[%s3878_s15 + $0xb0] sm:$0xff]  }
  0xe4   : > { %2809 = vmatprep.subr.bf16.mxu0 %v3145_v8  ;;  %v1127_v35 = vrot.slane %v1126_v28, 4  ;;  %v1173_v55 = vrot.slane %v1171_v46, 5  ;;  %v1154_v57 = vor.u32 %v1153_v50, %v1150_v44  ;;  %v1398_v59 = vrot.slane %v3940_v37, 5  ;;  %v3959_v0 = vld [vmem:[%s3870_s25 + $0x2c] sm:$0x1] }
  0xe5   : > { %v1168_v60 = vor.u32 %v1167_v54, %v1164_v51  ;;  %v3156_v1 = vld [vmem:[%s3878_s15 + $0x38] sm:$0xff]   ;;  %v2502_v3 = vld [vmem:[%s3870_s25 + $0x30] sm:$0xf]  ;;  %v3965_v4 = vld [vmem:[%s3870_s25 + $0x34] sm:$0x1]  ;;  %v1176_v5 = vshrl.u32 %v2500_v63, 16 }
  0xe6   : > { %2746 = vmatpush3.bf16.msra.mxu1 %v3144_v7  ;;  %v1132_v43 = vsel %vm3925_vm4, %v1127_v35, %v1131_v24  ;;  %v1155_v62 = vrot.slane %v1154_v57, 4  ;;  %v1179_v7 = vshll.u32 %v2500_v63, 16  ;;  %v1190_v9 = vshrl.u32 %v2502_v3, 16  ;;  %v3151_v12 = vld [vmem:[%s3878_s15 + $0xa8] sm:$0xff]   ;;  %v3976_v24 = vld [vmem:[%s3878_s15 + $0x40] sm:$0xff]  }
  0xe7   : > { %2810 = vmatpush3.bf16.msra.mxu0 %v3145_v8  ;;  %2755 = vmatprep.subr.bf16.mxu1 %v3148_v27  ;;  %v2508_v52 = vcombine.low %v1132_v43, %v1146_v48  ;;  %v1169_v2 = vrot.slane %v1168_v60, 4  ;;  %v1185_v8 = vshll.u32 %v3959_v0, 16  ;;  %v1178_v13 = vrot.slane %v1176_v5, 4  ;;  %v3153_v21 = vld [vmem:[%s3870_s25 + $0x30] ss:$8 sps:$4 sm:$0xff]  }
  0xe8   : > { %2819 = vmatprep.subr.bf16.mxu0 %v3932_v31  ;;  %v1160_v6 = vsel %vm3925_vm4, %v1155_v62, %v1159_v53  ;;  %v1193_v14 = vshll.u32 %v2502_v3, 16  ;;  %v1199_v16 = vshll.u32 %v3965_v4, 16  ;;  %v1181_v18 = vrot.slane %v1179_v7, 5  ;;  %v2504_v28 = vld [vmem:[%s3870_s25 + $0x38] sm:$0xf]  ;;  %p2624_p1 = scmp.ne.s32.totalorder %s4487_s5, 2 }
  0xe9   : > { %2748 = vmatmul.mubr.msk.bf16.vlgmr.msra.gmra.mrb[0].mxu1 %vm423_vm1, %v3147_v30  ;;  %2811 = vmatprep.mubr.msk.bf16.mxu0 %vm423_vm1, %v2508_v52  ;;  %v1174_v10 = vsel %vm3925_vm4, %v1169_v2, %v1173_v55  ;;  %v1187_v19 = vrot.slane %v1185_v8, 5  ;;  %v1192_v20 = vrot.slane %v1190_v9, 4  ;;  %v3982_v29 = vld [vmem:[%s3870_s25 + $0x3c] sm:$0x1]  ;;  %v2506_v30 = vld [vmem:[%s3870_s25 + $0x40] sm:$0xf] }
  0xea   : > { %2756 = vmatpush3.bf16.msra.mxu1 %v3148_v27  ;;  %2751 = vmatprep.mubr.msk.bf16.mxu1 %vm423_vm1, %v3152_v61  ;;  %v2509_v17 = vcombine.low %v1160_v6, %v1174_v10  ;;  %v1195_v25 = vrot.slane %v1193_v14, 5  ;;  %v1201_v26 = vrot.slane %v1199_v16, 5  ;;  %v1182_v27 = vor.u32 %v1181_v18, %v1178_v13  ;;  %v3987_v33 = vld [vmem:[%s3870_s25 + $0x44] sm:$0x1]  ;;  %v3157_v52 = vld [vmem:[%s3878_s15 + $0xb8] sm:$0xff]  }
  0xeb   : > { %2757 = vmatprep.subr.bf16.mxu1 %v3150_v47  ;;  %v1204_v35 = vshrl.u32 %v2504_v28, 16  ;;  %v1207_v36 = vshll.u32 %v2504_v28, 16  ;;  %v1213_v38 = vshll.u32 %v3982_v29, 16  ;;  %v1218_v41 = vshrl.u32 %v2506_v30, 16  ;;  %v509_v57 = vld [vmem:[%s3870_s25] sm:$0xf] }
  0xec   : > { %2812 = vmatmul.mubr.msk.bf16.vlgmr.msra.gmra.mrb[0].mxu0 %vm423_vm1, %v2509_v17  ;;  %v1196_v32 = vor.u32 %v1195_v25, %v1192_v20  ;;  %v1183_v40 = vrot.slane %v1182_v27, 4  ;;  %v1221_v42 = vshll.u32 %v2506_v30, 16  ;;  %v1227_v43 = vshll.u32 %v3987_v33, 16  ;;  %v4000_v60 = vld [vmem:[%s3870_s25 + $0x4] sm:$0x1] }
  0xed   : > { %2820 = vmatpush3.bf16.msra.mxu0 %v3932_v31  ;;  %v1206_v45 = vrot.slane %v1204_v35, 4  ;;  %v1209_v31 = vrot.slane %v1207_v36, 5  ;;  %v1215_v46 = vrot.slane %v1213_v38, 5  ;;  %v1220_v48 = vrot.slane %v1218_v41, 4  ;;  %v511_v61 = vld [vmem:[%s3870_s25 + $0x8] sm:$0xf] }
  0xee   : > { %2758 = vmatpush3.bf16.msra.mxu1 %v3150_v47  ;;  %2821 = vmatprep.subr.bf16.mxu0 %v3151_v12  ;;  %v1197_v44 = vrot.slane %v1196_v32, 4  ;;  %v1188_v47 = vsel %vm3925_vm4, %v1183_v40, %v1187_v19  ;;  %v1223_v50 = vrot.slane %v1221_v42, 5  ;;  %v1229_v51 = vrot.slane %v1227_v43, 5  ;;  %v4004_v63 = vld [vmem:[%s3870_s25 + $0xc] sm:$0x1] }
  0xef   : > { %2759 = vmatprep.subr.bf16.mxu1 %v3154_v56  ;;  %v1210_v54 = vor.u32 %v1209_v31, %v1206_v45  ;;  %v532_v2 = vshll.u32 %v509_v57, 16  ;;  %v538_v3 = vshll.u32 %v4000_v60, 16  ;;  %v543_v6 = vshrl.u32 %v511_v61, 16  ;;  %v2520_v9 = vld [vmem:[%s3870_s25 + $0x8] sm:$0xe] }
  0xf0   : > { %v1202_v53 = vsel %vm3925_vm4, %v1197_v44, %v1201_v26  ;;  %v546_v7 = vshll.u32 %v511_v61, 16  ;;  %v552_v8 = vshll.u32 %v4004_v63, 16  ;;  %v2521_v16 = vld [vmem:[%s3870_s25 + $0x10] sm:$0xe]  ;;  %v2528_v30 = vrot.slane %v2520_v9, 9 }
  0xf1   : > { %2752 = vmatmul.mubr.msk.bf16.gmra.mrb[4].mxu1 %vm423_vm1, %v3153_v21  ;;  %2822 = vmatpush3.bf16.msra.mxu0 %v3151_v12  ;;  %v2510_v55 = vcombine.low %v1188_v47, %v1202_v53  ;;  %v1211_v62 = vrot.slane %v1210_v54, 4  ;;  %v534_v13 = vrot.slane %v532_v2, 5  ;;  %v540_v14 = vrot.slane %v538_v3, 5  ;;  %v513_v25 = vld [vmem:[%s3870_s25 + $0x10] sm:$0xf] }
  0xf2   : > { %2760 = vmatpush3.bf16.msra.mxu1 %v3154_v56  ;;  %v1224_v56 = vor.u32 %v1223_v50, %v1220_v48  ;;  %2823 = vmatprep.subr.bf16.mxu0 %v3155_v39  ;;  %v545_v18 = vrot.slane %v543_v6, 4  ;;  %v548_v19 = vrot.slane %v546_v7, 5  ;;  %v554_v20 = vrot.slane %v552_v8, 5  ;;  %v4023_v26 = vld [vmem:[%s3878_s15 + $0xc0] sm:$0xff]   ;;  %v515_v36 = vld [vmem:[%s3870_s25 + $0x18] sm:$0xf] }
  0xf3   : > { %2761 = vmatprep.subr.bf16.mxu1 %v3156_v1  ;;  %2815 = vmatprep.mubr.msk.bf16.mxu0 %vm423_vm1, %v2510_v55  ;;  %v1216_v10 = vsel %vm3925_vm4, %v1211_v62, %v1215_v46  ;;  %v2529_v32 = vrot.slane %v2521_v16, 9  ;;  %v4026_v35 = vld [vmem:[%s3870_s25 + $0x14] sm:$0x1]  ;;  %v557_v40 = vshrl.u32 %v513_v25, 16  ;;  %v560_v41 = vshll.u32 %v513_v25, 16 }
  0xf4   : > { %v1225_v5 = vrot.slane %v1224_v56, 4  ;;  %v549_v38 = vor.u32 %v548_v19, %v545_v18  ;;  %v566_v42 = vshll.u32 %v4026_v35, 16  ;;  %v1387_v44 = vsel %vm4017_vm7, %v2528_v30, %v1386_v22  ;;  %v2523_v22 = vld [vmem:[%s3870_s25 + $0x20] sm:$0xe]  ;;  %v4063_v9 = vld [vmem:[%s3870_s25 + $0x24] sm:$0x1] }
  0xf5   : > { %2824 = vmatpush3.bf16.msra.mxu0 %v3155_v39  ;;  %v4030_v39 = vld [vmem:[%s3870_s25 + $0x1c] sm:$0x1]  ;;  %v1391_v45 = vsel %vm4017_vm7, %v2529_v32, %v1390_v49  ;;  %v571_v31 = vshrl.u32 %v515_v36, 16  ;;  %v559_v48 = vrot.slane %v557_v40, 4  ;;  %v562_v50 = vrot.slane %v560_v41, 5 }
  0xf6   : > { %2762 = vmatpush3.bf16.msra.mxu1 %v3156_v1  ;;  %v529_v1 = vshrl.u32 %v509_v57, 16  ;;  %v1230_v17 = vsel %vm3925_vm4, %v1225_v5, %v1229_v51  ;;  %2825 = vmatprep.subr.bf16.mxu0 %v3157_v52  ;;  %v550_v46 = vrot.slane %v549_v38, 4  ;;  %v2536_v47 = vcombine.low %v1387_v44, %v1391_v45  ;;  %v2522_v51 = vld [vmem:[%s3870_s25 + $0x18] sm:$0xe]  ;;  %v517_v8 = vld [vmem:[%s3870_s25 + $0x20] sm:$0xf] }
  0xf7   : > { %2771 = vmatprep.subr.bf16.mxu1 %v3976_v24  ;;  %v2511_v27 = vcombine.low %v1216_v10, %v1230_v17  ;;  %v568_v54 = vrot.slane %v566_v42, 5  ;;  %v573_v11 = vrot.slane %v571_v31, 4  ;;  %v574_v55 = vshll.u32 %v515_v36, 16  ;;  %v3161_v5 = vld [vmem:[%s3878_s15 + $0xc8] sm:$0xff]   ;;  %v2525_v19 = vld [vmem:[%s3870_s25 + $0x30] sm:$0xe] }
  0xf8   : > { %v531_v12 = vrot.slane %v529_v1, 4  ;;  %v555_v15 = vsel %vm3925_vm4, %v550_v46, %v554_v20  ;;  %v563_v49 = vor.u32 %v562_v50, %v559_v48  ;;  %v2530_v56 = vrot.slane %v2522_v51, 9  ;;  %v519_v10 = vld [vmem:[%s3870_s25 + $0x28] sm:$0xf]  ;;  %v521_v32 = vld [vmem:[%s3870_s25 + $0x30] sm:$0xf] }
  0xf9   : > { %2816 = vmatmul.mubr.msk.bf16.gmra.mrb[4].mxu0 %vm423_vm1, %v2511_v27  ;;  %v576_v61 = vrot.slane %v574_v55, 5  ;;  %v2531_v62 = vrot.slane %v2523_v22, 9  ;;  %v2524_v16 = vld [vmem:[%s3870_s25 + $0x28] sm:$0xe]  ;;  %v594_v37 = vshll.u32 %v4063_v9, 16  ;;  %v602_v18 = vshll.u32 %v519_v10, 16 }
  0xfa   : > { %v535_v28 = vor.u32 %v534_v13, %v531_v12  ;;  %2826 = vmatpush3.bf16.msra.mxu0 %v3157_v52  ;;  %2827 = vmatprep.mubr.msk.bf16.mxu0 %vm423_vm1, %v2536_v47  ;;  %v580_v52 = vshll.u32 %v4030_v39, 16  ;;  %v564_v1 = vrot.slane %v563_v49, 4  ;;  %v1395_v3 = vsel %vm4017_vm7, %v2530_v56, %v1394_v58  ;;  %v4069_v58 = vld [vmem:[%s3870_s25 + $0x2c] sm:$0x1]  ;;  %v4082_v42 = vld [vmem:[%s3870_s25 + $0x34] sm:$0x1] }
  0xfb   : > { %2835 = vmatprep.subr.bf16.mxu0 %v4023_v26  ;;  %v577_v6 = vor.u32 %v576_v61, %v573_v11  ;;  %v1399_v7 = vsel %vm4017_vm7, %v2531_v62, %v1398_v59  ;;  %v585_v13 = vshrl.u32 %v517_v8, 16  ;;  %v599_v59 = vshrl.u32 %v519_v10, 16  ;;  %v3160_v20 = vld [vmem:[%s3878_s15 + $0x48] sm:$0xff]  }
  0xfc   : > { %v536_v43 = vrot.slane %v535_v28, 4  ;;  %v582_v2 = vrot.slane %v580_v52, 5  ;;  %v569_v34 = vsel %vm3925_vm4, %v564_v1, %v568_v54  ;;  %v2537_v12 = vcombine.low %v1395_v3, %v1399_v7  ;;  %v523_v47 = vld [vmem:[%s3870_s25 + $0x38] sm:$0xf]  ;;  %v4088_v48 = vld [vmem:[%s3870_s25 + $0x3c] sm:$0x1] }
  0xfd   : > { %v578_v17 = vrot.slane %v577_v6, 4  ;;  %v587_v25 = vrot.slane %v585_v13, 4  ;;  %v608_v28 = vshll.u32 %v4069_v58, 16  ;;  %v2532_v30 = vrot.slane %v2524_v16, 9  ;;  %v3162_v52 = vld [vmem:[%s3878_s15 + $0x50] sm:$0xff]   ;;  %v3165_v7 = vld [vmem:[%s3878_s15 + $0xd8] sm:$0xff]  }
  0xfe   : > { %v541_v53 = vsel %vm3925_vm4, %v536_v43, %v540_v14  ;;  %v588_v14 = vshll.u32 %v517_v8, 16  ;;  %v596_v38 = vrot.slane %v594_v37, 5  ;;  %v601_v40 = vrot.slane %v599_v59, 4  ;;  %v3163_v43 = vld [vmem:[%s3878_s15 + $0xd0] sm:$0xff]   ;;  %v2526_v56 = vld [vmem:[%s3870_s25 + $0x38] sm:$0xe] }
  0xff   : > { %v2440_v57 = vcombine.low %v541_v53, %v555_v15  ;;  %v583_v36 = vsel %vm3925_vm4, %v578_v17, %v582_v2  ;;  %v604_v41 = vrot.slane %v602_v18, 5  ;;  %v610_v31 = vrot.slane %v608_v28, 5  ;;  %v2527_v2 = vld [vmem:[%s3870_s25 + $0x40] sm:$0xe]  ;;  %v3164_v13 = vld [vmem:[%s3878_s15 + $0x58] sm:$0xff]  }
 0x100   : > { %v590_v27 = vrot.slane %v588_v14, 5  ;;  %v2441_v44 = vcombine.low %v569_v34, %v583_v36  ;;  %v1402_v46 = vrot.slane %v3959_v0, 5  ;;  %v2533_v51 = vrot.slane %v2525_v19, 9  ;;  %v3169_v59 = vld [vmem:[%s3878_s15 + $0xe0] sm:$0xff]  }
 0x101   : > { %2763 = vmatprep.mubr.msk.bf16.mxu1 %vm423_vm1, %v2440_v57  ;;  %2828 = vmatmul.mubr.msk.bf16.vlgmr.msra.gmra.mrb[0].mxu0 %vm423_vm1, %v2537_v12  ;;  %v605_v50 = vor.u32 %v604_v41, %v601_v40  ;;  %v613_v53 = vshrl.u32 %v521_v32, 16  ;;  %v616_v55 = vshll.u32 %v521_v32, 16  ;;  %v622_v0 = vshll.u32 %v4082_v42, 16 }
 0x102   : > { %2836 = vmatpush3.bf16.msra.mxu0 %v4023_v26  ;;  %v591_v45 = vor.u32 %v590_v27, %v587_v25  ;;  %v1406_v26 = vrot.slane %v3965_v4, 5  ;;  %2764 = vmatmul.mubr.msk.bf16.vlgmr.msra.gmra.mrb[0].mxu1 %vm423_vm1, %v2441_v44  ;;  %v1403_v11 = vsel %vm4017_vm7, %v2532_v30, %v1402_v46  ;;  %v627_v49 = vshrl.u32 %v523_v47, 16  ;;  %v769_v25 = vld [vmem:[%s3870_s25] sm:$0xe]  ;;  %v770_v27 = vld [vmem:[%s3870_s25 + $0x8] sm:$0xe] }
 0x103   : > { %2837 = vmatprep.subr.bf16.mxu0 %v3161_v5  ;;  %2772 = vmatpush3.bf16.msra.mxu1 %v3976_v24  ;;  %v606_v22 = vrot.slane %v605_v50, 4  ;;  %v615_v4 = vrot.slane %v613_v53, 4  ;;  %v618_v62 = vrot.slane %v616_v55, 5  ;;  %v624_v1 = vrot.slane %v622_v0, 5  ;;  %v772_v44 = vld [vmem:[%s3870_s25 + $0x18] sm:$0xe] }
 0x104   : > { %v592_v54 = vrot.slane %v591_v45, 4  ;;  %v1407_v15 = vsel %vm4017_vm7, %v2533_v51, %v1406_v26  ;;  %2773 = vmatprep.subr.bf16.mxu1 %v3160_v20  ;;  %v629_v3 = vrot.slane %v627_v49, 4  ;;  %v636_v6 = vshll.u32 %v4088_v48, 16  ;;  %v3167_v45 = vld [vmem:[%s3878_s15 + $0x60] sm:$0xff]  }
 0x105   : > { %v2538_v61 = vcombine.low %v1403_v11, %v1407_v15  ;;  %v611_v24 = vsel %vm3925_vm4, %v606_v22, %v610_v31  ;;  %v619_v10 = vor.u32 %v618_v62, %v615_v4  ;;  %v2534_v34 = vrot.slane %v2526_v56, 9  ;;  %v774_v11 = vld [vmem:[%s3870_s25 + $0x28] sm:$0xe]  ;;  %v775_v56 = vld [vmem:[%s3870_s25 + $0x30] sm:$0xe] }
 0x106   : > { %2838 = vmatpush3.bf16.msra.mxu0 %v3161_v5  ;;  %v597_v57 = vsel %vm3925_vm4, %v592_v54, %v596_v38  ;;  %v630_v5 = vshll.u32 %v523_v47, 16  ;;  %v1410_v12 = vrot.slane %v3982_v29, 5  ;;  %v638_v16 = vrot.slane %v636_v6, 5  ;;  %v3166_v38 = vld [vmem:[%s3870_s25 + $0x10] ss:$8 sps:$4 sm:$0xff]  }
 0x107   : > { %2839 = vmatprep.subr.bf16.mxu0 %v3163_v43  ;;  %v2442_v8 = vcombine.low %v597_v57, %v611_v24  ;;  %2831 = vmatprep.mubr.msk.bf16.mxu0 %vm423_vm1, %v2538_v61  ;;  %v2535_v17 = vrot.slane %v2527_v2, 9  ;;  %v1414_v37 = vrot.slane %v3987_v33, 5  ;;  %v620_v18 = vrot.slane %v619_v10, 4  ;;  %v3168_v54 = vld [vmem:[%s3870_s25 + $0x20] ss:$8 sps:$4 sm:$0xff]  }
 0x108   : > { %2774 = vmatpush3.bf16.msra.mxu1 %v3160_v20  ;;  %v632_v14 = vrot.slane %v630_v5, 5  ;;  %v1411_v19 = vsel %vm4017_vm7, %v2534_v34, %v1410_v12  ;;  %v798_v29 = vrot.slane %v4000_v60, 5  ;;  %v2452_v28 = vrot.slane %v769_v25, 9  ;;  %v776_v57 = vld [vmem:[%s3870_s25 + $0x38] sm:$0xe]  ;;  %v3175_v6 = vld [vmem:[%s3878_s15 + $0xf0] sm:$0xff]  }
 0x109   : > { %2767 = vmatprep.mubr.msk.bf16.mxu1 %vm423_vm1, %v2442_v8  ;;  %2775 = vmatprep.subr.bf16.mxu1 %v3162_v52  ;;  %v1415_v33 = vsel %vm4017_vm7, %v2535_v17, %v1414_v37  ;;  %v802_v30 = vrot.slane %v4004_v63, 5  ;;  %v2453_v36 = vrot.slane %v770_v27, 9  ;;  %v625_v40 = vsel %vm3925_vm4, %v620_v18, %v624_v1  ;;  %v3177_v10 = vld [vmem:[%s3878_s15 + $0xf8] sm:$0xff]   ;;  %v2568_v34 = vld [vmem:[%s3870_s25 + $0x10] sm:$0xf] }
 0x10a   : > { %2840 = vmatpush3.bf16.msra.mxu0 %v3163_v43  ;;  %v633_v20 = vor.u32 %v632_v14, %v629_v3  ;;  %v2539_v32 = vcombine.low %v1411_v19, %v1415_v33  ;;  %v799_v60 = vsel %vm4017_vm7, %v2452_v28, %v798_v29  ;;  %v771_v43 = vld [vmem:[%s3870_s25 + $0x10] sm:$0xe]  ;;  %v806_v31 = vrot.slane %v4026_v35, 5  ;;  %v3171_v35 = vld [vmem:[%s3878_s15 + $0xe8] sm:$0xff]   ;;  %v4172_v12 = vld [vmem:[%s3870_s25 + $0x14] sm:$0x1] }
 0x10b   : > { %2841 = vmatprep.subr.bf16.mxu0 %v3165_v7  ;;  %v803_v63 = vsel %vm4017_vm7, %v2453_v36, %v802_v30  ;;  %v810_v46 = vrot.slane %v4030_v39, 5  ;;  %v2454_v51 = vrot.slane %v771_v43, 9  ;;  %v2455_v26 = vrot.slane %v772_v44, 9  ;;  %v773_v39 = vld [vmem:[%s3870_s25 + $0x20] sm:$0xe]  ;;  %v3170_v3 = vld [vmem:[%s3878_s15 + $0x68] sm:$0xff]  }
 0x10c   : > { %v634_v41 = vrot.slane %v633_v20, 4  ;;  %2776 = vmatpush3.bf16.msra.mxu1 %v3162_v52  ;;  %2832 = vmatmul.mubr.msk.bf16.gmra.mrb[4].mxu0 %vm423_vm1, %v2539_v32  ;;  %v2460_v50 = vcombine.low %v799_v60, %v803_v63  ;;  %v814_v55 = vrot.slane %v4063_v9, 5  ;;  %v818_v0 = vrot.slane %v4069_v58, 5  ;;  %v3172_v52 = vld [vmem:[%s3870_s25 + $0x30] ss:$8 sps:$4 sm:$0xff]  }
 0x10d   : > { %2777 = vmatprep.subr.bf16.mxu1 %v3164_v13  ;;  %2843 = vmatprep.mubr.msk.bf16.mxu0 %vm423_vm1, %v3166_v38  ;;  %v807_v22 = vsel %vm4017_vm7, %v2454_v51, %v806_v31  ;;  %v811_v15 = vsel %vm4017_vm7, %v2455_v26, %v810_v46  ;;  %v2456_v4 = vrot.slane %v773_v39, 9  ;;  %v2457_v49 = vrot.slane %v774_v11, 9  ;;  %v4177_v14 = vld [vmem:[%s3870_s25 + $0x1c] sm:$0x1]  ;;  %v3178_v20 = vld [vmem:[%s3870_s25 + $0x8] ss:$8 sps:$4 sm:$0xff]  }
 0x10e   : > { %2842 = vmatpush3.bf16.msra.mxu0 %v3165_v7  ;;  %v639_v47 = vsel %vm3925_vm4, %v634_v41, %v638_v16  ;;  %v2458_v61 = vrot.slane %v775_v56, 9  ;;  %v822_v62 = vrot.slane %v4082_v42, 5  ;;  %v2461_v1 = vcombine.low %v807_v22, %v811_v15  ;;  %v3174_v7 = vld [vmem:[%s3870_s25 + $0x40] ss:$8 sps:$4 sm:$0xff]   ;;  %v4190_v43 = vld [vmem:[%s3870_s25 + $0x2c] sm:$0x1] }
 0x10f   : > { %2851 = vmatprep.subr.bf16.mxu0 %v3169_v59  ;;  %v2443_v53 = vcombine.low %v625_v40, %v639_v47  ;;  %v815_v9 = vsel %vm4017_vm7, %v2456_v4, %v814_v55  ;;  %v819_v58 = vsel %vm4017_vm7, %v2457_v49, %v818_v0  ;;  %v2459_v2 = vrot.slane %v776_v57, 9  ;;  %v3176_v29 = vld [vmem:[%s3878_s15 + $0x78] sm:$0xff]   ;;  %v2572_v38 = vld [vmem:[%s3870_s25 + $0x20] sm:$0xf]  ;;  %v4186_v40 = vld [vmem:[%s3870_s25 + $0x24] sm:$0x1] }
 0x110   : > { %2778 = vmatpush3.bf16.msra.mxu1 %v3164_v13  ;;  %v826_v24 = vrot.slane %v4088_v48, 5  ;;  %v2462_v5 = vcombine.low %v815_v9, %v819_v58  ;;  %v823_v42 = vsel %vm4017_vm7, %v2458_v61, %v822_v62  ;;  %v3173_v48 = vld [vmem:[%s3878_s15 + $0x70] sm:$0xff]   ;;  %v2570_v13 = vld [vmem:[%s3870_s25 + $0x18] sm:$0xf]  ;;  %v1708_v16 = vshrl.u32 %v2568_v34, 16 }
 0x111   : > { %2768 = vmatmul.mubr.msk.bf16.gmra.mrb[4].mxu1 %vm423_vm1, %v2443_v53  ;;  %2787 = vmatprep.subr.bf16.mxu1 %v3167_v45  ;;  %v1711_v17 = vshll.u32 %v2568_v34, 16  ;;  %v1717_v37 = vshll.u32 %v4172_v12, 16  ;;  %v1725_v19 = vshll.u32 %v2570_v13, 16  ;;  %v1731_v25 = vshll.u32 %v4177_v14, 16  ;;  %v2574_v60 = vld [vmem:[%s3870_s25 + $0x28] sm:$0xf] }
 0x112   : > { %2779 = vmatprep.mubr.msk.bf16.mxu1 %vm423_vm1, %v2460_v50  ;;  %v827_v8 = vsel %vm4017_vm7, %v2459_v2, %v826_v24  ;;  %v1710_v33 = vrot.slane %v1708_v16, 4  ;;  %v1736_v44 = vshrl.u32 %v2572_v38, 16  ;;  %v1745_v31 = vshll.u32 %v4186_v40, 16  ;;  %v4194_v50 = vld [vmem:[%s3878_s15 + $0x100] sm:$0xff]   ;;  %v2578_v62 = vld [vmem:[%s3870_s25 + $0x38] sm:$0xf] }
 0x113   : > { %v2463_v18 = vcombine.low %v823_v42, %v827_v8  ;;  %v1713_v27 = vrot.slane %v1711_v17, 5  ;;  %v1719_v28 = vrot.slane %v1717_v37, 5  ;;  %v1727_v32 = vrot.slane %v1725_v19, 5  ;;  %v3179_v0 = vld [vmem:[%s3870_s25 + $0x18] ss:$8 sps:$4 sm:$0xff]  }
 0x114   : > { %2844 = vmatmul.mubr.msk.bf16.vlgmr.msra.gmra.mrb[0].mxu0 %vm423_vm1, %v3168_v54  ;;  %v1733_v36 = vrot.slane %v1731_v25, 5  ;;  %v1750_v46 = vshrl.u32 %v2574_v60, 16  ;;  %v1753_v47 = vshll.u32 %v2574_v60, 16  ;;  %v1738_v26 = vrot.slane %v1736_v44, 4  ;;  %v3182_v56 = vld [vmem:[%s3870_s25 + $0x28] ss:$8 sps:$4 sm:$0xff]  }
 0x115   : > { %2852 = vmatpush3.bf16.msra.mxu0 %v3169_v59  ;;  %2847 = vmatprep.mubr.msk.bf16.mxu0 %vm423_vm1, %v3172_v52  ;;  %v1722_v59 = vshrl.u32 %v2570_v13, 16  ;;  %v1714_v41 = vor.u32 %v1713_v27, %v1710_v33  ;;  %v1759_v54 = vshll.u32 %v4190_v43, 16  ;;  %v1747_v15 = vrot.slane %v1745_v31, 5  ;;  %v2576_v57 = vld [vmem:[%s3870_s25 + $0x30] sm:$0xf]  ;;  %v3181_v42 = vld [vmem:[%s3878_s15 + $0x108] sm:$0xff]  }
 0x116   : > { %2853 = vmatprep.subr.bf16.mxu0 %v3171_v35  ;;  %v1752_v39 = vrot.slane %v1750_v46, 4  ;;  %v1755_v11 = vrot.slane %v1753_v47, 5  ;;  %v4208_v61 = vld [vmem:[%s3870_s25 + $0x34] sm:$0x1]  ;;  %v4212_v24 = vld [vmem:[%s3870_s25 + $0x3c] sm:$0x1] }
 0x117   : > { %v1724_v30 = vrot.slane %v1722_v59, 4  ;;  %v1715_v51 = vrot.slane %v1714_v41, 4  ;;  %v1761_v4 = vrot.slane %v1759_v54, 5  ;;  %v2580_v19 = vld [vmem:[%s3870_s25 + $0x40] sm:$0xf]  ;;  %v3185_v54 = vld [vmem:[%s3878_s15 + $0x118] sm:$0xff]  }
 0x118   : > { %v1756_v52 = vor.u32 %v1755_v11, %v1752_v39  ;;  %v4232_v33 = vld [vmem:[%s3870_s25 + $0x4c] sm:$0x1]  ;;  %vm2232_vm8 = vcmask (!%p2624_p1), 519168  }
 0x119   : > { %2780 = vmatmul.mubr.msk.bf16.vlgmr.msra.gmra.mrb[0].mxu1 %vm423_vm1, %v2461_v1  ;;  %2854 = vmatpush3.bf16.msra.mxu0 %v3171_v35  ;;  %v1728_v63 = vor.u32 %v1727_v32, %v1724_v30  ;;  %v1720_v55 = vsel %vm3925_vm4, %v1715_v51, %v1719_v28  ;;  %v1764_v1 = vshrl.u32 %v2576_v57, 16  ;;  %v3183_v28 = vld [vmem:[%s3870_s25 + $0x38] ss:$8 sps:$4 sm:$0xff]   ;;  %v1792_v30 = vshrl.u32 %v2580_v19, 16 }
 0x11a   : > { %2788 = vmatpush3.bf16.msra.mxu1 %v3167_v45  ;;  %2783 = vmatprep.mubr.msk.bf16.mxu1 %vm423_vm1, %v2462_v5  ;;  %v1739_v45 = vshll.u32 %v2572_v38, 16  ;;  %v1757_v2 = vrot.slane %v1756_v52, 4  ;;  %v1773_v5 = vshll.u32 %v4208_v61, 16  ;;  %v1795_v32 = vshll.u32 %v2580_v19, 16  ;;  %v3184_v38 = vld [vmem:[%s3878_s15 + $0x110] sm:$0xff]  }
 0x11b   : > { %2789 = vmatprep.subr.bf16.mxu1 %v3170_v3  ;;  %2855 = vmatprep.subr.bf16.mxu0 %v3175_v6  ;;  %v1729_v35 = vrot.slane %v1728_v63, 4  ;;  %v1766_v8 = vrot.slane %v1764_v1, 4  ;;  %v1794_v31 = vrot.slane %v1792_v30, 4  ;;  %v1974_v52 = vrot.slane %v4172_v12, 5 }
 0x11c   : > { %2848 = vmatmul.mubr.msk.bf16.gmra.mrb[4].mxu0 %vm423_vm1, %v3174_v7  ;;  %v1741_v53 = vrot.slane %v1739_v45, 5  ;;  %v1762_v34 = vsel %vm3925_vm4, %v1757_v2, %v1761_v4  ;;  %v1775_v37 = vrot.slane %v1773_v5, 5  ;;  %v1815_v45 = vshll.u32 %v4232_v33, 16  ;;  %v2598_v2 = vld [vmem:[%s3870_s25 + $0x20] sm:$0xe] }
 0x11d   : > { %2856 = vmatpush3.bf16.msra.mxu0 %v3175_v6  ;;  %v1734_v49 = vsel %vm3925_vm4, %v1729_v35, %v1733_v36  ;;  %v1778_v6 = vshrl.u32 %v2578_v62, 16  ;;  %v1797_v46 = vrot.slane %v1795_v32, 5  ;;  %v1990_v5 = vrot.slane %v4208_v61, 5 }
 0x11e   : > { %2790 = vmatpush3.bf16.msra.mxu1 %v3170_v3  ;;  %2857 = vmatprep.subr.bf16.mxu0 %v3177_v10  ;;  %v1742_v22 = vor.u32 %v1741_v53, %v1738_v26  ;;  %v2584_v9 = vcombine.low %v1720_v55, %v1734_v49  ;;  %v1767_v3 = vshll.u32 %v2576_v57, 16  ;;  %v2002_v55 = vrot.slane %v4232_v33, 5  ;;  %v2601_v57 = vld [vmem:[%s3870_s25 + $0x38] sm:$0xe] }
 0x11f   : > { %2791 = vmatprep.subr.bf16.mxu1 %v3173_v48  ;;  %v1780_v16 = vrot.slane %v1778_v6, 4  ;;  %v1798_v39 = vor.u32 %v1797_v46, %v1794_v31  ;;  %v2609_v6 = vrot.slane %v2601_v57, 9  ;;  %v360_v31 = vld [vmem:[#allocation2 + $0x28] sm:$0xff] }
 0x120   : > { %v1743_v58 = vrot.slane %v1742_v22, 4  ;;  %2859 = vmatprep.mubr.msk.bf16.mxu0 %vm423_vm1, %v2584_v9  ;;  %v1769_v13 = vrot.slane %v1767_v3, 5  ;;  %v2597_v22 = vld [vmem:[%s3870_s25 + $0x18] sm:$0xe] }
 0x121   : > { %2784 = vmatmul.mubr.msk.bf16.gmra.mrb[4].mxu1 %vm423_vm1, %v2463_v18  ;;  %2858 = vmatpush3.bf16.msra.mxu0 %v3177_v10  ;;  %v1787_v10 = vshll.u32 %v4212_v24, 16  ;;  %v1799_v9 = vrot.slane %v1798_v39, 4 }
 0x122   : > { %2792 = vmatpush3.bf16.msra.mxu1 %v3173_v48  ;;  %2795 = vmatprep.mubr.msk.bf16.mxu1 %vm423_vm1, %v3178_v20  ;;  %v1748_v7 = vsel %vm3925_vm4, %v1743_v58, %v1747_v15  ;;  %v1781_v48 = vshll.u32 %v2578_v62, 16  ;;  %v1770_v25 = vor.u32 %v1769_v13, %v1766_v8  ;;  %v2582_v20 = vld [vmem:[%s3870_s25 + $0x48] sm:$0xf]  ;;  %v2605_v58 = vrot.slane %v2597_v22, 9 }
 0x123   : > { %2793 = vmatprep.subr.bf16.mxu1 %v3176_v29  ;;  %2867 = vmatprep.subr.bf16.mxu0 %v4194_v50  ;;  %v2585_v17 = vcombine.low %v1748_v7, %v1762_v34  ;;  %v1789_v18 = vrot.slane %v1787_v10, 5  ;;  %v1806_v60 = vshrl.u32 %v2582_v20, 16  ;;  %v1809_v44 = vshll.u32 %v2582_v20, 16  ;;  %v2599_v7 = vld [vmem:[%s3870_s25 + $0x28] sm:$0xe] }
 0x124   : > { %v1783_v59 = vrot.slane %v1781_v48, 5  ;;  %v1771_v41 = vrot.slane %v1770_v25, 4  ;;  %v1978_v62 = vrot.slane %v4177_v14, 5  ;;  %v1994_v8 = vrot.slane %v4212_v24, 5  ;;  %v2602_v10 = vld [vmem:[%s3870_s25 + $0x40] sm:$0xe] }
 0x125   : > { %2860 = vmatmul.mubr.msk.bf16.vlgmr.msra.gmra.mrb[0].mxu0 %vm423_vm1, %v2585_v17  ;;  %v1808_v26 = vrot.slane %v1806_v60, 4  ;;  %v1811_v53 = vrot.slane %v1809_v44, 5  ;;  %v2606_v48 = vrot.slane %v2598_v2, 9  ;;  %v2603_v34 = vld [vmem:[%s3870_s25 + $0x48] sm:$0xe]  ;;  %v1982_v17 = vrot.slane %v4186_v40, 5 }
 0x126   : > { %2794 = vmatpush3.bf16.msra.mxu1 %v3176_v29  ;;  %v4228_v29 = vld [vmem:[%s3870_s25 + $0x44] sm:$0x1]  ;;  %v1784_v27 = vor.u32 %v1783_v59, %v1780_v16  ;;  %2868 = vmatpush3.bf16.msra.mxu0 %v4194_v50  ;;  %v1776_v51 = vsel %vm3925_vm4, %v1771_v41, %v1775_v37  ;;  %v1979_v14 = vsel %vm4017_vm7, %v2605_v58, %v1978_v62  ;;  %v1986_v24 = vrot.slane %v4190_v43, 5  ;;  %v356_v62 = vld [vmem:[#allocation2 + $0x8] sm:$0xff] }
 0x127   : > { %2883 = vmatprep.subr.bf16.mxu1 %v4194_v50  ;;  %v1801_v36 = vshll.u32 %v4228_v29, 16  ;;  %2869 = vmatprep.subr.bf16.mxu0 %v3181_v42  ;;  %v1998_v11 = vrot.slane %v4228_v29, 5  ;;  %v1812_v4 = vor.u32 %v1811_v53, %v1808_v26  ;;  %v1995_v59 = vsel %vm4017_vm7, %v2609_v6, %v1994_v8  ;;  %v359_v60 = vld [vmem:[#allocation2 + $0x20] sm:$0xff] }
 0x128   : > { %v1785_v63 = vrot.slane %v1784_v27, 4  ;;  %v2610_v25 = vrot.slane %v2602_v10, 9  ;;  %v2611_v23 = vrot.slane %v2603_v34, 9  ;;  %v1983_v29 = vsel %vm4017_vm7, %v2606_v48, %v1982_v17  ;;  %v2649_v17 = vld [vmem:[%s3893_s8] sm:$0xff] (!%p2624_p1)  }
 0x129   : > { %2796 = vmatmul.mubr.msk.bf16.vlgmr.msra.gmra.mrb[0].mxu1 %vm423_vm1, %v3179_v0  ;;  %v1803_v47 = vrot.slane %v1801_v36, 5  ;;  %v2596_v0 = vld [vmem:[%s3870_s25 + $0x10] sm:$0xe]  ;;  %v1813_v3 = vrot.slane %v1812_v4, 4 }
 0x12a   : > { %2887 = vmatpush3.bf16.msra.mxu1 %v4194_v50  ;;  %2799 = vmatprep.mubr.msk.bf16.mxu1 %vm423_vm1, %v3182_v56  ;;  %v1817_v50 = vrot.slane %v1815_v45, 5  ;;  %v1790_v35 = vsel %vm3925_vm4, %v1785_v63, %v1789_v18  ;;  %v2604_v49 = vrot.slane %v2596_v0, 9  ;;  %v2600_v56 = vld [vmem:[%s3870_s25 + $0x30] sm:$0xe]  ;;  %v2607_v18 = vrot.slane %v2599_v7, 9  ;;  %v362_v45 = vld [vmem:[#allocation2 + $0x38] sm:$0xff] }
 0x12b   : > { %2884 = vmatprep.subr.bf16.mxu1 %v3181_v42  ;;  %2870 = vmatpush3.bf16.msra.mxu0 %v3181_v42  ;;  %v2586_v15 = vcombine.low %v1776_v51, %v1790_v35  ;;  %v2608_v1 = vrot.slane %v2600_v56, 9  ;;  %v1999_v20 = vsel %vm4017_vm7, %v2610_v25, %v1998_v11  ;;  %v2003_v43 = vsel %vm4017_vm7, %v2611_v23, %v2002_v55  ;;  %v357_v0 = vld [vmem:[#allocation2 + $0x10] sm:$0xff]  ;;  %v355_v4 = vld [vmem:[#allocation2] sm:$0xff]  ;;  %v358_v56 = vld [vmem:[#allocation2 + $0x18] sm:$0xff] }
 0x12c   : > { %2871 = vmatprep.subr.bf16.mxu0 %v3184_v38  ;;  %v1975_v12 = vsel %vm4017_vm7, %v2604_v49, %v1974_v52  ;;  %v1818_v13 = vsel %vm3925_vm4, %v1813_v3, %v1817_v50  ;;  %v1987_v40 = vsel %vm4017_vm7, %v2607_v18, %v1986_v24  ;;  %v2615_v33 = vcombine.low %v1999_v20, %v2003_v43  ;;  %v2664_v25 = vld [vmem:[%s3893_s8 + $0x8] sm:$0xff] (!%p2624_p1)  }
 0x12d   : > { %2863 = vmatprep.mubr.msk.bf16.mxu0 %vm423_vm1, %v2586_v15  ;;  %v2612_v16 = vcombine.low %v1975_v12, %v1979_v14  ;;  %v1991_v61 = vsel %vm4017_vm7, %v2608_v1, %v1990_v5  ;;  %v2613_v27 = vcombine.low %v1983_v29, %v1987_v40  ;;  %v2651_v24 = vunpack.c.h.bf16 (!%p2624_p1), %v2649_v17 }
 0x12e   : > { %2888 = vmatpush3.bf16.msra.mxu1 %v3181_v42  ;;  %v1804_v42 = vsel %vm3925_vm4, %v1799_v9, %v1803_v47  ;;  %v2614_v19 = vcombine.low %v1991_v61, %v1995_v59  ;;  %v2625_v61 = vld [vmem:[#allocation8] ss:$0 sm:$0xff] (!%p2624_p1)  ;;  %v2650_v59 = vunpack.c.l.bf16 (!%p2624_p1), %v2649_v17  ;;  %v2654_v40 = vunpack.c.l.bf16 (!%p2624_p1), %v2664_v25 }
 0x12f   : > { %2885 = vmatprep.subr.bf16.mxu1 %v3184_v38  ;;  %2872 = vmatpush3.bf16.msra.mxu0 %v3184_v38  ;;  %v2587_v37 = vcombine.low %v1804_v42, %v1818_v13  ;;  %v2655_v43 = vunpack.c.h.bf16 (!%p2624_p1), %v2664_v25 }
 0x130   : > { %2873 = vmatprep.subr.bf16.mxu0 %v3185_v54 }
 0x131   : > { %2800 = vmatmul.mubr.msk.bf16.gmra.mrb[4].mxu1 %vm423_vm1, %v3183_v28  ;;  %2864 = vmatmul.mubr.msk.bf16.gmra.mrb[4].mxu0 %vm423_vm1, %v2587_v37 }
 0x132   : > { %2889 = vmatpush3.bf16.msra.mxu1 %v3184_v38  ;;  %2875 = vmatprep.mubr.msk.bf16.mxu0 %vm423_vm1, %v2612_v16  ;;  %v361_v38 = vld [vmem:[#allocation2 + $0x30] sm:$0xff] }
 0x133   : > { %2886 = vmatprep.subr.bf16.mxu1 %v3185_v54  ;;  %2874 = vmatpush3.bf16.msra.mxu0 %v3185_v54 }
 0x134   : > { %2879 = vmatprep.mubr.msk.bf16.mxu1 %vm423_vm1, %v2614_v19 }
 0x136   : > { %2890 = vmatpush3.bf16.msra.mxu1 %v3185_v54 }
 0x139   : > { %2880 = vmatmul.mubr.msk.bf16.vlgmr.msra.gmra.mrb[8].mxu1 %vm423_vm1, %v2615_v33  ;;  %2876 = vmatmul.mubr.msk.bf16.vlgmr.msra.gmra.mrb[0].mxu0 %vm423_vm1, %v2613_v27  ;;  %v2665_v27 = vld [vmem:[%s3893_s8 + $0x10] sm:$0xff] (!%p2624_p1)  }
 0x1fc   : > { %v2797_v28 = vpop.f32.mrb[0].mxu1 }
 0x1fd   : > { %v1064_v30 = vpop.f32.mrb[1].mxu1  ;;  %v2891_v58 = vadd.f32 %v2797_v28, %v357_v0 }
 0x1fe   : > { %v2798_v32 = vpop.f32.mrb[2].mxu1  ;;  %v2893_v3 = vadd.f32 %v1064_v30, %v355_v4 }
 0x1ff   : > { %v1067_v36 = vpop.f32.mrb[3].mxu1  ;;  %v2895_v6 = vadd.f32 %v2798_v32, %v358_v56 }
 0x200   : > { %v2897_v14 = vadd.f32 %v1067_v36, %v356_v62  ;;  %v2658_v36 = vunpack.c.l.bf16 (!%p2624_p1), %v2665_v27 }
 0x204   : > { %v2801_v41 = vpop.f32.mrb[4].mxu1  ;;  %v2865_v26 = vpop.f32.mrb[4].mxu0 }
 0x205   : > { %v1080_v44 = vpop.f32.mrb[5].mxu1  ;;  %v2899_v21 = vadd.f32 %v2801_v41, %v361_v38  ;;  %v1925_v54 = vpop.f32.mrb[5].mxu0 }
 0x206   : > { %v2802_v63 = vpop.f32.mrb[6].mxu1  ;;  %v2902_v47 = vadd.f32 %v1080_v44, %v359_v60  ;;  %v2866_v39 = vpop.f32.mrb[6].mxu0  ;;  %v2666_v60 = vld [vmem:[%s3893_s8 + $0x18] sm:$0xff] (!%p2624_p1)  }
 0x207   : > { %v1083_v46 = vpop.f32.mrb[7].mxu1  ;;  %v2905_v51 = vadd.f32 %v2802_v63, %v362_v45  ;;  %v2900_v50 = vadd.f32 %v2899_v21, %v2865_v26  ;;  %v1928_v55 = vpop.f32.mrb[7].mxu0  ;;  %v2659_v21 = vunpack.c.h.bf16 (!%p2624_p1), %v2665_v27 }
 0x208   : > { %v2908_v53 = vadd.f32 %v1083_v46, %v360_v31  ;;  %v2903_v35 = vadd.f32 %v2902_v47, %v1925_v54 }
 0x209   : > { %v2906_v11 = vadd.f32 %v2905_v51, %v2866_v39 }
 0x20a   : > { %v2909_v22 = vadd.f32 %v2908_v53, %v1928_v55 }
 0x20c   : > { %v2881_v15 = vpop.f32.mrb[8].mxu1  ;;  %v2877_v12 = vpop.f32.mrb[0].mxu0  ;;  %2144 = sbr.rel (%p2624_p1) target bundleno = 548 (0x224), region = 60 }
 0x20d   : > { %v2901_v49 = vadd.f32 %v2900_v50, %v2881_v15  ;;  %v2110_v52 = vpop.f32.mrb[9].mxu1  ;;  %v2892_v7 = vadd.f32 %v2891_v58, %v2877_v12  ;;  %v2094_v42 = vpop.f32.mrb[1].mxu0 }
 0x20e   : > { %v2904_v57 = vadd.f32 %v2903_v35, %v2110_v52  ;;  %v2882_v9 = vpop.f32.mrb[10].mxu1  ;;  %v2894_v8 = vadd.f32 %v2893_v3, %v2094_v42  ;;  %v2878_v48 = vpop.f32.mrb[2].mxu0  ;;  %v2662_v35 = vunpack.c.l.bf16 (!%p2624_p1), %v2666_v60 }
 0x20f   : > { %2139 = vst.msk [vmem:[#allocation2 + $0x30] sm:$0xff] %vm423_vm1, %v2901_v49  ;;  %v2907_v1 = vadd.f32 %v2906_v11, %v2882_v9  ;;  %v2113_v2 = vpop.f32.mrb[11].mxu1  ;;  %2135 = vst.msk [vmem:[#allocation2 + $0x10] sm:$0xff] %vm423_vm1, %v2892_v7  ;;  %v2896_v10 = vadd.f32 %v2895_v6, %v2878_v48  ;;  %v2097_v34 = vpop.f32.mrb[3].mxu0 }
 0x210   : > { %2137 = vst.msk [vmem:[#allocation2 + $0x20] sm:$0xff] %vm423_vm1, %v2904_v57  ;;  %v2910_v5 = vadd.f32 %v2909_v22, %v2113_v2  ;;  %2133 = vst.msk [vmem:[#allocation2] sm:$0xff] %vm423_vm1, %v2894_v8  ;;  %v2898_v13 = vadd.f32 %v2897_v14, %v2097_v34  ;;  %v2663_v57 = vunpack.c.h.bf16 (!%p2624_p1), %v2666_v60 }
 0x211   : > { %2140 = vst.msk [vmem:[#allocation2 + $0x38] sm:$0xff] %vm423_vm1, %v2907_v1  ;;  %2136 = vst.msk [vmem:[#allocation2 + $0x18] sm:$0xff] %vm423_vm1, %v2896_v10 }
 0x212   : > { %2138 = vst.msk [vmem:[#allocation2 + $0x28] sm:$0xff] %vm423_vm1, %v2910_v5  ;;  %2134 = vst.msk [vmem:[#allocation2 + $0x8] sm:$0xff] %vm423_vm1, %v2898_v13 }
 0x216   : > { %v2147_v19 = vld [vmem:[#allocation2 + $0x10] sm:$0xff] }
 0x217   : > { %v2145_v16 = vld [vmem:[#allocation2] sm:$0xff]  ;;  %v2162_v29 = vadd.f32 %v2625_v61, %v2147_v19  ;;  %v2151_v41 = vld [vmem:[#allocation2 + $0x30] sm:$0xff] }
 0x218   : > { %v2160_v37 = vadd.f32 %v2625_v61, %v2145_v16  ;;  %v2148_v20 = vld [vmem:[#allocation2 + $0x18] sm:$0xff]  ;;  %v2149_v33 = vld [vmem:[#allocation2 + $0x20] sm:$0xff]  ;;  %v2166_v26 = vadd.f32 %v2625_v61, %v2151_v41 }
 0x219   : > { %v2146_v18 = vld [vmem:[#allocation2 + $0x8] sm:$0xff]  ;;  %v2163_v30 = vadd.f32 %v2625_v61, %v2148_v20  ;;  %v2164_v32 = vadd.f32 %v2625_v61, %v2149_v33  ;;  %v2186_v45 = vadd.f32 %v2654_v40, %v2162_v29  ;;  %v2152_v31 = vld [vmem:[#allocation2 + $0x38] sm:$0xff] }
 0x21a   : > { %v2161_v23 = vadd.f32 %v2625_v61, %v2146_v18  ;;  %v2184_v28 = vadd.f32 %v2650_v59, %v2160_v37  ;;  %v2150_v38 = vld [vmem:[#allocation2 + $0x28] sm:$0xff]  ;;  %v2167_v0 = vadd.f32 %v2625_v61, %v2152_v31  ;;  %v2190_v49 = vadd.f32 %v2662_v35, %v2166_v26 }
 0x21b   : > { %v2165_v63 = vadd.f32 %v2625_v61, %v2150_v38  ;;  %v2187_v47 = vadd.f32 %v2655_v43, %v2163_v30  ;;  %v2188_v51 = vadd.f32 %v2658_v36, %v2164_v32  ;;  %v2194_v50 = vmax.f32 %v2186_v45, 0.0 }
 0x21c   : > { %v2185_v44 = vadd.f32 %v2651_v24, %v2161_v23  ;;  %v2192_v46 = vmax.f32 %v2184_v28, 0.0  ;;  %v2198_v58 = vmax.f32 %v2190_v49, 0.0  ;;  %v2191_v62 = vadd.f32 %v2663_v57, %v2167_v0 }
 0x21d   : > { %v2189_v54 = vadd.f32 %v2659_v21, %v2165_v63  ;;  %v2195_v11 = vmax.f32 %v2187_v47, 0.0  ;;  %v2196_v55 = vmax.f32 %v2188_v51, 0.0  ;;  %v2642_v15 = vpack.c.bf16 %v2194_v50, %v2194_v50 }
 0x21e   : > { %v2193_v53 = vmax.f32 %v2185_v44, 0.0  ;;  %v2640_v39 = vpack.c.bf16 %v2192_v46, %v2192_v46  ;;  %v2646_v1 = vpack.c.bf16 %v2198_v58, %v2198_v58  ;;  %v2199_v2 = vmax.f32 %v2191_v62, 0.0 }
 0x21f   : > { %v2197_v4 = vmax.f32 %v2189_v54, 0.0  ;;  %v2643_v52 = vpack.c.bf16 %v2195_v11, %v2195_v11  ;;  %v2644_v56 = vpack.c.bf16 %v2196_v55, %v2196_v55  ;;  %2235 = vst.msk [vmem:[%s3899_s18 + $0x8] sm:$0xf] %vm2232_vm8, %v2642_v15 }
 0x220   : > { %v2641_v22 = vpack.c.bf16 %v2193_v53, %v2193_v53  ;;  %2233 = vst.msk [vmem:[%s3899_s18] sm:$0xf] %vm2232_vm8, %v2640_v39  ;;  %2239 = vst.msk [vmem:[%s3899_s18 + $0x18] sm:$0xf] %vm2232_vm8, %v2646_v1  ;;  %v2647_v3 = vpack.c.bf16 %v2199_v2, %v2199_v2 }
 0x221   : > { %v2645_v9 = vpack.c.bf16 %v2197_v4, %v2197_v4  ;;  %2236 = vst.msk [vmem:[%s3899_s18 + $0xc] sm:$0xf] %vm2232_vm8, %v2643_v52  ;;  %2237 = vst.msk [vmem:[%s3899_s18 + $0x10] sm:$0xf] %vm2232_vm8, %v2644_v56 }
 0x222   : > { %2234 = vst.msk [vmem:[%s3899_s18 + $0x4] sm:$0xf] %vm2232_vm8, %v2641_v22  ;;  %2240 = vst.msk [vmem:[%s3899_s18 + $0x1c] sm:$0xf] %vm2232_vm8, %v2647_v3 }
 0x223   : > { %2238 = vst.msk [vmem:[%s3899_s18 + $0x14] sm:$0xf] %vm2232_vm8, %v2645_v9 }
 0x224 PF: > { %s4488_s25 = sld [smem:[#allocation20_spill]]  ;;  %s4489_s7 = sld [smem:[#allocation21_spill]] }
 0x225   : > { %s2257_s22 = sshll.u32 %s3899_s18, 4  ;;  %s4490_s10 = sld [smem:[#allocation30_spill]]  ;;  %s4320_s22 = int_to_ptr.vmem [resolvable:$true] %s2257_s22 }
 0x226   : > { %s2242_s13 = scalar_lea.sflag [#allocation5], %s3889_s4  ;;  %s3304_s5 = scalar_lea.vmem %s4320_s22, 512 }
 0x227   : > { %p3305_p3 = scmp.ne.s32.totalorder %s4320_s22, %s3304_s5 }
 0x229   : > { %p3306_p0 = pnand %p3305_p3, %p3816_p6 }
 0x22a   : > { %s2635_s14 = sshll.u32 %s4488_s25, 3  ;;  %s2636_s26 = sshll.u32 %s4489_s7, 6 }
 0x22b   : > { %s2254_s11 = sadd.s32 %s2636_s26, %s2635_s14  ;;  %p3307_p9 = pneg %p3306_p0 }
 0x22c   : > { %s2637_s15 = sshll.u32 %s2254_s11, 6  ;;  %s3487_s25 = smov [#allocation11]  }
 0x22d   : > { %s4325_s8 = scalar_lea.hbm %s4490_s10, %s2637_s15  ;;  %s3308_s18 = sshll.u32 %s3487_s25, 4  ;;  %s3309_s18 = int_to_ptr.vmem [resolvable:$false] %s3308_s18 }
 0x22e   : > { %s3310_s7 = scalar_lea.vmem %s3309_s18, 1024  ;;  %p3311_p13 = scmp.lt.s32.totalorder %s4320_s22, %s3309_s18 }
 0x22f   : > { %p3312_p8 = scmp.lt.s32.totalorder %s3310_s7, %s3304_s5 }
 0x231   : > { %p3313_p10 = por %p3312_p8, %p3311_p13 }
 0x233   : > { %p3314_p12 = pnand %p3313_p10, %p3307_p9 }
 0x235   : > { %3317 = shalt.err (!%p3314_p12)
}
 0x236   : > { %s3318_s14 = scalar_lea.hbm %s4325_s8, 512  ;;  %s3322_s15 = scalar_lea.hbm %s4490_s10, 8192 }
 0x237   : > { %p3319_p7 = scmp.ne.s32.totalorder %s4325_s8, %s3318_s14  ;;  %p3323_p5 = scmp.lt.u32.totalorder %s4325_s8, %s4490_s10 }
 0x238   : > { %p3324_p11 = scmp.lt.u32.totalorder %s3322_s15, %s3318_s14  ;;  %p3326_p3 = scmp.lt.u32.totalorder %s3318_s14, %s4325_s8 }
 0x239   : > { %p3320_p2 = pnand %p3319_p7, %p3816_p6 }
 0x23a   : > { %p3325_p1 = por %p3324_p11, %p3323_p5 }
 0x23b   : > { %p3321_p4 = pneg %p3320_p2 }
 0x23c   : > { %p3327_p0 = por %p3326_p3, %p3325_p1 }
 0x23e   : > { %p3328_p9 = pnand %p3327_p0, %p3321_p4 }
 0x240   : > { %3331 = shalt.err (!%p3328_p9)
}
 0x241   : > { %s3488_s5 = smov 64   ;;  %s3489_s25 = smov 4  }
 0x242   : > { %2980 = dma.vmem_to_hbm [thread:$0]  (%p3816_p6), %s4320_s22, 512, %s4325_s8, %s2242_s13, %s3488_s5, %s3488_s5, %s3489_s25  }
 0x243 PF: > { %s4491_s18 = sld [smem:[#allocation17_spill]]  ;;  %s4492_s7 = sld [smem:[#allocation25_spill]] }
 0x244   : > { %p3003_p13 = scmp.ge.s32.totalorder %s3478_s30, 2 }
 0x249   : > { %s2272_s26 = sand.u32 1, %s4491_s18   ;;  %p4493_p8 = scmp.ne.s32.totalorder %s4492_s7, 0 }
 0x24a   : > { %s2273_s14 = scalar_lea.sflag [#allocation5], %s2272_s26 }
 0x24b   : > { %p2997_p10 = pnand %p3003_p13, %p4493_p8 }
 0x24d   : > { %3413 = dma.done.wait (!%p2997_p10), %s2273_s14, 512  }
 0x24e   : > { %3415 = vsyncadd (!%p2997_p10), %s2273_s14, 4294966784  ;;  %s26_s30 = sadd.s32 1, %s3478_s30   ;;  %s4495_s2 = sld [smem:[#allocation18_spill]] }
 0x24f   : > { %p4356_p12 = scmp.ge.s32.totalorder %s26_s30, 50   ;;  %s4496_s4 = sld [smem:[#allocation26_spill]] }
 0x250   : > { %s4497_s8 = sld [smem:[#allocation27_spill]]  ;;  %s4498_s13 = sld [smem:[#allocation28_spill]] }
 0x251   : > { %s4499_s15 = smov %s3422_s16  ;;  %s4500_s16 = smov %s3426_s17 }
 0x252   : > { %s4501_s17 = smov %s3810_s24  ;;  %s4502_s18 = smov %s3434_s19 }
 0x253   : > { %s4503_s19 = smov %s3438_s20  ;;  %s4504_s20 = smov %s3754_s21 }
 0x254   : > { %s4505_s21 = smov %s4495_s2  ;;  %s4506_s22 = smov %s3450_s23 }
 0x255   : > { %s4507_s23 = smov %s3706_s12  ;;  %s4508_s24 = smov %s3466_s27 }
 0x256   : > { %s4509_s25 = smov %s3470_s28  ;;  %s4510_s26 = smov %s3474_s29 }
 0x257   : > { %s4511_s27 = smov %s4496_s4  ;;  %s4512_s28 = smov %s4497_s8 }
 0x258   : > { %s4513_s29 = smov %s4498_s13  ;;  %25 = sbr.rel (!%p4356_p12) target bundleno = 18 (0x12), region = 121 }
 0x25f   :  { %2278 = vsyncpa [#allocation4], 1 }
 0x260   :  { %2280 = vsyncpa [#allocation4 + $0x1], 1 }
 0x261   :  { %2281 = vsyncpa [#allocation7], 1 }
 0x262   :  { %2283 = vsyncpa [#allocation7 + $0x1], 1 }
 0x263   :  { %2284 = vsyncpa [#allocation10], 1 }
 0x264   :  { %2286 = vsyncpa [#allocation10 + $0x1], 1 }
 0x265   :  { %2287 = vsyncpa [#allocation5], 1 }
 0x266   :  { %2289 = vsyncpa [#allocation5 + $0x1], 1 }

// kernel: mri_model_forward.11
= control target key start
LH: loop header
LB: loop body
LE: loop exit
PB: predicated region body
PF: predicated region fallthrough
CT: control target
= control target key end

     0   :  { %s4151_s0 = inlined_call_operand.hbm [shape: bf16[2,10,10,10,64], index: 0, kind: input, shape index: {}]   ;;  %s4152_s1 = inlined_call_operand.hbm [shape: bf16[3,576,64], index: 1, kind: input, shape index: {}]   ;;  %s4153_s2 = inlined_call_operand.hbm [shape: f32[1,64], index: 2, kind: input, shape index: {}]   ;;  %s4154_s3 = inlined_call_operand.hbm [shape: bf16[2,8,64,64], index: 3, kind: output, shape index: {}]  }
   0x1   :  { %4182 = sst [smem:[#allocation31_spill]] %s4153_s2 }
   0x2   :  { %4183 = sst [smem:[#allocation32_spill]] %s4154_s3 }
   0x3   :  { %8 = vsyncpa [#allocation4], 0 }
   0x4   :  { %10 = vsyncpa [#allocation4 + $0x1], 0 }
   0x5   :  { %11 = vsyncpa [#allocation7], 0 }
   0x6   :  { %13 = vsyncpa [#allocation7 + $0x1], 0 }
   0x7   :  { %14 = vsyncpa [#allocation5], 0 }
   0x8   :  { %16 = vsyncpa [#allocation5 + $0x1], 0  ;;  %s3325_s12 = smov 0   ;;  %s3327_s13 = smov 0  }
   0x9   :  { %s3329_s14 = smov 0   ;;  %s3331_s15 = smov 0  }
   0xa   :  { %s3333_s16 = smov 0   ;;  %s3335_s17 = smov 0  }
   0xb   :  { %s3337_s18 = smov 0   ;;  %s3339_s19 = smov 0  }
   0xc   :  { %s3341_s20 = smov 0   ;;  %s3343_s21 = smov 0  }
   0xd   :  { %s3345_s22 = smov 0   ;;  %s3347_s23 = smov 0  }
   0xe   :  { %s3349_s24 = smov 0   ;;  %s3351_s25 = smov 0  }
   0xf   :  { %s3353_s26 = smov 0   ;;  %s3355_s27 = smov 0  }
  0x10 LB: > { %4184 = sst [smem:[#allocation14_spill]] %s3234_s12  ;;  %s3402_s28 = sadd.s32 4294967295, %s3294_s27   ;;  %s3294_s27 = sphi %s3355_s27, %s22_s27   ;;  %s3290_s26 = sphi %s3353_s26, %s4263_s26   ;;  %s3286_s25 = sphi %s3351_s25, %s4252_s25   ;;  %s3282_s24 = sphi %s3349_s24, %s4262_s24   ;;  %s3278_s23 = sphi %s3347_s23, %s4261_s23   ;;  %s3274_s22 = sphi %s3345_s22, %s4250_s22   ;;  %s3270_s21 = sphi %s3343_s21, %s4260_s21   ;;  %s3266_s20 = sphi %s3341_s20, %s4259_s20   ;;  %s3262_s19 = sphi %s3339_s19, %s4258_s19   ;;  %s3258_s18 = sphi %s3337_s18, %s4249_s18   ;;  %s3254_s17 = sphi %s3335_s17, %s4257_s17   ;;  %s3250_s16 = sphi %s3333_s16, %s4256_s16   ;;  %s3246_s15 = sphi %s3331_s15, %s4247_s15   ;;  %s3242_s14 = sphi %s3329_s14, %s4255_s14   ;;  %s3238_s13 = sphi %s3327_s13, %s4254_s13   ;;  %s3234_s12 = sphi %s3325_s12, %s4253_s12  }
  0x11   : > { %4185 = sst [smem:[#allocation15_spill]] %s3238_s13  ;;  %s2292_s29 = sadd.s32 4294967294, %s3294_s27  }
  0x12   : > { %4186 = sst [smem:[#allocation16_spill]] %s3250_s16  ;;  %p4155_p0 = scmp.eq.s32.totalorder %s3294_s27, 0 }
  0x13   : > { %4187 = sst [smem:[#allocation17_spill]] %s3262_s19  ;;  %p65_p1 = scmp.ne.s32.totalorder %s3262_s19, %s3258_s18 }
  0x14   : > { %4188 = sst [smem:[#allocation18_spill]] %s3270_s21  ;;  %p4159_p2 = scmp.eq.s32.totalorder %s3402_s28, 0 }
  0x15   : > { %4189 = sst [smem:[#allocation19_spill]] %s3274_s22  ;;  %p85_p3 = scmp.ne.s32.totalorder %s3254_s17, %s3250_s16 }
  0x16   : > { %4190 = sst [smem:[#allocation20_spill]] %s3278_s23  ;;  %p91_p4 = scmp.ne.s32.totalorder %s3250_s16, %s3246_s15 }
  0x17   : > { %4191 = sst [smem:[#allocation21_spill]] %s3286_s25  ;;  %p3414_p5 = por %p4159_p2, %p65_p1 }
  0x18   : > { %4192 = sst [smem:[#allocation22_spill]] %s3402_s28  ;;  %p3421_p6 = por %p85_p3, %p4155_p0 }
  0x19   : > { %s4193_s4 = scalar_select %p3414_p5, 1, 0 }
  0x1a   : > { %p3427_p7 = por %p91_p4, %p4159_p2  ;;  %p137_p8 = scmp.ne.s32.totalorder %s3242_s14, %s3238_s13 }
  0x1b   : > { %4194 = sst [smem:[#allocation23_spill]] %s4193_s4  ;;  %p138_p9 = scmp.eq.s32.totalorder %s3402_s28, 47 }
  0x1c   : > { %s4196_s7 = scalar_select %p3427_p7, 1, 0 }
  0x1d   : > { %p143_p10 = scmp.ne.s32.totalorder %s3238_s13, %s3234_s12  ;;  %p144_p11 = scmp.eq.s32.totalorder %s2292_s29, 47 }
  0x1e   : > { %4197 = sst [smem:[#allocation24_spill]] %s4196_s7  ;;  %p3436_p12 = por %p138_p9, %p137_p8 }
  0x1f   : > { %p2293_p13 = scmp.ge.s32.totalorder %s3294_s27, 1  ;;  %p3441_p1 = por %p144_p11, %p143_p10 }
  0x20   : > { %s4198_s8 = scalar_select %p3436_p12, 1, 0 }
  0x21   : > { %s4200_s9 = scalar_select %p3441_p1, 1, 0 }
  0x22   : > { %4199 = sst [smem:[#allocation25_spill]] %s4198_s8  ;;  %p151_p3 = scmp.lt.s32.totalorder %s3294_s27, 49 }
  0x23   : > { %4201 = sst [smem:[#allocation26_spill]] %s4200_s9  ;;  %s3296_s11 = smov [#allocation8]  }
  0x24   : > { %p3446_p4 = pnand %p2293_p13, %p151_p3  ;;  %s164_s15 = sshll.u32 %s3296_s11, 4  ;;  %s165_s15 = int_to_ptr.vmem [resolvable:$true] %s164_s15 }
  0x25   : > { %p4162_p8 = scmp.lt.s32.totalorder %s3294_s27, 48  ;;  %s4206_s2 = sld [smem:[#allocation31_spill]] }
  0x26   : > { %s4202_s10 = scalar_select %p3446_p4, 1, 0 }
  0x27   : > { %p2835_p0 = pneg %p3446_p4  ;;  %p3463_p10 = pnand %p4162_p8, %p3421_p6 }
  0x28   : > { %4203 = sst [smem:[#allocation27_spill]] %s4202_s10 }
  0x29   : > { %p3455_p9 = pnand %p2835_p0, %p4159_p2 }
  0x2a   : > { %s4205_s29 = scalar_select %p3463_p10, 1, 0 }
  0x2b   : > { %s3036_s11 = scalar_lea.hbm %s4206_s2, 16  ;;  %p3038_p0 = pneg %p3455_p9 }
  0x2c   : > { %p3037_p11 = scmp.ne.s32.totalorder %s4206_s2, %s3036_s11  ;;  %p3043_p2 = scmp.lt.u32.totalorder %s3036_s11, %s4206_s2 }
  0x2e   : > { %p3039_p13 = pnand %p3038_p0, %p3037_p11 }
  0x30   : > { %p3040_p3 = pneg %p3039_p13 }
  0x32   : > { %p3045_p6 = pnand %p3043_p2, %p3040_p3 }
  0x34   : > { %3048 = shalt.err (!%p3045_p6)
}
  0x35   : > { %s3049_s8 = scalar_lea.vmem %s165_s15, 16  ;;  %s3056_s30 = scalar_lea.vmem %s165_s15, 32 }
  0x36   : > { %p3050_p8 = scmp.ne.s32.totalorder %s165_s15, %s3049_s8  ;;  %p3057_p7 = scmp.lt.s32.totalorder %s165_s15, %s165_s15 }
  0x37   : > { %p3058_p5 = scmp.lt.s32.totalorder %s3056_s30, %s3049_s8 }
  0x38   : > { %p3052_p1 = pnand %p3050_p8, %p3038_p0 }
  0x39   : > { %p3059_p4 = por %p3058_p5, %p3057_p7 }
  0x3a   : > { %p3053_p12 = pneg %p3052_p1 }
  0x3c   : > { %p3060_p10 = pnand %p3059_p4, %p3053_p12 }
  0x3e   : > { %3063 = shalt.err (!%p3060_p10)
}
  0x3f   : > { %2838 = dma.hbm_to_vmem [thread:$0]  (!%p3455_p9), %s4206_s2, 16, %s165_s15, [#allocation7]  }
  0x40   : > { %s34_s3 = sadd.s32 1, %s3282_s24  ;;  %s37_s8 = sadd.s32 1, %s3286_s25 }
  0x41   : > { %p35_p2 = scmp.ge.s32.totalorder %s34_s3, 3  ;;  %s41_s9 = sadd.s32 1, %s3290_s26 }
  0x42   : > { %s3488_s18 = sadd.s32 %s3282_s24, %s3286_s25  ;;  %s52_s11 = sadd.s32 1, %s3266_s20 }
  0x43   : > { %s4265_s3 = smov (%p35_p2, %s34_s3), 0  ;;  %s4267_s8 = smov (!%p35_p2, %s37_s8), %s3286_s25 }
  0x44   : > { %4207 = sst [smem:[#allocation28_spill]] %s4265_s3  ;;  %p59_p5 = scmp.ne.s32.totalorder %s3266_s20, %s3262_s19 }
  0x45   : > { %s75_s15 = ssub.s32 %s3282_s24, %s4265_s3  ;;  %p39_p7 = scmp.ge.s32.totalorder %s4267_s8, 8 }
  0x46   : > { %p76_p12 = scmp.eq.s32.totalorder %s75_s15, 0  ;;  %p4208_p1 = scmp.eq.s32.totalorder %s3294_s27, 0 }
  0x47   : > { %s175_s30 = sand.u32 1, %s3266_s20   ;;  %s4269_s8 = smov (%p39_p7, %s4267_s8), 0 }
  0x48   : > { %p3500_p4 = por %p4208_p1, %p59_p5  ;;  %4210 = sst [smem:[#allocation29_spill]] %s4269_s8 }
  0x49   : > { %s4271_s9 = smov (!%p39_p7, %s41_s9), %s3290_s26  ;;  %s46_s12 = sadd.s32 %s4269_s8, %s4265_s3 }
  0x4a   : > { %s123_s5 = ssub.s32 %s3286_s25, %s4269_s8  ;;  %p43_p8 = scmp.ge.s32.totalorder %s4271_s9, 2 }
  0x4b   : > { %s48_s2 = ssub.s32 %s3488_s18, %s46_s12  ;;  %s4211_s15 = sadd.s32 1, %s3254_s17 }
  0x4c   : > { %s3516_s23 = scalar_select %p76_p12, %s3254_s17, %s4211_s15  }
  0x4d   : > { %s4273_s9 = smov (%p43_p8, %s4271_s9), 0  ;;  %s2818_s22 = smul.u32 80, %s175_s30 }
  0x4e   : > { %4212 = sst [smem:[#allocation30_spill]] %s3516_s23  ;;  %s47_s21 = ssub.s32 %s3290_s26, %s4273_s9 }
  0x4f   : > { %s2819_s13 = smul.u32 20, %s3488_s18  ;;  %s49_s7 = sor.u32 %s48_s2, %s47_s21 }
  0x50   : > { %s124_s16 = sor.u32 %s123_s5, %s47_s21  ;;  %p50_p9 = scmp.eq.s32.totalorder %s49_s7, 0 }
  0x51   : > { %p125_p10 = scmp.eq.s32.totalorder %s124_s16, 0  ;;  %s2820_s28 = smul.u32 200, %s3290_s26 }
  0x52   : > { %s3525_s3 = scalar_select %p50_p9, %s3266_s20, %s52_s11  }
  0x53   : > { %s4213_s8 = sadd.s32 1, %s3242_s14  ;;  %s186_s15 = sadd.s32 %s2820_s28, %s2819_s13 }
  0x54   : > { %s3530_s12 = scalar_select %p125_p10, %s3242_s14, %s4213_s8  }
  0x55   : > { %s179_s25 = scalar_lea.vmem [#allocation3], %s2818_s22  ;;  %s2296_s4 = sshll.u32 %s186_s15, 6 }
  0x56   : > { %s189_s23 = sshll.u32 %s179_s25, 4  ;;  %s3537_s18 = scalar_lea.hbm %s4151_s0, %s2296_s4  ;;  %s3532_s23 = int_to_ptr.vmem [resolvable:$true] %s189_s23 }
  0x57   : > { %p4214_p11 = scmp.lt.s32.totalorder %s3294_s27, 48  ;;  %s3547_s13 = scalar_lea.sflag [#allocation4], %s175_s30 }
  0x58   : > { %s3064_s16 = scalar_lea.hbm %s3537_s18, 1280  ;;  %s3069_s22 = scalar_lea.hbm %s4151_s0, 25600 }
  0x59   : > { %p3543_p0 = pnand %p4214_p11, %p3500_p4  ;;  %p3065_p13 = scmp.ne.s32.totalorder %s3537_s18, %s3064_s16 }
  0x5a   : > { %p3070_p5 = scmp.lt.u32.totalorder %s3537_s18, %s4151_s0  ;;  %p3071_p7 = scmp.lt.u32.totalorder %s3069_s22, %s3064_s16 }
  0x5b   : > { %p3066_p3 = pneg %p3543_p0  ;;  %p3073_p1 = scmp.lt.u32.totalorder %s3064_s16, %s3537_s18 }
  0x5c   : > { %p3072_p12 = por %p3071_p7, %p3070_p5 }
  0x5d   : > { %p3067_p6 = pnand %p3066_p3, %p3065_p13 }
  0x5e   : > { %p3074_p4 = por %p3073_p1, %p3072_p12 }
  0x5f   : > { %p3068_p2 = pneg %p3067_p6 }
  0x61   : > { %p3075_p8 = pnand %p3074_p4, %p3068_p2 }
  0x63   : > { %3078 = shalt.err (!%p3075_p8)
}
  0x64   : > { %s3079_s4 = scalar_lea.vmem %s3532_s23, 1280  ;;  %s3297_s7 = smov [#allocation3]  }
  0x65   : > { %p3080_p9 = scmp.ne.s32.totalorder %s3532_s23, %s3079_s4  ;;  %s3084_s10 = sshll.u32 %s3297_s7, 4  ;;  %s3085_s10 = int_to_ptr.vmem [resolvable:$false] %s3084_s10 }
  0x66   : > { %s3086_s8 = scalar_lea.vmem %s3085_s10, 2560  ;;  %p3087_p13 = scmp.lt.s32.totalorder %s3532_s23, %s3085_s10 }
  0x67   : > { %p3082_p10 = pnand %p3080_p9, %p3066_p3  ;;  %p3088_p6 = scmp.lt.s32.totalorder %s3086_s8, %s3079_s4 }
  0x69   : > { %p3083_p11 = pneg %p3082_p10  ;;  %p3089_p5 = por %p3088_p6, %p3087_p13 }
  0x6b   : > { %p3090_p7 = pnand %p3089_p5, %p3083_p11 }
  0x6d   : > { %3093 = shalt.err (!%p3090_p7)
}
  0x6e   : > { %s3298_s11 = smov 64   ;;  %s3299_s6 = smov 4  }
  0x6f   : > { %2842 = dma.hbm_to_vmem [thread:$0]  (!%p3543_p0), %s3537_s18, 1280, %s3532_s23, %s3547_s13, %s3298_s11, %s3298_s11, %s3299_s6  }
  0x70   : > { %s199_s30 = sand.u32 1, %s3294_s27   ;;  %s201_s5 = sand.u32 1, %s3254_s17  }
  0x71   : > { %s2821_s15 = smul.u32 288, %s201_s5  ;;  %s3588_s2 = scalar_lea.sflag [#allocation7], %s199_s30 }
  0x72   : > { %s2822_s16 = smul.u32 4608, %s3282_s24  ;;  %p4216_p3 = scmp.ne.s32.totalorder %s4205_s29, 0 }
  0x73   : > { %s203_s25 = scalar_lea.vmem [#allocation6], %s2821_s15  ;;  %s3099_s4 = scalar_lea.hbm %s4152_s1, 13824 }
  0x74   : > { %s3584_s22 = scalar_lea.hbm %s4152_s1, %s2822_s16  ;;  %s210_s28 = sshll.u32 %s203_s25, 4  ;;  %s3586_s28 = int_to_ptr.vmem [resolvable:$true] %s210_s28 }
  0x75   : > { %s3094_s23 = scalar_lea.hbm %s3584_s22, 4608  ;;  %p3096_p2 = pneg %p4216_p3 }
  0x76   : > { %p3095_p0 = scmp.ne.s32.totalorder %s3584_s22, %s3094_s23  ;;  %p3100_p4 = scmp.lt.u32.totalorder %s3584_s22, %s4152_s1 }
  0x77   : > { %p3101_p8 = scmp.lt.u32.totalorder %s3099_s4, %s3094_s23  ;;  %p3103_p10 = scmp.lt.u32.totalorder %s3094_s23, %s3584_s22 }
  0x78   : > { %p3097_p12 = pnand %p3096_p2, %p3095_p0 }
  0x79   : > { %p3102_p9 = por %p3101_p8, %p3100_p4 }
  0x7a   : > { %p3098_p1 = pneg %p3097_p12 }
  0x7b   : > { %p3104_p11 = por %p3103_p10, %p3102_p9 }
  0x7d   : > { %p3105_p13 = pnand %p3104_p11, %p3098_p1 }
  0x7f   : > { %3108 = shalt.err (!%p3105_p13)
}
  0x80   : > { %s3109_s8 = scalar_lea.vmem %s3586_s28, 4608  ;;  %s3300_s30 = smov [#allocation6]  }
  0x81   : > { %p3110_p6 = scmp.ne.s32.totalorder %s3586_s28, %s3109_s8  ;;  %s3114_s5 = sshll.u32 %s3300_s30, 4  ;;  %s3115_s5 = int_to_ptr.vmem [resolvable:$false] %s3114_s5 }
  0x82   : > { %s3116_s15 = scalar_lea.vmem %s3115_s5, 9216  ;;  %p3117_p0 = scmp.lt.s32.totalorder %s3586_s28, %s3115_s5 }
  0x83   : > { %p3112_p5 = pnand %p3110_p6, %p3096_p2  ;;  %p3118_p12 = scmp.lt.s32.totalorder %s3116_s15, %s3109_s8 }
  0x85   : > { %p3113_p7 = pneg %p3112_p5  ;;  %p3119_p4 = por %p3118_p12, %p3117_p0 }
  0x87   : > { %p3120_p8 = pnand %p3119_p4, %p3113_p7 }
  0x89   : > { %3123 = shalt.err (!%p3120_p8)
}
  0x8a   : > { %2845 = dma.hbm_to_vmem [thread:$0]  (!%p4216_p3), %s3584_s22, 4608, %s3586_s28, %s3588_s2, %s3298_s11, %s3298_s11, %s3299_s6  }
  0x8b   : > { %s4217_s16 = sld [smem:[#allocation27_spill]] }
  0x91   : > { %p4218_p2 = scmp.ne.s32.totalorder %s4217_s16, 0 }
  0x92   : > { %s4219_s19 = sld [smem:[#allocation17_spill]] (!%p4218_p2)  ;;  %s4220_s21 = sld [smem:[#allocation23_spill]] (!%p4218_p2) }
  0x93   : > { %222 = sbr.rel (%p4218_p2) target bundleno = 546 (0x222), region = 32 }
  0x98   : > { %s224_s25 = sand.u32 (!%p4218_p2), 1, %s4219_s19   ;;  %p4221_p1 = scmp.ne.s32.totalorder (!%p4218_p2), %s4220_s21, 0 }
  0x99   : > { %s2823_s23 = smul.u32 (!%p4218_p2), 80, %s224_s25  ;;  %s225_s18 = scalar_lea.sflag (!%p4218_p2), [#allocation4], %s224_s25 }
  0x9b   : > { %s3622_s13 = scalar_lea.vmem [#allocation3], %s2823_s23 }
  0x9c   : > { %3217 = dma.done.wait (%p4221_p1), %s225_s18, 1280  }
  0x9d   : > { %3219 = vsyncadd (%p4221_p1), %s225_s18, 4294966016  ;;  %s4222_s29 = sld [smem:[#allocation22_spill]]  ;;  %s4223_s4 = sld [smem:[#allocation16_spill]] }
  0x9e   : > { %s4224_s7 = sld [smem:[#allocation24_spill]] }
  0xa3   : > { %s233_s10 = sand.u32 1, %s4222_s29   ;;  %s235_s11 = sand.u32 1, %s4223_s4  }
  0xa4   : > { %s2824_s6 = smul.u32 288, %s235_s11  ;;  %s234_s22 = scalar_lea.sflag [#allocation7], %s233_s10 }
  0xa5   : > { %p4225_p3 = scmp.ne.s32.totalorder %s4224_s7, 0 }
  0xa6   : > { %s3630_s28 = scalar_lea.vmem [#allocation6], %s2824_s6 }
  0xa7   : > { %3221 = dma.done.wait (%p4225_p3), %s234_s22, 4608  }
  0xa8   : > { %3223 = vsyncadd (%p4225_p3), %s234_s22, 4294962688  ;;  %p4226_p9 = scmp.eq.s32.totalorder %s4222_s29, 0 }
  0xaa   : > { %3225 = dma.done.wait (%p4226_p9), [#allocation7], 16   ;;  %p4227_p10 = pmov %p4226_p9 }
  0xab   : > { %s4228_s2 = sld [smem:[#allocation15_spill]] }
  0xac   : > { %3227 = vsyncadd (%p4227_p10), [#allocation7], 4294967280  ;;  %s4229_s15 = sld [smem:[#allocation18_spill]] }
  0xb1   : > { %s266_s8 = sand.u32 1, %s4228_s2  }
  0xb2   : > { %s2300_s30 = sshll.u32 %s266_s8, 5  ;;  %p2301_p11 = scmp.ne.s32.totalorder %s4229_s15, 0 }
  0xb3   : > { %s3643_s5 = scalar_lea.vmem [#allocation9], %s2300_s30  ;;  %vm275_vm0 = vcmask (!%p2301_p11), 523264   ;;  %v3301_v0 = vmov (!%p2301_p11), 0.0  }
  0xb4   : > { %274 = sbr.rel (%p2301_p11) target bundleno = 187 (0xbb), region = 48  ;;  %276 = vst.msk [vmem:[#allocation2] sm:$0xff] (!%p2301_p11), %vm275_vm0, %v3301_v0  ;;  %277 = vst.msk [vmem:[#allocation2 + $0x8] sm:$0xff] (!%p2301_p11), %vm275_vm0, %v3301_v0 }
  0xb5   : > { %278 = vst.msk [vmem:[#allocation2 + $0x10] sm:$0xff] (!%p2301_p11), %vm275_vm0, %v3301_v0  ;;  %279 = vst.msk [vmem:[#allocation2 + $0x18] sm:$0xff] (!%p2301_p11), %vm275_vm0, %v3301_v0 }
  0xb6   : > { %280 = vst.msk [vmem:[#allocation2 + $0x20] sm:$0xff] (!%p2301_p11), %vm275_vm0, %v3301_v0  ;;  %281 = vst.msk [vmem:[#allocation2 + $0x28] sm:$0xff] (!%p2301_p11), %vm275_vm0, %v3301_v0 }
  0xb7   : > { %282 = vst.msk [vmem:[#allocation2 + $0x30] sm:$0xff] (!%p2301_p11), %vm275_vm0, %v3301_v0  ;;  %283 = vst.msk [vmem:[#allocation2 + $0x38] sm:$0xff] (!%p2301_p11), %vm275_vm0, %v3301_v0 }
  0xbb PF: > { %v2988_v1 = vld [vmem:[%s3630_s28] sm:$0xff]   ;;  %v2990_v3 = vld [vmem:[%s3630_s28 + $0x8] sm:$0xff]   ;;  %v2992_v5 = vld [vmem:[%s3630_s28 + $0x10] sm:$0xff]   ;;  %vm352_vm1 = vcmask 523264   ;;  %vm454_vm2 = vsmask.f32 3328 }
  0xbc   : > { %v2989_v2 = vld [vmem:[%s3630_s28 + $0x80] sm:$0xff]   ;;  %2594 = vmatprep.subr.bf16.mxu1 %v2988_v1  ;;  %v2991_v4 = vld [vmem:[%s3630_s28 + $0x88] sm:$0xff]   ;;  %v2993_v6 = vld [vmem:[%s3630_s28 + $0x90] sm:$0xff]   ;;  %vm455_vm3 = vsmask.f32 7440  ;;  %vm722_vm5 = vcmask 1042432  }
  0xbd   : > { %2658 = vmatprep.subr.bf16.mxu0 %v2989_v2  ;;  %2595 = vmatpush3.bf16.msra.mxu1 %v2988_v1  ;;  %v2994_v7 = vld [vmem:[%s3630_s28 + $0x18] sm:$0xff]   ;;  %v2368_v12 = vld [vmem:[%s3622_s13 + $0x10] sm:$0xf]  ;;  %v3662_v15 = vld [vmem:[%s3622_s13 + $0x14] sm:$0x1]  ;;  %vm723_vm6 = vcmask 1046532  }
  0xbe   : > { %2659 = vmatpush3.bf16.msra.mxu0 %v2989_v2  ;;  %2596 = vmatprep.subr.bf16.mxu1 %v2990_v3  ;;  %v2995_v8 = vld [vmem:[%s3630_s28 + $0x98] sm:$0xff]   ;;  %v1063_v17 = vshrl.u32 %v2368_v12, 16  ;;  %v1066_v18 = vshll.u32 %v2368_v12, 16  ;;  %v1072_v21 = vshll.u32 %v3662_v15, 16  ;;  %vm3669_vm4 = vmor %vm454_vm2, %vm455_vm3  ;;  %v2998_v27 = vld [vmem:[%s3630_s28 + $0x20] sm:$0xff]   ;;  %v1319_v49 = vrot.slane %v3662_v15, 5 }
  0xbf   : > { %2660 = vmatprep.subr.bf16.mxu0 %v2991_v4  ;;  %v2996_v9 = vld [vmem:[%s3622_s13] ss:$8 sps:$4 sm:$0xff]   ;;  %v3658_v11 = vld [vmem:[%s3622_s13 + $0xc] sm:$0x1]  ;;  %v2997_v30 = vld [vmem:[%s3622_s13 + $0x10] ss:$8 sps:$4 sm:$0xff]  }
  0xc0   : > { %v2366_v10 = vld [vmem:[%s3622_s13 + $0x8] sm:$0xf]  ;;  %2602 = vmatprep.mubr.msk.bf16.mxu1 %vm352_vm1, %v2996_v9  ;;  %v1058_v16 = vshll.u32 %v3658_v11, 16  ;;  %v1315_v22 = vrot.slane %v3658_v11, 5  ;;  %v1065_v25 = vrot.slane %v1063_v17, 4  ;;  %v1068_v26 = vrot.slane %v1066_v18, 5  ;;  %vm3761_vm7 = vmor %vm722_vm5, %vm723_vm6 }
  0xc1   : > { %2597 = vmatpush3.bf16.msra.mxu1 %v2990_v3  ;;  %v1049_v13 = vshrl.u32 %v2366_v10, 16  ;;  %v1052_v14 = vshll.u32 %v2366_v10, 16  ;;  %v1074_v29 = vrot.slane %v1072_v21, 5  ;;  %v3676_v31 = vld [vmem:[%s3630_s28 + $0xa0] sm:$0xff]   ;;  %v2370_v33 = vld [vmem:[%s3622_s13 + $0x18] sm:$0xf] }
  0xc2   : > { %2661 = vmatpush3.bf16.msra.mxu0 %v2991_v4  ;;  %2598 = vmatprep.subr.bf16.mxu1 %v2992_v5  ;;  %v1060_v24 = vrot.slane %v1058_v16, 5  ;;  %v1069_v32 = vor.u32 %v1068_v26, %v1065_v25  ;;  %v3680_v34 = vld [vmem:[%s3622_s13 + $0x1c] sm:$0x1]  ;;  %v2372_v36 = vld [vmem:[%s3622_s13 + $0x20] sm:$0xf]  ;;  %v1077_v38 = vshrl.u32 %v2370_v33, 16 }
  0xc3   : > { %2662 = vmatprep.subr.bf16.mxu0 %v2993_v6  ;;  %v1051_v19 = vrot.slane %v1049_v13, 4  ;;  %v1054_v20 = vrot.slane %v1052_v14, 5  ;;  %v3684_v37 = vld [vmem:[%s3622_s13 + $0x24] sm:$0x1]  ;;  %v1080_v40 = vshll.u32 %v2370_v33, 16  ;;  %v1086_v41 = vshll.u32 %v3680_v34, 16 }
  0xc4   : > { %v1070_v39 = vrot.slane %v1069_v32, 4  ;;  %v1091_v42 = vshrl.u32 %v2372_v36, 16  ;;  %v1079_v44 = vrot.slane %v1077_v38, 4  ;;  %v1094_v45 = vshll.u32 %v2372_v36, 16  ;;  %v3000_v47 = vld [vmem:[%s3630_s28 + $0x28] sm:$0xff]   ;;  %v3004_v56 = vld [vmem:[%s3630_s28 + $0x30] sm:$0xff]  }
  0xc5   : > { %2599 = vmatpush3.bf16.msra.mxu1 %v2992_v5  ;;  %v1055_v28 = vor.u32 %v1054_v20, %v1051_v19  ;;  %v1100_v46 = vshll.u32 %v3684_v37, 16  ;;  %v1082_v50 = vrot.slane %v1080_v40, 5  ;;  %v1088_v53 = vrot.slane %v1086_v41, 5  ;;  %v3002_v61 = vld [vmem:[%s3622_s13 + $0x20] ss:$8 sps:$4 sm:$0xff]   ;;  %s4234_s16 = sld [smem:[#allocation18_spill]] }
  0xc6   : > { %2663 = vmatpush3.bf16.msra.mxu0 %v2993_v6  ;;  %2600 = vmatprep.subr.bf16.mxu1 %v2994_v7  ;;  %v1075_v48 = vsel %vm3669_vm4, %v1070_v39, %v1074_v29  ;;  %v1093_v51 = vrot.slane %v1091_v42, 4  ;;  %v1096_v54 = vrot.slane %v1094_v45, 5  ;;  %v1323_v58 = vrot.slane %v3680_v34, 5  ;;  %v2374_v63 = vld [vmem:[%s3622_s13 + $0x28] sm:$0xf]  ;;  %v3005_v39 = vld [vmem:[%s3630_s28 + $0xb0] sm:$0xff]  }
  0xc7   : > { %2664 = vmatprep.subr.bf16.mxu0 %v2995_v8  ;;  %v1056_v35 = vrot.slane %v1055_v28, 4  ;;  %v1102_v55 = vrot.slane %v1100_v46, 5  ;;  %v1083_v57 = vor.u32 %v1082_v50, %v1079_v44  ;;  %v1327_v59 = vrot.slane %v3684_v37, 5  ;;  %v3703_v0 = vld [vmem:[%s3622_s13 + $0x2c] sm:$0x1] }
  0xc8   : > { %v1097_v60 = vor.u32 %v1096_v54, %v1093_v51  ;;  %v3006_v1 = vld [vmem:[%s3630_s28 + $0x38] sm:$0xff]   ;;  %v2376_v3 = vld [vmem:[%s3622_s13 + $0x30] sm:$0xf]  ;;  %v3709_v4 = vld [vmem:[%s3622_s13 + $0x34] sm:$0x1]  ;;  %v1105_v5 = vshrl.u32 %v2374_v63, 16 }
  0xc9   : > { %2601 = vmatpush3.bf16.msra.mxu1 %v2994_v7  ;;  %v1061_v43 = vsel %vm3669_vm4, %v1056_v35, %v1060_v24  ;;  %v1084_v62 = vrot.slane %v1083_v57, 4  ;;  %v1108_v7 = vshll.u32 %v2374_v63, 16  ;;  %v1119_v9 = vshrl.u32 %v2376_v3, 16  ;;  %v3001_v12 = vld [vmem:[%s3630_s28 + $0xa8] sm:$0xff]   ;;  %v3720_v24 = vld [vmem:[%s3630_s28 + $0x40] sm:$0xff]  }
  0xca   : > { %2665 = vmatpush3.bf16.msra.mxu0 %v2995_v8  ;;  %2610 = vmatprep.subr.bf16.mxu1 %v2998_v27  ;;  %v2382_v52 = vcombine.low %v1061_v43, %v1075_v48  ;;  %v1098_v2 = vrot.slane %v1097_v60, 4  ;;  %v1114_v8 = vshll.u32 %v3703_v0, 16  ;;  %v1107_v13 = vrot.slane %v1105_v5, 4  ;;  %v3003_v21 = vld [vmem:[%s3622_s13 + $0x30] ss:$8 sps:$4 sm:$0xff]  }
  0xcb   : > { %2674 = vmatprep.subr.bf16.mxu0 %v3676_v31  ;;  %v1089_v6 = vsel %vm3669_vm4, %v1084_v62, %v1088_v53  ;;  %v1122_v14 = vshll.u32 %v2376_v3, 16  ;;  %v1128_v16 = vshll.u32 %v3709_v4, 16  ;;  %v1110_v18 = vrot.slane %v1108_v7, 5  ;;  %v2378_v28 = vld [vmem:[%s3622_s13 + $0x38] sm:$0xf]  ;;  %p2498_p13 = scmp.ne.s32.totalorder %s4234_s16, 2 }
  0xcc   : > { %2603 = vmatmul.mubr.msk.bf16.vlgmr.msra.gmra.mrb[0].mxu1 %vm352_vm1, %v2997_v30  ;;  %2666 = vmatprep.mubr.msk.bf16.mxu0 %vm352_vm1, %v2382_v52  ;;  %v1103_v10 = vsel %vm3669_vm4, %v1098_v2, %v1102_v55  ;;  %v1116_v19 = vrot.slane %v1114_v8, 5  ;;  %v1121_v20 = vrot.slane %v1119_v9, 4  ;;  %v3726_v29 = vld [vmem:[%s3622_s13 + $0x3c] sm:$0x1]  ;;  %v2380_v30 = vld [vmem:[%s3622_s13 + $0x40] sm:$0xf] }
  0xcd   : > { %2611 = vmatpush3.bf16.msra.mxu1 %v2998_v27  ;;  %2606 = vmatprep.mubr.msk.bf16.mxu1 %vm352_vm1, %v3002_v61  ;;  %v2383_v17 = vcombine.low %v1089_v6, %v1103_v10  ;;  %v1124_v25 = vrot.slane %v1122_v14, 5  ;;  %v1130_v26 = vrot.slane %v1128_v16, 5  ;;  %v1111_v27 = vor.u32 %v1110_v18, %v1107_v13  ;;  %v3731_v33 = vld [vmem:[%s3622_s13 + $0x44] sm:$0x1]  ;;  %v3007_v52 = vld [vmem:[%s3630_s28 + $0xb8] sm:$0xff]  }
  0xce   : > { %2612 = vmatprep.subr.bf16.mxu1 %v3000_v47  ;;  %v1133_v35 = vshrl.u32 %v2378_v28, 16  ;;  %v1136_v36 = vshll.u32 %v2378_v28, 16  ;;  %v1142_v38 = vshll.u32 %v3726_v29, 16  ;;  %v1147_v41 = vshrl.u32 %v2380_v30, 16  ;;  %v438_v57 = vld [vmem:[%s3622_s13] sm:$0xf] }
  0xcf   : > { %2667 = vmatmul.mubr.msk.bf16.vlgmr.msra.gmra.mrb[0].mxu0 %vm352_vm1, %v2383_v17  ;;  %v1125_v32 = vor.u32 %v1124_v25, %v1121_v20  ;;  %v1112_v40 = vrot.slane %v1111_v27, 4  ;;  %v1150_v42 = vshll.u32 %v2380_v30, 16  ;;  %v1156_v43 = vshll.u32 %v3731_v33, 16  ;;  %v3744_v60 = vld [vmem:[%s3622_s13 + $0x4] sm:$0x1] }
  0xd0   : > { %2675 = vmatpush3.bf16.msra.mxu0 %v3676_v31  ;;  %v1135_v45 = vrot.slane %v1133_v35, 4  ;;  %v1138_v31 = vrot.slane %v1136_v36, 5  ;;  %v1144_v46 = vrot.slane %v1142_v38, 5  ;;  %v1149_v48 = vrot.slane %v1147_v41, 4  ;;  %v440_v61 = vld [vmem:[%s3622_s13 + $0x8] sm:$0xf] }
  0xd1   : > { %2613 = vmatpush3.bf16.msra.mxu1 %v3000_v47  ;;  %2676 = vmatprep.subr.bf16.mxu0 %v3001_v12  ;;  %v1126_v44 = vrot.slane %v1125_v32, 4  ;;  %v1117_v47 = vsel %vm3669_vm4, %v1112_v40, %v1116_v19  ;;  %v1152_v50 = vrot.slane %v1150_v42, 5  ;;  %v1158_v51 = vrot.slane %v1156_v43, 5  ;;  %v3748_v63 = vld [vmem:[%s3622_s13 + $0xc] sm:$0x1] }
  0xd2   : > { %2614 = vmatprep.subr.bf16.mxu1 %v3004_v56  ;;  %v1139_v54 = vor.u32 %v1138_v31, %v1135_v45  ;;  %v461_v2 = vshll.u32 %v438_v57, 16  ;;  %v467_v3 = vshll.u32 %v3744_v60, 16  ;;  %v472_v6 = vshrl.u32 %v440_v61, 16  ;;  %v2394_v9 = vld [vmem:[%s3622_s13 + $0x8] sm:$0xe] }
  0xd3   : > { %v1131_v53 = vsel %vm3669_vm4, %v1126_v44, %v1130_v26  ;;  %v475_v7 = vshll.u32 %v440_v61, 16  ;;  %v481_v8 = vshll.u32 %v3748_v63, 16  ;;  %v2395_v16 = vld [vmem:[%s3622_s13 + $0x10] sm:$0xe]  ;;  %v2402_v30 = vrot.slane %v2394_v9, 9 }
  0xd4   : > { %2607 = vmatmul.mubr.msk.bf16.gmra.mrb[4].mxu1 %vm352_vm1, %v3003_v21  ;;  %2677 = vmatpush3.bf16.msra.mxu0 %v3001_v12  ;;  %v2384_v55 = vcombine.low %v1117_v47, %v1131_v53  ;;  %v1140_v62 = vrot.slane %v1139_v54, 4  ;;  %v463_v13 = vrot.slane %v461_v2, 5  ;;  %v469_v14 = vrot.slane %v467_v3, 5  ;;  %v442_v25 = vld [vmem:[%s3622_s13 + $0x10] sm:$0xf] }
  0xd5   : > { %2615 = vmatpush3.bf16.msra.mxu1 %v3004_v56  ;;  %v1153_v56 = vor.u32 %v1152_v50, %v1149_v48  ;;  %2678 = vmatprep.subr.bf16.mxu0 %v3005_v39  ;;  %v474_v18 = vrot.slane %v472_v6, 4  ;;  %v477_v19 = vrot.slane %v475_v7, 5  ;;  %v483_v20 = vrot.slane %v481_v8, 5  ;;  %v3767_v26 = vld [vmem:[%s3630_s28 + $0xc0] sm:$0xff]   ;;  %v444_v36 = vld [vmem:[%s3622_s13 + $0x18] sm:$0xf] }
  0xd6   : > { %2616 = vmatprep.subr.bf16.mxu1 %v3006_v1  ;;  %2670 = vmatprep.mubr.msk.bf16.mxu0 %vm352_vm1, %v2384_v55  ;;  %v1145_v10 = vsel %vm3669_vm4, %v1140_v62, %v1144_v46  ;;  %v2403_v32 = vrot.slane %v2395_v16, 9  ;;  %v3770_v35 = vld [vmem:[%s3622_s13 + $0x14] sm:$0x1]  ;;  %v486_v40 = vshrl.u32 %v442_v25, 16  ;;  %v489_v41 = vshll.u32 %v442_v25, 16 }
  0xd7   : > { %v1154_v5 = vrot.slane %v1153_v56, 4  ;;  %v478_v38 = vor.u32 %v477_v19, %v474_v18  ;;  %v495_v42 = vshll.u32 %v3770_v35, 16  ;;  %v1316_v44 = vsel %vm3761_vm7, %v2402_v30, %v1315_v22  ;;  %v2397_v22 = vld [vmem:[%s3622_s13 + $0x20] sm:$0xe]  ;;  %v3807_v9 = vld [vmem:[%s3622_s13 + $0x24] sm:$0x1] }
  0xd8   : > { %2679 = vmatpush3.bf16.msra.mxu0 %v3005_v39  ;;  %v3774_v39 = vld [vmem:[%s3622_s13 + $0x1c] sm:$0x1]  ;;  %v1320_v45 = vsel %vm3761_vm7, %v2403_v32, %v1319_v49  ;;  %v500_v31 = vshrl.u32 %v444_v36, 16  ;;  %v488_v48 = vrot.slane %v486_v40, 4  ;;  %v491_v50 = vrot.slane %v489_v41, 5 }
  0xd9   : > { %2617 = vmatpush3.bf16.msra.mxu1 %v3006_v1  ;;  %v458_v1 = vshrl.u32 %v438_v57, 16  ;;  %v1159_v17 = vsel %vm3669_vm4, %v1154_v5, %v1158_v51  ;;  %2680 = vmatprep.subr.bf16.mxu0 %v3007_v52  ;;  %v479_v46 = vrot.slane %v478_v38, 4  ;;  %v2410_v47 = vcombine.low %v1316_v44, %v1320_v45  ;;  %v2396_v51 = vld [vmem:[%s3622_s13 + $0x18] sm:$0xe]  ;;  %v446_v8 = vld [vmem:[%s3622_s13 + $0x20] sm:$0xf] }
  0xda   : > { %2626 = vmatprep.subr.bf16.mxu1 %v3720_v24  ;;  %v2385_v27 = vcombine.low %v1145_v10, %v1159_v17  ;;  %v497_v54 = vrot.slane %v495_v42, 5  ;;  %v502_v11 = vrot.slane %v500_v31, 4  ;;  %v503_v55 = vshll.u32 %v444_v36, 16  ;;  %v3011_v5 = vld [vmem:[%s3630_s28 + $0xc8] sm:$0xff]   ;;  %v2399_v19 = vld [vmem:[%s3622_s13 + $0x30] sm:$0xe] }
  0xdb   : > { %v460_v12 = vrot.slane %v458_v1, 4  ;;  %v484_v15 = vsel %vm3669_vm4, %v479_v46, %v483_v20  ;;  %v492_v49 = vor.u32 %v491_v50, %v488_v48  ;;  %v2404_v56 = vrot.slane %v2396_v51, 9  ;;  %v448_v10 = vld [vmem:[%s3622_s13 + $0x28] sm:$0xf]  ;;  %v450_v32 = vld [vmem:[%s3622_s13 + $0x30] sm:$0xf] }
  0xdc   : > { %2671 = vmatmul.mubr.msk.bf16.gmra.mrb[4].mxu0 %vm352_vm1, %v2385_v27  ;;  %v505_v61 = vrot.slane %v503_v55, 5  ;;  %v2405_v62 = vrot.slane %v2397_v22, 9  ;;  %v2398_v16 = vld [vmem:[%s3622_s13 + $0x28] sm:$0xe]  ;;  %v523_v37 = vshll.u32 %v3807_v9, 16  ;;  %v531_v18 = vshll.u32 %v448_v10, 16 }
  0xdd   : > { %v464_v28 = vor.u32 %v463_v13, %v460_v12  ;;  %2681 = vmatpush3.bf16.msra.mxu0 %v3007_v52  ;;  %2682 = vmatprep.mubr.msk.bf16.mxu0 %vm352_vm1, %v2410_v47  ;;  %v509_v52 = vshll.u32 %v3774_v39, 16  ;;  %v493_v1 = vrot.slane %v492_v49, 4  ;;  %v1324_v3 = vsel %vm3761_vm7, %v2404_v56, %v1323_v58  ;;  %v3813_v58 = vld [vmem:[%s3622_s13 + $0x2c] sm:$0x1]  ;;  %v3826_v42 = vld [vmem:[%s3622_s13 + $0x34] sm:$0x1] }
  0xde   : > { %2690 = vmatprep.subr.bf16.mxu0 %v3767_v26  ;;  %v506_v6 = vor.u32 %v505_v61, %v502_v11  ;;  %v1328_v7 = vsel %vm3761_vm7, %v2405_v62, %v1327_v59  ;;  %v514_v13 = vshrl.u32 %v446_v8, 16  ;;  %v528_v59 = vshrl.u32 %v448_v10, 16  ;;  %v3010_v20 = vld [vmem:[%s3630_s28 + $0x48] sm:$0xff]  }
  0xdf   : > { %v465_v43 = vrot.slane %v464_v28, 4  ;;  %v511_v2 = vrot.slane %v509_v52, 5  ;;  %v498_v34 = vsel %vm3669_vm4, %v493_v1, %v497_v54  ;;  %v2411_v12 = vcombine.low %v1324_v3, %v1328_v7  ;;  %v452_v47 = vld [vmem:[%s3622_s13 + $0x38] sm:$0xf]  ;;  %v3832_v48 = vld [vmem:[%s3622_s13 + $0x3c] sm:$0x1] }
  0xe0   : > { %v507_v17 = vrot.slane %v506_v6, 4  ;;  %v516_v25 = vrot.slane %v514_v13, 4  ;;  %v537_v28 = vshll.u32 %v3813_v58, 16  ;;  %v2406_v30 = vrot.slane %v2398_v16, 9  ;;  %v3012_v52 = vld [vmem:[%s3630_s28 + $0x50] sm:$0xff]   ;;  %v3015_v7 = vld [vmem:[%s3630_s28 + $0xd8] sm:$0xff]  }
  0xe1   : > { %v470_v53 = vsel %vm3669_vm4, %v465_v43, %v469_v14  ;;  %v517_v14 = vshll.u32 %v446_v8, 16  ;;  %v525_v38 = vrot.slane %v523_v37, 5  ;;  %v530_v40 = vrot.slane %v528_v59, 4  ;;  %v3013_v43 = vld [vmem:[%s3630_s28 + $0xd0] sm:$0xff]   ;;  %v2400_v56 = vld [vmem:[%s3622_s13 + $0x38] sm:$0xe] }
  0xe2   : > { %v2314_v57 = vcombine.low %v470_v53, %v484_v15  ;;  %v512_v36 = vsel %vm3669_vm4, %v507_v17, %v511_v2  ;;  %v533_v41 = vrot.slane %v531_v18, 5  ;;  %v539_v31 = vrot.slane %v537_v28, 5  ;;  %v2401_v2 = vld [vmem:[%s3622_s13 + $0x40] sm:$0xe]  ;;  %v3014_v13 = vld [vmem:[%s3630_s28 + $0x58] sm:$0xff]  }
  0xe3   : > { %v519_v27 = vrot.slane %v517_v14, 5  ;;  %v2315_v44 = vcombine.low %v498_v34, %v512_v36  ;;  %v1331_v46 = vrot.slane %v3703_v0, 5  ;;  %v2407_v51 = vrot.slane %v2399_v19, 9  ;;  %v3019_v59 = vld [vmem:[%s3630_s28 + $0xe0] sm:$0xff]  }
  0xe4   : > { %2618 = vmatprep.mubr.msk.bf16.mxu1 %vm352_vm1, %v2314_v57  ;;  %2683 = vmatmul.mubr.msk.bf16.vlgmr.msra.gmra.mrb[0].mxu0 %vm352_vm1, %v2411_v12  ;;  %v534_v50 = vor.u32 %v533_v41, %v530_v40  ;;  %v542_v53 = vshrl.u32 %v450_v32, 16  ;;  %v545_v55 = vshll.u32 %v450_v32, 16  ;;  %v551_v0 = vshll.u32 %v3826_v42, 16 }
  0xe5   : > { %2691 = vmatpush3.bf16.msra.mxu0 %v3767_v26  ;;  %v520_v45 = vor.u32 %v519_v27, %v516_v25  ;;  %v1335_v26 = vrot.slane %v3709_v4, 5  ;;  %2619 = vmatmul.mubr.msk.bf16.vlgmr.msra.gmra.mrb[0].mxu1 %vm352_vm1, %v2315_v44  ;;  %v1332_v11 = vsel %vm3761_vm7, %v2406_v30, %v1331_v46  ;;  %v556_v49 = vshrl.u32 %v452_v47, 16  ;;  %v698_v25 = vld [vmem:[%s3622_s13] sm:$0xe]  ;;  %v699_v27 = vld [vmem:[%s3622_s13 + $0x8] sm:$0xe] }
  0xe6   : > { %2692 = vmatprep.subr.bf16.mxu0 %v3011_v5  ;;  %2627 = vmatpush3.bf16.msra.mxu1 %v3720_v24  ;;  %v535_v22 = vrot.slane %v534_v50, 4  ;;  %v544_v4 = vrot.slane %v542_v53, 4  ;;  %v547_v62 = vrot.slane %v545_v55, 5  ;;  %v553_v1 = vrot.slane %v551_v0, 5  ;;  %v701_v44 = vld [vmem:[%s3622_s13 + $0x18] sm:$0xe] }
  0xe7   : > { %v521_v54 = vrot.slane %v520_v45, 4  ;;  %v1336_v15 = vsel %vm3761_vm7, %v2407_v51, %v1335_v26  ;;  %2628 = vmatprep.subr.bf16.mxu1 %v3010_v20  ;;  %v558_v3 = vrot.slane %v556_v49, 4  ;;  %v565_v6 = vshll.u32 %v3832_v48, 16  ;;  %v3017_v45 = vld [vmem:[%s3630_s28 + $0x60] sm:$0xff]  }
  0xe8   : > { %v2412_v61 = vcombine.low %v1332_v11, %v1336_v15  ;;  %v540_v24 = vsel %vm3669_vm4, %v535_v22, %v539_v31  ;;  %v548_v10 = vor.u32 %v547_v62, %v544_v4  ;;  %v2408_v34 = vrot.slane %v2400_v56, 9  ;;  %v703_v11 = vld [vmem:[%s3622_s13 + $0x28] sm:$0xe]  ;;  %v704_v56 = vld [vmem:[%s3622_s13 + $0x30] sm:$0xe] }
  0xe9   : > { %2693 = vmatpush3.bf16.msra.mxu0 %v3011_v5  ;;  %v526_v57 = vsel %vm3669_vm4, %v521_v54, %v525_v38  ;;  %v559_v5 = vshll.u32 %v452_v47, 16  ;;  %v1339_v12 = vrot.slane %v3726_v29, 5  ;;  %v567_v16 = vrot.slane %v565_v6, 5  ;;  %v3016_v38 = vld [vmem:[%s3622_s13 + $0x10] ss:$8 sps:$4 sm:$0xff]  }
  0xea   : > { %2694 = vmatprep.subr.bf16.mxu0 %v3013_v43  ;;  %v2316_v8 = vcombine.low %v526_v57, %v540_v24  ;;  %2686 = vmatprep.mubr.msk.bf16.mxu0 %vm352_vm1, %v2412_v61  ;;  %v2409_v17 = vrot.slane %v2401_v2, 9  ;;  %v1343_v37 = vrot.slane %v3731_v33, 5  ;;  %v549_v18 = vrot.slane %v548_v10, 4  ;;  %v3018_v54 = vld [vmem:[%s3622_s13 + $0x20] ss:$8 sps:$4 sm:$0xff]  }
  0xeb   : > { %2629 = vmatpush3.bf16.msra.mxu1 %v3010_v20  ;;  %v561_v14 = vrot.slane %v559_v5, 5  ;;  %v1340_v19 = vsel %vm3761_vm7, %v2408_v34, %v1339_v12  ;;  %v727_v29 = vrot.slane %v3744_v60, 5  ;;  %v2326_v28 = vrot.slane %v698_v25, 9  ;;  %v705_v57 = vld [vmem:[%s3622_s13 + $0x38] sm:$0xe]  ;;  %v3025_v6 = vld [vmem:[%s3630_s28 + $0xf0] sm:$0xff]  }
  0xec   : > { %2622 = vmatprep.mubr.msk.bf16.mxu1 %vm352_vm1, %v2316_v8  ;;  %2630 = vmatprep.subr.bf16.mxu1 %v3012_v52  ;;  %v1344_v33 = vsel %vm3761_vm7, %v2409_v17, %v1343_v37  ;;  %v731_v30 = vrot.slane %v3748_v63, 5  ;;  %v2327_v36 = vrot.slane %v699_v27, 9  ;;  %v554_v40 = vsel %vm3669_vm4, %v549_v18, %v553_v1  ;;  %v3027_v10 = vld [vmem:[%s3630_s28 + $0xf8] sm:$0xff]   ;;  %v2442_v34 = vld [vmem:[%s3622_s13 + $0x10] sm:$0xf] }
  0xed   : > { %2695 = vmatpush3.bf16.msra.mxu0 %v3013_v43  ;;  %v562_v20 = vor.u32 %v561_v14, %v558_v3  ;;  %v2413_v32 = vcombine.low %v1340_v19, %v1344_v33  ;;  %v728_v60 = vsel %vm3761_vm7, %v2326_v28, %v727_v29  ;;  %v700_v43 = vld [vmem:[%s3622_s13 + $0x10] sm:$0xe]  ;;  %v735_v31 = vrot.slane %v3770_v35, 5  ;;  %v3021_v35 = vld [vmem:[%s3630_s28 + $0xe8] sm:$0xff]   ;;  %v3916_v12 = vld [vmem:[%s3622_s13 + $0x14] sm:$0x1] }
  0xee   : > { %2696 = vmatprep.subr.bf16.mxu0 %v3015_v7  ;;  %v732_v63 = vsel %vm3761_vm7, %v2327_v36, %v731_v30  ;;  %v739_v46 = vrot.slane %v3774_v39, 5  ;;  %v2328_v51 = vrot.slane %v700_v43, 9  ;;  %v2329_v26 = vrot.slane %v701_v44, 9  ;;  %v702_v39 = vld [vmem:[%s3622_s13 + $0x20] sm:$0xe]  ;;  %v3020_v3 = vld [vmem:[%s3630_s28 + $0x68] sm:$0xff]  }
  0xef   : > { %v563_v41 = vrot.slane %v562_v20, 4  ;;  %2631 = vmatpush3.bf16.msra.mxu1 %v3012_v52  ;;  %2687 = vmatmul.mubr.msk.bf16.gmra.mrb[4].mxu0 %vm352_vm1, %v2413_v32  ;;  %v2334_v50 = vcombine.low %v728_v60, %v732_v63  ;;  %v743_v55 = vrot.slane %v3807_v9, 5  ;;  %v747_v0 = vrot.slane %v3813_v58, 5  ;;  %v3022_v52 = vld [vmem:[%s3622_s13 + $0x30] ss:$8 sps:$4 sm:$0xff]  }
  0xf0   : > { %2632 = vmatprep.subr.bf16.mxu1 %v3014_v13  ;;  %2698 = vmatprep.mubr.msk.bf16.mxu0 %vm352_vm1, %v3016_v38  ;;  %v736_v22 = vsel %vm3761_vm7, %v2328_v51, %v735_v31  ;;  %v740_v15 = vsel %vm3761_vm7, %v2329_v26, %v739_v46  ;;  %v2330_v4 = vrot.slane %v702_v39, 9  ;;  %v2331_v49 = vrot.slane %v703_v11, 9  ;;  %v3921_v14 = vld [vmem:[%s3622_s13 + $0x1c] sm:$0x1]  ;;  %v3028_v20 = vld [vmem:[%s3622_s13 + $0x8] ss:$8 sps:$4 sm:$0xff]  }
  0xf1   : > { %2697 = vmatpush3.bf16.msra.mxu0 %v3015_v7  ;;  %v568_v47 = vsel %vm3669_vm4, %v563_v41, %v567_v16  ;;  %v2332_v61 = vrot.slane %v704_v56, 9  ;;  %v751_v62 = vrot.slane %v3826_v42, 5  ;;  %v2335_v1 = vcombine.low %v736_v22, %v740_v15  ;;  %v3024_v7 = vld [vmem:[%s3622_s13 + $0x40] ss:$8 sps:$4 sm:$0xff]   ;;  %v3934_v43 = vld [vmem:[%s3622_s13 + $0x2c] sm:$0x1] }
  0xf2   : > { %2706 = vmatprep.subr.bf16.mxu0 %v3019_v59  ;;  %v2317_v53 = vcombine.low %v554_v40, %v568_v47  ;;  %v744_v9 = vsel %vm3761_vm7, %v2330_v4, %v743_v55  ;;  %v748_v58 = vsel %vm3761_vm7, %v2331_v49, %v747_v0  ;;  %v2333_v2 = vrot.slane %v705_v57, 9  ;;  %v3026_v29 = vld [vmem:[%s3630_s28 + $0x78] sm:$0xff]   ;;  %v2446_v38 = vld [vmem:[%s3622_s13 + $0x20] sm:$0xf]  ;;  %v3930_v40 = vld [vmem:[%s3622_s13 + $0x24] sm:$0x1] }
  0xf3   : > { %2633 = vmatpush3.bf16.msra.mxu1 %v3014_v13  ;;  %v755_v24 = vrot.slane %v3832_v48, 5  ;;  %v2336_v5 = vcombine.low %v744_v9, %v748_v58  ;;  %v752_v42 = vsel %vm3761_vm7, %v2332_v61, %v751_v62  ;;  %v3023_v48 = vld [vmem:[%s3630_s28 + $0x70] sm:$0xff]   ;;  %v2444_v13 = vld [vmem:[%s3622_s13 + $0x18] sm:$0xf]  ;;  %v1637_v16 = vshrl.u32 %v2442_v34, 16 }
  0xf4   : > { %2623 = vmatmul.mubr.msk.bf16.gmra.mrb[4].mxu1 %vm352_vm1, %v2317_v53  ;;  %2642 = vmatprep.subr.bf16.mxu1 %v3017_v45  ;;  %v1640_v17 = vshll.u32 %v2442_v34, 16  ;;  %v1646_v37 = vshll.u32 %v3916_v12, 16  ;;  %v1654_v19 = vshll.u32 %v2444_v13, 16  ;;  %v1660_v25 = vshll.u32 %v3921_v14, 16  ;;  %v2448_v60 = vld [vmem:[%s3622_s13 + $0x28] sm:$0xf] }
  0xf5   : > { %2634 = vmatprep.mubr.msk.bf16.mxu1 %vm352_vm1, %v2334_v50  ;;  %v756_v8 = vsel %vm3761_vm7, %v2333_v2, %v755_v24  ;;  %v1639_v33 = vrot.slane %v1637_v16, 4  ;;  %v1665_v44 = vshrl.u32 %v2446_v38, 16  ;;  %v1674_v31 = vshll.u32 %v3930_v40, 16  ;;  %v3938_v50 = vld [vmem:[%s3630_s28 + $0x100] sm:$0xff]   ;;  %v2452_v62 = vld [vmem:[%s3622_s13 + $0x38] sm:$0xf] }
  0xf6   : > { %v2337_v18 = vcombine.low %v752_v42, %v756_v8  ;;  %v1642_v27 = vrot.slane %v1640_v17, 5  ;;  %v1648_v28 = vrot.slane %v1646_v37, 5  ;;  %v1656_v32 = vrot.slane %v1654_v19, 5  ;;  %v3029_v0 = vld [vmem:[%s3622_s13 + $0x18] ss:$8 sps:$4 sm:$0xff]  }
  0xf7   : > { %2699 = vmatmul.mubr.msk.bf16.vlgmr.msra.gmra.mrb[0].mxu0 %vm352_vm1, %v3018_v54  ;;  %v1662_v36 = vrot.slane %v1660_v25, 5  ;;  %v1679_v46 = vshrl.u32 %v2448_v60, 16  ;;  %v1682_v47 = vshll.u32 %v2448_v60, 16  ;;  %v1667_v26 = vrot.slane %v1665_v44, 4  ;;  %v3032_v56 = vld [vmem:[%s3622_s13 + $0x28] ss:$8 sps:$4 sm:$0xff]  }
  0xf8   : > { %2707 = vmatpush3.bf16.msra.mxu0 %v3019_v59  ;;  %2702 = vmatprep.mubr.msk.bf16.mxu0 %vm352_vm1, %v3022_v52  ;;  %v1651_v59 = vshrl.u32 %v2444_v13, 16  ;;  %v1643_v41 = vor.u32 %v1642_v27, %v1639_v33  ;;  %v1688_v54 = vshll.u32 %v3934_v43, 16  ;;  %v1676_v15 = vrot.slane %v1674_v31, 5  ;;  %v2450_v57 = vld [vmem:[%s3622_s13 + $0x30] sm:$0xf]  ;;  %v3031_v42 = vld [vmem:[%s3630_s28 + $0x108] sm:$0xff]  }
  0xf9   : > { %2708 = vmatprep.subr.bf16.mxu0 %v3021_v35  ;;  %v1681_v39 = vrot.slane %v1679_v46, 4  ;;  %v1684_v11 = vrot.slane %v1682_v47, 5  ;;  %v3952_v61 = vld [vmem:[%s3622_s13 + $0x34] sm:$0x1]  ;;  %v3956_v24 = vld [vmem:[%s3622_s13 + $0x3c] sm:$0x1] }
  0xfa   : > { %v1653_v30 = vrot.slane %v1651_v59, 4  ;;  %v1644_v51 = vrot.slane %v1643_v41, 4  ;;  %v1690_v4 = vrot.slane %v1688_v54, 5  ;;  %v2454_v19 = vld [vmem:[%s3622_s13 + $0x40] sm:$0xf]  ;;  %v3035_v54 = vld [vmem:[%s3630_s28 + $0x118] sm:$0xff]  }
  0xfb   : > { %v1685_v52 = vor.u32 %v1684_v11, %v1681_v39  ;;  %v3976_v33 = vld [vmem:[%s3622_s13 + $0x4c] sm:$0x1]  ;;  %vm2137_vm8 = vcmask (!%p2498_p13), 519168  }
  0xfc   : > { %2635 = vmatmul.mubr.msk.bf16.vlgmr.msra.gmra.mrb[0].mxu1 %vm352_vm1, %v2335_v1  ;;  %2709 = vmatpush3.bf16.msra.mxu0 %v3021_v35  ;;  %v1657_v63 = vor.u32 %v1656_v32, %v1653_v30  ;;  %v1649_v55 = vsel %vm3669_vm4, %v1644_v51, %v1648_v28  ;;  %v1693_v1 = vshrl.u32 %v2450_v57, 16  ;;  %v3033_v28 = vld [vmem:[%s3622_s13 + $0x38] ss:$8 sps:$4 sm:$0xff]   ;;  %v1721_v30 = vshrl.u32 %v2454_v19, 16 }
  0xfd   : > { %2643 = vmatpush3.bf16.msra.mxu1 %v3017_v45  ;;  %2638 = vmatprep.mubr.msk.bf16.mxu1 %vm352_vm1, %v2336_v5  ;;  %v1668_v45 = vshll.u32 %v2446_v38, 16  ;;  %v1686_v2 = vrot.slane %v1685_v52, 4  ;;  %v1702_v5 = vshll.u32 %v3952_v61, 16  ;;  %v1724_v32 = vshll.u32 %v2454_v19, 16  ;;  %v3034_v38 = vld [vmem:[%s3630_s28 + $0x110] sm:$0xff]  }
  0xfe   : > { %2644 = vmatprep.subr.bf16.mxu1 %v3020_v3  ;;  %2710 = vmatprep.subr.bf16.mxu0 %v3025_v6  ;;  %v1658_v35 = vrot.slane %v1657_v63, 4  ;;  %v1695_v8 = vrot.slane %v1693_v1, 4  ;;  %v1723_v31 = vrot.slane %v1721_v30, 4  ;;  %v1903_v52 = vrot.slane %v3916_v12, 5 }
  0xff   : > { %2703 = vmatmul.mubr.msk.bf16.gmra.mrb[4].mxu0 %vm352_vm1, %v3024_v7  ;;  %v1670_v53 = vrot.slane %v1668_v45, 5  ;;  %v1691_v34 = vsel %vm3669_vm4, %v1686_v2, %v1690_v4  ;;  %v1704_v37 = vrot.slane %v1702_v5, 5  ;;  %v1744_v45 = vshll.u32 %v3976_v33, 16  ;;  %v2472_v2 = vld [vmem:[%s3622_s13 + $0x20] sm:$0xe] }
 0x100   : > { %2711 = vmatpush3.bf16.msra.mxu0 %v3025_v6  ;;  %v1663_v49 = vsel %vm3669_vm4, %v1658_v35, %v1662_v36  ;;  %v1707_v6 = vshrl.u32 %v2452_v62, 16  ;;  %v1726_v46 = vrot.slane %v1724_v32, 5  ;;  %v1919_v5 = vrot.slane %v3952_v61, 5 }
 0x101   : > { %2645 = vmatpush3.bf16.msra.mxu1 %v3020_v3  ;;  %2712 = vmatprep.subr.bf16.mxu0 %v3027_v10  ;;  %v1671_v22 = vor.u32 %v1670_v53, %v1667_v26  ;;  %v2458_v9 = vcombine.low %v1649_v55, %v1663_v49  ;;  %v1696_v3 = vshll.u32 %v2450_v57, 16  ;;  %v1931_v55 = vrot.slane %v3976_v33, 5  ;;  %v2475_v57 = vld [vmem:[%s3622_s13 + $0x38] sm:$0xe] }
 0x102   : > { %2646 = vmatprep.subr.bf16.mxu1 %v3023_v48  ;;  %v1709_v16 = vrot.slane %v1707_v6, 4  ;;  %v1727_v39 = vor.u32 %v1726_v46, %v1723_v31  ;;  %v2483_v6 = vrot.slane %v2475_v57, 9  ;;  %v289_v31 = vld [vmem:[#allocation2 + $0x28] sm:$0xff] }
 0x103   : > { %v1672_v58 = vrot.slane %v1671_v22, 4  ;;  %2714 = vmatprep.mubr.msk.bf16.mxu0 %vm352_vm1, %v2458_v9  ;;  %v1698_v13 = vrot.slane %v1696_v3, 5  ;;  %v2471_v22 = vld [vmem:[%s3622_s13 + $0x18] sm:$0xe] }
 0x104   : > { %2639 = vmatmul.mubr.msk.bf16.gmra.mrb[4].mxu1 %vm352_vm1, %v2337_v18  ;;  %2713 = vmatpush3.bf16.msra.mxu0 %v3027_v10  ;;  %v1716_v10 = vshll.u32 %v3956_v24, 16  ;;  %v1728_v9 = vrot.slane %v1727_v39, 4 }
 0x105   : > { %2647 = vmatpush3.bf16.msra.mxu1 %v3023_v48  ;;  %2650 = vmatprep.mubr.msk.bf16.mxu1 %vm352_vm1, %v3028_v20  ;;  %v1677_v7 = vsel %vm3669_vm4, %v1672_v58, %v1676_v15  ;;  %v1710_v48 = vshll.u32 %v2452_v62, 16  ;;  %v1699_v25 = vor.u32 %v1698_v13, %v1695_v8  ;;  %v2456_v20 = vld [vmem:[%s3622_s13 + $0x48] sm:$0xf]  ;;  %v2479_v58 = vrot.slane %v2471_v22, 9 }
 0x106   : > { %2648 = vmatprep.subr.bf16.mxu1 %v3026_v29  ;;  %2722 = vmatprep.subr.bf16.mxu0 %v3938_v50  ;;  %v2459_v17 = vcombine.low %v1677_v7, %v1691_v34  ;;  %v1718_v18 = vrot.slane %v1716_v10, 5  ;;  %v1735_v60 = vshrl.u32 %v2456_v20, 16  ;;  %v1738_v44 = vshll.u32 %v2456_v20, 16  ;;  %v2473_v7 = vld [vmem:[%s3622_s13 + $0x28] sm:$0xe] }
 0x107   : > { %v1712_v59 = vrot.slane %v1710_v48, 5  ;;  %v1700_v41 = vrot.slane %v1699_v25, 4  ;;  %v1907_v62 = vrot.slane %v3921_v14, 5  ;;  %v1923_v8 = vrot.slane %v3956_v24, 5  ;;  %v2476_v10 = vld [vmem:[%s3622_s13 + $0x40] sm:$0xe] }
 0x108   : > { %2715 = vmatmul.mubr.msk.bf16.vlgmr.msra.gmra.mrb[0].mxu0 %vm352_vm1, %v2459_v17  ;;  %v1737_v26 = vrot.slane %v1735_v60, 4  ;;  %v1740_v53 = vrot.slane %v1738_v44, 5  ;;  %v2480_v48 = vrot.slane %v2472_v2, 9  ;;  %v2477_v34 = vld [vmem:[%s3622_s13 + $0x48] sm:$0xe]  ;;  %v1911_v17 = vrot.slane %v3930_v40, 5 }
 0x109   : > { %2649 = vmatpush3.bf16.msra.mxu1 %v3026_v29  ;;  %v3972_v29 = vld [vmem:[%s3622_s13 + $0x44] sm:$0x1]  ;;  %v1713_v27 = vor.u32 %v1712_v59, %v1709_v16  ;;  %2723 = vmatpush3.bf16.msra.mxu0 %v3938_v50  ;;  %v1705_v51 = vsel %vm3669_vm4, %v1700_v41, %v1704_v37  ;;  %v1908_v14 = vsel %vm3761_vm7, %v2479_v58, %v1907_v62  ;;  %v1915_v24 = vrot.slane %v3934_v43, 5  ;;  %v285_v62 = vld [vmem:[#allocation2 + $0x8] sm:$0xff] }
 0x10a   : > { %2738 = vmatprep.subr.bf16.mxu1 %v3938_v50  ;;  %v1730_v36 = vshll.u32 %v3972_v29, 16  ;;  %2724 = vmatprep.subr.bf16.mxu0 %v3031_v42  ;;  %v1927_v11 = vrot.slane %v3972_v29, 5  ;;  %v1741_v4 = vor.u32 %v1740_v53, %v1737_v26  ;;  %v1924_v59 = vsel %vm3761_vm7, %v2483_v6, %v1923_v8  ;;  %v288_v60 = vld [vmem:[#allocation2 + $0x20] sm:$0xff] }
 0x10b   : > { %v1714_v63 = vrot.slane %v1713_v27, 4  ;;  %v2484_v25 = vrot.slane %v2476_v10, 9  ;;  %v2485_v23 = vrot.slane %v2477_v34, 9  ;;  %v1912_v29 = vsel %vm3761_vm7, %v2480_v48, %v1911_v17 }
 0x10c   : > { %2651 = vmatmul.mubr.msk.bf16.vlgmr.msra.gmra.mrb[0].mxu1 %vm352_vm1, %v3029_v0  ;;  %v1732_v47 = vrot.slane %v1730_v36, 5  ;;  %v2470_v0 = vld [vmem:[%s3622_s13 + $0x10] sm:$0xe]  ;;  %v1742_v3 = vrot.slane %v1741_v4, 4 }
 0x10d   : > { %2742 = vmatpush3.bf16.msra.mxu1 %v3938_v50  ;;  %2654 = vmatprep.mubr.msk.bf16.mxu1 %vm352_vm1, %v3032_v56  ;;  %v1746_v50 = vrot.slane %v1744_v45, 5  ;;  %v1719_v35 = vsel %vm3669_vm4, %v1714_v63, %v1718_v18  ;;  %v2478_v49 = vrot.slane %v2470_v0, 9  ;;  %v2474_v56 = vld [vmem:[%s3622_s13 + $0x30] sm:$0xe]  ;;  %v2481_v18 = vrot.slane %v2473_v7, 9  ;;  %v291_v45 = vld [vmem:[#allocation2 + $0x38] sm:$0xff] }
 0x10e   : > { %2739 = vmatprep.subr.bf16.mxu1 %v3031_v42  ;;  %2725 = vmatpush3.bf16.msra.mxu0 %v3031_v42  ;;  %v2460_v15 = vcombine.low %v1705_v51, %v1719_v35  ;;  %v2482_v1 = vrot.slane %v2474_v56, 9  ;;  %v1928_v20 = vsel %vm3761_vm7, %v2484_v25, %v1927_v11  ;;  %v1932_v43 = vsel %vm3761_vm7, %v2485_v23, %v1931_v55  ;;  %v286_v0 = vld [vmem:[#allocation2 + $0x10] sm:$0xff]  ;;  %v284_v4 = vld [vmem:[#allocation2] sm:$0xff]  ;;  %v287_v56 = vld [vmem:[#allocation2 + $0x18] sm:$0xff] }
 0x10f   : > { %2726 = vmatprep.subr.bf16.mxu0 %v3034_v38  ;;  %v1904_v12 = vsel %vm3761_vm7, %v2478_v49, %v1903_v52  ;;  %v1747_v13 = vsel %vm3669_vm4, %v1742_v3, %v1746_v50  ;;  %v1916_v40 = vsel %vm3761_vm7, %v2481_v18, %v1915_v24  ;;  %v2489_v33 = vcombine.low %v1928_v20, %v1932_v43 }
 0x110   : > { %2718 = vmatprep.mubr.msk.bf16.mxu0 %vm352_vm1, %v2460_v15  ;;  %v2486_v16 = vcombine.low %v1904_v12, %v1908_v14  ;;  %v1920_v61 = vsel %vm3761_vm7, %v2482_v1, %v1919_v5  ;;  %v2487_v27 = vcombine.low %v1912_v29, %v1916_v40 }
 0x111   : > { %2743 = vmatpush3.bf16.msra.mxu1 %v3031_v42  ;;  %v1733_v42 = vsel %vm3669_vm4, %v1728_v9, %v1732_v47  ;;  %v2488_v19 = vcombine.low %v1920_v61, %v1924_v59  ;;  %v2499_v61 = vld [vmem:[#allocation8] ss:$0 sm:$0xff] (!%p2498_p13) }
 0x112   : > { %2740 = vmatprep.subr.bf16.mxu1 %v3034_v38  ;;  %2727 = vmatpush3.bf16.msra.mxu0 %v3034_v38  ;;  %v2461_v37 = vcombine.low %v1733_v42, %v1747_v13 }
 0x113   : > { %2728 = vmatprep.subr.bf16.mxu0 %v3035_v54 }
 0x114   : > { %2655 = vmatmul.mubr.msk.bf16.gmra.mrb[4].mxu1 %vm352_vm1, %v3033_v28  ;;  %2719 = vmatmul.mubr.msk.bf16.gmra.mrb[4].mxu0 %vm352_vm1, %v2461_v37 }
 0x115   : > { %2744 = vmatpush3.bf16.msra.mxu1 %v3034_v38  ;;  %2730 = vmatprep.mubr.msk.bf16.mxu0 %vm352_vm1, %v2486_v16  ;;  %v290_v38 = vld [vmem:[#allocation2 + $0x30] sm:$0xff] }
 0x116   : > { %2741 = vmatprep.subr.bf16.mxu1 %v3035_v54  ;;  %2729 = vmatpush3.bf16.msra.mxu0 %v3035_v54 }
 0x117   : > { %2734 = vmatprep.mubr.msk.bf16.mxu1 %vm352_vm1, %v2488_v19 }
 0x119   : > { %2745 = vmatpush3.bf16.msra.mxu1 %v3035_v54 }
 0x11c   : > { %2735 = vmatmul.mubr.msk.bf16.vlgmr.msra.gmra.mrb[8].mxu1 %vm352_vm1, %v2489_v33  ;;  %2731 = vmatmul.mubr.msk.bf16.vlgmr.msra.gmra.mrb[0].mxu0 %vm352_vm1, %v2487_v27 }
 0x1df   : > { %v2652_v28 = vpop.f32.mrb[0].mxu1 }
 0x1e0   : > { %v993_v30 = vpop.f32.mrb[1].mxu1  ;;  %v2746_v58 = vadd.f32 %v2652_v28, %v286_v0 }
 0x1e1   : > { %v2653_v32 = vpop.f32.mrb[2].mxu1  ;;  %v2748_v3 = vadd.f32 %v993_v30, %v284_v4 }
 0x1e2   : > { %v996_v36 = vpop.f32.mrb[3].mxu1  ;;  %v2750_v6 = vadd.f32 %v2653_v32, %v287_v56 }
 0x1e3   : > { %v2752_v14 = vadd.f32 %v996_v36, %v285_v62 }
 0x1e7   : > { %v2656_v41 = vpop.f32.mrb[4].mxu1  ;;  %v2720_v26 = vpop.f32.mrb[4].mxu0 }
 0x1e8   : > { %v1009_v44 = vpop.f32.mrb[5].mxu1  ;;  %v2754_v21 = vadd.f32 %v2656_v41, %v290_v38  ;;  %v1854_v54 = vpop.f32.mrb[5].mxu0 }
 0x1e9   : > { %v2657_v63 = vpop.f32.mrb[6].mxu1  ;;  %v2757_v47 = vadd.f32 %v1009_v44, %v288_v60  ;;  %v2721_v39 = vpop.f32.mrb[6].mxu0 }
 0x1ea   : > { %v1012_v46 = vpop.f32.mrb[7].mxu1  ;;  %v2760_v51 = vadd.f32 %v2657_v63, %v291_v45  ;;  %v2755_v50 = vadd.f32 %v2754_v21, %v2720_v26  ;;  %v1857_v55 = vpop.f32.mrb[7].mxu0 }
 0x1eb   : > { %v2763_v53 = vadd.f32 %v1012_v46, %v289_v31  ;;  %v2758_v35 = vadd.f32 %v2757_v47, %v1854_v54 }
 0x1ec   : > { %v2761_v11 = vadd.f32 %v2760_v51, %v2721_v39 }
 0x1ed   : > { %v2764_v22 = vadd.f32 %v2763_v53, %v1857_v55 }
 0x1ef   : > { %v2736_v15 = vpop.f32.mrb[8].mxu1  ;;  %v2732_v12 = vpop.f32.mrb[0].mxu0  ;;  %2073 = sbr.rel (%p2498_p13) target bundleno = 517 (0x205), region = 52 }
 0x1f0   : > { %v2756_v49 = vadd.f32 %v2755_v50, %v2736_v15  ;;  %v2039_v52 = vpop.f32.mrb[9].mxu1  ;;  %v2747_v7 = vadd.f32 %v2746_v58, %v2732_v12  ;;  %v2023_v42 = vpop.f32.mrb[1].mxu0 }
 0x1f1   : > { %v2759_v57 = vadd.f32 %v2758_v35, %v2039_v52  ;;  %v2737_v9 = vpop.f32.mrb[10].mxu1  ;;  %v2749_v8 = vadd.f32 %v2748_v3, %v2023_v42  ;;  %v2733_v48 = vpop.f32.mrb[2].mxu0 }
 0x1f2   : > { %2068 = vst.msk [vmem:[#allocation2 + $0x30] sm:$0xff] %vm352_vm1, %v2756_v49  ;;  %v2762_v1 = vadd.f32 %v2761_v11, %v2737_v9  ;;  %v2042_v2 = vpop.f32.mrb[11].mxu1  ;;  %2064 = vst.msk [vmem:[#allocation2 + $0x10] sm:$0xff] %vm352_vm1, %v2747_v7  ;;  %v2751_v10 = vadd.f32 %v2750_v6, %v2733_v48  ;;  %v2026_v34 = vpop.f32.mrb[3].mxu0 }
 0x1f3   : > { %2066 = vst.msk [vmem:[#allocation2 + $0x20] sm:$0xff] %vm352_vm1, %v2759_v57  ;;  %v2765_v5 = vadd.f32 %v2764_v22, %v2042_v2  ;;  %2062 = vst.msk [vmem:[#allocation2] sm:$0xff] %vm352_vm1, %v2749_v8  ;;  %v2753_v13 = vadd.f32 %v2752_v14, %v2026_v34 }
 0x1f4   : > { %2069 = vst.msk [vmem:[#allocation2 + $0x38] sm:$0xff] %vm352_vm1, %v2762_v1  ;;  %2065 = vst.msk [vmem:[#allocation2 + $0x18] sm:$0xff] %vm352_vm1, %v2751_v10 }
 0x1f5   : > { %2067 = vst.msk [vmem:[#allocation2 + $0x28] sm:$0xff] %vm352_vm1, %v2765_v5  ;;  %2063 = vst.msk [vmem:[#allocation2 + $0x8] sm:$0xff] %vm352_vm1, %v2753_v13 }
 0x1f9   : > { %v2076_v18 = vld [vmem:[#allocation2 + $0x10] sm:$0xff] }
 0x1fa   : > { %v2074_v16 = vld [vmem:[#allocation2] sm:$0xff]  ;;  %v2091_v25 = vadd.f32 %v2499_v61, %v2076_v18  ;;  %v2080_v20 = vld [vmem:[#allocation2 + $0x30] sm:$0xff] }
 0x1fb   : > { %v2089_v37 = vadd.f32 %v2499_v61, %v2074_v16  ;;  %v2077_v24 = vld [vmem:[#allocation2 + $0x18] sm:$0xff]  ;;  %v2078_v19 = vld [vmem:[#allocation2 + $0x20] sm:$0xff]  ;;  %v2095_v30 = vadd.f32 %v2499_v61, %v2080_v20 }
 0x1fc   : > { %v2075_v17 = vld [vmem:[#allocation2 + $0x8] sm:$0xff]  ;;  %v2092_v23 = vadd.f32 %v2499_v61, %v2077_v24  ;;  %v2093_v29 = vadd.f32 %v2499_v61, %v2078_v19  ;;  %v2081_v43 = vld [vmem:[#allocation2 + $0x38] sm:$0xff]  ;;  %v2099_v32 = vmax.f32 %v2091_v25, 0.0 }
 0x1fd   : > { %v2090_v59 = vadd.f32 %v2499_v61, %v2075_v17  ;;  %v2079_v40 = vld [vmem:[#allocation2 + $0x28] sm:$0xff]  ;;  %v2097_v33 = vmax.f32 %v2089_v37, 0.0  ;;  %v2096_v41 = vadd.f32 %v2499_v61, %v2081_v43  ;;  %v2103_v63 = vmax.f32 %v2095_v30, 0.0 }
 0x1fe   : > { %v2094_v28 = vadd.f32 %v2499_v61, %v2079_v40  ;;  %v2100_v36 = vmax.f32 %v2092_v23, 0.0  ;;  %v2101_v38 = vmax.f32 %v2093_v29, 0.0  ;;  %v2516_v21 = vpack.c.bf16 %v2099_v32, %v2099_v32 }
 0x1ff   : > { %v2098_v27 = vmax.f32 %v2090_v59, 0.0  ;;  %v2514_v60 = vpack.c.bf16 %v2097_v33, %v2097_v33  ;;  %v2104_v47 = vmax.f32 %v2096_v41, 0.0  ;;  %v2520_v26 = vpack.c.bf16 %v2103_v63, %v2103_v63 }
 0x200   : > { %v2102_v45 = vmax.f32 %v2094_v28, 0.0  ;;  %v2517_v31 = vpack.c.bf16 %v2100_v36, %v2100_v36  ;;  %v2518_v46 = vpack.c.bf16 %v2101_v38, %v2101_v38  ;;  %2140 = vst.msk [vmem:[%s3643_s5 + $0x8] sm:$0xf] %vm2137_vm8, %v2516_v21 }
 0x201   : > { %v2515_v44 = vpack.c.bf16 %v2098_v27, %v2098_v27  ;;  %2138 = vst.msk [vmem:[%s3643_s5] sm:$0xf] %vm2137_vm8, %v2514_v60  ;;  %v2521_v53 = vpack.c.bf16 %v2104_v47, %v2104_v47  ;;  %2144 = vst.msk [vmem:[%s3643_s5 + $0x18] sm:$0xf] %vm2137_vm8, %v2520_v26 }
 0x202   : > { %v2519_v51 = vpack.c.bf16 %v2102_v45, %v2102_v45  ;;  %2141 = vst.msk [vmem:[%s3643_s5 + $0xc] sm:$0xf] %vm2137_vm8, %v2517_v31  ;;  %2142 = vst.msk [vmem:[%s3643_s5 + $0x10] sm:$0xf] %vm2137_vm8, %v2518_v46 }
 0x203   : > { %2139 = vst.msk [vmem:[%s3643_s5 + $0x4] sm:$0xf] %vm2137_vm8, %v2515_v44  ;;  %2145 = vst.msk [vmem:[%s3643_s5 + $0x1c] sm:$0xf] %vm2137_vm8, %v2521_v53 }
 0x204   : > { %2143 = vst.msk [vmem:[%s3643_s5 + $0x14] sm:$0xf] %vm2137_vm8, %v2519_v51 }
 0x205 PF: > { %s4235_s19 = sld [smem:[#allocation19_spill]]  ;;  %s4236_s21 = sld [smem:[#allocation20_spill]] }
 0x206   : > { %s4238_s23 = sld [smem:[#allocation25_spill]]  ;;  %s2162_s29 = sshll.u32 %s3643_s5, 4  ;;  %s4060_s29 = int_to_ptr.vmem [resolvable:$true] %s2162_s29 }
 0x207   : > { %s4239_s6 = sld [smem:[#allocation32_spill]]  ;;  %s4069_s28 = scalar_lea.sflag [#allocation5], %s266_s8 }
 0x208   : > { %s3124_s2 = scalar_lea.vmem %s4060_s29, 512  ;;  %s3302_s30 = smov [#allocation9]  }
 0x209   : > { %p3125_p6 = scmp.ne.s32.totalorder %s4060_s29, %s3124_s2  ;;  %s3128_s5 = sshll.u32 %s3302_s30, 4  ;;  %s3129_s5 = int_to_ptr.vmem [resolvable:$false] %s3128_s5 }
 0x20a   : > { %s3130_s15 = scalar_lea.vmem %s3129_s5, 1024  ;;  %p3131_p12 = scmp.lt.s32.totalorder %s4060_s29, %s3129_s5 }
 0x20b   : > { %s2509_s18 = sshll.u32 %s4235_s19, 3  ;;  %s2510_s13 = sshll.u32 %s4236_s21, 6 }
 0x20c   : > { %s2159_s4 = sadd.s32 %s2510_s13, %s2509_s18  ;;  %p4240_p5 = scmp.ne.s32.totalorder %s4238_s23, 0 }
 0x20d   : > { %s2511_s7 = sshll.u32 %s2159_s4, 6  ;;  %p3132_p4 = scmp.lt.s32.totalorder %s3130_s15, %s3124_s2 }
 0x20e   : > { %s4065_s22 = scalar_lea.hbm %s4239_s6, %s2511_s7  ;;  %p3126_p7 = pnand %p3125_p6, %p4240_p5 }
 0x20f   : > { %p3133_p8 = por %p3132_p4, %p3131_p12 }
 0x210   : > { %p3127_p0 = pneg %p3126_p7 }
 0x212   : > { %p3134_p2 = pnand %p3133_p8, %p3127_p0 }
 0x214   : > { %3137 = shalt.err (!%p3134_p2)
}
 0x215   : > { %s3138_s8 = scalar_lea.hbm %s4065_s22, 512  ;;  %s3142_s21 = scalar_lea.hbm %s4239_s6, 8192 }
 0x216   : > { %p3139_p1 = scmp.ne.s32.totalorder %s4065_s22, %s3138_s8  ;;  %p3143_p10 = scmp.lt.u32.totalorder %s4065_s22, %s4239_s6 }
 0x217   : > { %p3144_p11 = scmp.lt.u32.totalorder %s3142_s21, %s3138_s8  ;;  %p3146_p6 = scmp.lt.u32.totalorder %s3138_s8, %s4065_s22 }
 0x218   : > { %p3140_p3 = pnand %p3139_p1, %p4240_p5 }
 0x219   : > { %p3145_p13 = por %p3144_p11, %p3143_p10 }
 0x21a   : > { %p3141_p9 = pneg %p3140_p3 }
 0x21b   : > { %p3147_p7 = por %p3146_p6, %p3145_p13 }
 0x21d   : > { %p3148_p0 = pnand %p3147_p7, %p3141_p9 }
 0x21f   : > { %3151 = shalt.err (!%p3148_p0)
}
 0x220   : > { %s3303_s13 = smov 64   ;;  %s3304_s4 = smov 4  }
 0x221   : > { %2833 = dma.vmem_to_hbm [thread:$0]  (%p4240_p5), %s4060_s29, 512, %s4065_s22, %s4069_s28, %s3303_s13, %s3303_s13, %s3304_s4  }
 0x222 PF: > { %s4241_s7 = sld [smem:[#allocation14_spill]]  ;;  %p2853_p12 = scmp.ge.s32.totalorder %s3294_s27, 2 }
 0x223   : > { %s4242_s10 = sld [smem:[#allocation26_spill]] }
 0x228   : > { %s2177_s11 = sand.u32 1, %s4241_s7  }
 0x229   : > { %p4243_p4 = scmp.ne.s32.totalorder %s4242_s10, 0  ;;  %s2178_s2 = scalar_lea.sflag [#allocation5], %s2177_s11 }
 0x22b   : > { %p2847_p8 = pnand %p2853_p12, %p4243_p4 }
 0x22d   : > { %3229 = dma.done.wait (!%p2847_p8), %s2178_s2, 512  }
 0x22e   : > { %3231 = vsyncadd (!%p2847_p8), %s2178_s2, 4294966784  ;;  %s22_s27 = sadd.s32 1, %s3294_s27   ;;  %s4245_s5 = sld [smem:[#allocation15_spill]] }
 0x22f   : > { %p4098_p2 = scmp.ge.s32.totalorder %s22_s27, 50   ;;  %s4246_s23 = smov %s3530_s12 }
 0x230   : > { %s4247_s15 = sld [smem:[#allocation16_spill]]  ;;  %s4248_s29 = sld [smem:[#allocation30_spill]] }
 0x231   : > { %s4249_s18 = sld [smem:[#allocation17_spill]]  ;;  %s4250_s22 = sld [smem:[#allocation21_spill]] }
 0x232   : > { %s4251_s28 = sld [smem:[#allocation28_spill]]  ;;  %s4252_s25 = sld [smem:[#allocation29_spill]] }
 0x233   : > { %s4254_s13 = smov %s3242_s14  ;;  %s4255_s14 = smov %s4246_s23 }
 0x234   : > { %s4253_s12 = smov %s4245_s5  ;;  %s4256_s16 = smov %s3254_s17 }
 0x235   : > { %s4258_s19 = smov %s3266_s20  ;;  %s4259_s20 = smov %s3525_s3 }
 0x236   : > { %s4257_s17 = smov %s4248_s29  ;;  %s4260_s21 = smov %s3282_s24 }
 0x237   : > { %s4261_s23 = smov %s3290_s26  ;;  %s4263_s26 = smov %s4273_s9 }
 0x238   : > { %s4262_s24 = smov %s4251_s28  ;;  %21 = sbr.rel (!%p4098_p2) target bundleno = 16 (0x10), region = 104 }
 0x23f   :  { %2183 = vsyncpa [#allocation4], 1 }
 0x240   :  { %2185 = vsyncpa [#allocation4 + $0x1], 1 }
 0x241   :  { %2186 = vsyncpa [#allocation7], 1 }
 0x242   :  { %2188 = vsyncpa [#allocation7 + $0x1], 1 }
 0x243   :  { %2189 = vsyncpa [#allocation5], 1 }
 0x244   :  { %2191 = vsyncpa [#allocation5 + $0x1], 1 }

// kernel: mri_model_forward.15
= control target key start
LH: loop header
LB: loop body
LE: loop exit
PB: predicated region body
PF: predicated region fallthrough
CT: control target
= control target key end

     0   :  { %8 = vsyncpa [#allocation4], 0  ;;  %s3073_s0 = inlined_call_operand.hbm [shape: bf16[128,1792], index: 0, kind: input, shape index: {}]   ;;  %s3074_s1 = inlined_call_operand.hbm [shape: bf16[1792,128], index: 1, kind: input, shape index: {}]   ;;  %s3075_s2 = inlined_call_operand.hbm [shape: f32[1,128], index: 2, kind: input, shape index: {}]   ;;  %s3076_s3 = inlined_call_operand.hbm [shape: bf16[128,128], index: 3, kind: output, shape index: {}]  }
   0x1   :  { %10 = vsyncpa [#allocation4 + $0x1], 0 }
   0x2   :  { %11 = vsyncpa [#allocation7], 0 }
   0x3   :  { %13 = vsyncpa [#allocation7 + $0x1], 0 }
   0x4   :  { %14 = vsyncpa [#allocation5], 0  ;;  %s2671_s12 = smov 0   ;;  %s2673_s13 = smov 0  }
   0x5   :  { %s2675_s14 = smov 0   ;;  %s2677_s15 = smov 0  }
   0x6   :  { %s2679_s16 = smov 0   ;;  %s2681_s17 = smov 0  }
   0x7 LB: > { %s2700_s18 = sadd.s32 4294967295, %s2637_s17   ;;  %s48_s19 = sadd.s32 1, %s2625_s14  ;;  %s2637_s17 = sphi %s2681_s17, %s20_s17   ;;  %s2633_s16 = sphi %s2679_s16, %s3094_s16   ;;  %s2629_s15 = sphi %s2677_s15, %s3093_s15   ;;  %s2625_s14 = sphi %s2675_s14, %s3092_s14   ;;  %s2621_s13 = sphi %s2673_s13, %s3091_s13   ;;  %s2617_s12 = sphi %s2671_s12, %s3090_s12  }
   0x8   : > { %p55_p0 = scmp.ne.s32.totalorder %s2625_s14, %s2621_s13  ;;  %p56_p1 = scmp.eq.s32.totalorder %s2637_s17, 0 }
   0x9   : > { %p61_p2 = scmp.ne.s32.totalorder %s2621_s13, %s2617_s12  ;;  %p3077_p3 = scmp.eq.s32.totalorder %s2700_s18, 0 }
   0xa   : > { %p57_p4 = por %p56_p1, %p55_p0  ;;  %p1789_p5 = scmp.ge.s32.totalorder %s2637_s17, 1 }
   0xb   : > { %p2711_p6 = por %p3077_p3, %p61_p2  ;;  %p154_p7 = scmp.lt.s32.totalorder %s2637_s17, 3 }
   0xc   : > { %s2639_s22 = smov [#allocation8]   ;;  %p2263_p10 = scmp.lt.s32.totalorder %s2637_s17, 2 }
   0xd   : > { %s3081_s20 = scalar_select %p2711_p6, 1, 0 }
   0xe   : > { %p2716_p8 = pnand %p1789_p5, %p154_p7  ;;  %s169_s23 = sshll.u32 %s2639_s22, 4  ;;  %s170_s23 = int_to_ptr.vmem [resolvable:$true] %s169_s23 }
   0xf   : > { %s180_s24 = sand.u32 1, %s2625_s14   ;;  %p2730_p12 = pnand %p2263_p10, %p57_p4 }
  0x10   : > { %s3082_s21 = scalar_select %p2716_p8, 1, 0 }
  0x11   : > { %p2251_p9 = pneg %p2716_p8  ;;  %s2461_s29 = scalar_lea.hbm %s3075_s2, 16 }
  0x12   : > { %s3084_s26 = scalar_select %p2730_p12, 1, 0 }
  0x13   : > { %p2726_p11 = pnand %p2251_p9, %p3077_p3  ;;  %p2462_p13 = scmp.ne.s32.totalorder %s3075_s2, %s2461_s29 }
  0x14   : > { %p2468_p5 = scmp.lt.u32.totalorder %s2461_s29, %s3075_s2 }
  0x15   : > { %p2463_p0 = pneg %p2726_p11 }
  0x17   : > { %p2464_p1 = pnand %p2463_p0, %p2462_p13 }
  0x19   : > { %p2465_p2 = pneg %p2464_p1 }
  0x1b   : > { %p2470_p4 = pnand %p2468_p5, %p2465_p2 }
  0x1d   : > { %2473 = shalt.err (!%p2470_p4)
}
  0x1e   : > { %s2474_s7 = scalar_lea.vmem %s170_s23, 16  ;;  %s2481_s8 = scalar_lea.vmem %s170_s23, 32 }
  0x1f   : > { %p2475_p7 = scmp.ne.s32.totalorder %s170_s23, %s2474_s7  ;;  %p2482_p3 = scmp.lt.s32.totalorder %s170_s23, %s170_s23 }
  0x20   : > { %p2483_p6 = scmp.lt.s32.totalorder %s2481_s8, %s2474_s7 }
  0x21   : > { %p2477_p9 = pnand %p2475_p7, %p2463_p0 }
  0x22   : > { %p2484_p8 = por %p2483_p6, %p2482_p3 }
  0x23   : > { %p2478_p10 = pneg %p2477_p9 }
  0x25   : > { %p2485_p12 = pnand %p2484_p8, %p2478_p10 }
  0x27   : > { %2488 = shalt.err (!%p2485_p12)
}
  0x28   : > { %2254 = dma.hbm_to_vmem [thread:$0]  (!%p2726_p11), %s3075_s2, 16, %s170_s23, [#allocation7]  }
  0x29   : > { %s32_s11 = sadd.s32 1, %s2633_s16  ;;  %s2753_s12 = smul.u32 448, %s180_s24 }
  0x2a   : > { %p33_p3 = scmp.ge.s32.totalorder %s32_s11, 2  ;;  %s1931_s22 = smul.u32 448, %s2633_s16 }
  0x2b   : > { %s184_s23 = scalar_lea.vmem [#allocation3], %s2753_s12  ;;  %s204_s4 = sand.u32 1, %s2637_s17  }
  0x2c   : > { %s3096_s11 = smov (%p33_p3, %s32_s11), 0  ;;  %s2761_s28 = scalar_lea.hbm %s3073_s0, %s1931_s22 }
  0x2d   : > { %s194_s29 = sshll.u32 %s184_s23, 4  ;;  %s44_s30 = ssub.s32 %s2633_s16, %s3096_s11  ;;  %s2766_s29 = int_to_ptr.vmem [resolvable:$true] %s194_s29 }
  0x2e   : > { %p46_p6 = scmp.eq.s32.totalorder %s44_s30, 0  ;;  %s2776_s6 = scalar_lea.sflag [#allocation4], %s180_s24 }
  0x2f   : > { %s2489_s7 = scalar_lea.hbm %s2761_s28, 7168  ;;  %p3085_p11 = scmp.ne.s32.totalorder %s3084_s26, 0 }
  0x30   : > { %s2772_s5 = scalar_select %p46_p6, %s2625_s14, %s48_s19  }
  0x31   : > { %p2490_p8 = scmp.ne.s32.totalorder %s2761_s28, %s2489_s7  ;;  %p2491_p12 = pneg %p3085_p11 }
  0x32   : > { %s2494_s10 = scalar_lea.hbm %s3073_s0, 14336  ;;  %p2495_p1 = scmp.lt.u32.totalorder %s2761_s28, %s3073_s0 }
  0x33   : > { %p2492_p13 = pnand %p2491_p12, %p2490_p8  ;;  %p2496_p2 = scmp.lt.u32.totalorder %s2494_s10, %s2489_s7 }
  0x34   : > { %p2498_p4 = scmp.lt.u32.totalorder %s2489_s7, %s2761_s28 }
  0x35   : > { %p2493_p0 = pneg %p2492_p13  ;;  %p2497_p5 = por %p2496_p2, %p2495_p1 }
  0x37   : > { %p2499_p7 = por %p2498_p4, %p2497_p5 }
  0x39   : > { %p2500_p9 = pnand %p2499_p7, %p2493_p0 }
  0x3b   : > { %2503 = shalt.err (!%p2500_p9)
}
  0x3c   : > { %s2504_s19 = scalar_lea.vmem %s2766_s29, 7168  ;;  %s2640_s24 = smov [#allocation3]  }
  0x3d   : > { %p2505_p10 = scmp.ne.s32.totalorder %s2766_s29, %s2504_s19  ;;  %s2509_s27 = sshll.u32 %s2640_s24, 4  ;;  %s2510_s27 = int_to_ptr.vmem [resolvable:$false] %s2509_s27 }
  0x3e   : > { %s2511_s23 = scalar_lea.vmem %s2510_s27, 14336  ;;  %p2512_p8 = scmp.lt.s32.totalorder %s2766_s29, %s2510_s27 }
  0x3f   : > { %p2507_p3 = pnand %p2505_p10, %p2491_p12  ;;  %p2513_p13 = scmp.lt.s32.totalorder %s2511_s23, %s2504_s19 }
  0x41   : > { %p2508_p6 = pneg %p2507_p3  ;;  %p2514_p1 = por %p2513_p13, %p2512_p8 }
  0x43   : > { %p2515_p2 = pnand %p2514_p1, %p2508_p6 }
  0x45   : > { %2518 = shalt.err (!%p2515_p2)
}
  0x46   : > { %s2641_s30 = smov 896   ;;  %s2642_s7 = smov 448  }
  0x47   : > { %s2643_s8 = smov 28   ;;  %s1932_s9 = smul.u32 7168, %s2633_s16 }
  0x48   : > { %2258 = dma.hbm_to_vmem [thread:$0]  (!%p3085_p11), %s2761_s28, 7168, %s2766_s29, %s2776_s6, %s2641_s30, %s2642_s7, %s2643_s8  }
  0x49   : > { %s208_s10 = scalar_lea.vmem [#allocation6], %s2753_s12  ;;  %s2811_s24 = scalar_lea.hbm %s3074_s1, %s1932_s9 }
  0x4a   : > { %s216_s22 = sshll.u32 %s208_s10, 4  ;;  %s2815_s27 = scalar_lea.sflag [#allocation7], %s204_s4  ;;  %s2806_s22 = int_to_ptr.vmem [resolvable:$true] %s216_s22 }
  0x4b   : > { %s2519_s23 = scalar_lea.hbm %s2811_s24, 7168  ;;  %s2524_s29 = scalar_lea.hbm %s3074_s1, 14336 }
  0x4c   : > { %p2520_p0 = scmp.ne.s32.totalorder %s2811_s24, %s2519_s23  ;;  %p2525_p7 = scmp.lt.u32.totalorder %s2811_s24, %s3074_s1 }
  0x4d   : > { %p2526_p9 = scmp.lt.u32.totalorder %s2524_s29, %s2519_s23  ;;  %p2528_p3 = scmp.lt.u32.totalorder %s2519_s23, %s2811_s24 }
  0x4e   : > { %p2522_p5 = pnand %p2520_p0, %p2491_p12 }
  0x4f   : > { %p2527_p10 = por %p2526_p9, %p2525_p7 }
  0x50   : > { %p2523_p4 = pneg %p2522_p5 }
  0x51   : > { %p2529_p6 = por %p2528_p3, %p2527_p10 }
  0x53   : > { %p2530_p8 = pnand %p2529_p6, %p2523_p4 }
  0x55   : > { %2533 = shalt.err (!%p2530_p8)
}
  0x56   : > { %s2534_s4 = scalar_lea.vmem %s2806_s22, 7168  ;;  %s2644_s7 = smov [#allocation6]  }
  0x57   : > { %p2535_p13 = scmp.ne.s32.totalorder %s2806_s22, %s2534_s4  ;;  %s2539_s8 = sshll.u32 %s2644_s7, 4  ;;  %s2540_s8 = int_to_ptr.vmem [resolvable:$false] %s2539_s8 }
  0x58   : > { %s2541_s9 = scalar_lea.vmem %s2540_s8, 14336  ;;  %p2542_p0 = scmp.lt.s32.totalorder %s2806_s22, %s2540_s8 }
  0x59   : > { %p2537_p1 = pnand %p2535_p13, %p2491_p12  ;;  %p2543_p5 = scmp.lt.s32.totalorder %s2541_s9, %s2534_s4 }
  0x5b   : > { %p2538_p2 = pneg %p2537_p1  ;;  %p2544_p7 = por %p2543_p5, %p2542_p0 }
  0x5d   : > { %p2545_p9 = pnand %p2544_p7, %p2538_p2 }
  0x5f   : > { %2548 = shalt.err (!%p2545_p9)
}
  0x60   : > { %s2645_s10 = smov 64   ;;  %s2646_s25 = smov 4  }
  0x61   : > { %2261 = dma.hbm_to_vmem [thread:$0]  (!%p3085_p11), %s2811_s24, 7168, %s2806_s22, %s2815_s27, %s2645_s10, %s2645_s10, %s2646_s25  }
  0x62   : > { %p3086_p12 = scmp.ne.s32.totalorder %s3082_s21, 0 }
  0x63   : > { %s230_s19 = sand.u32 (!%p3086_p12), 1, %s2621_s13   ;;  %p3087_p4 = scmp.ne.s32.totalorder (!%p3086_p12), %s3081_s20, 0 }
  0x64   : > { %228 = sbr.rel (%p3086_p12) target bundleno = 542 (0x21e), region = 32  ;;  %s231_s12 = scalar_lea.sflag (!%p3086_p12), [#allocation4], %s230_s19 }
  0x65   : > { %s2238_s23 = smul.u32 (!%p3086_p12), 448, %s230_s19 }
  0x67   : > { %s2844_s28 = scalar_lea.vmem (!%p3086_p12), [#allocation3], %s2238_s23 }
  0x6b   : > { %2600 = dma.done.wait (%p3087_p4), %s231_s12, 7168  }
  0x6c   : > { %2602 = vsyncadd (%p3087_p4), %s231_s12, 4294960128  ;;  %s239_s29 = sand.u32 1, %s2700_s18   ;;  %s2851_s22 = scalar_lea.vmem [#allocation6], %s2238_s23 }
  0x6d   : > { %s240_s26 = scalar_lea.sflag [#allocation7], %s239_s29 }
  0x6e   : > { %2604 = dma.done.wait (%p3087_p4), %s240_s26, 7168  }
  0x6f   : > { %2606 = vsyncadd (%p3087_p4), %s240_s26, 4294960128  ;;  %p3088_p11 = scmp.eq.s32.totalorder %s2700_s18, 0 }
  0x71   : > { %2608 = dma.done.wait (%p3088_p11), [#allocation7], 16   ;;  %p3089_p10 = pmov %p3088_p11 }
  0x72   : > { %p1796_p3 = scmp.ne.s32.totalorder %s2629_s15, 0 }
  0x73   : > { %2610 = vsyncadd (%p3089_p10), [#allocation7], 4294967280  ;;  %v2647_v0 = vmov (!%p1796_p3), 0.0  }
  0x74   : > { %278 = sbr.rel (%p1796_p3) target bundleno = 124 (0x7c), region = 48  ;;  %279 = vst [vmem:[#allocation2] sm:$0xff] (!%p1796_p3), %v2647_v0  ;;  %280 = vst [vmem:[#allocation2 + $0x8] sm:$0xff] (!%p1796_p3), %v2647_v0 }
  0x75   : > { %281 = vst [vmem:[#allocation2 + $0x10] sm:$0xff] (!%p1796_p3), %v2647_v0  ;;  %282 = vst [vmem:[#allocation2 + $0x18] sm:$0xff] (!%p1796_p3), %v2647_v0 }
  0x76   : > { %283 = vst [vmem:[#allocation2 + $0x20] sm:$0xff] (!%p1796_p3), %v2647_v0  ;;  %284 = vst [vmem:[#allocation2 + $0x28] sm:$0xff] (!%p1796_p3), %v2647_v0 }
  0x77   : > { %285 = vst [vmem:[#allocation2 + $0x30] sm:$0xff] (!%p1796_p3), %v2647_v0  ;;  %286 = vst [vmem:[#allocation2 + $0x38] sm:$0xff] (!%p1796_p3), %v2647_v0 }
  0x78   : > { %287 = vst [vmem:[#allocation2 + $0x40] sm:$0xff] (!%p1796_p3), %v2647_v0  ;;  %288 = vst [vmem:[#allocation2 + $0x48] sm:$0xff] (!%p1796_p3), %v2647_v0 }
  0x79   : > { %289 = vst [vmem:[#allocation2 + $0x50] sm:$0xff] (!%p1796_p3), %v2647_v0  ;;  %290 = vst [vmem:[#allocation2 + $0x58] sm:$0xff] (!%p1796_p3), %v2647_v0 }
  0x7a   : > { %291 = vst [vmem:[#allocation2 + $0x60] sm:$0xff] (!%p1796_p3), %v2647_v0  ;;  %292 = vst [vmem:[#allocation2 + $0x68] sm:$0xff] (!%p1796_p3), %v2647_v0 }
  0x7b   : > { %293 = vst [vmem:[#allocation2 + $0x70] sm:$0xff] %v2647_v0  ;;  %294 = vst [vmem:[#allocation2 + $0x78] sm:$0xff] %v2647_v0 }
  0x7c PF: > { %v2325_v1 = vld [vmem:[%s2851_s22 + $0x40] sm:$0xff]   ;;  %v2329_v5 = vld [vmem:[%s2851_s22 + $0x48] sm:$0xff]   ;;  %v2333_v9 = vld [vmem:[%s2851_s22 + $0x50] sm:$0xff]   ;;  %p1909_p6 = scmp.ne.s32.totalorder %s2629_s15, 1 }
  0x7d   : > { %v2326_v2 = vld [vmem:[%s2851_s22 + $0xc0] sm:$0xff]   ;;  %1996 = vmatprep.subr.bf16.mxu0 %v2325_v1  ;;  %v2330_v6 = vld [vmem:[%s2851_s22 + $0xc8] sm:$0xff]   ;;  %v2334_v10 = vld [vmem:[%s2851_s22 + $0xd0] sm:$0xff]  }
  0x7e   : > { %v2327_v3 = vld [vmem:[%s2851_s22] sm:$0xff]   ;;  %2060 = vmatprep.subr.bf16.mxu1 %v2326_v2  ;;  %v2331_v7 = vld [vmem:[%s2851_s22 + $0x8] sm:$0xff]   ;;  %v2335_v11 = vld [vmem:[%s2851_s22 + $0x10] sm:$0xff]  }
  0x7f   : > { %v2328_v4 = vld [vmem:[%s2851_s22 + $0x80] sm:$0xff]   ;;  %1997 = vmatpush3.bf16.msra.mxu0 %v2327_v3  ;;  %v2332_v8 = vld [vmem:[%s2851_s22 + $0x88] sm:$0xff]   ;;  %v2336_v12 = vld [vmem:[%s2851_s22 + $0x90] sm:$0xff]  }
  0x80   : > { %2061 = vmatpush3.bf16.msra.mxu1 %v2328_v4  ;;  %1998 = vmatprep.subr.bf16.mxu0 %v2329_v5  ;;  %v2337_v13 = vld [vmem:[%s2851_s22 + $0x58] sm:$0xff]   ;;  %v2341_v17 = vld [vmem:[%s2851_s22 + $0x60] sm:$0xff]   ;;  %v2345_v21 = vld [vmem:[%s2851_s22 + $0x68] sm:$0xff]  }
  0x81   : > { %2062 = vmatprep.subr.bf16.mxu1 %v2330_v6  ;;  %v2338_v14 = vld [vmem:[%s2851_s22 + $0xd8] sm:$0xff]   ;;  %v2342_v18 = vld [vmem:[%s2851_s22 + $0xe0] sm:$0xff]   ;;  %v2346_v22 = vld [vmem:[%s2851_s22 + $0xe8] sm:$0xff]  }
  0x82   : > { %v2339_v15 = vld [vmem:[%s2851_s22 + $0x18] sm:$0xff]   ;;  %v2343_v19 = vld [vmem:[%s2851_s22 + $0x20] sm:$0xff]   ;;  %v2347_v23 = vld [vmem:[%s2851_s22 + $0x28] sm:$0xff]  }
  0x83   : > { %1999 = vmatpush3.bf16.msra.mxu0 %v2331_v7  ;;  %v2340_v16 = vld [vmem:[%s2851_s22 + $0x98] sm:$0xff]   ;;  %v2344_v20 = vld [vmem:[%s2851_s22 + $0xa0] sm:$0xff]   ;;  %v2348_v24 = vld [vmem:[%s2851_s22 + $0xa8] sm:$0xff]  }
  0x84   : > { %2063 = vmatpush3.bf16.msra.mxu1 %v2332_v8  ;;  %2000 = vmatprep.subr.bf16.mxu0 %v2333_v9  ;;  %v2349_v25 = vld [vmem:[%s2851_s22 + $0x70] sm:$0xff]   ;;  %v2353_v29 = vld [vmem:[%s2851_s22 + $0x78] sm:$0xff]   ;;  %v2359_v34 = vld [vmem:[%s2844_s28 + $0x4] ss:$28 sps:$4 sm:$0xff]  }
  0x85   : > { %2064 = vmatprep.subr.bf16.mxu1 %v2334_v10  ;;  %v2350_v26 = vld [vmem:[%s2851_s22 + $0xf0] sm:$0xff]   ;;  %v2354_v30 = vld [vmem:[%s2851_s22 + $0xf8] sm:$0xff]   ;;  %v2360_v35 = vld [vmem:[%s2844_s28 + $0x8] ss:$28 sps:$4 sm:$0xff]   ;;  %1143 = vmatprep.mubr.bf16.mxu0 %v2359_v34 }
  0x86   : > { %v2351_v27 = vld [vmem:[%s2851_s22 + $0x30] sm:$0xff]   ;;  %v2355_v31 = vld [vmem:[%s2851_s22 + $0x38] sm:$0xff]   ;;  %v2362_v36 = vld [vmem:[%s2844_s28 + $0xc] ss:$28 sps:$4 sm:$0xff]  }
  0x87   : > { %2001 = vmatpush3.bf16.msra.mxu0 %v2335_v11  ;;  %v2352_v28 = vld [vmem:[%s2851_s22 + $0xb0] sm:$0xff]   ;;  %v2356_v32 = vld [vmem:[%s2851_s22 + $0xb8] sm:$0xff]   ;;  %v2363_v37 = vld [vmem:[%s2851_s22 + $0x140] sm:$0xff]   ;;  %1240 = vmatprep.mubr.bf16.mxu1 %v2362_v36 }
  0x88   : > { %2065 = vmatpush3.bf16.msra.mxu1 %v2336_v12  ;;  %2002 = vmatprep.subr.bf16.mxu0 %v2337_v13  ;;  %v2357_v33 = vld [vmem:[%s2844_s28] ss:$28 sps:$4 sm:$0xff]   ;;  %v2369_v41 = vld [vmem:[%s2844_s28 + $0x38] ss:$28 sps:$4 sm:$0xff]   ;;  %v2371_v43 = vld [vmem:[%s2851_s22 + $0x148] sm:$0xff]  }
  0x89   : > { %2066 = vmatprep.subr.bf16.mxu1 %v2338_v14  ;;  %v2364_v38 = vld [vmem:[%s2851_s22 + $0x100] sm:$0xff]   ;;  %v2365_v39 = vld [vmem:[%s2844_s28 + $0x3c] ss:$28 sps:$4 sm:$0xff]   ;;  %v2372_v44 = vld [vmem:[%s2851_s22 + $0x108] sm:$0xff]  }
  0x8a   : > { %v2367_v40 = vld [vmem:[%s2844_s28 + $0x44] ss:$28 sps:$4 sm:$0xff]   ;;  %v2373_v45 = vld [vmem:[%s2844_s28 + $0x74] ss:$28 sps:$4 sm:$0xff]   ;;  %v2375_v46 = vld [vmem:[%s2844_s28 + $0x7c] ss:$28 sps:$4 sm:$0xff]  }
  0x8b   : > { %2003 = vmatpush3.bf16.msra.mxu0 %v2339_v15  ;;  %v2370_v42 = vld [vmem:[%s2844_s28 + $0x40] ss:$28 sps:$4 sm:$0xff]   ;;  %v2379_v47 = vld [vmem:[%s2851_s22 + $0x150] sm:$0xff]   ;;  %v2381_v51 = vld [vmem:[%s2844_s28 + $0xac] ss:$28 sps:$4 sm:$0xff]  }
  0x8c   : > { %2067 = vmatpush3.bf16.msra.mxu1 %v2340_v16  ;;  %2004 = vmatprep.subr.bf16.mxu0 %v2341_v17  ;;  %v2380_v48 = vld [vmem:[%s2851_s22 + $0x110] sm:$0xff]   ;;  %v2387_v53 = vld [vmem:[%s2851_s22 + $0x158] sm:$0xff]   ;;  %v2385_v55 = vld [vmem:[%s2844_s28 + $0xa8] ss:$28 sps:$4 sm:$0xff]  }
  0x8d   : > { %2068 = vmatprep.subr.bf16.mxu1 %v2342_v18  ;;  %v2377_v49 = vld [vmem:[%s2844_s28 + $0x70] ss:$28 sps:$4 sm:$0xff]   ;;  %v2378_v50 = vld [vmem:[%s2844_s28 + $0x78] ss:$28 sps:$4 sm:$0xff]   ;;  %v2395_v56 = vld [vmem:[%s2851_s22 + $0x160] sm:$0xff]  }
  0x8e   : > { %v2383_v52 = vld [vmem:[%s2844_s28 + $0xb4] ss:$28 sps:$4 sm:$0xff]   ;;  %v2388_v54 = vld [vmem:[%s2851_s22 + $0x118] sm:$0xff]   ;;  %v2396_v58 = vld [vmem:[%s2851_s22 + $0x120] sm:$0xff]  }
  0x8f   : > { %2005 = vmatpush3.bf16.msra.mxu0 %v2343_v19  ;;  %v2386_v57 = vld [vmem:[%s2844_s28 + $0xb0] ss:$28 sps:$4 sm:$0xff]   ;;  %v2397_v59 = vld [vmem:[%s2851_s22 + $0x180] sm:$0xff]   ;;  %v2398_v4 = vld [vmem:[%s2844_s28 + $0x11c] ss:$28 sps:$4 sm:$0xff]  }
  0x90   : > { %2069 = vmatpush3.bf16.msra.mxu1 %v2344_v20  ;;  %2006 = vmatprep.subr.bf16.mxu0 %v2345_v21  ;;  %v2389_v60 = vld [vmem:[%s2844_s28 + $0xe4] ss:$28 sps:$4 sm:$0xff]   ;;  %v2391_v61 = vld [vmem:[%s2844_s28 + $0xec] ss:$28 sps:$4 sm:$0xff]   ;;  %v2407_v1 = vld [vmem:[%s2851_s22 + $0x190] sm:$0xff]  }
  0x91   : > { %2070 = vmatprep.subr.bf16.mxu1 %v2346_v22  ;;  %v2404_v62 = vld [vmem:[%s2851_s22 + $0x168] sm:$0xff]   ;;  %v2393_v2 = vld [vmem:[%s2844_s28 + $0xe0] ss:$28 sps:$4 sm:$0xff]   ;;  %v2414_v6 = vld [vmem:[%s2851_s22 + $0x170] sm:$0xff]  }
  0x92   : > { %v2405_v63 = vld [vmem:[%s2851_s22 + $0x188] sm:$0xff]   ;;  %v2400_v5 = vld [vmem:[%s2844_s28 + $0x124] ss:$28 sps:$4 sm:$0xff]   ;;  %v2415_v7 = vld [vmem:[%s2851_s22 + $0x198] sm:$0xff]  }
  0x93   : > { %2007 = vmatpush3.bf16.msra.mxu0 %v2347_v23  ;;  %v2406_v0 = vld [vmem:[%s2851_s22 + $0x128] sm:$0xff]   ;;  %v2416_v8 = vld [vmem:[%s2851_s22 + $0x130] sm:$0xff]   ;;  %v2417_v9 = vld [vmem:[%s2851_s22 + $0x1a0] sm:$0xff]  }
  0x94   : > { %2071 = vmatpush3.bf16.msra.mxu1 %v2348_v24  ;;  %2008 = vmatprep.subr.bf16.mxu0 %v2349_v25  ;;  %v2394_v3 = vld [vmem:[%s2844_s28 + $0xe8] ss:$28 sps:$4 sm:$0xff]   ;;  %v2402_v10 = vld [vmem:[%s2844_s28 + $0x118] ss:$28 sps:$4 sm:$0xff]   ;;  %v2403_v11 = vld [vmem:[%s2844_s28 + $0x120] ss:$28 sps:$4 sm:$0xff]  }
  0x95   : > { %2072 = vmatprep.subr.bf16.mxu1 %v2350_v26  ;;  %v2408_v12 = vld [vmem:[%s2844_s28 + $0x154] ss:$28 sps:$4 sm:$0xff]   ;;  %v2410_v13 = vld [vmem:[%s2844_s28 + $0x15c] ss:$28 sps:$4 sm:$0xff]   ;;  %v2425_v15 = vld [vmem:[%s2851_s22 + $0x1a8] sm:$0xff]  }
  0x96   : > { %v2424_v14 = vld [vmem:[%s2851_s22 + $0x178] sm:$0xff]   ;;  %v2427_v17 = vld [vmem:[%s2851_s22 + $0x1b0] sm:$0xff]   ;;  %v2418_v20 = vld [vmem:[%s2844_s28 + $0x18c] ss:$28 sps:$4 sm:$0xff]  }
  0x97   : > { %2009 = vmatpush3.bf16.msra.mxu0 %v2351_v27  ;;  %v2426_v16 = vld [vmem:[%s2851_s22 + $0x138] sm:$0xff]   ;;  %v2412_v18 = vld [vmem:[%s2844_s28 + $0x150] ss:$28 sps:$4 sm:$0xff]   ;;  %v2422_v23 = vld [vmem:[%s2844_s28 + $0x188] ss:$28 sps:$4 sm:$0xff]  }
  0x98   : > { %2073 = vmatpush3.bf16.msra.mxu1 %v2352_v28  ;;  %2010 = vmatprep.subr.bf16.mxu0 %v2353_v29  ;;  %v2413_v19 = vld [vmem:[%s2844_s28 + $0x158] ss:$28 sps:$4 sm:$0xff]   ;;  %v2423_v24 = vld [vmem:[%s2844_s28 + $0x190] ss:$28 sps:$4 sm:$0xff]  }
  0x99   : > { %2074 = vmatprep.subr.bf16.mxu1 %v2354_v30  ;;  %v2420_v21 = vld [vmem:[%s2844_s28 + $0x194] ss:$28 sps:$4 sm:$0xff]   ;;  %v2431_v22 = vld [vmem:[%s2851_s22 + $0x1b8] sm:$0xff]   ;;  %v2434_v29 = vld [vmem:[%s2844_s28 + $0x4c] ss:$28 sps:$4 sm:$0xff]  }
  0x9a   : > { %v2430_v25 = vld [vmem:[%s2844_s28 + $0x14] ss:$28 sps:$4 sm:$0xff]   ;;  %v2440_v30 = vld [vmem:[%s2844_s28 + $0x88] ss:$28 sps:$4 sm:$0xff]   ;;  %v2442_v36 = vld [vmem:[%s2844_s28 + $0xbc] ss:$28 sps:$4 sm:$0xff]  }
  0x9b   : > { %2011 = vmatpush3.bf16.msra.mxu0 %v2355_v31  ;;  %v2432_v26 = vld [vmem:[%s2844_s28 + $0x18] ss:$28 sps:$4 sm:$0xff]   ;;  %v2428_v27 = vld [vmem:[%s2844_s28 + $0x10] ss:$28 sps:$4 sm:$0xff]   ;;  %v2436_v31 = vld [vmem:[%s2844_s28 + $0x48] ss:$28 sps:$4 sm:$0xff]  }
  0x9c   : > { %2075 = vmatpush3.bf16.msra.mxu1 %v2356_v32  ;;  %2124 = vmatprep.subr.bf16.mxu0 %v2363_v37  ;;  %v2433_v28 = vld [vmem:[%s2844_s28 + $0x50] ss:$28 sps:$4 sm:$0xff]   ;;  %v2437_v32 = vld [vmem:[%s2844_s28 + $0x84] ss:$28 sps:$4 sm:$0xff]   ;;  %v2448_v34 = vld [vmem:[%s2844_s28 + $0xf8] ss:$28 sps:$4 sm:$0xff]  }
  0x9d   : > { %2204 = vmatprep.subr.bf16.mxu1 %v2397_v59  ;;  %v2449_v37 = vld [vmem:[%s2844_s28 + $0x130] ss:$28 sps:$4 sm:$0xff]  }
  0x9e   : > { %1144 = vmatmul.mubr.bf16.vlgmr.msra.gmra.mrb[0].mxu0 %v2357_v33  ;;  %v2441_v33 = vld [vmem:[%s2844_s28 + $0xc0] ss:$28 sps:$4 sm:$0xff]  }
  0x9f   : > { %1241 = vmatmul.mubr.bf16.vlgmr.msra.gmra.mrb[0].mxu1 %v2360_v35  ;;  %2125 = vmatpush3.bf16.msra.mxu0 %v2364_v38  ;;  %v2439_v35 = vld [vmem:[%s2844_s28 + $0x80] ss:$28 sps:$4 sm:$0xff]   ;;  %v2456_v38 = vld [vmem:[%s2844_s28 + $0x168] ss:$28 sps:$4 sm:$0xff]  }
  0xa0   : > { %1151 = vmatprep.mubr.bf16.mxu0 %v2365_v39  ;;  %1248 = vmatprep.mubr.bf16.mxu1 %v2367_v40  ;;  %v2444_v39 = vld [vmem:[%s2844_s28 + $0xb8] ss:$28 sps:$4 sm:$0xff]  }
  0xa1   : > { %2126 = vmatprep.subr.bf16.mxu0 %v2371_v43  ;;  %2205 = vmatpush3.bf16.msra.mxu1 %v2397_v59  ;;  %v2445_v40 = vld [vmem:[%s2844_s28 + $0xf4] ss:$28 sps:$4 sm:$0xff]   ;;  %v2450_v43 = vld [vmem:[%s2844_s28 + $0x12c] ss:$28 sps:$4 sm:$0xff]  }
  0xa2   : > { %2206 = vmatprep.subr.bf16.mxu1 %v2405_v63 }
  0xa3   : > { %2127 = vmatpush3.bf16.msra.mxu0 %v2372_v44  ;;  %v2452_v44 = vld [vmem:[%s2844_s28 + $0x128] ss:$28 sps:$4 sm:$0xff]  }
  0xa4   : > { %2128 = vmatprep.subr.bf16.mxu0 %v2379_v47  ;;  %v2458_v47 = vld [vmem:[%s2844_s28 + $0x19c] ss:$28 sps:$4 sm:$0xff]  }
  0xa5   : > { %2207 = vmatpush3.bf16.msra.mxu1 %v2405_v63 }
  0xa6   : > { %1152 = vmatmul.mubr.bf16.gmra.mrb[4].mxu0 %v2369_v41  ;;  %2208 = vmatprep.subr.bf16.mxu1 %v2407_v1  ;;  %v2457_v41 = vld [vmem:[%s2844_s28 + $0x1a0] ss:$28 sps:$4 sm:$0xff]  }
  0xa7   : > { %1249 = vmatmul.mubr.bf16.gmra.mrb[4].mxu1 %v2370_v42  ;;  %1159 = vmatprep.mubr.bf16.mxu0 %v2373_v45  ;;  %v2447_v42 = vld [vmem:[%s2844_s28 + $0xf0] ss:$28 sps:$4 sm:$0xff]   ;;  %v2453_v45 = vld [vmem:[%s2844_s28 + $0x164] ss:$28 sps:$4 sm:$0xff]  }
  0xa8   : > { %1256 = vmatprep.mubr.bf16.mxu1 %v2375_v46  ;;  %2129 = vmatpush3.bf16.msra.mxu0 %v2380_v48  ;;  %v2455_v46 = vld [vmem:[%s2844_s28 + $0x160] ss:$28 sps:$4 sm:$0xff]   ;;  %v2460_v48 = vld [vmem:[%s2844_s28 + $0x198] ss:$28 sps:$4 sm:$0xff]  }
  0xa9   : > { %2130 = vmatprep.subr.bf16.mxu0 %v2387_v53  ;;  %2209 = vmatpush3.bf16.msra.mxu1 %v2407_v1 }
  0xaa   : > { %2210 = vmatprep.subr.bf16.mxu1 %v2415_v7 }
  0xac   : > { %2131 = vmatpush3.bf16.msra.mxu0 %v2388_v54 }
  0xad   : > { %2132 = vmatprep.subr.bf16.mxu0 %v2395_v56  ;;  %2211 = vmatpush3.bf16.msra.mxu1 %v2415_v7 }
  0xae   : > { %1160 = vmatmul.mubr.bf16.gmra.mrb[8].mxu0 %v2377_v49  ;;  %2212 = vmatprep.subr.bf16.mxu1 %v2417_v9 }
  0xaf   : > { %1257 = vmatmul.mubr.bf16.gmra.mrb[8].mxu1 %v2378_v50  ;;  %1167 = vmatprep.mubr.bf16.mxu0 %v2381_v51 }
  0xb0   : > { %1264 = vmatprep.mubr.bf16.mxu1 %v2383_v52  ;;  %2133 = vmatpush3.bf16.msra.mxu0 %v2396_v58 }
  0xb1   : > { %2134 = vmatprep.subr.bf16.mxu0 %v2404_v62  ;;  %2213 = vmatpush3.bf16.msra.mxu1 %v2417_v9 }
  0xb2   : > { %2214 = vmatprep.subr.bf16.mxu1 %v2425_v15 }
  0xb4   : > { %2135 = vmatpush3.bf16.msra.mxu0 %v2406_v0 }
  0xb5   : > { %2136 = vmatprep.subr.bf16.mxu0 %v2414_v6  ;;  %2215 = vmatpush3.bf16.msra.mxu1 %v2425_v15 }
  0xb6   : > { %1168 = vmatmul.mubr.bf16.gmra.mrb[12].mxu0 %v2385_v55  ;;  %2216 = vmatprep.subr.bf16.mxu1 %v2427_v17 }
  0xb7   : > { %1265 = vmatmul.mubr.bf16.gmra.mrb[12].mxu1 %v2386_v57  ;;  %1175 = vmatprep.mubr.bf16.mxu0 %v2389_v60 }
  0xb8   : > { %1272 = vmatprep.mubr.bf16.mxu1 %v2391_v61  ;;  %2137 = vmatpush3.bf16.msra.mxu0 %v2416_v8 }
  0xb9   : > { %2138 = vmatprep.subr.bf16.mxu0 %v2424_v14  ;;  %2217 = vmatpush3.bf16.msra.mxu1 %v2427_v17 }
  0xba   : > { %2218 = vmatprep.subr.bf16.mxu1 %v2431_v22 }
  0xbc   : > { %2139 = vmatpush3.bf16.msra.mxu0 %v2426_v16 }
  0xbd   : > { %2219 = vmatpush3.bf16.msra.mxu1 %v2431_v22 }
  0xbe   : > { %1176 = vmatmul.mubr.bf16.gmra.mrb[16].mxu0 %v2393_v2 }
  0xbf   : > { %1273 = vmatmul.mubr.bf16.gmra.mrb[16].mxu1 %v2394_v3  ;;  %1183 = vmatprep.mubr.bf16.mxu0 %v2398_v4 }
  0xc0   : > { %1280 = vmatprep.mubr.bf16.mxu1 %v2400_v5 }
  0xc6   : > { %1184 = vmatmul.mubr.bf16.gmra.mrb[20].mxu0 %v2402_v10 }
  0xc7   : > { %1281 = vmatmul.mubr.bf16.gmra.mrb[20].mxu1 %v2403_v11  ;;  %1191 = vmatprep.mubr.bf16.mxu0 %v2408_v12 }
  0xc8   : > { %1288 = vmatprep.mubr.bf16.mxu1 %v2410_v13 }
  0xce   : > { %1192 = vmatmul.mubr.bf16.gmra.mrb[24].mxu0 %v2412_v18 }
  0xcf   : > { %1289 = vmatmul.mubr.bf16.gmra.mrb[24].mxu1 %v2413_v19  ;;  %1199 = vmatprep.mubr.bf16.mxu0 %v2418_v20 }
  0xd0   : > { %1296 = vmatprep.mubr.bf16.mxu1 %v2420_v21 }
  0xd6   : > { %1200 = vmatmul.mubr.bf16.gmra.mrb[28].mxu0 %v2422_v23 }
  0xd7   : > { %1297 = vmatmul.mubr.bf16.gmra.mrb[28].mxu1 %v2423_v24  ;;  %1337 = vmatprep.mubr.bf16.mxu0 %v2430_v25 }
  0xd8   : > { %2220 = vmatprep.mubr.bf16.mxu1 %v2432_v26 }
  0xde   : > { %1338 = vmatmul.mubr.bf16.vlgmr.msra.gmra.mrb[32].mxu0 %v2428_v27 }
  0xdf   : > { %2221 = vmatmul.mubr.bf16.vlgmr.msra.gmra.mrb[32].mxu1 %v2433_v28  ;;  %1345 = vmatprep.mubr.bf16.mxu0 %v2434_v29 }
  0xe0   : > { %2224 = vmatprep.mubr.bf16.mxu1 %v2440_v30 }
  0xe6   : > { %1346 = vmatmul.mubr.bf16.gmra.mrb[36].mxu0 %v2436_v31 }
  0xe7   : > { %1353 = vmatprep.mubr.bf16.mxu0 %v2437_v32  ;;  %2225 = vmatmul.mubr.bf16.gmra.mrb[36].mxu1 %v2441_v33 }
  0xe8   : > { %2228 = vmatprep.mubr.bf16.mxu1 %v2448_v34 }
  0xee   : > { %1354 = vmatmul.mubr.bf16.gmra.mrb[40].mxu0 %v2439_v35 }
  0xef   : > { %1361 = vmatprep.mubr.bf16.mxu0 %v2442_v36  ;;  %2229 = vmatmul.mubr.bf16.gmra.mrb[40].mxu1 %v2449_v37 }
  0xf0   : > { %2232 = vmatprep.mubr.bf16.mxu1 %v2456_v38 }
  0xf6   : > { %1362 = vmatmul.mubr.bf16.gmra.mrb[44].mxu0 %v2444_v39 }
  0xf7   : > { %1369 = vmatprep.mubr.bf16.mxu0 %v2445_v40  ;;  %2233 = vmatmul.mubr.bf16.gmra.mrb[44].mxu1 %v2457_v41 }
  0xfe   : > { %1370 = vmatmul.mubr.bf16.gmra.mrb[48].mxu0 %v2447_v42 }
  0xff   : > { %1377 = vmatprep.mubr.bf16.mxu0 %v2450_v43 }
 0x106   : > { %1378 = vmatmul.mubr.bf16.gmra.mrb[52].mxu0 %v2452_v44 }
 0x107   : > { %1385 = vmatprep.mubr.bf16.mxu0 %v2453_v45 }
 0x10e   : > { %1386 = vmatmul.mubr.bf16.gmra.mrb[56].mxu0 %v2455_v46 }
 0x10f   : > { %1393 = vmatprep.mubr.bf16.mxu0 %v2458_v47 }
 0x116   : > { %1394 = vmatmul.mubr.bf16.gmra.mrb[60].mxu0 %v2460_v48 }
 0x171   : > { %v2012_v49 = vpop.f32.mrb[0].mxu0 }
 0x172   : > { %v2076_v50 = vpop.f32.mrb[0].mxu1  ;;  %v2013_v51 = vpop.f32.mrb[1].mxu0 }
 0x173   : > { %v2014_v52 = vadd.f32 %v2013_v51, %v2012_v49  ;;  %v2077_v53 = vpop.f32.mrb[1].mxu1  ;;  %v2015_v54 = vpop.f32.mrb[2].mxu0 }
 0x174   : > { %v2078_v55 = vadd.f32 %v2077_v53, %v2076_v50  ;;  %v2079_v56 = vpop.f32.mrb[2].mxu1  ;;  %v2016_v57 = vpop.f32.mrb[3].mxu0 }
 0x175   : > { %v2017_v58 = vadd.f32 %v2016_v57, %v2015_v54  ;;  %v2080_v59 = vpop.f32.mrb[3].mxu1 }
 0x176   : > { %v2974_v60 = vadd.f32 %v2078_v55, %v2014_v52  ;;  %v2081_v61 = vadd.f32 %v2080_v59, %v2079_v56 }
 0x178   : > { %v2976_v62 = vadd.f32 %v2081_v61, %v2017_v58 }
 0x179   : > { %v2018_v63 = vpop.f32.mrb[4].mxu0 }
 0x17a   : > { %v2082_v0 = vpop.f32.mrb[4].mxu1  ;;  %v2019_v1 = vpop.f32.mrb[5].mxu0 }
 0x17b   : > { %v2020_v2 = vadd.f32 %v2019_v1, %v2018_v63  ;;  %v2083_v3 = vpop.f32.mrb[5].mxu1  ;;  %v2021_v4 = vpop.f32.mrb[6].mxu0 }
 0x17c   : > { %v2084_v5 = vadd.f32 %v2083_v3, %v2082_v0  ;;  %v2085_v6 = vpop.f32.mrb[6].mxu1  ;;  %v2022_v7 = vpop.f32.mrb[7].mxu0 }
 0x17d   : > { %v2023_v8 = vadd.f32 %v2022_v7, %v2021_v4  ;;  %v2086_v9 = vpop.f32.mrb[7].mxu1 }
 0x17e   : > { %v2978_v10 = vadd.f32 %v2084_v5, %v2020_v2  ;;  %v2087_v11 = vadd.f32 %v2086_v9, %v2085_v6 }
 0x180   : > { %v2980_v12 = vadd.f32 %v2087_v11, %v2023_v8 }
 0x181   : > { %v2024_v13 = vpop.f32.mrb[8].mxu0 }
 0x182   : > { %v2088_v14 = vpop.f32.mrb[8].mxu1  ;;  %v2025_v15 = vpop.f32.mrb[9].mxu0 }
 0x183   : > { %v2026_v16 = vadd.f32 %v2025_v15, %v2024_v13  ;;  %v2089_v17 = vpop.f32.mrb[9].mxu1  ;;  %v2027_v18 = vpop.f32.mrb[10].mxu0 }
 0x184   : > { %v2090_v19 = vadd.f32 %v2089_v17, %v2088_v14  ;;  %v2091_v20 = vpop.f32.mrb[10].mxu1  ;;  %v2028_v21 = vpop.f32.mrb[11].mxu0 }
 0x185   : > { %v2029_v22 = vadd.f32 %v2028_v21, %v2027_v18  ;;  %v2092_v23 = vpop.f32.mrb[11].mxu1 }
 0x186   : > { %v2982_v24 = vadd.f32 %v2090_v19, %v2026_v16  ;;  %v2093_v25 = vadd.f32 %v2092_v23, %v2091_v20 }
 0x188   : > { %v2984_v26 = vadd.f32 %v2093_v25, %v2029_v22 }
 0x189   : > { %v2030_v27 = vpop.f32.mrb[12].mxu0 }
 0x18a   : > { %v2094_v28 = vpop.f32.mrb[12].mxu1  ;;  %v2031_v29 = vpop.f32.mrb[13].mxu0 }
 0x18b   : > { %v2032_v30 = vadd.f32 %v2031_v29, %v2030_v27  ;;  %v2095_v31 = vpop.f32.mrb[13].mxu1  ;;  %v2033_v32 = vpop.f32.mrb[14].mxu0 }
 0x18c   : > { %v2096_v33 = vadd.f32 %v2095_v31, %v2094_v28  ;;  %v2097_v34 = vpop.f32.mrb[14].mxu1  ;;  %v2034_v35 = vpop.f32.mrb[15].mxu0 }
 0x18d   : > { %v2035_v36 = vadd.f32 %v2034_v35, %v2033_v32  ;;  %v2098_v37 = vpop.f32.mrb[15].mxu1 }
 0x18e   : > { %v2986_v38 = vadd.f32 %v2096_v33, %v2032_v30  ;;  %v2099_v39 = vadd.f32 %v2098_v37, %v2097_v34 }
 0x190   : > { %v2988_v40 = vadd.f32 %v2099_v39, %v2035_v36 }
 0x191   : > { %v2036_v41 = vpop.f32.mrb[16].mxu0 }
 0x192   : > { %v2100_v42 = vpop.f32.mrb[16].mxu1  ;;  %v2037_v43 = vpop.f32.mrb[17].mxu0 }
 0x193   : > { %v2038_v44 = vadd.f32 %v2037_v43, %v2036_v41  ;;  %v2101_v45 = vpop.f32.mrb[17].mxu1  ;;  %v2039_v46 = vpop.f32.mrb[18].mxu0 }
 0x194   : > { %v2102_v47 = vadd.f32 %v2101_v45, %v2100_v42  ;;  %v2103_v48 = vpop.f32.mrb[18].mxu1  ;;  %v2040_v49 = vpop.f32.mrb[19].mxu0 }
 0x195   : > { %v2041_v50 = vadd.f32 %v2040_v49, %v2039_v46  ;;  %v2104_v51 = vpop.f32.mrb[19].mxu1 }
 0x196   : > { %v2990_v52 = vadd.f32 %v2102_v47, %v2038_v44  ;;  %v2105_v53 = vadd.f32 %v2104_v51, %v2103_v48 }
 0x198   : > { %v2992_v54 = vadd.f32 %v2105_v53, %v2041_v50  ;;  %v295_v53 = vld [vmem:[#allocation2] sm:$0xff] }
 0x199   : > { %v2042_v55 = vpop.f32.mrb[20].mxu0 }
 0x19a   : > { %v2106_v56 = vpop.f32.mrb[20].mxu1  ;;  %v2043_v57 = vpop.f32.mrb[21].mxu0 }
 0x19b   : > { %v2044_v58 = vadd.f32 %v2043_v57, %v2042_v55  ;;  %v2107_v59 = vpop.f32.mrb[21].mxu1  ;;  %v2045_v61 = vpop.f32.mrb[22].mxu0  ;;  %v296_v57 = vld [vmem:[#allocation2 + $0x8] sm:$0xff] }
 0x19c   : > { %v2108_v63 = vadd.f32 %v2107_v59, %v2106_v56  ;;  %v2109_v0 = vpop.f32.mrb[22].mxu1  ;;  %v2046_v1 = vpop.f32.mrb[23].mxu0 }
 0x19d   : > { %v2047_v2 = vadd.f32 %v2046_v1, %v2045_v61  ;;  %v2110_v3 = vpop.f32.mrb[23].mxu1 }
 0x19e   : > { %v2994_v4 = vadd.f32 %v2108_v63, %v2044_v58  ;;  %v2111_v5 = vadd.f32 %v2110_v3, %v2109_v0 }
 0x1a0   : > { %v2996_v6 = vadd.f32 %v2111_v5, %v2047_v2 }
 0x1a1   : > { %v2048_v7 = vpop.f32.mrb[24].mxu0 }
 0x1a2   : > { %v2112_v8 = vpop.f32.mrb[24].mxu1  ;;  %v2049_v9 = vpop.f32.mrb[25].mxu0 }
 0x1a3   : > { %v2050_v11 = vadd.f32 %v2049_v9, %v2048_v7  ;;  %v2113_v13 = vpop.f32.mrb[25].mxu1  ;;  %v2051_v14 = vpop.f32.mrb[26].mxu0 }
 0x1a4   : > { %v2114_v15 = vadd.f32 %v2113_v13, %v2112_v8  ;;  %v2115_v16 = vpop.f32.mrb[26].mxu1  ;;  %v2052_v17 = vpop.f32.mrb[27].mxu0  ;;  %v297_v13 = vld [vmem:[#allocation2 + $0x10] sm:$0xff] }
 0x1a5   : > { %v2053_v18 = vadd.f32 %v2052_v17, %v2051_v14  ;;  %v2116_v19 = vpop.f32.mrb[27].mxu1 }
 0x1a6   : > { %v2998_v20 = vadd.f32 %v2114_v15, %v2050_v11  ;;  %v2117_v21 = vadd.f32 %v2116_v19, %v2115_v16  ;;  %v298_v15 = vld [vmem:[#allocation2 + $0x18] sm:$0xff] }
 0x1a8   : > { %v3000_v22 = vadd.f32 %v2117_v21, %v2053_v18 }
 0x1a9   : > { %v2054_v23 = vpop.f32.mrb[28].mxu0 }
 0x1aa   : > { %v2118_v25 = vpop.f32.mrb[28].mxu1  ;;  %v2055_v27 = vpop.f32.mrb[29].mxu0 }
 0x1ab   : > { %v2056_v28 = vadd.f32 %v2055_v27, %v2054_v23  ;;  %v2119_v29 = vpop.f32.mrb[29].mxu1  ;;  %v2057_v30 = vpop.f32.mrb[30].mxu0 }
 0x1ac   : > { %v2120_v31 = vadd.f32 %v2119_v29, %v2118_v25  ;;  %v2121_v32 = vpop.f32.mrb[30].mxu1  ;;  %v2058_v33 = vpop.f32.mrb[31].mxu0 }
 0x1ad   : > { %v2059_v34 = vadd.f32 %v2058_v33, %v2057_v30  ;;  %v2122_v35 = vpop.f32.mrb[31].mxu1 }
 0x1ae   : > { %v3002_v36 = vadd.f32 %v2120_v31, %v2056_v28  ;;  %v2123_v37 = vadd.f32 %v2122_v35, %v2121_v32  ;;  %v300_v35 = vld [vmem:[#allocation2 + $0x28] sm:$0xff] }
 0x1b0   : > { %v3004_v39 = vadd.f32 %v2123_v37, %v2059_v34 }
 0x1b1   : > { %v2140_v41 = vpop.f32.mrb[32].mxu0 }
 0x1b2   : > { %v2141_v42 = vpop.f32.mrb[33].mxu0  ;;  %v2222_v43 = vpop.f32.mrb[32].mxu1 }
 0x1b3   : > { %v2142_v44 = vadd.f32 %v2141_v42, %v2140_v41  ;;  %v2143_v45 = vpop.f32.mrb[34].mxu0  ;;  %v1436_v46 = vpop.f32.mrb[33].mxu1 }
 0x1b4   : > { %v2144_v47 = vpop.f32.mrb[35].mxu0  ;;  %v2223_v48 = vpop.f32.mrb[34].mxu1 }
 0x1b5   : > { %v2145_v49 = vadd.f32 %v2144_v47, %v2143_v45  ;;  %v1340_v50 = vadd.f32 %v2142_v44, %v2974_v60  ;;  %v1439_v51 = vpop.f32.mrb[35].mxu1 }
 0x1b7   : > { %v1437_v55 = vadd.f32 %v1436_v46, %v1340_v50  ;;  %v1343_v56 = vadd.f32 %v2145_v49, %v2976_v62 }
 0x1b9   : > { %v1499_v58 = vadd.f32 %v1437_v55, %v295_v53  ;;  %v1440_v59 = vadd.f32 %v1439_v51, %v1343_v56  ;;  %v2146_v61 = vpop.f32.mrb[36].mxu0  ;;  %v301_v53 = vld [vmem:[#allocation2 + $0x30] sm:$0xff] }
 0x1ba   : > { %v2147_v63 = vpop.f32.mrb[37].mxu0  ;;  %v2226_v0 = vpop.f32.mrb[36].mxu1 }
 0x1bb   : > { %1515 = vst [vmem:[#allocation2] sm:$0xff] %v1499_v58  ;;  %v1500_v1 = vadd.f32 %v1440_v59, %v296_v57  ;;  %v2148_v2 = vadd.f32 %v2147_v63, %v2146_v61  ;;  %v2149_v3 = vpop.f32.mrb[38].mxu0  ;;  %v1452_v5 = vpop.f32.mrb[37].mxu1  ;;  %v302_v57 = vld [vmem:[#allocation2 + $0x38] sm:$0xff] }
 0x1bc   : > { %v2150_v7 = vpop.f32.mrb[39].mxu0  ;;  %v2227_v8 = vpop.f32.mrb[38].mxu1 }
 0x1bd   : > { %1516 = vst [vmem:[#allocation2 + $0x8] sm:$0xff] %v1500_v1  ;;  %v1348_v60 = vadd.f32 %v2148_v2, %v2978_v10  ;;  %v2151_v9 = vadd.f32 %v2150_v7, %v2149_v3  ;;  %v1455_v11 = vpop.f32.mrb[39].mxu1 }
 0x1bf   : > { %v1445_v62 = vadd.f32 %v2222_v43, %v1348_v60  ;;  %v1351_v14 = vadd.f32 %v2151_v9, %v2980_v12  ;;  %v299_v12 = vld [vmem:[#allocation2 + $0x20] sm:$0xff] }
 0x1c0   : > { %v303_v60 = vld [vmem:[#allocation2 + $0x40] sm:$0xff] }
 0x1c1   : > { %v1501_v16 = vadd.f32 %v1445_v62, %v297_v13  ;;  %v1448_v17 = vadd.f32 %v2223_v48, %v1351_v14  ;;  %v2152_v18 = vpop.f32.mrb[40].mxu0 }
 0x1c2   : > { %v2153_v19 = vpop.f32.mrb[41].mxu0  ;;  %v3010_v21 = vpop.f32.mrb[40].mxu1 }
 0x1c3   : > { %1517 = vst [vmem:[#allocation2 + $0x10] sm:$0xff] %v1501_v16  ;;  %v1502_v23 = vadd.f32 %v1448_v17, %v298_v15  ;;  %v2154_v25 = vadd.f32 %v2153_v19, %v2152_v18  ;;  %v2155_v27 = vpop.f32.mrb[42].mxu0  ;;  %v1468_v28 = vpop.f32.mrb[41].mxu1 }
 0x1c4   : > { %v2156_v29 = vpop.f32.mrb[43].mxu0  ;;  %v2231_v10 = vpop.f32.mrb[42].mxu1 }
 0x1c5   : > { %1518 = vst [vmem:[#allocation2 + $0x18] sm:$0xff] %v1502_v23  ;;  %v2157_v30 = vadd.f32 %v2156_v29, %v2155_v27  ;;  %v1356_v31 = vadd.f32 %v2154_v25, %v2982_v24  ;;  %v1471_v32 = vpop.f32.mrb[43].mxu1  ;;  %v305_v23 = vld [vmem:[#allocation2 + $0x50] sm:$0xff] }
 0x1c7   : > { %v1453_v33 = vadd.f32 %v1452_v5, %v1356_v31  ;;  %v1359_v34 = vadd.f32 %v2157_v30, %v2984_v26 }
 0x1c9   : > { %v1503_v37 = vadd.f32 %v1453_v33, %v299_v12  ;;  %v1456_v41 = vadd.f32 %v1455_v11, %v1359_v34  ;;  %v2158_v42 = vpop.f32.mrb[44].mxu0  ;;  %v304_v11 = vld [vmem:[#allocation2 + $0x48] sm:$0xff] }
 0x1ca   : > { %v2159_v43 = vpop.f32.mrb[45].mxu0  ;;  %v3014_v44 = vpop.f32.mrb[44].mxu1 }
 0x1cb   : > { %1519 = vst [vmem:[#allocation2 + $0x20] sm:$0xff] %v1503_v37  ;;  %v1504_v45 = vadd.f32 %v1456_v41, %v300_v35  ;;  %v2160_v46 = vadd.f32 %v2159_v43, %v2158_v42  ;;  %v2161_v47 = vpop.f32.mrb[46].mxu0  ;;  %v1484_v48 = vpop.f32.mrb[45].mxu1  ;;  %v307_v35 = vld [vmem:[#allocation2 + $0x60] sm:$0xff]  ;;  %v308_v41 = vld [vmem:[#allocation2 + $0x68] sm:$0xff] }
 0x1cc   : > { %v2162_v49 = vpop.f32.mrb[47].mxu0  ;;  %v3016_v50 = vpop.f32.mrb[46].mxu1 }
 0x1cd   : > { %1520 = vst [vmem:[#allocation2 + $0x28] sm:$0xff] %v1504_v45  ;;  %v1364_v24 = vadd.f32 %v2160_v46, %v2986_v38  ;;  %v2163_v51 = vadd.f32 %v2162_v49, %v2161_v47  ;;  %v1487_v26 = vpop.f32.mrb[47].mxu1 }
 0x1cf   : > { %v1461_v55 = vadd.f32 %v2226_v0, %v1364_v24  ;;  %v1367_v56 = vadd.f32 %v2163_v51, %v2988_v40 }
 0x1d1   : > { %v1505_v58 = vadd.f32 %v1461_v55, %v301_v53  ;;  %v1464_v59 = vadd.f32 %v2227_v8, %v1367_v56  ;;  %v2164_v61 = vpop.f32.mrb[48].mxu0  ;;  %v309_v53 = vld [vmem:[#allocation2 + $0x70] sm:$0xff] }
 0x1d2   : > { %v2165_v63 = vpop.f32.mrb[49].mxu0 }
 0x1d3   : > { %1521 = vst [vmem:[#allocation2 + $0x30] sm:$0xff] %v1505_v58  ;;  %v1506_v1 = vadd.f32 %v1464_v59, %v302_v57  ;;  %v2166_v2 = vadd.f32 %v2165_v63, %v2164_v61  ;;  %v2167_v3 = vpop.f32.mrb[50].mxu0  ;;  %v1535_v57 = vld [vmem:[#allocation2] sm:$0xff] (!%p1909_p6)  ;;  %v1536_v58 = vld [vmem:[#allocation2 + $0x8] sm:$0xff] (!%p1909_p6)  ;;  %v1537_v63 = vld [vmem:[#allocation2 + $0x10] sm:$0xff] (!%p1909_p6) }
 0x1d4   : > { %v2168_v5 = vpop.f32.mrb[51].mxu0  ;;  %v1910_v59 = vld [vmem:[#allocation8] ss:$0 sm:$0xff] (!%p1909_p6) }
 0x1d5   : > { %1522 = vst [vmem:[#allocation2 + $0x38] sm:$0xff] %v1506_v1  ;;  %v2169_v7 = vadd.f32 %v2168_v5, %v2167_v3  ;;  %v1372_v38 = vadd.f32 %v2166_v2, %v2990_v52  ;;  %v1559_v61 = vadd.f32 (!%p1909_p6), %v1910_v59, %v1536_v58  ;;  %v1538_v1 = vld [vmem:[#allocation2 + $0x18] sm:$0xff] (!%p1909_p6)  ;;  %v1560_v2 = vadd.f32 (!%p1909_p6), %v1910_v59, %v1537_v63  ;;  %v1540_v3 = vld [vmem:[#allocation2 + $0x28] sm:$0xff] (!%p1909_p6) }
 0x1d7   : > { %v1469_v9 = vadd.f32 %v1468_v28, %v1372_v38  ;;  %v1375_v0 = vadd.f32 %v2169_v7, %v2992_v54  ;;  %v306_v54 = vld [vmem:[#allocation2 + $0x58] sm:$0xff] }
 0x1d9   : > { %v1507_v40 = vadd.f32 %v1469_v9, %v303_v60  ;;  %v1472_v13 = vadd.f32 %v1471_v32, %v1375_v0  ;;  %v2170_v62 = vpop.f32.mrb[52].mxu0  ;;  %v1575_v60 = vmax.f32 (!%p1909_p6), %v1559_v61, 0.0  ;;  %v1563_v9 = vadd.f32 (!%p1909_p6), %v1910_v59, %v1540_v3 }
 0x1da   : > { %v2171_v8 = vpop.f32.mrb[53].mxu0  ;;  %v1541_v7 = vld [vmem:[#allocation2 + $0x30] sm:$0xff] (!%p1909_p6) }
 0x1db   : > { %1523 = vst [vmem:[#allocation2 + $0x40] sm:$0xff] %v1507_v40  ;;  %v1508_v14 = vadd.f32 %v1472_v13, %v304_v11  ;;  %v2172_v15 = vadd.f32 %v2171_v8, %v2170_v62  ;;  %v2173_v16 = vpop.f32.mrb[54].mxu0  ;;  %v1564_v0 = vadd.f32 (!%p1909_p6), %v1910_v59, %v1541_v7  ;;  %v1576_v62 = vmax.f32 (!%p1909_p6), %v1560_v2, 0.0 }
 0x1dc   : > { %v2174_v17 = vpop.f32.mrb[55].mxu0 }
 0x1dd   : > { %1524 = vst [vmem:[#allocation2 + $0x48] sm:$0xff] %v1508_v14  ;;  %v1380_v18 = vadd.f32 %v2172_v15, %v2994_v4  ;;  %v2175_v19 = vadd.f32 %v2174_v17, %v2173_v16 }
 0x1df   : > { %v1477_v52 = vadd.f32 %v3010_v21, %v1380_v18  ;;  %v1383_v25 = vadd.f32 %v2175_v19, %v2996_v6  ;;  %v1579_v19 = vmax.f32 (!%p1909_p6), %v1563_v9, 0.0 }
 0x1e1   : > { %v1509_v27 = vadd.f32 %v1477_v52, %v305_v23  ;;  %v1480_v28 = vadd.f32 %v2231_v10, %v1383_v25  ;;  %v2176_v29 = vpop.f32.mrb[56].mxu0  ;;  %v1580_v23 = vmax.f32 (!%p1909_p6), %v1564_v0, 0.0 }
 0x1e2   : > { %v2177_v30 = vpop.f32.mrb[57].mxu0  ;;  %v1543_v11 = vld [vmem:[#allocation2 + $0x40] sm:$0xff] (!%p1909_p6) }
 0x1e3   : > { %1525 = vst [vmem:[#allocation2 + $0x50] sm:$0xff] %v1509_v27  ;;  %v1510_v31 = vadd.f32 %v1480_v28, %v306_v54  ;;  %v2178_v32 = vadd.f32 %v2177_v30, %v2176_v29  ;;  %v2179_v12 = vpop.f32.mrb[58].mxu0  ;;  %v1566_v52 = vadd.f32 (!%p1909_p6), %v1910_v59, %v1543_v11 }
 0x1e4   : > { %v2180_v33 = vpop.f32.mrb[59].mxu0  ;;  %v1544_v40 = vld [vmem:[#allocation2 + $0x48] sm:$0xff] (!%p1909_p6) }
 0x1e5   : > { %1526 = vst [vmem:[#allocation2 + $0x58] sm:$0xff] %v1510_v31  ;;  %v2181_v34 = vadd.f32 %v2180_v33, %v2179_v12  ;;  %v1388_v4 = vadd.f32 %v2178_v32, %v2998_v20  ;;  %v1567_v28 = vadd.f32 (!%p1909_p6), %v1910_v59, %v1544_v40  ;;  %v1582_v12 = vmax.f32 (!%p1909_p6), %v1566_v52, 0.0 }
 0x1e7   : > { %v1485_v37 = vadd.f32 %v1484_v48, %v1388_v4  ;;  %v1391_v21 = vadd.f32 %v2181_v34, %v3000_v22  ;;  %v310_v22 = vld [vmem:[#allocation2 + $0x78] sm:$0xff] }
 0x1e9   : > { %v1511_v6 = vadd.f32 %v1485_v37, %v307_v35  ;;  %v1488_v42 = vadd.f32 %v1487_v26, %v1391_v21  ;;  %v2182_v43 = vpop.f32.mrb[60].mxu0  ;;  %v1583_v35 = vmax.f32 (!%p1909_p6), %v1567_v28, 0.0 }
 0x1ea   : > { %v2183_v10 = vpop.f32.mrb[61].mxu0  ;;  %v1545_v13 = vld [vmem:[#allocation2 + $0x50] sm:$0xff] (!%p1909_p6) }
 0x1eb   : > { %1527 = vst [vmem:[#allocation2 + $0x60] sm:$0xff] %v1511_v6  ;;  %v1512_v45 = vadd.f32 %v1488_v42, %v308_v41  ;;  %v2184_v46 = vadd.f32 %v2183_v10, %v2182_v43  ;;  %v2185_v47 = vpop.f32.mrb[62].mxu0  ;;  %v1568_v29 = vadd.f32 (!%p1909_p6), %v1910_v59, %v1545_v13  ;;  %v1972_v10 = vpack.c.bf16 (!%p1909_p6), %v1583_v35, %v1582_v12 }
 0x1ec   : > { %v2186_v49 = vpop.f32.mrb[63].mxu0  ;;  %v1546_v16 = vld [vmem:[#allocation2 + $0x58] sm:$0xff] (!%p1909_p6) }
 0x1ed   : > { %1528 = vst [vmem:[#allocation2 + $0x68] sm:$0xff] %v1512_v45  ;;  %v1396_v24 = vadd.f32 %v2184_v46, %v3002_v36  ;;  %v2187_v51 = vadd.f32 %v2186_v49, %v2185_v47  ;;  %v1558_v36 = vadd.f32 (!%p1909_p6), %v1910_v59, %v1535_v57  ;;  %v1569_v33 = vadd.f32 (!%p1909_p6), %v1910_v59, %v1546_v16 }
 0x1ee   : > { %v1584_v37 = vmax.f32 (!%p1909_p6), %v1568_v29, 0.0  ;;  %1992 = vst [vmem:[#allocation9 + $0x20] sm:$0xff] (!%p1909_p6), %v1972_v10  }
 0x1ef   : > { %v1493_v20 = vadd.f32 %v3014_v44, %v1396_v24  ;;  %v1399_v48 = vadd.f32 %v2187_v51, %v3004_v39  ;;  %1534 = sbr.rel (%p1909_p6) target bundleno = 516 (0x204), region = 52  ;;  %v1539_v44 = vld [vmem:[#allocation2 + $0x20] sm:$0xff] (!%p1909_p6)  ;;  %v1561_v39 = vadd.f32 (!%p1909_p6), %v1910_v59, %v1538_v1  ;;  %v1574_v38 = vmax.f32 (!%p1909_p6), %v1558_v36, 0.0 }
 0x1f0   : > { %v1562_v5 = vadd.f32 (!%p1909_p6), %v1910_v59, %v1539_v44  ;;  %v1585_v41 = vmax.f32 (!%p1909_p6), %v1569_v33, 0.0 }
 0x1f1   : > { %v1513_v55 = vadd.f32 %v1493_v20, %v309_v53  ;;  %v1496_v26 = vadd.f32 %v3016_v50, %v1399_v48  ;;  %v1542_v50 = vld [vmem:[#allocation2 + $0x38] sm:$0xff] (!%p1909_p6)  ;;  %v1577_v8 = vmax.f32 (!%p1909_p6), %v1561_v39, 0.0  ;;  %v1952_v18 = vpack.c.bf16 (!%p1909_p6), %v1575_v60, %v1574_v38 }
 0x1f2   : > { %v1578_v14 = vmax.f32 (!%p1909_p6), %v1562_v5, 0.0  ;;  %v1565_v15 = vadd.f32 (!%p1909_p6), %v1910_v59, %v1542_v50  ;;  %v1547_v17 = vld [vmem:[#allocation2 + $0x60] sm:$0xff] (!%p1909_p6)  ;;  %v1977_v46 = vpack.c.bf16 (!%p1909_p6), %v1585_v41, %v1584_v37 }
 0x1f3   : > { %1529 = vst [vmem:[#allocation2 + $0x70] sm:$0xff] %v1513_v55  ;;  %v1514_v56 = vadd.f32 %v1496_v26, %v310_v22  ;;  %v1957_v54 = vpack.c.bf16 (!%p1909_p6), %v1577_v8, %v1576_v62  ;;  %1953 = vst [vmem:[#allocation9] sm:$0xff] (!%p1909_p6), %v1952_v18   ;;  %v1570_v34 = vadd.f32 (!%p1909_p6), %v1910_v59, %v1547_v17 }
 0x1f4   : > { %v1548_v25 = vld [vmem:[#allocation2 + $0x68] sm:$0xff] (!%p1909_p6)  ;;  %v1581_v27 = vmax.f32 (!%p1909_p6), %v1565_v15, 0.0  ;;  %v1962_v32 = vpack.c.bf16 (!%p1909_p6), %v1579_v19, %v1578_v14  ;;  %1993 = vst [vmem:[#allocation9 + $0x28] sm:$0xff] (!%p1909_p6), %v1977_v46  }
 0x1f5   : > { %1530 = vst [vmem:[#allocation2 + $0x78] sm:$0xff] %v1514_v56  ;;  %1989 = vst [vmem:[#allocation9 + $0x8] sm:$0xff] (!%p1909_p6), %v1957_v54   ;;  %v1571_v21 = vadd.f32 (!%p1909_p6), %v1910_v59, %v1548_v25  ;;  %v1586_v6 = vmax.f32 (!%p1909_p6), %v1570_v34, 0.0 }
 0x1f6   : > { %v1967_v4 = vpack.c.bf16 %v1581_v27, %v1580_v23  ;;  %1990 = vst [vmem:[#allocation9 + $0x10] sm:$0xff] %v1962_v32  }
 0x1f7   : > { %v1587_v45 = vmax.f32 %v1571_v21, 0.0 }
 0x1f8   : > { %1991 = vst [vmem:[#allocation9 + $0x18] sm:$0xff] %v1967_v4  }
 0x1f9   : > { %v1982_v24 = vpack.c.bf16 %v1587_v45, %v1586_v6 }
 0x1fa   : > { %v1549_v30 = vld [vmem:[#allocation2 + $0x70] sm:$0xff] }
 0x1fb   : > { %v1572_v42 = vadd.f32 %v1910_v59, %v1549_v30  ;;  %1994 = vst [vmem:[#allocation9 + $0x30] sm:$0xff] %v1982_v24  }
 0x1fc   : > { %v1550_v31 = vld [vmem:[#allocation2 + $0x78] sm:$0xff] }
 0x1fd   : > { %v1573_v43 = vadd.f32 %v1910_v59, %v1550_v31  ;;  %v1588_v47 = vmax.f32 %v1572_v42, 0.0 }
 0x1ff   : > { %v1589_v49 = vmax.f32 %v1573_v43, 0.0 }
 0x201   : > { %v1987_v51 = vpack.c.bf16 %v1589_v49, %v1588_v47 }
 0x203   : > { %1995 = vst [vmem:[#allocation9 + $0x38] sm:$0xff] %v1987_v51  }
 0x204 PF: > { %p2265_p8 = scmp.eq.s32.totalorder %s2700_s18, 1  ;;  %s2648_s15 = smov [#allocation9]  }
 0x205   : > { %s1680_s20 = sshll.u32 %s2648_s15, 4  ;;  %s1681_s20 = int_to_ptr.vmem [resolvable:$true] %s1680_s20 }
 0x206   : > { %s2549_s21 = scalar_lea.vmem %s1681_s20, 1024  ;;  %p2556_p0 = scmp.lt.s32.totalorder %s1681_s20, %s1681_s20 }
 0x207   : > { %p2550_p13 = scmp.ne.s32.totalorder %s1681_s20, %s2549_s21  ;;  %p2557_p5 = scmp.lt.s32.totalorder %s2549_s21, %s2549_s21 }
 0x209   : > { %p2551_p1 = pnand %p2550_p13, %p2265_p8  ;;  %p2558_p7 = por %p2557_p5, %p2556_p0 }
 0x20b   : > { %p2552_p2 = pneg %p2551_p1 }
 0x20d   : > { %p2559_p9 = pnand %p2558_p7, %p2552_p2 }
 0x20f   : > { %2562 = shalt.err (!%p2559_p9)
}
 0x210   : > { %s2563_s6 = scalar_lea.hbm %s3076_s3, 1024 }
 0x211   : > { %p2564_p12 = scmp.ne.s32.totalorder %s3076_s3, %s2563_s6  ;;  %p2569_p10 = scmp.lt.u32.totalorder %s2563_s6, %s3076_s3 }
 0x213   : > { %p2565_p4 = pnand %p2564_p12, %p2265_p8 }
 0x215   : > { %p2566_p11 = pneg %p2565_p4 }
 0x217   : > { %p2571_p3 = pnand %p2569_p10, %p2566_p11 }
 0x219   : > { %2574 = shalt.err (!%p2571_p3)
}
 0x21a   : > { %s2649_s9 = smov 64   ;;  %s2650_s10 = smov 4  }
 0x21b   : > { %2248 = dma.vmem_to_hbm [thread:$0]  (%p2265_p8), %s1681_s20, 1024, %s3076_s3, [#allocation5], %s2649_s9, %s2649_s9, %s2650_s10  }
 0x21c   : > { %2612 = dma.done.wait (%p2265_p8), [#allocation5], 1024  }
 0x21d   : > { %2614 = vsyncadd (%p2265_p8), [#allocation5], 4294966272 }
 0x21e PF: > { %s20_s17 = sadd.s32 1, %s2637_s17   ;;  %s3090_s12 = smov %s2621_s13 }
 0x21f   : > { %p17_p6 = scmp.ge.s32.totalorder %s20_s17, 4   ;;  %s3091_s13 = smov %s2625_s14 }
 0x220   : > { %s3092_s14 = smov %s2772_s5  ;;  %s3093_s15 = smov %s2633_s16 }
 0x221   : > { %s3094_s16 = smov %s3096_s11  ;;  %19 = sbr.rel (!%p17_p6) target bundleno = 7 (0x7), region = 96 }
 0x228   :  { %1696 = vsyncpa [#allocation4], 1 }
 0x229   :  { %1698 = vsyncpa [#allocation4 + $0x1], 1 }
 0x22a   :  { %1699 = vsyncpa [#allocation7], 1 }
 0x22b   :  { %1701 = vsyncpa [#allocation7 + $0x1], 1 }
 0x22c   :  { %1702 = vsyncpa [#allocation5], 1 }
 0x22d   :  { %1704 = vsyncpa [#allocation5 + $0x1], 1 }

// kernel: mri_model_forward.16
= control target key start
LH: loop header
LB: loop body
LE: loop exit
PB: predicated region body
PF: predicated region fallthrough
CT: control target
= control target key end

     0   :  { %8 = vsyncpa [#allocation4], 0  ;;  %s827_s0 = inlined_call_operand.hbm [shape: bf16[128,64], index: 0, kind: input, shape index: {}]   ;;  %s828_s1 = inlined_call_operand.hbm [shape: bf16[64,128], index: 1, kind: input, shape index: {}]   ;;  %s829_s2 = inlined_call_operand.hbm [shape: f32[1,128], index: 2, kind: input, shape index: {}]   ;;  %s830_s3 = inlined_call_operand.hbm [shape: bf16[128,128], index: 3, kind: output, shape index: {}]  }
   0x1   :  { %9 = vsyncpa [#allocation7], 0 }
   0x2   :  { %10 = vsyncpa [#allocation5], 0  ;;  %s729_s12 = smov [#allocation6]   ;;  %s730_s14 = smov [#allocation3]  }
   0x3   :  { %s28_s13 = sshll.u32 %s729_s12, 4  ;;  %s16_s15 = sshll.u32 %s730_s14, 4  ;;  %s29_s13 = int_to_ptr.vmem [resolvable:$true] %s28_s13  ;;  %s755_s15 = int_to_ptr.vmem [resolvable:$true] %s16_s15 }
   0x4   :  { %s635_s18 = scalar_lea.hbm %s828_s1, 512 }
   0x5   :  { %p636_p0 = scmp.ne.s32.totalorder %s828_s1, %s635_s18  ;;  %p639_p1 = scmp.lt.u32.totalorder %s635_s18, %s828_s1 }
   0x7   :  { %p641_p2 = pnand %p639_p1, %p636_p0 }
   0x9   :  { %644 = shalt.err (!%p641_p2)
}
   0xa   :  { %s645_s23 = scalar_lea.vmem %s29_s13, 512  ;;  %p650_p4 = scmp.lt.s32.totalorder %s29_s13, %s29_s13 }
   0xb   :  { %p646_p3 = scmp.ne.s32.totalorder %s29_s13, %s645_s23  ;;  %p651_p5 = scmp.lt.s32.totalorder %s645_s23, %s645_s23 }
   0xd   :  { %p652_p6 = por %p651_p5, %p650_p4 }
   0xf   :  { %p653_p7 = pnand %p652_p6, %p646_p3 }
  0x11   :  { %656 = shalt.err (!%p653_p7)
}
  0x12   :  { %s731_s24 = smov 64   ;;  %s732_s25 = smov 4  }
  0x13   :  { %34 = dma.hbm_to_vmem [thread:$0]  %s828_s1, 512, %s29_s13, [#allocation7], %s731_s24, %s731_s24, %s732_s25  }
  0x14   :  { %s657_s30 = scalar_lea.hbm %s827_s0, 1024 }
  0x15   :  { %p658_p8 = scmp.ne.s32.totalorder %s827_s0, %s657_s30  ;;  %p661_p9 = scmp.lt.u32.totalorder %s657_s30, %s827_s0 }
  0x17   :  { %p663_p10 = pnand %p661_p9, %p658_p8 }
  0x19   :  { %666 = shalt.err (!%p663_p10)
}
  0x1a   :  { %s667_s8 = scalar_lea.vmem %s755_s15, 1024  ;;  %p672_p12 = scmp.lt.s32.totalorder %s755_s15, %s755_s15 }
  0x1b   :  { %p668_p11 = scmp.ne.s32.totalorder %s755_s15, %s667_s8  ;;  %p673_p13 = scmp.lt.s32.totalorder %s667_s8, %s667_s8 }
  0x1d   :  { %p674_p0 = por %p673_p13, %p672_p12 }
  0x1f   :  { %p675_p1 = pnand %p674_p0, %p668_p11 }
  0x21   :  { %678 = shalt.err (!%p675_p1)
}
  0x22   :  { %22 = dma.hbm_to_vmem [thread:$0]  %s827_s0, 1024, %s755_s15, [#allocation4], %s731_s24, %s731_s24, %s732_s25  }
  0x23   :  { %s733_s10 = smov [#allocation8]   ;;  %s679_s14 = scalar_lea.hbm %s829_s2, 16 }
  0x24   :  { %s41_s11 = sshll.u32 %s733_s10, 4  ;;  %p680_p2 = scmp.ne.s32.totalorder %s829_s2, %s679_s14  ;;  %s42_s11 = int_to_ptr.vmem [resolvable:$true] %s41_s11 }
  0x25   :  { %p683_p3 = scmp.lt.u32.totalorder %s679_s14, %s829_s2 }
  0x27   :  { %p685_p4 = pnand %p683_p3, %p680_p2 }
  0x29   :  { %688 = shalt.err (!%p685_p4)
}
  0x2a   :  { %s689_s20 = scalar_lea.vmem %s42_s11, 16  ;;  %s693_s0 = scalar_lea.vmem %s42_s11, 32 }
  0x2b   :  { %p690_p5 = scmp.ne.s32.totalorder %s42_s11, %s689_s20  ;;  %p694_p6 = scmp.lt.s32.totalorder %s42_s11, %s42_s11 }
  0x2c   :  { %p695_p7 = scmp.lt.s32.totalorder %s693_s0, %s689_s20 }
  0x2e   :  { %p696_p8 = por %p695_p7, %p694_p6 }
  0x30   :  { %p697_p9 = pnand %p696_p8, %p690_p5 }
  0x32   :  { %700 = shalt.err (!%p697_p9)
}
  0x33   :  { %44 = dma.hbm_to_vmem [thread:$0]  %s829_s2, 16, %s42_s11, [#allocation7]  }
  0x34   :  { %723 = dma.done.wait [#allocation4], 1024  }
  0x35   :  { %724 = vsyncadd [#allocation4], 4294966272 }
  0x36   :  { %725 = dma.done.wait [#allocation7], 528  }
  0x37   :  { %726 = vsyncadd [#allocation7], 4294966768  ;;  %v623_v0 = vld [vmem:[#allocation6] sm:$0xff]   ;;  %v624_v1 = vld [vmem:[#allocation6 + $0x8] sm:$0xff]   ;;  %vm179_vm0 = vcmask 523264   ;;  %s734_s2 = smov [#allocation9]  }
  0x38   :  { %585 = vmatprep.subr.bf16.mxu0 %v623_v0  ;;  %609 = vmatprep.subr.bf16.mxu1 %v623_v0  ;;  %v625_v2 = vld [vmem:[#allocation6 + $0x10] sm:$0xff]   ;;  %v627_v3 = vld [vmem:[#allocation3] sm:$0xff]   ;;  %v626_v5 = vld [vmem:[#allocation6 + $0x18] sm:$0xff]   ;;  %s460_s22 = sshll.u32 %s734_s2, 4  ;;  %s461_s22 = int_to_ptr.vmem [resolvable:$true] %s460_s22 }
  0x39   :  { %586 = vmatpush3.bf16.msra.mxu0 %v623_v0  ;;  %613 = vmatpush3.bf16.msra.mxu1 %v623_v0  ;;  %v628_v4 = vld [vmem:[#allocation3 + $0x20] sm:$0xff]   ;;  %v629_v6 = vld [vmem:[#allocation3 + $0x8] sm:$0xff]   ;;  %v631_v8 = vld [vmem:[#allocation3 + $0x10] sm:$0xff]   ;;  %s701_s23 = scalar_lea.vmem %s461_s22, 1024  ;;  %p706_p11 = scmp.lt.s32.totalorder %s461_s22, %s461_s22 }
  0x3a   :  { %587 = vmatprep.subr.bf16.mxu0 %v624_v1  ;;  %610 = vmatprep.subr.bf16.mxu1 %v624_v1  ;;  %v630_v7 = vld [vmem:[#allocation3 + $0x28] sm:$0xff]   ;;  %v632_v9 = vld [vmem:[#allocation3 + $0x30] sm:$0xff]   ;;  %v633_v10 = vld [vmem:[#allocation3 + $0x18] sm:$0xff]   ;;  %p702_p10 = scmp.ne.s32.totalorder %s461_s22, %s701_s23  ;;  %p707_p12 = scmp.lt.s32.totalorder %s701_s23, %s701_s23 }
  0x3b   :  { %593 = vmatprep.mubr.msk.bf16.mxu0 %vm179_vm0, %v627_v3  ;;  %601 = vmatprep.mubr.msk.bf16.mxu1 %vm179_vm0, %v628_v4  ;;  %v634_v11 = vld [vmem:[#allocation3 + $0x38] sm:$0xff]   ;;  %v493_v13 = vld [vmem:[#allocation8] ss:$0 sm:$0xff] }
  0x3c   :  { %p708_p13 = por %p707_p12, %p706_p11 }
  0x3d   :  { %588 = vmatpush3.bf16.msra.mxu0 %v624_v1  ;;  %614 = vmatpush3.bf16.msra.mxu1 %v624_v1 }
  0x3e   :  { %589 = vmatprep.subr.bf16.mxu0 %v625_v2  ;;  %611 = vmatprep.subr.bf16.mxu1 %v625_v2  ;;  %p709_p0 = pnand %p708_p13, %p702_p10 }
  0x41   :  { %590 = vmatpush3.bf16.msra.mxu0 %v625_v2  ;;  %615 = vmatpush3.bf16.msra.mxu1 %v625_v2 }
  0x42   :  { %591 = vmatprep.subr.bf16.mxu0 %v626_v5  ;;  %612 = vmatprep.subr.bf16.mxu1 %v626_v5 }
  0x45   :  { %592 = vmatpush3.bf16.msra.mxu0 %v626_v5  ;;  %616 = vmatpush3.bf16.msra.mxu1 %v626_v5 }
  0x48   :  { %594 = vmatmul.mubr.msk.bf16.vlgmr.msra.gmra.mrb[0].mxu0 %vm179_vm0, %v629_v6  ;;  %602 = vmatmul.mubr.msk.bf16.vlgmr.msra.gmra.mrb[0].mxu1 %vm179_vm0, %v630_v7 }
  0x49   :  { %597 = vmatprep.mubr.msk.bf16.mxu0 %vm179_vm0, %v631_v8  ;;  %605 = vmatprep.mubr.msk.bf16.mxu1 %vm179_vm0, %v632_v9 }
  0x50   :  { %598 = vmatmul.mubr.msk.bf16.gmra.mrb[4].mxu0 %vm179_vm0, %v633_v10  ;;  %606 = vmatmul.mubr.msk.bf16.gmra.mrb[4].mxu1 %vm179_vm0, %v634_v11 }
 0x11b   :  { %v595_v12 = vpop.f32.mrb[0].mxu0  ;;  %v603_v14 = vpop.f32.mrb[0].mxu1 }
 0x11c   :  { %v238_v15 = vpop.f32.mrb[1].mxu0  ;;  %v270_v16 = vpop.f32.mrb[1].mxu1  ;;  %v361_v19 = vadd.f32 %v595_v12, %v493_v13  ;;  %v369_v20 = vadd.f32 %v603_v14, %v493_v13 }
 0x11d   :  { %v596_v17 = vpop.f32.mrb[2].mxu0  ;;  %v604_v18 = vpop.f32.mrb[2].mxu1  ;;  %v359_v25 = vadd.f32 %v493_v13, %v238_v15  ;;  %v367_v26 = vadd.f32 %v493_v13, %v270_v16 }
 0x11e   :  { %v362_v21 = vadd.f32 %v596_v17, %v493_v13  ;;  %v370_v22 = vadd.f32 %v604_v18, %v493_v13  ;;  %v241_v23 = vpop.f32.mrb[3].mxu0  ;;  %v273_v24 = vpop.f32.mrb[3].mxu1 }
 0x11f   :  { %v360_v27 = vadd.f32 %v493_v13, %v241_v23  ;;  %v368_v28 = vadd.f32 %v493_v13, %v273_v24 }
 0x120   :  { %v534_v29 = vpack.c.bf16 %v362_v21, %v361_v19  ;;  %v554_v30 = vpack.c.bf16 %v370_v22, %v369_v20 }
 0x121   :  { %v529_v31 = vpack.c.bf16 %v360_v27, %v359_v25  ;;  %v549_v32 = vpack.c.bf16 %v368_v28, %v367_v26 }
 0x122   :  { %566 = vst [vmem:[#allocation9 + $0x8] sm:$0xff] %v534_v29   ;;  %570 = vst [vmem:[#allocation9 + $0x28] sm:$0xff] %v554_v30  }
 0x123   :  { %530 = vst [vmem:[#allocation9] sm:$0xff] %v529_v31   ;;  %569 = vst [vmem:[#allocation9 + $0x20] sm:$0xff] %v549_v32   ;;  %v599_v33 = vpop.f32.mrb[4].mxu0  ;;  %v607_v34 = vpop.f32.mrb[4].mxu1 }
 0x124   :  { %v254_v35 = vpop.f32.mrb[5].mxu0  ;;  %v286_v36 = vpop.f32.mrb[5].mxu1  ;;  %v365_v39 = vadd.f32 %v599_v33, %v493_v13  ;;  %v373_v40 = vadd.f32 %v607_v34, %v493_v13 }
 0x125   :  { %v600_v37 = vpop.f32.mrb[6].mxu0  ;;  %v608_v38 = vpop.f32.mrb[6].mxu1  ;;  %v363_v45 = vadd.f32 %v493_v13, %v254_v35  ;;  %v371_v46 = vadd.f32 %v493_v13, %v286_v36 }
 0x126   :  { %v366_v41 = vadd.f32 %v600_v37, %v493_v13  ;;  %v374_v42 = vadd.f32 %v608_v38, %v493_v13  ;;  %v257_v43 = vpop.f32.mrb[7].mxu0  ;;  %v289_v44 = vpop.f32.mrb[7].mxu1 }
 0x127   :  { %v364_v47 = vadd.f32 %v493_v13, %v257_v43  ;;  %v372_v48 = vadd.f32 %v493_v13, %v289_v44 }
 0x128   :  { %v544_v49 = vpack.c.bf16 %v366_v41, %v365_v39  ;;  %v564_v50 = vpack.c.bf16 %v374_v42, %v373_v40 }
 0x129   :  { %v539_v51 = vpack.c.bf16 %v364_v47, %v363_v45  ;;  %v559_v52 = vpack.c.bf16 %v372_v48, %v371_v46 }
 0x12a   :  { %568 = vst [vmem:[#allocation9 + $0x18] sm:$0xff] %v544_v49   ;;  %572 = vst [vmem:[#allocation9 + $0x38] sm:$0xff] %v564_v50  }
 0x12b   :  { %567 = vst [vmem:[#allocation9 + $0x10] sm:$0xff] %v539_v51   ;;  %571 = vst [vmem:[#allocation9 + $0x30] sm:$0xff] %v559_v52  }
 0x12c   :  { %712 = shalt.err (!%p709_p0)
}
 0x12d   :  { %s713_s28 = scalar_lea.hbm %s830_s3, 1024 }
 0x12e   :  { %p714_p1 = scmp.ne.s32.totalorder %s830_s3, %s713_s28  ;;  %p717_p2 = scmp.lt.u32.totalorder %s713_s28, %s830_s3 }
 0x130   :  { %p719_p3 = pnand %p717_p2, %p714_p1 }
 0x132   :  { %722 = shalt.err (!%p719_p3)
}
 0x133   :  { %466 = dma.vmem_to_hbm [thread:$0]  %s461_s22, 1024, %s830_s3, [#allocation5], %s731_s24, %s731_s24, %s732_s25  }
 0x134   :  { %727 = dma.done.wait [#allocation5], 1024  }
 0x135   :  { %728 = vsyncadd [#allocation5], 4294966272 }
 0x136   :  { %470 = vsyncpa [#allocation4], 1 }
 0x137   :  { %471 = vsyncpa [#allocation7], 1 }
 0x138   :  { %472 = vsyncpa [#allocation5], 1 }

// kernel: mri_model_forward.17
= control target key start
LH: loop header
LB: loop body
LE: loop exit
PB: predicated region body
PF: predicated region fallthrough
CT: control target
= control target key end

     0   :  { %s2291_s0 = inlined_call_operand.hbm [shape: bf16[128,3456], index: 0, kind: input, shape index: {}]   ;;  %s2292_s1 = inlined_call_operand.hbm [shape: bf16[3456,128], index: 1, kind: input, shape index: {}]   ;;  %s2293_s2 = inlined_call_operand.hbm [shape: f32[1,128], index: 2, kind: input, shape index: {}]   ;;  %s2294_s3 = inlined_call_operand.hbm [shape: bf16[128,128], index: 3, kind: input, shape index: {}]   ;;  %s2295_s4 = inlined_call_operand.hbm [shape: bf16[128,128], index: 4, kind: output, shape index: {}]  }
   0x1   :  { %2302 = sst [smem:[#allocation17_spill]] %s2291_s0 }
   0x2   :  { %9 = vsyncpa [#allocation4], 0 }
   0x3   :  { %11 = vsyncpa [#allocation4 + $0x1], 0 }
   0x4   :  { %12 = vsyncpa [#allocation7], 0 }
   0x5   :  { %14 = vsyncpa [#allocation7 + $0x1], 0 }
   0x6   :  { %15 = vsyncpa [#allocation10], 0 }
   0x7   :  { %16 = vsyncpa [#allocation5], 0  ;;  %s1962_s15 = smov 0   ;;  %s1964_s16 = smov 0  }
   0x8   :  { %s1966_s17 = smov 0   ;;  %s1968_s18 = smov 0  }
   0x9   :  { %s1970_s19 = smov 0   ;;  %s1972_s20 = smov 0  }
   0xa LB: > { %s1991_s21 = sadd.s32 4294967295, %s1922_s20   ;;  %s50_s22 = sadd.s32 1, %s1910_s17  ;;  %s1922_s20 = sphi %s1972_s20, %s22_s20   ;;  %s1918_s19 = sphi %s1970_s19, %s2322_s19   ;;  %s1914_s18 = sphi %s1968_s18, %s2321_s18   ;;  %s1910_s17 = sphi %s1966_s17, %s2320_s17   ;;  %s1906_s16 = sphi %s1964_s16, %s2319_s16   ;;  %s1902_s15 = sphi %s1962_s15, %s2318_s15  }
   0xb   : > { %p57_p0 = scmp.ne.s32.totalorder %s1910_s17, %s1906_s16  ;;  %p58_p1 = scmp.eq.s32.totalorder %s1922_s20, 0 }
   0xc   : > { %p63_p2 = scmp.ne.s32.totalorder %s1906_s16, %s1902_s15  ;;  %p2296_p3 = scmp.eq.s32.totalorder %s1991_s21, 0 }
   0xd   : > { %p59_p4 = por %p58_p1, %p57_p0  ;;  %p1263_p5 = scmp.ge.s32.totalorder %s1922_s20, 1 }
   0xe   : > { %p2002_p6 = por %p2296_p3, %p63_p2  ;;  %p184_p7 = scmp.lt.s32.totalorder %s1922_s20, 10 }
   0xf   : > { %s1924_s25 = smov [#allocation8]   ;;  %p1594_p10 = scmp.lt.s32.totalorder %s1922_s20, 9 }
  0x10   : > { %s2303_s23 = scalar_select %p2002_p6, 1, 0 }
  0x11   : > { %p2007_p8 = pnand %p1263_p5, %p184_p7  ;;  %s199_s26 = sshll.u32 %s1924_s25, 4  ;;  %s200_s26 = int_to_ptr.vmem [resolvable:$true] %s199_s26 }
  0x12   : > { %p2020_p12 = pnand %p1594_p10, %p59_p4  ;;  %s1925_s29 = smov [#allocation9]  }
  0x13   : > { %s2304_s24 = scalar_select %p2007_p8, 1, 0 }
  0x14   : > { %p1578_p9 = pneg %p2007_p8  ;;  %s213_s30 = sshll.u32 %s1925_s29, 4  ;;  %s214_s30 = int_to_ptr.vmem [resolvable:$true] %s213_s30 }
  0x15   : > { %s2306_s28 = scalar_select %p2020_p12, 1, 0 }
  0x16   : > { %p2016_p11 = pnand %p1578_p9, %p2296_p3  ;;  %s1714_s7 = scalar_lea.hbm %s2293_s2, 16 }
  0x17   : > { %p1715_p13 = scmp.ne.s32.totalorder %s2293_s2, %s1714_s7  ;;  %p1721_p4 = scmp.lt.u32.totalorder %s1714_s7, %s2293_s2 }
  0x18   : > { %p1716_p0 = pneg %p2016_p11 }
  0x1a   : > { %p1717_p1 = pnand %p1716_p0, %p1715_p13 }
  0x1c   : > { %p1718_p2 = pneg %p1717_p1 }
  0x1e   : > { %p1723_p5 = pnand %p1721_p4, %p1718_p2 }
  0x20   : > { %1726 = shalt.err (!%p1723_p5)
}
  0x21   : > { %s1727_s12 = scalar_lea.vmem %s200_s26, 16  ;;  %s1734_s13 = scalar_lea.vmem %s200_s26, 32 }
  0x22   : > { %p1728_p7 = scmp.ne.s32.totalorder %s200_s26, %s1727_s12  ;;  %p1735_p3 = scmp.lt.s32.totalorder %s200_s26, %s200_s26 }
  0x23   : > { %p1736_p6 = scmp.lt.s32.totalorder %s1734_s13, %s1727_s12 }
  0x24   : > { %p1730_p9 = pnand %p1728_p7, %p1716_p0 }
  0x25   : > { %p1737_p8 = por %p1736_p6, %p1735_p3 }
  0x26   : > { %p1731_p10 = pneg %p1730_p9 }
  0x28   : > { %p1738_p12 = pnand %p1737_p8, %p1731_p10 }
  0x2a   : > { %1741 = shalt.err (!%p1738_p12)
}
  0x2b   : > { %1581 = dma.hbm_to_vmem [thread:$0]  (!%p2016_p11), %s2293_s2, 16, %s200_s26, [#allocation7]  }
  0x2c   : > { %s1742_s5 = scalar_lea.hbm %s2294_s3, 1024 }
  0x2d   : > { %p1743_p13 = scmp.ne.s32.totalorder %s2294_s3, %s1742_s5  ;;  %p1749_p8 = scmp.lt.u32.totalorder %s1742_s5, %s2294_s3 }
  0x2f   : > { %p1745_p3 = pnand %p1743_p13, %p1716_p0 }
  0x31   : > { %p1746_p6 = pneg %p1745_p3 }
  0x33   : > { %p1751_p12 = pnand %p1749_p8, %p1746_p6 }
  0x35   : > { %1754 = shalt.err (!%p1751_p12)
}
  0x36   : > { %s1755_s26 = scalar_lea.vmem %s214_s30, 1024  ;;  %p1763_p5 = scmp.lt.s32.totalorder %s214_s30, %s214_s30 }
  0x37   : > { %p1756_p1 = scmp.ne.s32.totalorder %s214_s30, %s1755_s26  ;;  %p1764_p7 = scmp.lt.s32.totalorder %s1755_s26, %s1755_s26 }
  0x39   : > { %p1758_p2 = pnand %p1756_p1, %p1716_p0  ;;  %p1765_p9 = por %p1764_p7, %p1763_p5 }
  0x3b   : > { %p1759_p4 = pneg %p1758_p2 }
  0x3d   : > { %p1766_p10 = pnand %p1765_p9, %p1759_p4 }
  0x3f   : > { %1769 = shalt.err (!%p1766_p10)
}
  0x40   : > { %s2300_s10 = smov 64   ;;  %s2301_s11 = smov 4  }
  0x41   : > { %1584 = dma.hbm_to_vmem [thread:$0]  (!%p2016_p11), %s2294_s3, 1024, %s214_s30, [#allocation10], %s2300_s10, %s2300_s10, %s2301_s11  }
  0x42   : > { %s227_s14 = sand.u32 1, %s1910_s17   ;;  %s34_s15 = sadd.s32 1, %s1918_s19 }
  0x43   : > { %p35_p0 = scmp.ge.s32.totalorder %s34_s15, 9  ;;  %s2071_s25 = smul.u32 192, %s227_s14 }
  0x44   : > { %s1343_s29 = smul.u32 192, %s1918_s19  ;;  %s2307_s0 = sld [smem:[#allocation17_spill]] }
  0x45   : > { %s2324_s15 = smov (%p35_p0, %s34_s15), 0  ;;  %s231_s7 = scalar_lea.vmem [#allocation3], %s2071_s25 }
  0x46   : > { %s46_s30 = ssub.s32 %s1918_s19, %s2324_s15  ;;  %s241_s8 = sshll.u32 %s231_s7, 4  ;;  %s2084_s8 = int_to_ptr.vmem [resolvable:$true] %s241_s8 }
  0x47   : > { %p48_p11 = scmp.eq.s32.totalorder %s46_s30, 0  ;;  %s2091_s26 = scalar_lea.sflag [#allocation4], %s227_s14 }
  0x48   : > { %p2308_p3 = scmp.ne.s32.totalorder %s2306_s28, 0 }
  0x49   : > { %s2089_s9 = scalar_select %p48_p11, %s1910_s17, %s50_s22  }
  0x4a   : > { %s2079_s6 = scalar_lea.hbm %s2307_s0, %s1343_s29  ;;  %p1772_p6 = pneg %p2308_p3 }
  0x4b   : > { %s1770_s12 = scalar_lea.hbm %s2079_s6, 3072  ;;  %s1775_s5 = scalar_lea.hbm %s2307_s0, 27648 }
  0x4c   : > { %p1771_p13 = scmp.ne.s32.totalorder %s2079_s6, %s1770_s12  ;;  %p1776_p1 = scmp.lt.u32.totalorder %s2079_s6, %s2307_s0 }
  0x4d   : > { %p1777_p2 = scmp.lt.u32.totalorder %s1775_s5, %s1770_s12  ;;  %p1779_p5 = scmp.lt.u32.totalorder %s1770_s12, %s2079_s6 }
  0x4e   : > { %p1773_p8 = pnand %p1772_p6, %p1771_p13 }
  0x4f   : > { %p1778_p4 = por %p1777_p2, %p1776_p1 }
  0x50   : > { %p1774_p12 = pneg %p1773_p8 }
  0x51   : > { %p1780_p7 = por %p1779_p5, %p1778_p4 }
  0x53   : > { %p1781_p9 = pnand %p1780_p7, %p1774_p12 }
  0x55   : > { %1784 = shalt.err (!%p1781_p9)
}
  0x56   : > { %s1785_s22 = scalar_lea.vmem %s2084_s8, 3072  ;;  %s1928_s14 = smov [#allocation3]  }
  0x57   : > { %p1786_p10 = scmp.ne.s32.totalorder %s2084_s8, %s1785_s22  ;;  %s1790_s7 = sshll.u32 %s1928_s14, 4  ;;  %s1791_s7 = int_to_ptr.vmem [resolvable:$false] %s1790_s7 }
  0x58   : > { %s1792_s13 = scalar_lea.vmem %s1791_s7, 6144  ;;  %p1793_p13 = scmp.lt.s32.totalorder %s2084_s8, %s1791_s7 }
  0x59   : > { %p1788_p0 = pnand %p1786_p10, %p1772_p6  ;;  %p1794_p8 = scmp.lt.s32.totalorder %s1792_s13, %s1785_s22 }
  0x5b   : > { %p1789_p11 = pneg %p1788_p0  ;;  %p1795_p1 = por %p1794_p8, %p1793_p13 }
  0x5d   : > { %p1796_p2 = pnand %p1795_p1, %p1789_p11 }
  0x5f   : > { %1799 = shalt.err (!%p1796_p2)
}
  0x60   : > { %s1929_s12 = smov 1728   ;;  %s1930_s29 = smov 192  }
  0x61   : > { %s1931_s5 = smov 12   ;;  %s251_s27 = sand.u32 1, %s1922_s20  }
  0x62   : > { %1588 = dma.hbm_to_vmem [thread:$0]  (!%p2308_p3), %s2079_s6, 3072, %s2084_s8, %s2091_s26, %s1929_s12, %s1930_s29, %s1931_s5  }
  0x63   : > { %s1344_s30 = smul.u32 3072, %s1918_s19  ;;  %s255_s14 = scalar_lea.vmem [#allocation6], %s2071_s25 }
  0x64   : > { %s263_s22 = sshll.u32 %s255_s14, 4  ;;  %s2129_s11 = scalar_lea.sflag [#allocation7], %s251_s27  ;;  %s2127_s22 = int_to_ptr.vmem [resolvable:$true] %s263_s22 }
  0x65   : > { %s2125_s10 = scalar_lea.hbm %s2292_s1, %s1344_s30  ;;  %s1805_s8 = scalar_lea.hbm %s2292_s1, 27648 }
  0x66   : > { %s1800_s0 = scalar_lea.hbm %s2125_s10, 3072  ;;  %p1806_p7 = scmp.lt.u32.totalorder %s2125_s10, %s2292_s1 }
  0x67   : > { %p1801_p12 = scmp.ne.s32.totalorder %s2125_s10, %s1800_s0  ;;  %p1807_p9 = scmp.lt.u32.totalorder %s1805_s8, %s1800_s0 }
  0x68   : > { %p1809_p0 = scmp.lt.u32.totalorder %s1800_s0, %s2125_s10 }
  0x69   : > { %p1803_p4 = pnand %p1801_p12, %p1772_p6  ;;  %p1808_p10 = por %p1807_p9, %p1806_p7 }
  0x6b   : > { %p1804_p5 = pneg %p1803_p4  ;;  %p1810_p11 = por %p1809_p0, %p1808_p10 }
  0x6d   : > { %p1811_p13 = pnand %p1810_p11, %p1804_p5 }
  0x6f   : > { %1814 = shalt.err (!%p1811_p13)
}
  0x70   : > { %s1815_s29 = scalar_lea.vmem %s2127_s22, 3072  ;;  %s1932_s5 = smov [#allocation6]  }
  0x71   : > { %p1816_p8 = scmp.ne.s32.totalorder %s2127_s22, %s1815_s29  ;;  %s1820_s27 = sshll.u32 %s1932_s5, 4  ;;  %s1821_s27 = int_to_ptr.vmem [resolvable:$false] %s1820_s27 }
  0x72   : > { %s1822_s30 = scalar_lea.vmem %s1821_s27, 6144  ;;  %p1823_p12 = scmp.lt.s32.totalorder %s2127_s22, %s1821_s27 }
  0x73   : > { %p1818_p1 = pnand %p1816_p8, %p1772_p6  ;;  %p1824_p4 = scmp.lt.s32.totalorder %s1822_s30, %s1815_s29 }
  0x75   : > { %p1819_p2 = pneg %p1818_p1  ;;  %p1825_p7 = por %p1824_p4, %p1823_p12 }
  0x77   : > { %p1826_p9 = pnand %p1825_p7, %p1819_p2 }
  0x79   : > { %1829 = shalt.err (!%p1826_p9)
}
  0x7a   : > { %s2309_s0 = smov 4   ;;  %s2310_s14 = smov 64  }
  0x7b   : > { %1591 = dma.hbm_to_vmem [thread:$0]  (!%p2308_p3), %s2125_s10, 3072, %s2127_s22, %s2129_s11, %s2310_s14, %s2310_s14, %s2309_s0  }
  0x7c   : > { %p2311_p6 = scmp.ne.s32.totalorder %s2304_s24, 0 }
  0x7d   : > { %s277_s7 = sand.u32 (!%p2311_p6), 1, %s1906_s16   ;;  %p2312_p5 = scmp.ne.s32.totalorder (!%p2311_p6), %s2303_s23, 0 }
  0x7e   : > { %275 = sbr.rel (%p2311_p6) target bundleno = 506 (0x1fa), region = 36  ;;  %s278_s25 = scalar_lea.sflag (!%p2311_p6), [#allocation4], %s277_s7 }
  0x7f   : > { %s1561_s13 = smul.u32 (!%p2311_p6), 192, %s277_s7 }
  0x81   : > { %s2161_s6 = scalar_lea.vmem (!%p2311_p6), [#allocation3], %s1561_s13 }
  0x85   : > { %1881 = dma.done.wait (%p2312_p5), %s278_s25, 3072  }
  0x86   : > { %1883 = vsyncadd (%p2312_p5), %s278_s25, 4294964224  ;;  %s286_s28 = sand.u32 1, %s1991_s21   ;;  %s2168_s10 = scalar_lea.vmem [#allocation6], %s1561_s13 }
  0x87   : > { %s287_s8 = scalar_lea.sflag [#allocation7], %s286_s28 }
  0x88   : > { %1885 = dma.done.wait (%p2312_p5), %s287_s8, 3072  }
  0x89   : > { %1887 = vsyncadd (%p2312_p5), %s287_s8, 4294964224  ;;  %p2313_p3 = scmp.eq.s32.totalorder %s1991_s21, 0 }
  0x8b   : > { %1889 = dma.done.wait (%p2313_p3), [#allocation7], 16   ;;  %p2314_p10 = pmov %p2313_p3 }
  0x8c   : > { %p2315_p0 = pmov %p2313_p3 }
  0x8d   : > { %1891 = vsyncadd (%p2314_p10), [#allocation7], 4294967280 }
  0x8e   : > { %1893 = dma.done.wait (%p2315_p0), [#allocation10], 1024   ;;  %p2316_p11 = pmov %p2315_p0 }
  0x8f   : > { %p1272_p13 = scmp.ne.s32.totalorder %s1914_s18, 0 }
  0x90   : > { %1895 = vsyncadd (%p2316_p11), [#allocation10], 4294966272  ;;  %v1933_v0 = vmov (!%p1272_p13), 0.0  }
  0x91   : > { %332 = sbr.rel (%p1272_p13) target bundleno = 153 (0x99), region = 56  ;;  %333 = vst [vmem:[#allocation2] sm:$0xff] (!%p1272_p13), %v1933_v0  ;;  %334 = vst [vmem:[#allocation2 + $0x8] sm:$0xff] (!%p1272_p13), %v1933_v0 }
  0x92   : > { %335 = vst [vmem:[#allocation2 + $0x10] sm:$0xff] (!%p1272_p13), %v1933_v0  ;;  %336 = vst [vmem:[#allocation2 + $0x18] sm:$0xff] (!%p1272_p13), %v1933_v0 }
  0x93   : > { %337 = vst [vmem:[#allocation2 + $0x20] sm:$0xff] (!%p1272_p13), %v1933_v0  ;;  %338 = vst [vmem:[#allocation2 + $0x28] sm:$0xff] (!%p1272_p13), %v1933_v0 }
  0x94   : > { %339 = vst [vmem:[#allocation2 + $0x30] sm:$0xff] (!%p1272_p13), %v1933_v0  ;;  %340 = vst [vmem:[#allocation2 + $0x38] sm:$0xff] (!%p1272_p13), %v1933_v0 }
  0x95   : > { %341 = vst [vmem:[#allocation2 + $0x40] sm:$0xff] (!%p1272_p13), %v1933_v0  ;;  %342 = vst [vmem:[#allocation2 + $0x48] sm:$0xff] (!%p1272_p13), %v1933_v0 }
  0x96   : > { %343 = vst [vmem:[#allocation2 + $0x50] sm:$0xff] (!%p1272_p13), %v1933_v0  ;;  %344 = vst [vmem:[#allocation2 + $0x58] sm:$0xff] (!%p1272_p13), %v1933_v0 }
  0x97   : > { %345 = vst [vmem:[#allocation2 + $0x60] sm:$0xff] (!%p1272_p13), %v1933_v0  ;;  %346 = vst [vmem:[#allocation2 + $0x68] sm:$0xff] (!%p1272_p13), %v1933_v0 }
  0x98   : > { %347 = vst [vmem:[#allocation2 + $0x70] sm:$0xff] %v1933_v0  ;;  %348 = vst [vmem:[#allocation2 + $0x78] sm:$0xff] %v1933_v0 }
  0x99 PF: > { %v1658_v1 = vld [vmem:[%s2168_s10 + $0x40] sm:$0xff]   ;;  %v1661_v4 = vld [vmem:[%s2168_s10 + $0x48] sm:$0xff]   ;;  %v1664_v7 = vld [vmem:[%s2168_s10 + $0x50] sm:$0xff]   ;;  %p1321_p8 = scmp.ne.s32.totalorder %s1914_s18, 8 }
  0x9a   : > { %v1659_v2 = vld [vmem:[%s2168_s10] sm:$0xff]   ;;  %1447 = vmatprep.subr.bf16.mxu0 %v1658_v1  ;;  %v1662_v5 = vld [vmem:[%s2168_s10 + $0x8] sm:$0xff]   ;;  %v1665_v8 = vld [vmem:[%s2168_s10 + $0x10] sm:$0xff]  }
  0x9b   : > { %v1660_v3 = vld [vmem:[%s2168_s10 + $0x80] sm:$0xff]   ;;  %1448 = vmatpush3.bf16.msra.mxu0 %v1659_v2  ;;  %v1663_v6 = vld [vmem:[%s2168_s10 + $0x88] sm:$0xff]   ;;  %v1666_v9 = vld [vmem:[%s2168_s10 + $0x90] sm:$0xff]  }
  0x9c   : > { %1527 = vmatprep.subr.bf16.mxu1 %v1660_v3  ;;  %1449 = vmatprep.subr.bf16.mxu0 %v1661_v4  ;;  %v1667_v10 = vld [vmem:[%s2168_s10 + $0x58] sm:$0xff]   ;;  %v1670_v13 = vld [vmem:[%s2168_s10 + $0x60] sm:$0xff]   ;;  %v1673_v16 = vld [vmem:[%s2168_s10 + $0x68] sm:$0xff]  }
  0x9d   : > { %1528 = vmatpush3.bf16.msra.mxu1 %v1660_v3  ;;  %v1668_v11 = vld [vmem:[%s2168_s10 + $0x18] sm:$0xff]   ;;  %v1672_v14 = vld [vmem:[%s2168_s10 + $0xa0] sm:$0xff]   ;;  %v1675_v17 = vld [vmem:[%s2168_s10 + $0xa8] sm:$0xff]  }
  0x9e   : > { %1529 = vmatprep.subr.bf16.mxu1 %v1663_v6  ;;  %v1669_v12 = vld [vmem:[%s2168_s10 + $0x98] sm:$0xff]   ;;  %v1671_v15 = vld [vmem:[%s2168_s10 + $0x20] sm:$0xff]   ;;  %v1674_v18 = vld [vmem:[%s2168_s10 + $0x28] sm:$0xff]  }
  0x9f   : > { %1450 = vmatpush3.bf16.msra.mxu0 %v1662_v5  ;;  %v1676_v19 = vld [vmem:[%s2168_s10 + $0x70] sm:$0xff]   ;;  %v1679_v22 = vld [vmem:[%s2168_s10 + $0x78] sm:$0xff]   ;;  %v1682_v27 = vld [vmem:[%s2161_s6] ss:$12 sps:$4 sm:$0xff]  }
  0xa0   : > { %1451 = vmatprep.subr.bf16.mxu0 %v1664_v7  ;;  %v1677_v20 = vld [vmem:[%s2168_s10 + $0x30] sm:$0xff]   ;;  %v1681_v23 = vld [vmem:[%s2168_s10 + $0xb8] sm:$0xff]   ;;  %v1686_v29 = vld [vmem:[%s2161_s6 + $0x20] ss:$12 sps:$4 sm:$0xff]  }
  0xa1   : > { %1530 = vmatpush3.bf16.msra.mxu1 %v1663_v6  ;;  %v1678_v21 = vld [vmem:[%s2168_s10 + $0xb0] sm:$0xff]   ;;  %v1680_v26 = vld [vmem:[%s2168_s10 + $0x38] sm:$0xff]   ;;  %v1702_v37 = vld [vmem:[%s2161_s6 + $0x80] ss:$12 sps:$4 sm:$0xff]  }
  0xa2   : > { %1531 = vmatprep.subr.bf16.mxu1 %v1666_v9  ;;  %v1684_v24 = vld [vmem:[%s2161_s6 + $0x4] ss:$12 sps:$4 sm:$0xff]   ;;  %v1685_v25 = vld [vmem:[%s2161_s6 + $0x8] ss:$12 sps:$4 sm:$0xff]   ;;  %v1695_v36 = vld [vmem:[%s2161_s6 + $0x4c] ss:$12 sps:$4 sm:$0xff]  }
  0xa3   : > { %1452 = vmatpush3.bf16.msra.mxu0 %v1665_v8  ;;  %749 = vmatprep.mubr.bf16.mxu0 %v1684_v24  ;;  %v1687_v28 = vld [vmem:[%s2161_s6 + $0x1c] ss:$12 sps:$4 sm:$0xff]   ;;  %v1693_v30 = vld [vmem:[%s2161_s6 + $0x38] ss:$12 sps:$4 sm:$0xff]   ;;  %v1690_v32 = vld [vmem:[%s2161_s6 + $0x34] ss:$12 sps:$4 sm:$0xff]  }
  0xa4   : > { %1453 = vmatprep.subr.bf16.mxu0 %v1667_v10  ;;  %1543 = vmatprep.mubr.bf16.mxu1 %v1685_v25  ;;  %v1689_v31 = vld [vmem:[%s2161_s6 + $0x18] ss:$12 sps:$4 sm:$0xff]   ;;  %v1694_v33 = vld [vmem:[%s2161_s6 + $0x50] ss:$12 sps:$4 sm:$0xff]   ;;  %v1701_v34 = vld [vmem:[%s2161_s6 + $0x68] ss:$12 sps:$4 sm:$0xff]  }
  0xa5   : > { %1532 = vmatpush3.bf16.msra.mxu1 %v1666_v9  ;;  %v1692_v35 = vld [vmem:[%s2161_s6 + $0x30] ss:$12 sps:$4 sm:$0xff]   ;;  %v1709_v38 = vld [vmem:[%s2161_s6 + $0x98] ss:$12 sps:$4 sm:$0xff]   ;;  %v1697_v39 = vld [vmem:[%s2161_s6 + $0x48] ss:$12 sps:$4 sm:$0xff]  }
  0xa6   : > { %1533 = vmatprep.subr.bf16.mxu1 %v1669_v12  ;;  %v1698_v40 = vld [vmem:[%s2161_s6 + $0x64] ss:$12 sps:$4 sm:$0xff]   ;;  %v1700_v42 = vld [vmem:[%s2161_s6 + $0x60] ss:$12 sps:$4 sm:$0xff]   ;;  %v1703_v43 = vld [vmem:[%s2161_s6 + $0x7c] ss:$12 sps:$4 sm:$0xff]  }
  0xa7   : > { %1454 = vmatpush3.bf16.msra.mxu0 %v1668_v11  ;;  %v1710_v41 = vld [vmem:[%s2161_s6 + $0xb0] ss:$12 sps:$4 sm:$0xff]   ;;  %v1705_v44 = vld [vmem:[%s2161_s6 + $0x78] ss:$12 sps:$4 sm:$0xff]   ;;  %v1706_v45 = vld [vmem:[%s2161_s6 + $0x94] ss:$12 sps:$4 sm:$0xff]  }
  0xa8   : > { %1455 = vmatprep.subr.bf16.mxu0 %v1670_v13  ;;  %v1708_v46 = vld [vmem:[%s2161_s6 + $0x90] ss:$12 sps:$4 sm:$0xff]   ;;  %v1711_v47 = vld [vmem:[%s2161_s6 + $0xac] ss:$12 sps:$4 sm:$0xff]   ;;  %v1713_v48 = vld [vmem:[%s2161_s6 + $0xa8] ss:$12 sps:$4 sm:$0xff]  }
  0xa9   : > { %1534 = vmatpush3.bf16.msra.mxu1 %v1669_v12  ;;  %v349_v55 = vld [vmem:[#allocation2] sm:$0xff]  ;;  %v350_v60 = vld [vmem:[#allocation2 + $0x8] sm:$0xff]  ;;  %v351_v6 = vld [vmem:[#allocation2 + $0x10] sm:$0xff] }
  0xaa   : > { %1535 = vmatprep.subr.bf16.mxu1 %v1672_v14  ;;  %v352_v12 = vld [vmem:[#allocation2 + $0x18] sm:$0xff] }
  0xab   : > { %1456 = vmatpush3.bf16.msra.mxu0 %v1671_v15 }
  0xac   : > { %1457 = vmatprep.subr.bf16.mxu0 %v1673_v16 }
  0xad   : > { %1536 = vmatpush3.bf16.msra.mxu1 %v1672_v14 }
  0xae   : > { %1537 = vmatprep.subr.bf16.mxu1 %v1675_v17 }
  0xaf   : > { %1458 = vmatpush3.bf16.msra.mxu0 %v1674_v18 }
  0xb0   : > { %1459 = vmatprep.subr.bf16.mxu0 %v1676_v19 }
  0xb1   : > { %1538 = vmatpush3.bf16.msra.mxu1 %v1675_v17 }
  0xb2   : > { %1539 = vmatprep.subr.bf16.mxu1 %v1678_v21 }
  0xb3   : > { %1460 = vmatpush3.bf16.msra.mxu0 %v1677_v20 }
  0xb4   : > { %1461 = vmatprep.subr.bf16.mxu0 %v1679_v22 }
  0xb5   : > { %1540 = vmatpush3.bf16.msra.mxu1 %v1678_v21 }
  0xb6   : > { %1541 = vmatprep.subr.bf16.mxu1 %v1681_v23 }
  0xb7   : > { %1462 = vmatpush3.bf16.msra.mxu0 %v1680_v26 }
  0xb9   : > { %1542 = vmatpush3.bf16.msra.mxu1 %v1681_v23  ;;  %v353_v23 = vld [vmem:[#allocation2 + $0x20] sm:$0xff] }
  0xba   : > { %750 = vmatmul.mubr.bf16.vlgmr.msra.gmra.mrb[0].mxu0 %v1682_v27 }
  0xbb   : > { %757 = vmatprep.mubr.bf16.mxu0 %v1687_v28  ;;  %v354_v28 = vld [vmem:[#allocation2 + $0x28] sm:$0xff] }
  0xbc   : > { %1544 = vmatmul.mubr.bf16.vlgmr.msra.gmra.mrb[0].mxu1 %v1686_v29 }
  0xbd   : > { %1547 = vmatprep.mubr.bf16.mxu1 %v1693_v30 }
  0xc2   : > { %758 = vmatmul.mubr.bf16.gmra.mrb[4].mxu0 %v1689_v31 }
  0xc3   : > { %765 = vmatprep.mubr.bf16.mxu0 %v1690_v32 }
  0xc4   : > { %1548 = vmatmul.mubr.bf16.gmra.mrb[4].mxu1 %v1694_v33 }
  0xc5   : > { %1551 = vmatprep.mubr.bf16.mxu1 %v1701_v34 }
  0xca   : > { %766 = vmatmul.mubr.bf16.gmra.mrb[8].mxu0 %v1692_v35 }
  0xcb   : > { %773 = vmatprep.mubr.bf16.mxu0 %v1695_v36 }
  0xcc   : > { %1552 = vmatmul.mubr.bf16.gmra.mrb[8].mxu1 %v1702_v37 }
  0xcd   : > { %1555 = vmatprep.mubr.bf16.mxu1 %v1709_v38  ;;  %v355_v38 = vld [vmem:[#allocation2 + $0x30] sm:$0xff] }
  0xd2   : > { %774 = vmatmul.mubr.bf16.gmra.mrb[12].mxu0 %v1697_v39 }
  0xd3   : > { %781 = vmatprep.mubr.bf16.mxu0 %v1698_v40 }
  0xd4   : > { %1556 = vmatmul.mubr.bf16.gmra.mrb[12].mxu1 %v1710_v41 }
  0xda   : > { %782 = vmatmul.mubr.bf16.gmra.mrb[16].mxu0 %v1700_v42 }
  0xdb   : > { %789 = vmatprep.mubr.bf16.mxu0 %v1703_v43 }
  0xe2   : > { %790 = vmatmul.mubr.bf16.gmra.mrb[20].mxu0 %v1705_v44  ;;  %v356_v44 = vld [vmem:[#allocation2 + $0x38] sm:$0xff] }
  0xe3   : > { %797 = vmatprep.mubr.bf16.mxu0 %v1706_v45 }
  0xea   : > { %798 = vmatmul.mubr.bf16.gmra.mrb[24].mxu0 %v1708_v46 }
  0xeb   : > { %805 = vmatprep.mubr.bf16.mxu0 %v1711_v47 }
  0xf2   : > { %806 = vmatmul.mubr.bf16.gmra.mrb[28].mxu0 %v1713_v48 }
 0x18d   : > { %v1463_v49 = vpop.f32.mrb[0].mxu0 }
 0x18e   : > { %v1464_v50 = vpop.f32.mrb[1].mxu0 }
 0x18f   : > { %v1465_v51 = vadd.f32 %v1464_v50, %v1463_v49  ;;  %v1466_v52 = vpop.f32.mrb[2].mxu0  ;;  %v1545_v53 = vpop.f32.mrb[0].mxu1 }
 0x190   : > { %v1467_v54 = vpop.f32.mrb[3].mxu0  ;;  %v848_v56 = vpop.f32.mrb[1].mxu1 }
 0x191   : > { %v1468_v57 = vadd.f32 %v1467_v54, %v1466_v52  ;;  %v849_v58 = vadd.f32 %v1465_v51, %v848_v56  ;;  %v1546_v59 = vpop.f32.mrb[2].mxu1  ;;  %v357_v54 = vld [vmem:[#allocation2 + $0x40] sm:$0xff] }
 0x192   : > { %v851_v61 = vpop.f32.mrb[3].mxu1 }
 0x193   : > { %v911_v62 = vadd.f32 %v849_v58, %v349_v55  ;;  %v852_v63 = vadd.f32 %v1468_v57, %v851_v61  ;;  %v358_v57 = vld [vmem:[#allocation2 + $0x48] sm:$0xff] }
 0x195   : > { %927 = vst [vmem:[#allocation2] sm:$0xff] %v911_v62  ;;  %v912_v0 = vadd.f32 %v852_v63, %v350_v60  ;;  %v1469_v1 = vpop.f32.mrb[4].mxu0 }
 0x196   : > { %v1470_v2 = vpop.f32.mrb[5].mxu0 }
 0x197   : > { %928 = vst [vmem:[#allocation2 + $0x8] sm:$0xff] %v912_v0  ;;  %v1471_v3 = vadd.f32 %v1470_v2, %v1469_v1  ;;  %v1472_v4 = vpop.f32.mrb[6].mxu0  ;;  %v1549_v5 = vpop.f32.mrb[4].mxu1  ;;  %v359_v1 = vld [vmem:[#allocation2 + $0x50] sm:$0xff] }
 0x198   : > { %v1473_v7 = vpop.f32.mrb[7].mxu0  ;;  %v864_v8 = vpop.f32.mrb[5].mxu1 }
 0x199   : > { %v857_v9 = vadd.f32 %v1545_v53, %v1471_v3  ;;  %v1474_v10 = vadd.f32 %v1473_v7, %v1472_v4  ;;  %v1550_v11 = vpop.f32.mrb[6].mxu1 }
 0x19a   : > { %v867_v13 = vpop.f32.mrb[7].mxu1 }
 0x19b   : > { %v913_v14 = vadd.f32 %v857_v9, %v351_v6  ;;  %v860_v15 = vadd.f32 %v1546_v59, %v1474_v10 }
 0x19d   : > { %929 = vst [vmem:[#allocation2 + $0x10] sm:$0xff] %v913_v14  ;;  %v914_v16 = vadd.f32 %v860_v15, %v352_v12  ;;  %v1475_v17 = vpop.f32.mrb[8].mxu0  ;;  %v361_v14 = vld [vmem:[#allocation2 + $0x60] sm:$0xff] }
 0x19e   : > { %v1476_v18 = vpop.f32.mrb[9].mxu0 }
 0x19f   : > { %930 = vst [vmem:[#allocation2 + $0x18] sm:$0xff] %v914_v16  ;;  %v1477_v19 = vadd.f32 %v1476_v18, %v1475_v17  ;;  %v1478_v20 = vpop.f32.mrb[10].mxu0  ;;  %v1553_v21 = vpop.f32.mrb[8].mxu1  ;;  %v362_v17 = vld [vmem:[#allocation2 + $0x68] sm:$0xff] }
 0x1a0   : > { %v1479_v22 = vpop.f32.mrb[11].mxu0  ;;  %v880_v24 = vpop.f32.mrb[9].mxu1 }
 0x1a1   : > { %v1480_v25 = vadd.f32 %v1479_v22, %v1478_v20  ;;  %v865_v26 = vadd.f32 %v1477_v19, %v864_v8  ;;  %v1554_v27 = vpop.f32.mrb[10].mxu1 }
 0x1a2   : > { %v883_v29 = vpop.f32.mrb[11].mxu1 }
 0x1a3   : > { %v915_v30 = vadd.f32 %v865_v26, %v353_v23  ;;  %v868_v31 = vadd.f32 %v1480_v25, %v867_v13  ;;  %v363_v25 = vld [vmem:[#allocation2 + $0x70] sm:$0xff] }
 0x1a5   : > { %931 = vst [vmem:[#allocation2 + $0x20] sm:$0xff] %v915_v30  ;;  %v916_v32 = vadd.f32 %v868_v31, %v354_v28  ;;  %v1481_v33 = vpop.f32.mrb[12].mxu0 }
 0x1a6   : > { %v1482_v34 = vpop.f32.mrb[13].mxu0 }
 0x1a7   : > { %932 = vst [vmem:[#allocation2 + $0x28] sm:$0xff] %v916_v32  ;;  %v1483_v35 = vadd.f32 %v1482_v34, %v1481_v33  ;;  %v1484_v36 = vpop.f32.mrb[14].mxu0  ;;  %v1557_v37 = vpop.f32.mrb[12].mxu1  ;;  %v947_v33 = vld [vmem:[#allocation2] sm:$0xff] (!%p1321_p8)  ;;  %v948_v34 = vld [vmem:[#allocation2 + $0x8] sm:$0xff] (!%p1321_p8) }
 0x1a8   : > { %v1485_v39 = vpop.f32.mrb[15].mxu0  ;;  %v896_v40 = vpop.f32.mrb[13].mxu1 }
 0x1a9   : > { %v873_v41 = vadd.f32 %v1549_v5, %v1483_v35  ;;  %v1486_v42 = vadd.f32 %v1485_v39, %v1484_v36  ;;  %v1558_v43 = vpop.f32.mrb[14].mxu1  ;;  %v360_v5 = vld [vmem:[#allocation2 + $0x58] sm:$0xff]  ;;  %v2232_v35 = vld [vmem:[#allocation8] ss:$0 sm:$0xff] (!%p1321_p8)  ;;  %v1362_v39 = vld [vmem:[#allocation9] sm:$0xff] (!%p1321_p8)  }
 0x1aa   : > { %v899_v45 = vpop.f32.mrb[15].mxu1  ;;  %v970_v36 = vadd.f32 (!%p1321_p8), %v2232_v35, %v947_v33 }
 0x1ab   : > { %v917_v46 = vadd.f32 %v873_v41, %v355_v38  ;;  %v876_v47 = vadd.f32 %v1550_v11, %v1486_v42  ;;  %v971_v38 = vadd.f32 (!%p1321_p8), %v2232_v35, %v948_v34  ;;  %v1363_v41 = vunpack.c.l.bf16 (!%p1321_p8), %v1362_v39 }
 0x1ac   : > { %v1364_v42 = vunpack.c.h.bf16 (!%p1321_p8), %v1362_v39 }
 0x1ad   : > { %933 = vst [vmem:[#allocation2 + $0x30] sm:$0xff] %v917_v46  ;;  %v918_v48 = vadd.f32 %v876_v47, %v356_v44  ;;  %v1487_v49 = vpop.f32.mrb[16].mxu0  ;;  %v951_v46 = vld [vmem:[#allocation2 + $0x20] sm:$0xff] (!%p1321_p8) }
 0x1ae   : > { %v1488_v50 = vpop.f32.mrb[17].mxu0  ;;  %v952_v47 = vld [vmem:[#allocation2 + $0x28] sm:$0xff] (!%p1321_p8) }
 0x1af   : > { %934 = vst [vmem:[#allocation2 + $0x38] sm:$0xff] %v918_v48  ;;  %v1489_v51 = vadd.f32 %v1488_v50, %v1487_v49  ;;  %v1490_v52 = vpop.f32.mrb[18].mxu0  ;;  %v974_v50 = vadd.f32 (!%p1321_p8), %v2232_v35, %v951_v46 }
 0x1b0   : > { %v1491_v53 = vpop.f32.mrb[19].mxu0 }
 0x1b1   : > { %v1492_v55 = vadd.f32 %v1491_v53, %v1490_v52  ;;  %v881_v56 = vadd.f32 %v1489_v51, %v880_v24  ;;  %v975_v51 = vadd.f32 (!%p1321_p8), %v2232_v35, %v952_v47  ;;  %v1434_v52 = vld [vmem:[#allocation9 + $0x10] sm:$0xff] (!%p1321_p8)  }
 0x1b3   : > { %v919_v58 = vadd.f32 %v881_v56, %v357_v54  ;;  %v884_v59 = vadd.f32 %v1492_v55, %v883_v29  ;;  %v364_v29 = vld [vmem:[#allocation2 + $0x78] sm:$0xff]  ;;  %v1018_v55 = vadd.f32 (!%p1321_p8), %v1363_v41, %v970_v36  ;;  %v1019_v56 = vadd.f32 (!%p1321_p8), %v1364_v42, %v971_v38 }
 0x1b4   : > { %v953_v53 = vld [vmem:[#allocation2 + $0x30] sm:$0xff] (!%p1321_p8) }
 0x1b5   : > { %935 = vst [vmem:[#allocation2 + $0x40] sm:$0xff] %v919_v58  ;;  %v920_v60 = vadd.f32 %v884_v59, %v358_v57  ;;  %v1493_v61 = vpop.f32.mrb[20].mxu0  ;;  %v1371_v57 = vunpack.c.l.bf16 (!%p1321_p8), %v1434_v52  ;;  %v1372_v58 = vunpack.c.h.bf16 (!%p1321_p8), %v1434_v52  ;;  %v1435_v59 = vld [vmem:[#allocation9 + $0x18] sm:$0xff] (!%p1321_p8)  }
 0x1b6   : > { %v1494_v62 = vpop.f32.mrb[21].mxu0  ;;  %v954_v54 = vld [vmem:[#allocation2 + $0x38] sm:$0xff] (!%p1321_p8) }
 0x1b7   : > { %936 = vst [vmem:[#allocation2 + $0x48] sm:$0xff] %v920_v60  ;;  %v1495_v63 = vadd.f32 %v1494_v62, %v1493_v61  ;;  %v1496_v0 = vpop.f32.mrb[22].mxu0  ;;  %v976_v62 = vadd.f32 (!%p1321_p8), %v2232_v35, %v953_v53 }
 0x1b8   : > { %v1497_v2 = vpop.f32.mrb[23].mxu0 }
 0x1b9   : > { %v889_v3 = vadd.f32 %v1553_v21, %v1495_v63  ;;  %v1498_v4 = vadd.f32 %v1497_v2, %v1496_v0  ;;  %v977_v63 = vadd.f32 (!%p1321_p8), %v2232_v35, %v954_v54  ;;  %v1035_v2 = vmax.f32 (!%p1321_p8), %v1019_v56, 0.0 }
 0x1bb   : > { %v921_v6 = vadd.f32 %v889_v3, %v359_v1  ;;  %v892_v7 = vadd.f32 %v1554_v27, %v1498_v4  ;;  %v1034_v1 = vmax.f32 (!%p1321_p8), %v1018_v55, 0.0  ;;  %v1022_v3 = vadd.f32 (!%p1321_p8), %v1371_v57, %v974_v50 }
 0x1bc   : > { %v955_v0 = vld [vmem:[#allocation2 + $0x40] sm:$0xff] (!%p1321_p8)  ;;  %v1023_v4 = vadd.f32 (!%p1321_p8), %v1372_v58, %v975_v51 }
 0x1bd   : > { %937 = vst [vmem:[#allocation2 + $0x50] sm:$0xff] %v921_v6  ;;  %v922_v8 = vadd.f32 %v892_v7, %v360_v5  ;;  %v1499_v9 = vpop.f32.mrb[24].mxu0 }
 0x1be   : > { %v1500_v10 = vpop.f32.mrb[25].mxu0  ;;  %v956_v5 = vld [vmem:[#allocation2 + $0x48] sm:$0xff] (!%p1321_p8) }
 0x1bf   : > { %938 = vst [vmem:[#allocation2 + $0x58] sm:$0xff] %v922_v8  ;;  %v1501_v11 = vadd.f32 %v1500_v10, %v1499_v9  ;;  %v1502_v12 = vpop.f32.mrb[26].mxu0  ;;  %v1375_v8 = vunpack.c.l.bf16 (!%p1321_p8), %v1435_v59  ;;  %v1376_v9 = vunpack.c.h.bf16 (!%p1321_p8), %v1435_v59  ;;  %v1436_v10 = vld [vmem:[#allocation9 + $0x20] sm:$0xff] (!%p1321_p8)  }
 0x1c0   : > { %v1503_v13 = vpop.f32.mrb[27].mxu0 }
 0x1c1   : > { %v1504_v15 = vadd.f32 %v1503_v13, %v1502_v12  ;;  %v897_v16 = vadd.f32 %v1501_v11, %v896_v40  ;;  %v950_v40 = vld [vmem:[#allocation2 + $0x18] sm:$0xff] (!%p1321_p8)  ;;  %v1396_v12 = vpack.c.bf16 (!%p1321_p8), %v1035_v2, %v1034_v1  ;;  %v1038_v13 = vmax.f32 (!%p1321_p8), %v1022_v3, 0.0 }
 0x1c2   : > { %v973_v44 = vadd.f32 (!%p1321_p8), %v2232_v35, %v950_v40 }
 0x1c3   : > { %v923_v18 = vadd.f32 %v897_v16, %v361_v14  ;;  %v900_v19 = vadd.f32 %v1504_v15, %v899_v45  ;;  %v1433_v45 = vld [vmem:[#allocation9 + $0x8] sm:$0xff] (!%p1321_p8)   ;;  %v1039_v14 = vmax.f32 (!%p1321_p8), %v1023_v4, 0.0  ;;  %v978_v15 = vadd.f32 (!%p1321_p8), %v2232_v35, %v955_v0  ;;  %1397 = vst [vmem:[#allocation11] sm:$0xff] (!%p1321_p8), %v1396_v12  }
 0x1c4   : > { %v1367_v48 = vunpack.c.l.bf16 (!%p1321_p8), %v1433_v45  ;;  %v1368_v49 = vunpack.c.h.bf16 (!%p1321_p8), %v1433_v45  ;;  %v957_v11 = vld [vmem:[#allocation2 + $0x50] sm:$0xff] (!%p1321_p8) }
 0x1c5   : > { %939 = vst [vmem:[#allocation2 + $0x60] sm:$0xff] %v923_v18  ;;  %v924_v20 = vadd.f32 %v900_v19, %v362_v17  ;;  %v1505_v21 = vpop.f32.mrb[28].mxu0  ;;  %v1437_v17 = vld [vmem:[#allocation9 + $0x28] sm:$0xff] (!%p1321_p8)   ;;  %v1024_v19 = vadd.f32 (!%p1321_p8), %v1375_v8, %v976_v62 }
 0x1c6   : > { %v1506_v22 = vpop.f32.mrb[29].mxu0  ;;  %v1021_v61 = vadd.f32 (!%p1321_p8), %v1368_v49, %v973_v44  ;;  %v958_v16 = vld [vmem:[#allocation2 + $0x58] sm:$0xff] (!%p1321_p8)  ;;  %v1384_v36 = vunpack.c.h.bf16 (!%p1321_p8), %v1437_v17 }
 0x1c7   : > { %940 = vst [vmem:[#allocation2 + $0x68] sm:$0xff] %v924_v20  ;;  %v1507_v23 = vadd.f32 %v1506_v22, %v1505_v21  ;;  %v1508_v24 = vpop.f32.mrb[30].mxu0  ;;  %v1025_v20 = vadd.f32 (!%p1321_p8), %v1376_v9, %v977_v63  ;;  %v979_v21 = vadd.f32 (!%p1321_p8), %v2232_v35, %v956_v5  ;;  %v1439_v44 = vld [vmem:[#allocation9 + $0x38] sm:$0xff] (!%p1321_p8)  }
 0x1c8   : > { %v1509_v26 = vpop.f32.mrb[31].mxu0  ;;  %v1037_v7 = vmax.f32 (!%p1321_p8), %v1021_v61, 0.0  ;;  %v1391_v56 = vunpack.c.l.bf16 (!%p1321_p8), %v1439_v44  ;;  %v1392_v58 = vunpack.c.h.bf16 (!%p1321_p8), %v1439_v44 }
 0x1c9   : > { %v905_v27 = vadd.f32 %v1557_v37, %v1507_v23  ;;  %v1510_v28 = vadd.f32 %v1509_v26, %v1508_v24  ;;  %946 = sbr.rel (%p1321_p8) target bundleno = 480 (0x1e0), region = 60  ;;  %v949_v37 = vld [vmem:[#allocation2 + $0x10] sm:$0xff] (!%p1321_p8)  ;;  %v1406_v23 = vpack.c.bf16 (!%p1321_p8), %v1039_v14, %v1038_v13  ;;  %v1379_v24 = vunpack.c.l.bf16 (!%p1321_p8), %v1436_v10 }
 0x1ca   : > { %v980_v26 = vadd.f32 (!%p1321_p8), %v2232_v35, %v957_v11 }
 0x1cb   : > { %v925_v30 = vadd.f32 %v905_v27, %v363_v25  ;;  %v908_v31 = vadd.f32 %v1558_v43, %v1510_v28  ;;  %v972_v43 = vadd.f32 (!%p1321_p8), %v2232_v35, %v949_v37  ;;  %v1380_v25 = vunpack.c.h.bf16 (!%p1321_p8), %v1436_v10  ;;  %v1438_v28 = vld [vmem:[#allocation9 + $0x30] sm:$0xff] (!%p1321_p8)   ;;  %1441 = vst [vmem:[#allocation11 + $0x10] sm:$0xff] (!%p1321_p8), %v1406_v23  }
 0x1cc   : > { %v959_v22 = vld [vmem:[#allocation2 + $0x60] sm:$0xff] (!%p1321_p8)  ;;  %v1026_v33 = vadd.f32 (!%p1321_p8), %v1379_v24, %v978_v15 }
 0x1cd   : > { %941 = vst [vmem:[#allocation2 + $0x70] sm:$0xff] %v925_v30  ;;  %v926_v32 = vadd.f32 %v908_v31, %v364_v29  ;;  %v1020_v60 = vadd.f32 (!%p1321_p8), %v1367_v48, %v972_v43  ;;  %v1040_v29 = vmax.f32 (!%p1321_p8), %v1024_v19, 0.0  ;;  %v1041_v30 = vmax.f32 (!%p1321_p8), %v1025_v20, 0.0 }
 0x1ce   : > { %v960_v27 = vld [vmem:[#allocation2 + $0x68] sm:$0xff] (!%p1321_p8)  ;;  %v981_v31 = vadd.f32 (!%p1321_p8), %v2232_v35, %v958_v16  ;;  %v1027_v34 = vadd.f32 (!%p1321_p8), %v1380_v25, %v979_v21  ;;  %v982_v38 = vadd.f32 (!%p1321_p8), %v2232_v35, %v959_v22  ;;  %v1387_v43 = vunpack.c.l.bf16 (!%p1321_p8), %v1438_v28 }
 0x1cf   : > { %942 = vst [vmem:[#allocation2 + $0x78] sm:$0xff] %v926_v32  ;;  %v1036_v6 = vmax.f32 (!%p1321_p8), %v1020_v60, 0.0  ;;  %v1383_v32 = vunpack.c.l.bf16 (!%p1321_p8), %v1437_v17  ;;  %v1411_v40 = vpack.c.bf16 (!%p1321_p8), %v1041_v30, %v1040_v29  ;;  %v983_v42 = vadd.f32 (!%p1321_p8), %v2232_v35, %v960_v27 }
 0x1d0   : > { %v1042_v45 = vmax.f32 %v1026_v33, 0.0  ;;  %v1043_v46 = vmax.f32 %v1027_v34, 0.0  ;;  %v1029_v47 = vadd.f32 %v1384_v36, %v981_v31  ;;  %v1388_v48 = vunpack.c.h.bf16 %v1438_v28 }
 0x1d1   : > { %v1401_v18 = vpack.c.bf16 %v1037_v7, %v1036_v6  ;;  %v1028_v41 = vadd.f32 %v1383_v32, %v980_v26  ;;  %1442 = vst [vmem:[#allocation11 + $0x18] sm:$0xff] %v1411_v40   ;;  %v1030_v50 = vadd.f32 %v1387_v43, %v982_v38 }
 0x1d2   : > { %v1416_v53 = vpack.c.bf16 %v1043_v46, %v1042_v45  ;;  %v1045_v54 = vmax.f32 %v1029_v47, 0.0  ;;  %v1031_v55 = vadd.f32 %v1388_v48, %v983_v42 }
 0x1d3   : > { %1440 = vst [vmem:[#allocation11 + $0x8] sm:$0xff] %v1401_v18   ;;  %v1044_v49 = vmax.f32 %v1028_v41, 0.0  ;;  %v1046_v57 = vmax.f32 %v1030_v50, 0.0 }
 0x1d4   : > { %v961_v39 = vld [vmem:[#allocation2 + $0x70] sm:$0xff]  ;;  %1443 = vst [vmem:[#allocation11 + $0x20] sm:$0xff] %v1416_v53   ;;  %v1047_v60 = vmax.f32 %v1031_v55, 0.0 }
 0x1d5   : > { %v984_v51 = vadd.f32 %v2232_v35, %v961_v39  ;;  %v1421_v59 = vpack.c.bf16 %v1045_v54, %v1044_v49 }
 0x1d6   : > { %v962_v37 = vld [vmem:[#allocation2 + $0x78] sm:$0xff]  ;;  %v1426_v63 = vpack.c.bf16 %v1047_v60, %v1046_v57 }
 0x1d7   : > { %v985_v52 = vadd.f32 %v2232_v35, %v962_v37  ;;  %v1032_v61 = vadd.f32 %v1391_v56, %v984_v51  ;;  %1444 = vst [vmem:[#allocation11 + $0x28] sm:$0xff] %v1421_v59  }
 0x1d8   : > { %1445 = vst [vmem:[#allocation11 + $0x30] sm:$0xff] %v1426_v63  }
 0x1d9   : > { %v1033_v62 = vadd.f32 %v1392_v58, %v985_v52  ;;  %v1048_v0 = vmax.f32 %v1032_v61, 0.0 }
 0x1db   : > { %v1049_v1 = vmax.f32 %v1033_v62, 0.0 }
 0x1dd   : > { %v1431_v2 = vpack.c.bf16 %v1049_v1, %v1048_v0 }
 0x1df   : > { %1446 = vst [vmem:[#allocation11 + $0x38] sm:$0xff] %v1431_v2  }
 0x1e0 PF: > { %p1597_p1 = scmp.eq.s32.totalorder %s1991_s21, 8  ;;  %s1934_s18 = smov [#allocation11]  }
 0x1e1   : > { %s1140_s23 = sshll.u32 %s1934_s18, 4  ;;  %s1141_s23 = int_to_ptr.vmem [resolvable:$true] %s1140_s23 }
 0x1e2   : > { %s1830_s24 = scalar_lea.vmem %s1141_s23, 1024  ;;  %p1837_p7 = scmp.lt.s32.totalorder %s1141_s23, %s1141_s23 }
 0x1e3   : > { %p1831_p2 = scmp.ne.s32.totalorder %s1141_s23, %s1830_s24  ;;  %p1838_p9 = scmp.lt.s32.totalorder %s1830_s24, %s1830_s24 }
 0x1e5   : > { %p1832_p12 = pnand %p1831_p2, %p1597_p1  ;;  %p1839_p6 = por %p1838_p9, %p1837_p7 }
 0x1e7   : > { %p1833_p4 = pneg %p1832_p12 }
 0x1e9   : > { %p1840_p5 = pnand %p1839_p6, %p1833_p4 }
 0x1eb   : > { %1843 = shalt.err (!%p1840_p5)
}
 0x1ec   : > { %s1844_s26 = scalar_lea.hbm %s2295_s4, 1024 }
 0x1ed   : > { %p1845_p3 = scmp.ne.s32.totalorder %s2295_s4, %s1844_s26  ;;  %p1850_p11 = scmp.lt.u32.totalorder %s1844_s26, %s2295_s4 }
 0x1ef   : > { %p1846_p10 = pnand %p1845_p3, %p1597_p1 }
 0x1f1   : > { %p1847_p0 = pneg %p1846_p10 }
 0x1f3   : > { %p1852_p13 = pnand %p1850_p11, %p1847_p0 }
 0x1f5   : > { %1855 = shalt.err (!%p1852_p13)
}
 0x1f6   : > { %s1935_s30 = smov 64   ;;  %s1936_s0 = smov 4  }
 0x1f7   : > { %1575 = dma.vmem_to_hbm [thread:$0]  (%p1597_p1), %s1141_s23, 1024, %s2295_s4, [#allocation5], %s1935_s30, %s1935_s30, %s1936_s0  }
 0x1f8   : > { %1897 = dma.done.wait (%p1597_p1), [#allocation5], 1024  }
 0x1f9   : > { %1899 = vsyncadd (%p1597_p1), [#allocation5], 4294966272 }
 0x1fa PF: > { %s22_s20 = sadd.s32 1, %s1922_s20   ;;  %s2317_s13 = smov %s2324_s15 }
 0x1fb   : > { %p19_p8 = scmp.ge.s32.totalorder %s22_s20, 11   ;;  %s2318_s15 = smov %s1906_s16 }
 0x1fc   : > { %s2319_s16 = smov %s1910_s17  ;;  %s2320_s17 = smov %s2089_s9 }
 0x1fd   : > { %s2321_s18 = smov %s1918_s19  ;;  %s2322_s19 = smov %s2317_s13 }
 0x1fe   :  { %21 = sbr.rel (!%p19_p8) target bundleno = 10 (0xa), region = 105 }
 0x205   :  { %1156 = vsyncpa [#allocation4], 1 }
 0x206   :  { %1158 = vsyncpa [#allocation4 + $0x1], 1 }
 0x207   :  { %1159 = vsyncpa [#allocation7], 1 }
 0x208   :  { %1161 = vsyncpa [#allocation7 + $0x1], 1 }
 0x209   :  { %1162 = vsyncpa [#allocation10], 1 }
 0x20a   :  { %1163 = vsyncpa [#allocation5], 1 }
 0x20b   :  { %1165 = vsyncpa [#allocation5 + $0x1], 1 }

// kernel: mri_model_forward.18
= control target key start
LH: loop header
LB: loop body
LE: loop exit
PB: predicated region body
PF: predicated region fallthrough
CT: control target
= control target key end

     0   :  { %8 = vsyncpa [#allocation4], 0  ;;  %s2038_s0 = inlined_call_operand.hbm [shape: bf16[128,3456], index: 0, kind: input, shape index: {}]   ;;  %s2039_s1 = inlined_call_operand.hbm [shape: bf16[3456,128], index: 1, kind: input, shape index: {}]   ;;  %s2040_s2 = inlined_call_operand.hbm [shape: f32[1,128], index: 2, kind: input, shape index: {}]   ;;  %s2041_s3 = inlined_call_operand.hbm [shape: bf16[128,128], index: 3, kind: output, shape index: {}]  }
   0x1   :  { %10 = vsyncpa [#allocation4 + $0x1], 0 }
   0x2   :  { %11 = vsyncpa [#allocation7], 0 }
   0x3   :  { %13 = vsyncpa [#allocation7 + $0x1], 0 }
   0x4   :  { %14 = vsyncpa [#allocation5], 0  ;;  %s1757_s12 = smov 0   ;;  %s1759_s13 = smov 0  }
   0x5   :  { %s1761_s14 = smov 0   ;;  %s1763_s15 = smov 0  }
   0x6   :  { %s1765_s16 = smov 0   ;;  %s1767_s17 = smov 0  }
   0x7 LB: > { %s1786_s18 = sadd.s32 4294967295, %s1723_s17   ;;  %s48_s19 = sadd.s32 1, %s1711_s14  ;;  %s1723_s17 = sphi %s1767_s17, %s20_s17   ;;  %s1719_s16 = sphi %s1765_s16, %s2059_s16   ;;  %s1715_s15 = sphi %s1763_s15, %s2058_s15   ;;  %s1711_s14 = sphi %s1761_s14, %s2057_s14   ;;  %s1707_s13 = sphi %s1759_s13, %s2056_s13   ;;  %s1703_s12 = sphi %s1757_s12, %s2055_s12  }
   0x8   : > { %p55_p0 = scmp.ne.s32.totalorder %s1711_s14, %s1707_s13  ;;  %p56_p1 = scmp.eq.s32.totalorder %s1723_s17, 0 }
   0x9   : > { %p61_p2 = scmp.ne.s32.totalorder %s1707_s13, %s1703_s12  ;;  %p2042_p3 = scmp.eq.s32.totalorder %s1786_s18, 0 }
   0xa   : > { %p57_p4 = por %p56_p1, %p55_p0  ;;  %p1147_p5 = scmp.ge.s32.totalorder %s1723_s17, 1 }
   0xb   : > { %p1797_p6 = por %p2042_p3, %p61_p2  ;;  %p154_p7 = scmp.lt.s32.totalorder %s1723_s17, 10 }
   0xc   : > { %s1725_s22 = smov [#allocation8]   ;;  %p1429_p10 = scmp.lt.s32.totalorder %s1723_s17, 9 }
   0xd   : > { %s2046_s20 = scalar_select %p1797_p6, 1, 0 }
   0xe   : > { %p1802_p8 = pnand %p1147_p5, %p154_p7  ;;  %s169_s23 = sshll.u32 %s1725_s22, 4  ;;  %s170_s23 = int_to_ptr.vmem [resolvable:$true] %s169_s23 }
   0xf   : > { %s180_s24 = sand.u32 1, %s1711_s14   ;;  %p1816_p12 = pnand %p1429_p10, %p57_p4 }
  0x10   : > { %s2047_s21 = scalar_select %p1802_p8, 1, 0 }
  0x11   : > { %p1417_p9 = pneg %p1802_p8  ;;  %s1547_s29 = scalar_lea.hbm %s2040_s2, 16 }
  0x12   : > { %s2049_s26 = scalar_select %p1816_p12, 1, 0 }
  0x13   : > { %p1812_p11 = pnand %p1417_p9, %p2042_p3  ;;  %p1548_p13 = scmp.ne.s32.totalorder %s2040_s2, %s1547_s29 }
  0x14   : > { %p1554_p5 = scmp.lt.u32.totalorder %s1547_s29, %s2040_s2 }
  0x15   : > { %p1549_p0 = pneg %p1812_p11 }
  0x17   : > { %p1550_p1 = pnand %p1549_p0, %p1548_p13 }
  0x19   : > { %p1551_p2 = pneg %p1550_p1 }
  0x1b   : > { %p1556_p4 = pnand %p1554_p5, %p1551_p2 }
  0x1d   : > { %1559 = shalt.err (!%p1556_p4)
}
  0x1e   : > { %s1560_s7 = scalar_lea.vmem %s170_s23, 16  ;;  %s1567_s8 = scalar_lea.vmem %s170_s23, 32 }
  0x1f   : > { %p1561_p7 = scmp.ne.s32.totalorder %s170_s23, %s1560_s7  ;;  %p1568_p3 = scmp.lt.s32.totalorder %s170_s23, %s170_s23 }
  0x20   : > { %p1569_p6 = scmp.lt.s32.totalorder %s1567_s8, %s1560_s7 }
  0x21   : > { %p1563_p9 = pnand %p1561_p7, %p1549_p0 }
  0x22   : > { %p1570_p8 = por %p1569_p6, %p1568_p3 }
  0x23   : > { %p1564_p10 = pneg %p1563_p9 }
  0x25   : > { %p1571_p12 = pnand %p1570_p8, %p1564_p10 }
  0x27   : > { %1574 = shalt.err (!%p1571_p12)
}
  0x28   : > { %1420 = dma.hbm_to_vmem [thread:$0]  (!%p1812_p11), %s2040_s2, 16, %s170_s23, [#allocation7]  }
  0x29   : > { %s32_s11 = sadd.s32 1, %s1719_s16  ;;  %s1839_s12 = smul.u32 192, %s180_s24 }
  0x2a   : > { %p33_p3 = scmp.ge.s32.totalorder %s32_s11, 9  ;;  %s1225_s22 = smul.u32 192, %s1719_s16 }
  0x2b   : > { %s184_s23 = scalar_lea.vmem [#allocation3], %s1839_s12  ;;  %s204_s4 = sand.u32 1, %s1723_s17  }
  0x2c   : > { %s2061_s11 = smov (%p33_p3, %s32_s11), 0  ;;  %s1847_s28 = scalar_lea.hbm %s2038_s0, %s1225_s22 }
  0x2d   : > { %s194_s29 = sshll.u32 %s184_s23, 4  ;;  %s44_s30 = ssub.s32 %s1719_s16, %s2061_s11  ;;  %s1852_s29 = int_to_ptr.vmem [resolvable:$true] %s194_s29 }
  0x2e   : > { %p46_p6 = scmp.eq.s32.totalorder %s44_s30, 0  ;;  %s1862_s6 = scalar_lea.sflag [#allocation4], %s180_s24 }
  0x2f   : > { %s1575_s7 = scalar_lea.hbm %s1847_s28, 3072  ;;  %p2050_p11 = scmp.ne.s32.totalorder %s2049_s26, 0 }
  0x30   : > { %s1858_s5 = scalar_select %p46_p6, %s1711_s14, %s48_s19  }
  0x31   : > { %p1576_p8 = scmp.ne.s32.totalorder %s1847_s28, %s1575_s7  ;;  %p1577_p12 = pneg %p2050_p11 }
  0x32   : > { %s1580_s10 = scalar_lea.hbm %s2038_s0, 27648  ;;  %p1581_p1 = scmp.lt.u32.totalorder %s1847_s28, %s2038_s0 }
  0x33   : > { %p1578_p13 = pnand %p1577_p12, %p1576_p8  ;;  %p1582_p2 = scmp.lt.u32.totalorder %s1580_s10, %s1575_s7 }
  0x34   : > { %p1584_p4 = scmp.lt.u32.totalorder %s1575_s7, %s1847_s28 }
  0x35   : > { %p1579_p0 = pneg %p1578_p13  ;;  %p1583_p5 = por %p1582_p2, %p1581_p1 }
  0x37   : > { %p1585_p7 = por %p1584_p4, %p1583_p5 }
  0x39   : > { %p1586_p9 = pnand %p1585_p7, %p1579_p0 }
  0x3b   : > { %1589 = shalt.err (!%p1586_p9)
}
  0x3c   : > { %s1590_s19 = scalar_lea.vmem %s1852_s29, 3072  ;;  %s1726_s24 = smov [#allocation3]  }
  0x3d   : > { %p1591_p10 = scmp.ne.s32.totalorder %s1852_s29, %s1590_s19  ;;  %s1595_s27 = sshll.u32 %s1726_s24, 4  ;;  %s1596_s27 = int_to_ptr.vmem [resolvable:$false] %s1595_s27 }
  0x3e   : > { %s1597_s23 = scalar_lea.vmem %s1596_s27, 6144  ;;  %p1598_p8 = scmp.lt.s32.totalorder %s1852_s29, %s1596_s27 }
  0x3f   : > { %p1593_p3 = pnand %p1591_p10, %p1577_p12  ;;  %p1599_p13 = scmp.lt.s32.totalorder %s1597_s23, %s1590_s19 }
  0x41   : > { %p1594_p6 = pneg %p1593_p3  ;;  %p1600_p1 = por %p1599_p13, %p1598_p8 }
  0x43   : > { %p1601_p2 = pnand %p1600_p1, %p1594_p6 }
  0x45   : > { %1604 = shalt.err (!%p1601_p2)
}
  0x46   : > { %s1727_s30 = smov 1728   ;;  %s1728_s7 = smov 192  }
  0x47   : > { %s1729_s8 = smov 12   ;;  %s1226_s9 = smul.u32 3072, %s1719_s16 }
  0x48   : > { %1424 = dma.hbm_to_vmem [thread:$0]  (!%p2050_p11), %s1847_s28, 3072, %s1852_s29, %s1862_s6, %s1727_s30, %s1728_s7, %s1729_s8  }
  0x49   : > { %s208_s10 = scalar_lea.vmem [#allocation6], %s1839_s12  ;;  %s1897_s24 = scalar_lea.hbm %s2039_s1, %s1226_s9 }
  0x4a   : > { %s216_s22 = sshll.u32 %s208_s10, 4  ;;  %s1901_s27 = scalar_lea.sflag [#allocation7], %s204_s4  ;;  %s1892_s22 = int_to_ptr.vmem [resolvable:$true] %s216_s22 }
  0x4b   : > { %s1605_s23 = scalar_lea.hbm %s1897_s24, 3072  ;;  %s1610_s29 = scalar_lea.hbm %s2039_s1, 27648 }
  0x4c   : > { %p1606_p0 = scmp.ne.s32.totalorder %s1897_s24, %s1605_s23  ;;  %p1611_p7 = scmp.lt.u32.totalorder %s1897_s24, %s2039_s1 }
  0x4d   : > { %p1612_p9 = scmp.lt.u32.totalorder %s1610_s29, %s1605_s23  ;;  %p1614_p3 = scmp.lt.u32.totalorder %s1605_s23, %s1897_s24 }
  0x4e   : > { %p1608_p5 = pnand %p1606_p0, %p1577_p12 }
  0x4f   : > { %p1613_p10 = por %p1612_p9, %p1611_p7 }
  0x50   : > { %p1609_p4 = pneg %p1608_p5 }
  0x51   : > { %p1615_p6 = por %p1614_p3, %p1613_p10 }
  0x53   : > { %p1616_p8 = pnand %p1615_p6, %p1609_p4 }
  0x55   : > { %1619 = shalt.err (!%p1616_p8)
}
  0x56   : > { %s1620_s4 = scalar_lea.vmem %s1892_s22, 3072  ;;  %s1730_s7 = smov [#allocation6]  }
  0x57   : > { %p1621_p13 = scmp.ne.s32.totalorder %s1892_s22, %s1620_s4  ;;  %s1625_s8 = sshll.u32 %s1730_s7, 4  ;;  %s1626_s8 = int_to_ptr.vmem [resolvable:$false] %s1625_s8 }
  0x58   : > { %s1627_s9 = scalar_lea.vmem %s1626_s8, 6144  ;;  %p1628_p0 = scmp.lt.s32.totalorder %s1892_s22, %s1626_s8 }
  0x59   : > { %p1623_p1 = pnand %p1621_p13, %p1577_p12  ;;  %p1629_p5 = scmp.lt.s32.totalorder %s1627_s9, %s1620_s4 }
  0x5b   : > { %p1624_p2 = pneg %p1623_p1  ;;  %p1630_p7 = por %p1629_p5, %p1628_p0 }
  0x5d   : > { %p1631_p9 = pnand %p1630_p7, %p1624_p2 }
  0x5f   : > { %1634 = shalt.err (!%p1631_p9)
}
  0x60   : > { %s1731_s10 = smov 64   ;;  %s1732_s25 = smov 4  }
  0x61   : > { %1427 = dma.hbm_to_vmem [thread:$0]  (!%p2050_p11), %s1897_s24, 3072, %s1892_s22, %s1901_s27, %s1731_s10, %s1731_s10, %s1732_s25  }
  0x62   : > { %p2051_p12 = scmp.ne.s32.totalorder %s2047_s21, 0 }
  0x63   : > { %s230_s19 = sand.u32 (!%p2051_p12), 1, %s1707_s13   ;;  %p2052_p4 = scmp.ne.s32.totalorder (!%p2051_p12), %s2046_s20, 0 }
  0x64   : > { %228 = sbr.rel (%p2051_p12) target bundleno = 475 (0x1db), region = 32  ;;  %s231_s12 = scalar_lea.sflag (!%p2051_p12), [#allocation4], %s230_s19 }
  0x65   : > { %s1404_s23 = smul.u32 (!%p2051_p12), 192, %s230_s19 }
  0x67   : > { %s1930_s28 = scalar_lea.vmem (!%p2051_p12), [#allocation3], %s1404_s23 }
  0x6b   : > { %1686 = dma.done.wait (%p2052_p4), %s231_s12, 3072  }
  0x6c   : > { %1688 = vsyncadd (%p2052_p4), %s231_s12, 4294964224  ;;  %s239_s29 = sand.u32 1, %s1786_s18   ;;  %s1937_s22 = scalar_lea.vmem [#allocation6], %s1404_s23 }
  0x6d   : > { %s240_s26 = scalar_lea.sflag [#allocation7], %s239_s29 }
  0x6e   : > { %1690 = dma.done.wait (%p2052_p4), %s240_s26, 3072  }
  0x6f   : > { %1692 = vsyncadd (%p2052_p4), %s240_s26, 4294964224  ;;  %p2053_p11 = scmp.eq.s32.totalorder %s1786_s18, 0 }
  0x71   : > { %1694 = dma.done.wait (%p2053_p11), [#allocation7], 16   ;;  %p2054_p10 = pmov %p2053_p11 }
  0x72   : > { %p1154_p3 = scmp.ne.s32.totalorder %s1715_s15, 0 }
  0x73   : > { %1696 = vsyncadd (%p2054_p10), [#allocation7], 4294967280  ;;  %v1733_v0 = vmov (!%p1154_p3), 0.0  }
  0x74   : > { %278 = sbr.rel (%p1154_p3) target bundleno = 124 (0x7c), region = 48  ;;  %279 = vst [vmem:[#allocation2] sm:$0xff] (!%p1154_p3), %v1733_v0  ;;  %280 = vst [vmem:[#allocation2 + $0x8] sm:$0xff] (!%p1154_p3), %v1733_v0 }
  0x75   : > { %281 = vst [vmem:[#allocation2 + $0x10] sm:$0xff] (!%p1154_p3), %v1733_v0  ;;  %282 = vst [vmem:[#allocation2 + $0x18] sm:$0xff] (!%p1154_p3), %v1733_v0 }
  0x76   : > { %283 = vst [vmem:[#allocation2 + $0x20] sm:$0xff] (!%p1154_p3), %v1733_v0  ;;  %284 = vst [vmem:[#allocation2 + $0x28] sm:$0xff] (!%p1154_p3), %v1733_v0 }
  0x77   : > { %285 = vst [vmem:[#allocation2 + $0x30] sm:$0xff] (!%p1154_p3), %v1733_v0  ;;  %286 = vst [vmem:[#allocation2 + $0x38] sm:$0xff] (!%p1154_p3), %v1733_v0 }
  0x78   : > { %287 = vst [vmem:[#allocation2 + $0x40] sm:$0xff] (!%p1154_p3), %v1733_v0  ;;  %288 = vst [vmem:[#allocation2 + $0x48] sm:$0xff] (!%p1154_p3), %v1733_v0 }
  0x79   : > { %289 = vst [vmem:[#allocation2 + $0x50] sm:$0xff] (!%p1154_p3), %v1733_v0  ;;  %290 = vst [vmem:[#allocation2 + $0x58] sm:$0xff] (!%p1154_p3), %v1733_v0 }
  0x7a   : > { %291 = vst [vmem:[#allocation2 + $0x60] sm:$0xff] (!%p1154_p3), %v1733_v0  ;;  %292 = vst [vmem:[#allocation2 + $0x68] sm:$0xff] (!%p1154_p3), %v1733_v0 }
  0x7b   : > { %293 = vst [vmem:[#allocation2 + $0x70] sm:$0xff] %v1733_v0  ;;  %294 = vst [vmem:[#allocation2 + $0x78] sm:$0xff] %v1733_v0 }
  0x7c PF: > { %v1491_v1 = vld [vmem:[%s1937_s22 + $0x40] sm:$0xff]   ;;  %v1494_v4 = vld [vmem:[%s1937_s22 + $0x48] sm:$0xff]   ;;  %v1497_v7 = vld [vmem:[%s1937_s22 + $0x50] sm:$0xff]   ;;  %p1203_p6 = scmp.ne.s32.totalorder %s1715_s15, 8 }
  0x7d   : > { %v1492_v2 = vld [vmem:[%s1937_s22] sm:$0xff]   ;;  %1290 = vmatprep.subr.bf16.mxu0 %v1491_v1  ;;  %v1495_v5 = vld [vmem:[%s1937_s22 + $0x8] sm:$0xff]   ;;  %v1498_v8 = vld [vmem:[%s1937_s22 + $0x10] sm:$0xff]  }
  0x7e   : > { %v1493_v3 = vld [vmem:[%s1937_s22 + $0x80] sm:$0xff]   ;;  %1291 = vmatpush3.bf16.msra.mxu0 %v1492_v2  ;;  %v1496_v6 = vld [vmem:[%s1937_s22 + $0x88] sm:$0xff]   ;;  %v1499_v9 = vld [vmem:[%s1937_s22 + $0x90] sm:$0xff]  }
  0x7f   : > { %1370 = vmatprep.subr.bf16.mxu1 %v1493_v3  ;;  %1292 = vmatprep.subr.bf16.mxu0 %v1494_v4  ;;  %v1500_v10 = vld [vmem:[%s1937_s22 + $0x58] sm:$0xff]   ;;  %v1503_v13 = vld [vmem:[%s1937_s22 + $0x60] sm:$0xff]   ;;  %v1506_v16 = vld [vmem:[%s1937_s22 + $0x68] sm:$0xff]  }
  0x80   : > { %1371 = vmatpush3.bf16.msra.mxu1 %v1493_v3  ;;  %v1501_v11 = vld [vmem:[%s1937_s22 + $0x18] sm:$0xff]   ;;  %v1505_v14 = vld [vmem:[%s1937_s22 + $0xa0] sm:$0xff]   ;;  %v1508_v17 = vld [vmem:[%s1937_s22 + $0xa8] sm:$0xff]  }
  0x81   : > { %1372 = vmatprep.subr.bf16.mxu1 %v1496_v6  ;;  %v1502_v12 = vld [vmem:[%s1937_s22 + $0x98] sm:$0xff]   ;;  %v1504_v15 = vld [vmem:[%s1937_s22 + $0x20] sm:$0xff]   ;;  %v1507_v18 = vld [vmem:[%s1937_s22 + $0x28] sm:$0xff]  }
  0x82   : > { %1293 = vmatpush3.bf16.msra.mxu0 %v1495_v5  ;;  %v1509_v19 = vld [vmem:[%s1937_s22 + $0x70] sm:$0xff]   ;;  %v1512_v22 = vld [vmem:[%s1937_s22 + $0x78] sm:$0xff]   ;;  %v1515_v27 = vld [vmem:[%s1930_s28] ss:$12 sps:$4 sm:$0xff]  }
  0x83   : > { %1294 = vmatprep.subr.bf16.mxu0 %v1497_v7  ;;  %v1510_v20 = vld [vmem:[%s1937_s22 + $0x30] sm:$0xff]   ;;  %v1514_v23 = vld [vmem:[%s1937_s22 + $0xb8] sm:$0xff]   ;;  %v1519_v29 = vld [vmem:[%s1930_s28 + $0x20] ss:$12 sps:$4 sm:$0xff]  }
  0x84   : > { %1373 = vmatpush3.bf16.msra.mxu1 %v1496_v6  ;;  %v1511_v21 = vld [vmem:[%s1937_s22 + $0xb0] sm:$0xff]   ;;  %v1513_v26 = vld [vmem:[%s1937_s22 + $0x38] sm:$0xff]   ;;  %v1535_v37 = vld [vmem:[%s1930_s28 + $0x80] ss:$12 sps:$4 sm:$0xff]  }
  0x85   : > { %1374 = vmatprep.subr.bf16.mxu1 %v1499_v9  ;;  %v1517_v24 = vld [vmem:[%s1930_s28 + $0x4] ss:$12 sps:$4 sm:$0xff]   ;;  %v1518_v25 = vld [vmem:[%s1930_s28 + $0x8] ss:$12 sps:$4 sm:$0xff]   ;;  %v1528_v36 = vld [vmem:[%s1930_s28 + $0x4c] ss:$12 sps:$4 sm:$0xff]  }
  0x86   : > { %1295 = vmatpush3.bf16.msra.mxu0 %v1498_v8  ;;  %695 = vmatprep.mubr.bf16.mxu0 %v1517_v24  ;;  %v1520_v28 = vld [vmem:[%s1930_s28 + $0x1c] ss:$12 sps:$4 sm:$0xff]   ;;  %v1526_v30 = vld [vmem:[%s1930_s28 + $0x38] ss:$12 sps:$4 sm:$0xff]   ;;  %v1523_v32 = vld [vmem:[%s1930_s28 + $0x34] ss:$12 sps:$4 sm:$0xff]  }
  0x87   : > { %1296 = vmatprep.subr.bf16.mxu0 %v1500_v10  ;;  %1386 = vmatprep.mubr.bf16.mxu1 %v1518_v25  ;;  %v1522_v31 = vld [vmem:[%s1930_s28 + $0x18] ss:$12 sps:$4 sm:$0xff]   ;;  %v1527_v33 = vld [vmem:[%s1930_s28 + $0x50] ss:$12 sps:$4 sm:$0xff]   ;;  %v1534_v34 = vld [vmem:[%s1930_s28 + $0x68] ss:$12 sps:$4 sm:$0xff]  }
  0x88   : > { %1375 = vmatpush3.bf16.msra.mxu1 %v1499_v9  ;;  %v1525_v35 = vld [vmem:[%s1930_s28 + $0x30] ss:$12 sps:$4 sm:$0xff]   ;;  %v1542_v38 = vld [vmem:[%s1930_s28 + $0x98] ss:$12 sps:$4 sm:$0xff]   ;;  %v1530_v39 = vld [vmem:[%s1930_s28 + $0x48] ss:$12 sps:$4 sm:$0xff]  }
  0x89   : > { %1376 = vmatprep.subr.bf16.mxu1 %v1502_v12  ;;  %v1531_v40 = vld [vmem:[%s1930_s28 + $0x64] ss:$12 sps:$4 sm:$0xff]   ;;  %v1533_v42 = vld [vmem:[%s1930_s28 + $0x60] ss:$12 sps:$4 sm:$0xff]   ;;  %v1536_v43 = vld [vmem:[%s1930_s28 + $0x7c] ss:$12 sps:$4 sm:$0xff]  }
  0x8a   : > { %1297 = vmatpush3.bf16.msra.mxu0 %v1501_v11  ;;  %v1543_v41 = vld [vmem:[%s1930_s28 + $0xb0] ss:$12 sps:$4 sm:$0xff]   ;;  %v1538_v44 = vld [vmem:[%s1930_s28 + $0x78] ss:$12 sps:$4 sm:$0xff]   ;;  %v1539_v45 = vld [vmem:[%s1930_s28 + $0x94] ss:$12 sps:$4 sm:$0xff]  }
  0x8b   : > { %1298 = vmatprep.subr.bf16.mxu0 %v1503_v13  ;;  %v1541_v46 = vld [vmem:[%s1930_s28 + $0x90] ss:$12 sps:$4 sm:$0xff]   ;;  %v1544_v47 = vld [vmem:[%s1930_s28 + $0xac] ss:$12 sps:$4 sm:$0xff]   ;;  %v1546_v48 = vld [vmem:[%s1930_s28 + $0xa8] ss:$12 sps:$4 sm:$0xff]  }
  0x8c   : > { %1377 = vmatpush3.bf16.msra.mxu1 %v1502_v12  ;;  %v295_v55 = vld [vmem:[#allocation2] sm:$0xff]  ;;  %v296_v60 = vld [vmem:[#allocation2 + $0x8] sm:$0xff]  ;;  %v297_v6 = vld [vmem:[#allocation2 + $0x10] sm:$0xff] }
  0x8d   : > { %1378 = vmatprep.subr.bf16.mxu1 %v1505_v14  ;;  %v298_v12 = vld [vmem:[#allocation2 + $0x18] sm:$0xff] }
  0x8e   : > { %1299 = vmatpush3.bf16.msra.mxu0 %v1504_v15 }
  0x8f   : > { %1300 = vmatprep.subr.bf16.mxu0 %v1506_v16 }
  0x90   : > { %1379 = vmatpush3.bf16.msra.mxu1 %v1505_v14 }
  0x91   : > { %1380 = vmatprep.subr.bf16.mxu1 %v1508_v17 }
  0x92   : > { %1301 = vmatpush3.bf16.msra.mxu0 %v1507_v18 }
  0x93   : > { %1302 = vmatprep.subr.bf16.mxu0 %v1509_v19 }
  0x94   : > { %1381 = vmatpush3.bf16.msra.mxu1 %v1508_v17 }
  0x95   : > { %1382 = vmatprep.subr.bf16.mxu1 %v1511_v21 }
  0x96   : > { %1303 = vmatpush3.bf16.msra.mxu0 %v1510_v20 }
  0x97   : > { %1304 = vmatprep.subr.bf16.mxu0 %v1512_v22 }
  0x98   : > { %1383 = vmatpush3.bf16.msra.mxu1 %v1511_v21 }
  0x99   : > { %1384 = vmatprep.subr.bf16.mxu1 %v1514_v23 }
  0x9a   : > { %1305 = vmatpush3.bf16.msra.mxu0 %v1513_v26 }
  0x9c   : > { %1385 = vmatpush3.bf16.msra.mxu1 %v1514_v23  ;;  %v299_v23 = vld [vmem:[#allocation2 + $0x20] sm:$0xff] }
  0x9d   : > { %696 = vmatmul.mubr.bf16.vlgmr.msra.gmra.mrb[0].mxu0 %v1515_v27 }
  0x9e   : > { %703 = vmatprep.mubr.bf16.mxu0 %v1520_v28  ;;  %v300_v28 = vld [vmem:[#allocation2 + $0x28] sm:$0xff] }
  0x9f   : > { %1387 = vmatmul.mubr.bf16.vlgmr.msra.gmra.mrb[0].mxu1 %v1519_v29 }
  0xa0   : > { %1390 = vmatprep.mubr.bf16.mxu1 %v1526_v30 }
  0xa5   : > { %704 = vmatmul.mubr.bf16.gmra.mrb[4].mxu0 %v1522_v31 }
  0xa6   : > { %711 = vmatprep.mubr.bf16.mxu0 %v1523_v32 }
  0xa7   : > { %1391 = vmatmul.mubr.bf16.gmra.mrb[4].mxu1 %v1527_v33 }
  0xa8   : > { %1394 = vmatprep.mubr.bf16.mxu1 %v1534_v34 }
  0xad   : > { %712 = vmatmul.mubr.bf16.gmra.mrb[8].mxu0 %v1525_v35 }
  0xae   : > { %719 = vmatprep.mubr.bf16.mxu0 %v1528_v36 }
  0xaf   : > { %1395 = vmatmul.mubr.bf16.gmra.mrb[8].mxu1 %v1535_v37 }
  0xb0   : > { %1398 = vmatprep.mubr.bf16.mxu1 %v1542_v38  ;;  %v301_v38 = vld [vmem:[#allocation2 + $0x30] sm:$0xff] }
  0xb5   : > { %720 = vmatmul.mubr.bf16.gmra.mrb[12].mxu0 %v1530_v39 }
  0xb6   : > { %727 = vmatprep.mubr.bf16.mxu0 %v1531_v40 }
  0xb7   : > { %1399 = vmatmul.mubr.bf16.gmra.mrb[12].mxu1 %v1543_v41 }
  0xbd   : > { %728 = vmatmul.mubr.bf16.gmra.mrb[16].mxu0 %v1533_v42 }
  0xbe   : > { %735 = vmatprep.mubr.bf16.mxu0 %v1536_v43 }
  0xc5   : > { %736 = vmatmul.mubr.bf16.gmra.mrb[20].mxu0 %v1538_v44  ;;  %v302_v44 = vld [vmem:[#allocation2 + $0x38] sm:$0xff] }
  0xc6   : > { %743 = vmatprep.mubr.bf16.mxu0 %v1539_v45 }
  0xcd   : > { %744 = vmatmul.mubr.bf16.gmra.mrb[24].mxu0 %v1541_v46 }
  0xce   : > { %751 = vmatprep.mubr.bf16.mxu0 %v1544_v47 }
  0xd5   : > { %752 = vmatmul.mubr.bf16.gmra.mrb[28].mxu0 %v1546_v48 }
 0x170   : > { %v1306_v49 = vpop.f32.mrb[0].mxu0 }
 0x171   : > { %v1307_v50 = vpop.f32.mrb[1].mxu0 }
 0x172   : > { %v1308_v51 = vadd.f32 %v1307_v50, %v1306_v49  ;;  %v1309_v52 = vpop.f32.mrb[2].mxu0  ;;  %v1388_v53 = vpop.f32.mrb[0].mxu1 }
 0x173   : > { %v1310_v54 = vpop.f32.mrb[3].mxu0  ;;  %v794_v56 = vpop.f32.mrb[1].mxu1 }
 0x174   : > { %v1311_v57 = vadd.f32 %v1310_v54, %v1309_v52  ;;  %v795_v58 = vadd.f32 %v1308_v51, %v794_v56  ;;  %v1389_v59 = vpop.f32.mrb[2].mxu1  ;;  %v303_v54 = vld [vmem:[#allocation2 + $0x40] sm:$0xff] }
 0x175   : > { %v797_v61 = vpop.f32.mrb[3].mxu1 }
 0x176   : > { %v857_v62 = vadd.f32 %v795_v58, %v295_v55  ;;  %v798_v63 = vadd.f32 %v1311_v57, %v797_v61  ;;  %v304_v57 = vld [vmem:[#allocation2 + $0x48] sm:$0xff] }
 0x178   : > { %873 = vst [vmem:[#allocation2] sm:$0xff] %v857_v62  ;;  %v858_v0 = vadd.f32 %v798_v63, %v296_v60  ;;  %v1312_v1 = vpop.f32.mrb[4].mxu0 }
 0x179   : > { %v1313_v2 = vpop.f32.mrb[5].mxu0 }
 0x17a   : > { %874 = vst [vmem:[#allocation2 + $0x8] sm:$0xff] %v858_v0  ;;  %v1314_v3 = vadd.f32 %v1313_v2, %v1312_v1  ;;  %v1315_v4 = vpop.f32.mrb[6].mxu0  ;;  %v1392_v5 = vpop.f32.mrb[4].mxu1  ;;  %v305_v1 = vld [vmem:[#allocation2 + $0x50] sm:$0xff] }
 0x17b   : > { %v1316_v7 = vpop.f32.mrb[7].mxu0  ;;  %v810_v8 = vpop.f32.mrb[5].mxu1 }
 0x17c   : > { %v803_v9 = vadd.f32 %v1388_v53, %v1314_v3  ;;  %v1317_v10 = vadd.f32 %v1316_v7, %v1315_v4  ;;  %v1393_v11 = vpop.f32.mrb[6].mxu1 }
 0x17d   : > { %v813_v13 = vpop.f32.mrb[7].mxu1 }
 0x17e   : > { %v859_v14 = vadd.f32 %v803_v9, %v297_v6  ;;  %v806_v15 = vadd.f32 %v1389_v59, %v1317_v10 }
 0x180   : > { %875 = vst [vmem:[#allocation2 + $0x10] sm:$0xff] %v859_v14  ;;  %v860_v16 = vadd.f32 %v806_v15, %v298_v12  ;;  %v1318_v17 = vpop.f32.mrb[8].mxu0  ;;  %v307_v14 = vld [vmem:[#allocation2 + $0x60] sm:$0xff] }
 0x181   : > { %v1319_v18 = vpop.f32.mrb[9].mxu0 }
 0x182   : > { %876 = vst [vmem:[#allocation2 + $0x18] sm:$0xff] %v860_v16  ;;  %v1320_v19 = vadd.f32 %v1319_v18, %v1318_v17  ;;  %v1321_v20 = vpop.f32.mrb[10].mxu0  ;;  %v1396_v21 = vpop.f32.mrb[8].mxu1  ;;  %v308_v17 = vld [vmem:[#allocation2 + $0x68] sm:$0xff] }
 0x183   : > { %v1322_v22 = vpop.f32.mrb[11].mxu0  ;;  %v826_v24 = vpop.f32.mrb[9].mxu1 }
 0x184   : > { %v1323_v25 = vadd.f32 %v1322_v22, %v1321_v20  ;;  %v811_v26 = vadd.f32 %v1320_v19, %v810_v8  ;;  %v1397_v27 = vpop.f32.mrb[10].mxu1 }
 0x185   : > { %v829_v29 = vpop.f32.mrb[11].mxu1 }
 0x186   : > { %v861_v30 = vadd.f32 %v811_v26, %v299_v23  ;;  %v814_v31 = vadd.f32 %v1323_v25, %v813_v13  ;;  %v309_v25 = vld [vmem:[#allocation2 + $0x70] sm:$0xff] }
 0x188   : > { %877 = vst [vmem:[#allocation2 + $0x20] sm:$0xff] %v861_v30  ;;  %v862_v32 = vadd.f32 %v814_v31, %v300_v28  ;;  %v1324_v33 = vpop.f32.mrb[12].mxu0 }
 0x189   : > { %v1325_v34 = vpop.f32.mrb[13].mxu0 }
 0x18a   : > { %878 = vst [vmem:[#allocation2 + $0x28] sm:$0xff] %v862_v32  ;;  %v1326_v35 = vadd.f32 %v1325_v34, %v1324_v33  ;;  %v1327_v36 = vpop.f32.mrb[14].mxu0  ;;  %v1400_v37 = vpop.f32.mrb[12].mxu1  ;;  %v893_v33 = vld [vmem:[#allocation2] sm:$0xff] (!%p1203_p6)  ;;  %v894_v34 = vld [vmem:[#allocation2 + $0x8] sm:$0xff] (!%p1203_p6) }
 0x18b   : > { %v1328_v39 = vpop.f32.mrb[15].mxu0  ;;  %v842_v40 = vpop.f32.mrb[13].mxu1 }
 0x18c   : > { %v819_v41 = vadd.f32 %v1392_v5, %v1326_v35  ;;  %v1329_v42 = vadd.f32 %v1328_v39, %v1327_v36  ;;  %v1401_v43 = vpop.f32.mrb[14].mxu1  ;;  %v306_v5 = vld [vmem:[#allocation2 + $0x58] sm:$0xff]  ;;  %v1204_v35 = vld [vmem:[#allocation8] ss:$0 sm:$0xff] (!%p1203_p6)  ;;  %v895_v39 = vld [vmem:[#allocation2 + $0x10] sm:$0xff] (!%p1203_p6) }
 0x18d   : > { %v845_v45 = vpop.f32.mrb[15].mxu1  ;;  %v916_v36 = vadd.f32 (!%p1203_p6), %v1204_v35, %v893_v33 }
 0x18e   : > { %v863_v46 = vadd.f32 %v819_v41, %v301_v38  ;;  %v822_v47 = vadd.f32 %v1393_v11, %v1329_v42  ;;  %v917_v38 = vadd.f32 (!%p1203_p6), %v1204_v35, %v894_v34  ;;  %v918_v42 = vadd.f32 (!%p1203_p6), %v1204_v35, %v895_v39 }
 0x18f   : > { %v897_v41 = vld [vmem:[#allocation2 + $0x20] sm:$0xff] (!%p1203_p6) }
 0x190   : > { %879 = vst [vmem:[#allocation2 + $0x30] sm:$0xff] %v863_v46  ;;  %v864_v48 = vadd.f32 %v822_v47, %v302_v44  ;;  %v1330_v49 = vpop.f32.mrb[16].mxu0  ;;  %v932_v47 = vmax.f32 (!%p1203_p6), %v916_v36, 0.0 }
 0x191   : > { %v1331_v50 = vpop.f32.mrb[17].mxu0  ;;  %v898_v44 = vld [vmem:[#allocation2 + $0x28] sm:$0xff] (!%p1203_p6) }
 0x192   : > { %880 = vst [vmem:[#allocation2 + $0x38] sm:$0xff] %v864_v48  ;;  %v1332_v51 = vadd.f32 %v1331_v50, %v1330_v49  ;;  %v1333_v52 = vpop.f32.mrb[18].mxu0  ;;  %v933_v48 = vmax.f32 (!%p1203_p6), %v917_v38, 0.0  ;;  %v921_v49 = vadd.f32 (!%p1203_p6), %v1204_v35, %v898_v44 }
 0x193   : > { %v1334_v53 = vpop.f32.mrb[19].mxu0 }
 0x194   : > { %v1335_v55 = vadd.f32 %v1334_v53, %v1333_v52  ;;  %v827_v56 = vadd.f32 %v1332_v51, %v826_v24 }
 0x196   : > { %v865_v58 = vadd.f32 %v827_v56, %v303_v54  ;;  %v830_v59 = vadd.f32 %v1335_v55, %v829_v29  ;;  %v310_v29 = vld [vmem:[#allocation2 + $0x78] sm:$0xff]  ;;  %v934_v54 = vmax.f32 (!%p1203_p6), %v918_v42, 0.0 }
 0x197   : > { %v899_v46 = vld [vmem:[#allocation2 + $0x30] sm:$0xff] (!%p1203_p6) }
 0x198   : > { %881 = vst [vmem:[#allocation2 + $0x40] sm:$0xff] %v865_v58  ;;  %v866_v60 = vadd.f32 %v830_v59, %v304_v57  ;;  %v1336_v61 = vpop.f32.mrb[20].mxu0  ;;  %v922_v50 = vadd.f32 (!%p1203_p6), %v1204_v35, %v899_v46 }
 0x199   : > { %v1337_v62 = vpop.f32.mrb[21].mxu0 }
 0x19a   : > { %882 = vst [vmem:[#allocation2 + $0x48] sm:$0xff] %v866_v60  ;;  %v1338_v63 = vadd.f32 %v1337_v62, %v1336_v61  ;;  %v1339_v0 = vpop.f32.mrb[22].mxu0  ;;  %v1246_v60 = vpack.c.bf16 (!%p1203_p6), %v933_v48, %v932_v47  ;;  %v937_v61 = vmax.f32 (!%p1203_p6), %v921_v49, 0.0  ;;  %v938_v62 = vmax.f32 (!%p1203_p6), %v922_v50, 0.0 }
 0x19b   : > { %v1340_v2 = vpop.f32.mrb[23].mxu0 }
 0x19c   : > { %v835_v3 = vadd.f32 %v1396_v21, %v1338_v63  ;;  %v1341_v4 = vadd.f32 %v1340_v2, %v1339_v0  ;;  %1247 = vst [vmem:[#allocation9] sm:$0xff] (!%p1203_p6), %v1246_v60  }
 0x19e   : > { %v867_v6 = vadd.f32 %v835_v3, %v305_v1  ;;  %v838_v7 = vadd.f32 %v1397_v27, %v1341_v4 }
 0x19f   : > { %v901_v51 = vld [vmem:[#allocation2 + $0x40] sm:$0xff] (!%p1203_p6) }
 0x1a0   : > { %883 = vst [vmem:[#allocation2 + $0x50] sm:$0xff] %v867_v6  ;;  %v868_v8 = vadd.f32 %v838_v7, %v306_v5  ;;  %v1342_v9 = vpop.f32.mrb[24].mxu0  ;;  %v924_v63 = vadd.f32 (!%p1203_p6), %v1204_v35, %v901_v51 }
 0x1a1   : > { %v1343_v10 = vpop.f32.mrb[25].mxu0  ;;  %v902_v52 = vld [vmem:[#allocation2 + $0x48] sm:$0xff] (!%p1203_p6) }
 0x1a2   : > { %884 = vst [vmem:[#allocation2 + $0x58] sm:$0xff] %v868_v8  ;;  %v1344_v11 = vadd.f32 %v1343_v10, %v1342_v9  ;;  %v1345_v12 = vpop.f32.mrb[26].mxu0  ;;  %v925_v3 = vadd.f32 (!%p1203_p6), %v1204_v35, %v902_v52  ;;  %v940_v8 = vmax.f32 (!%p1203_p6), %v924_v63, 0.0 }
 0x1a3   : > { %v1346_v13 = vpop.f32.mrb[27].mxu0 }
 0x1a4   : > { %v1347_v15 = vadd.f32 %v1346_v13, %v1345_v12  ;;  %v843_v16 = vadd.f32 %v1344_v11, %v842_v40  ;;  %v896_v40 = vld [vmem:[#allocation2 + $0x18] sm:$0xff] (!%p1203_p6)  ;;  %v941_v12 = vmax.f32 (!%p1203_p6), %v925_v3, 0.0 }
 0x1a6   : > { %v869_v18 = vadd.f32 %v843_v16, %v307_v14  ;;  %v846_v19 = vadd.f32 %v1347_v15, %v845_v45  ;;  %v920_v45 = vadd.f32 (!%p1203_p6), %v1204_v35, %v897_v41 }
 0x1a7   : > { %v903_v53 = vld [vmem:[#allocation2 + $0x50] sm:$0xff] (!%p1203_p6) }
 0x1a8   : > { %885 = vst [vmem:[#allocation2 + $0x60] sm:$0xff] %v869_v18  ;;  %v870_v20 = vadd.f32 %v846_v19, %v308_v17  ;;  %v1348_v21 = vpop.f32.mrb[28].mxu0  ;;  %v936_v56 = vmax.f32 (!%p1203_p6), %v920_v45, 0.0  ;;  %v926_v4 = vadd.f32 (!%p1203_p6), %v1204_v35, %v903_v53  ;;  %v1266_v19 = vpack.c.bf16 (!%p1203_p6), %v941_v12, %v940_v8 }
 0x1a9   : > { %v1349_v22 = vpop.f32.mrb[29].mxu0  ;;  %v904_v58 = vld [vmem:[#allocation2 + $0x58] sm:$0xff] (!%p1203_p6) }
 0x1aa   : > { %886 = vst [vmem:[#allocation2 + $0x68] sm:$0xff] %v870_v20  ;;  %v1350_v23 = vadd.f32 %v1349_v22, %v1348_v21  ;;  %v1351_v24 = vpop.f32.mrb[30].mxu0  ;;  %v1256_v7 = vpack.c.bf16 (!%p1203_p6), %v937_v61, %v936_v56  ;;  %v927_v9 = vadd.f32 (!%p1203_p6), %v1204_v35, %v904_v58  ;;  %v942_v13 = vmax.f32 (!%p1203_p6), %v926_v4, 0.0  ;;  %1286 = vst [vmem:[#allocation9 + $0x20] sm:$0xff] (!%p1203_p6), %v1266_v19  }
 0x1ab   : > { %v1352_v26 = vpop.f32.mrb[31].mxu0 }
 0x1ac   : > { %v851_v27 = vadd.f32 %v1400_v37, %v1350_v23  ;;  %v1353_v28 = vadd.f32 %v1352_v26, %v1351_v24  ;;  %892 = sbr.rel (%p1203_p6) target bundleno = 449 (0x1c1), region = 52  ;;  %v919_v37 = vadd.f32 (!%p1203_p6), %v1204_v35, %v896_v40  ;;  %1284 = vst [vmem:[#allocation9 + $0x10] sm:$0xff] (!%p1203_p6), %v1256_v7   ;;  %v943_v15 = vmax.f32 (!%p1203_p6), %v927_v9, 0.0 }
 0x1ae   : > { %v871_v30 = vadd.f32 %v851_v27, %v309_v25  ;;  %v854_v31 = vadd.f32 %v1401_v43, %v1353_v28  ;;  %v900_v43 = vld [vmem:[#allocation2 + $0x38] sm:$0xff] (!%p1203_p6)  ;;  %v935_v55 = vmax.f32 (!%p1203_p6), %v919_v37, 0.0  ;;  %v1271_v21 = vpack.c.bf16 (!%p1203_p6), %v943_v15, %v942_v13 }
 0x1af   : > { %v923_v57 = vadd.f32 (!%p1203_p6), %v1204_v35, %v900_v43  ;;  %v905_v59 = vld [vmem:[#allocation2 + $0x60] sm:$0xff] (!%p1203_p6) }
 0x1b0   : > { %887 = vst [vmem:[#allocation2 + $0x70] sm:$0xff] %v871_v30  ;;  %v872_v32 = vadd.f32 %v854_v31, %v310_v29  ;;  %v1251_v1 = vpack.c.bf16 (!%p1203_p6), %v935_v55, %v934_v54  ;;  %v928_v10 = vadd.f32 (!%p1203_p6), %v1204_v35, %v905_v59  ;;  %1287 = vst [vmem:[#allocation9 + $0x28] sm:$0xff] (!%p1203_p6), %v1271_v21  }
 0x1b1   : > { %v906_v0 = vld [vmem:[#allocation2 + $0x68] sm:$0xff] (!%p1203_p6)  ;;  %v939_v2 = vmax.f32 (!%p1203_p6), %v923_v57, 0.0 }
 0x1b2   : > { %888 = vst [vmem:[#allocation2 + $0x78] sm:$0xff] %v872_v32  ;;  %1283 = vst [vmem:[#allocation9 + $0x8] sm:$0xff] (!%p1203_p6), %v1251_v1   ;;  %v929_v14 = vadd.f32 (!%p1203_p6), %v1204_v35, %v906_v0  ;;  %v944_v16 = vmax.f32 (!%p1203_p6), %v928_v10, 0.0 }
 0x1b3   : > { %v1261_v11 = vpack.c.bf16 %v939_v2, %v938_v62 }
 0x1b4   : > { %v945_v20 = vmax.f32 %v929_v14, 0.0 }
 0x1b5   : > { %1285 = vst [vmem:[#allocation9 + $0x18] sm:$0xff] %v1261_v11  }
 0x1b6   : > { %v1276_v24 = vpack.c.bf16 %v945_v20, %v944_v16 }
 0x1b7   : > { %v907_v5 = vld [vmem:[#allocation2 + $0x70] sm:$0xff] }
 0x1b8   : > { %v930_v17 = vadd.f32 %v1204_v35, %v907_v5  ;;  %1288 = vst [vmem:[#allocation9 + $0x30] sm:$0xff] %v1276_v24  }
 0x1b9   : > { %v908_v6 = vld [vmem:[#allocation2 + $0x78] sm:$0xff] }
 0x1ba   : > { %v931_v18 = vadd.f32 %v1204_v35, %v908_v6  ;;  %v946_v22 = vmax.f32 %v930_v17, 0.0 }
 0x1bc   : > { %v947_v23 = vmax.f32 %v931_v18, 0.0 }
 0x1be   : > { %v1281_v25 = vpack.c.bf16 %v947_v23, %v946_v22 }
 0x1c0   : > { %1289 = vst [vmem:[#allocation9 + $0x38] sm:$0xff] %v1281_v25  }
 0x1c1 PF: > { %p1431_p8 = scmp.eq.s32.totalorder %s1786_s18, 8  ;;  %s1734_s15 = smov [#allocation9]  }
 0x1c2   : > { %s1038_s20 = sshll.u32 %s1734_s15, 4  ;;  %s1039_s20 = int_to_ptr.vmem [resolvable:$true] %s1038_s20 }
 0x1c3   : > { %s1635_s21 = scalar_lea.vmem %s1039_s20, 1024  ;;  %p1642_p0 = scmp.lt.s32.totalorder %s1039_s20, %s1039_s20 }
 0x1c4   : > { %p1636_p13 = scmp.ne.s32.totalorder %s1039_s20, %s1635_s21  ;;  %p1643_p5 = scmp.lt.s32.totalorder %s1635_s21, %s1635_s21 }
 0x1c6   : > { %p1637_p1 = pnand %p1636_p13, %p1431_p8  ;;  %p1644_p7 = por %p1643_p5, %p1642_p0 }
 0x1c8   : > { %p1638_p2 = pneg %p1637_p1 }
 0x1ca   : > { %p1645_p9 = pnand %p1644_p7, %p1638_p2 }
 0x1cc   : > { %1648 = shalt.err (!%p1645_p9)
}
 0x1cd   : > { %s1649_s6 = scalar_lea.hbm %s2041_s3, 1024 }
 0x1ce   : > { %p1650_p12 = scmp.ne.s32.totalorder %s2041_s3, %s1649_s6  ;;  %p1655_p10 = scmp.lt.u32.totalorder %s1649_s6, %s2041_s3 }
 0x1d0   : > { %p1651_p4 = pnand %p1650_p12, %p1431_p8 }
 0x1d2   : > { %p1652_p11 = pneg %p1651_p4 }
 0x1d4   : > { %p1657_p3 = pnand %p1655_p10, %p1652_p11 }
 0x1d6   : > { %1660 = shalt.err (!%p1657_p3)
}
 0x1d7   : > { %s1735_s9 = smov 64   ;;  %s1736_s10 = smov 4  }
 0x1d8   : > { %1414 = dma.vmem_to_hbm [thread:$0]  (%p1431_p8), %s1039_s20, 1024, %s2041_s3, [#allocation5], %s1735_s9, %s1735_s9, %s1736_s10  }
 0x1d9   : > { %1698 = dma.done.wait (%p1431_p8), [#allocation5], 1024  }
 0x1da   : > { %1700 = vsyncadd (%p1431_p8), [#allocation5], 4294966272 }
 0x1db PF: > { %s20_s17 = sadd.s32 1, %s1723_s17   ;;  %s2055_s12 = smov %s1707_s13 }
 0x1dc   : > { %p17_p6 = scmp.ge.s32.totalorder %s20_s17, 11   ;;  %s2056_s13 = smov %s1711_s14 }
 0x1dd   : > { %s2057_s14 = smov %s1858_s5  ;;  %s2058_s15 = smov %s1719_s16 }
 0x1de   : > { %s2059_s16 = smov %s2061_s11  ;;  %19 = sbr.rel (!%p17_p6) target bundleno = 7 (0x7), region = 96 }
 0x1e5   :  { %1054 = vsyncpa [#allocation4], 1 }
 0x1e6   :  { %1056 = vsyncpa [#allocation4 + $0x1], 1 }
 0x1e7   :  { %1057 = vsyncpa [#allocation7], 1 }
 0x1e8   :  { %1059 = vsyncpa [#allocation7 + $0x1], 1 }
 0x1e9   :  { %1060 = vsyncpa [#allocation5], 1 }
 0x1ea   :  { %1062 = vsyncpa [#allocation5 + $0x1], 1 }

</bundles_post_ra>
